<compile_context>
chip_gen: v5e
topology: v5e:2x2
jax: 0.10.0
libtpu: 0.0.40
codegen_flags: <defaults>
</compile_context>

<pallas_src>
import jax
import jax.numpy as jnp
from jax.experimental import pallas as pl
from jax.experimental.pallas import tpu as pltpu

# Model hyper-parameters (n_layers = 1, equal hid dims per the Seq2Seq asserts).
SRC_VOCAB = 16
TRG_VOCAB = 16
EMB = 32
HID = 128
BATCH = 4
SRC_LEN = 8
MAX_LEN = 8

B_PAD = 8        # pad batch to the f32 sublane count
V_PAD = 128      # lane-dense logits / one-hot width


# ----------------------------------------------------------------------------
# LSTM cell: gate inputs (x@Wih [+ b]) are precomputed; only h@Whh is here.
# ----------------------------------------------------------------------------
def _lstm_cell(gates_in, h, c, whh_ref):
    gates = gates_in + jnp.dot(h.astype(jnp.bfloat16), whh_ref[...],
                               preferred_element_type=jnp.float32)
    i = jax.nn.sigmoid(gates[:, 0 * HID:1 * HID])
    f = jax.nn.sigmoid(gates[:, 1 * HID:2 * HID])
    g = jnp.tanh(gates[:, 2 * HID:3 * HID])
    o = jax.nn.sigmoid(gates[:, 3 * HID:4 * HID])
    c_new = f * c + i * g
    h_new = o * jnp.tanh(c_new)
    return h_new, c_new


# ----------------------------------------------------------------------------
# Fused encoder + decoder kernel.  No grid: single invocation, fully-unrolled
# in-kernel time loops (Python `for` == fully unrolled loop; all ref indices
# are static).  h/c carry encoder -> decoder as live values (no HBM round-trip).
# ----------------------------------------------------------------------------
def _seq2seq_kernel(tf_ref,                 # SMEM (MAX_LEN,) f32 teacher-force flags
                    enc_xg_ref,             # (SRC_LEN, B_PAD, 4H) f32: x@Wih + b
                    enc_whh_ref,            # (HID, 4H) bf16
                    tf_g_ref,               # (MAX_LEN, B_PAD, 4H) f32: emb(trg)@Wih
                    dec_whh_ref,            # (HID, 4H) bf16
                    dec_b_ref,              # (B_PAD, 4H) f32
                    emb_wih_ref,            # (V_PAD, 4H) bf16: emb table @ Wih
                    wfc_ref,                # (HID, V_PAD) bf16
                    bfc_ref,                # (B_PAD, V_PAD) f32
                    logits_ref):            # out: (MAX_LEN-1, B_PAD, V_PAD) f32
    # ---------------- encoder ----------------
    h = jnp.zeros((B_PAD, HID), jnp.float32)
    c = jnp.zeros((B_PAD, HID), jnp.float32)
    for t in range(SRC_LEN):
        h, c = _lstm_cell(enc_xg_ref[t], h, c, enc_whh_ref)

    # ---------------- decoder ----------------
    dec_b = dec_b_ref[...]
    bfc = bfc_ref[...]
    # argmax helpers built once, reused by every unrolled step
    ids = jax.lax.broadcasted_iota(jnp.int32, (B_PAD, V_PAD), 1)
    ids_f = ids.astype(jnp.float32)
    valid = ids < TRG_VOCAB

    gate_x = tf_g_ref[0]                    # input = emb(trg[0]) @ Wih (no bias)
    for s in range(MAX_LEN - 1):            # s = t - 1 in the PyTorch loop
        h, c = _lstm_cell(gate_x + dec_b, h, c, dec_whh_ref)

        logits = jnp.dot(h.astype(jnp.bfloat16), wfc_ref[...],
                         preferred_element_type=jnp.float32) + bfc
        logits_ref[s] = logits

        if s + 1 < MAX_LEN - 1:
            # greedy top-1 over the real vocab (first-occurrence tie break),
            # expressed as a lane-dense one-hot; feedback folded through Wih.
            masked = jnp.where(valid, logits, -1e30)
            mx = jnp.max(masked, axis=1, keepdims=True)
            first = jnp.min(jnp.where(masked == mx, ids_f, float(V_PAD)),
                            axis=1, keepdims=True)
            top1_oh = jnp.where(ids_f == first, 1.0, 0.0).astype(jnp.bfloat16)
            model_g = jnp.dot(top1_oh, emb_wih_ref[...],
                              preferred_element_type=jnp.float32)
            # teacher-forcing select for the NEXT step's gate input (trg[s+1])
            sel = tf_ref[s + 1]
            gate_x = sel * tf_g_ref[s + 1] + (1.0 - sel) * model_g


# ----------------------------------------------------------------------------
# One-time parameter prep (pads, casts, bias broadcasts, emb@Wih fold).
# ----------------------------------------------------------------------------
def prepare_params(params):
    f32, bf16 = jnp.float32, jnp.bfloat16
    dec_emb_pad = jnp.pad(params["dec_emb"],
                          ((0, V_PAD - TRG_VOCAB), (0, 0)))           # (128, E)
    return {
        "enc_emb": params["enc_emb"].astype(f32),
        "dec_emb": params["dec_emb"].astype(f32),
        "enc_wih": params["enc_wih"].astype(f32),                     # (E, 4H)
        "dec_wih": params["dec_wih"].astype(f32),
        "enc_b":   params["enc_b"].astype(f32),                       # (1, 4H)
        "enc_whh": params["enc_whh"].astype(bf16),                    # (H, 4H)
        "dec_whh": params["dec_whh"].astype(bf16),
        "dec_b":   jnp.broadcast_to(params["dec_b"],
                                    (B_PAD, 4 * HID)).astype(f32),
        # emb(v) @ Wih for every padded vocab id: folds the decoder feedback
        # embedding-lookup + input projection into a single one_hot matmul.
        "emb_wih": jnp.dot(dec_emb_pad, params["dec_wih"]).astype(bf16),
        "wfc": jnp.pad(params["dec_fc_w"],
                       ((0, 0), (0, V_PAD - TRG_VOCAB))).astype(bf16),
        "bfc": jnp.broadcast_to(
            jnp.pad(params["dec_fc_b"], ((0, 0), (0, V_PAD - TRG_VOCAB))),
            (B_PAD, V_PAD)).astype(f32),
    }


# ----------------------------------------------------------------------------
# Seq2Seq forward (mirrors the PyTorch module's forward), fully jitted.
# ----------------------------------------------------------------------------
@jax.jit
def seq2seq_forward(prepped, src, trg, teacher_forcing_ratio, tf_key):
    f32 = jnp.float32

    # Deterministic stand-in for the per-step `random.random() < ratio`.
    tf_flags = (jax.random.uniform(tf_key, (MAX_LEN,))
                < teacher_forcing_ratio).astype(f32)

    # Encoder input projection hoisted out of the recurrence:
    # one (S*B_PAD, E) @ (E, 4H) matmul instead of one per timestep.
    emb_src = jnp.take(prepped["enc_emb"], src, axis=0)               # (S, B, E)
    emb_src = jnp.pad(emb_src, ((0, 0), (0, B_PAD - BATCH), (0, 0)))
    enc_xg = (jnp.einsum("sbe,eh->sbh", emb_src, prepped["enc_wih"])
              + prepped["enc_b"]).astype(f32)                         # (S, B_PAD, 4H)

    # Decoder teacher-forcing inputs projected to gate space (no bias).
    x_tf = jnp.take(prepped["dec_emb"], trg, axis=0)                  # (T, B, E)
    x_tf = jnp.pad(x_tf, ((0, 0), (0, B_PAD - BATCH), (0, 0)))
    tf_g = jnp.einsum("tbe,eh->tbh", x_tf, prepped["dec_wih"]).astype(f32)

    vmem = pltpu.MemorySpace.VMEM
    smem = pltpu.MemorySpace.SMEM
    dec_logits = pl.pallas_call(
        _seq2seq_kernel,
        in_specs=[
            pl.BlockSpec(memory_space=smem),     # tf flags
            pl.BlockSpec(memory_space=vmem),     # enc_xg
            pl.BlockSpec(memory_space=vmem),     # enc_whh
            pl.BlockSpec(memory_space=vmem),     # tf_g
            pl.BlockSpec(memory_space=vmem),     # dec_whh
            pl.BlockSpec(memory_space=vmem),     # dec_b
            pl.BlockSpec(memory_space=vmem),     # emb_wih
            pl.BlockSpec(memory_space=vmem),     # wfc
            pl.BlockSpec(memory_space=vmem),     # bfc
        ],
        out_specs=pl.BlockSpec(memory_space=vmem),
        out_shape=jax.ShapeDtypeStruct((MAX_LEN - 1, B_PAD, V_PAD), jnp.float32),
    )(tf_flags, enc_xg, prepped["enc_whh"],
      tf_g, prepped["dec_whh"], prepped["dec_b"],
      prepped["emb_wih"], prepped["wfc"], prepped["bfc"])

    # Slice away batch/vocab padding; outputs[0] stays all-zeros like the
    # torch.zeros(...) row in the PyTorch forward.
    logits = dec_logits[:, :BATCH, :TRG_VOCAB]
    outputs = jnp.concatenate(
        [jnp.zeros((1, BATCH, TRG_VOCAB), f32), logits], axis=0)
    return outputs      # (max_len, batch, trg_vocab)


# ----------------------------------------------------------------------------
# Deterministic parameter init (uniform(-0.08, 0.08), tutorial-style)
# ----------------------------------------------------------------------------
def init_params(key):
    ks = jax.random.split(key, 10)
    u = lambda k, shape: jax.random.uniform(k, shape, jnp.float32, -0.08, 0.08)
    return {
        "enc_emb": u(ks[0], (SRC_VOCAB, EMB)),
        "enc_wih": u(ks[1], (EMB, 4 * HID)),
        "enc_whh": u(ks[2], (HID, 4 * HID)),
        "enc_b":   u(ks[3], (1, 4 * HID)),    # b_ih + b_hh combined
        "dec_emb": u(ks[4], (TRG_VOCAB, EMB)),
        "dec_wih": u(ks[5], (EMB, 4 * HID)),
        "dec_whh": u(ks[6], (HID, 4 * HID)),
        "dec_b":   u(ks[7], (1, 4 * HID)),
        "dec_fc_w": u(ks[8], (HID, TRG_VOCAB)),
        "dec_fc_b": u(ks[9], (1, TRG_VOCAB)),
    }


if __name__ == "__main__":
    root = jax.random.PRNGKey(0)
    k_params, k_src, k_trg, k_tf = jax.random.split(root, 4)

    params = init_params(k_params)
    prepped = prepare_params(params)
    src = jax.random.randint(k_src, (SRC_LEN, BATCH), 0, SRC_VOCAB, jnp.int32)
    trg = jax.random.randint(k_trg, (MAX_LEN, BATCH), 0, TRG_VOCAB, jnp.int32)

    outputs = seq2seq_forward(prepped, src, trg, 0.5, k_tf)
    outputs = jax.block_until_ready(outputs)

    assert outputs.shape == (MAX_LEN, BATCH, TRG_VOCAB)
    assert bool(jnp.all(outputs[0] == 0.0))
    assert bool(jnp.all(jnp.isfinite(outputs)))
    print("KERNEL_OK")
</pallas_src>

<mosaic_0001>
module attributes {stable_mosaic.version = 11 : i64} {
  func.func @_seq2seq_kernel(%arg0: memref<8xf32, #tpu.memory_space<smem>>, %arg1: memref<8x8x512xf32, #tpu.memory_space<vmem>>, %arg2: memref<128x512xbf16, #tpu.memory_space<vmem>>, %arg3: memref<8x8x512xf32, #tpu.memory_space<vmem>>, %arg4: memref<128x512xbf16, #tpu.memory_space<vmem>>, %arg5: memref<8x512xf32, #tpu.memory_space<vmem>>, %arg6: memref<128x512xbf16, #tpu.memory_space<vmem>>, %arg7: memref<128x128xbf16, #tpu.memory_space<vmem>>, %arg8: memref<8x128xf32, #tpu.memory_space<vmem>>, %arg9: memref<7x8x128xf32, #tpu.memory_space<vmem>>) attributes {dimension_semantics = [], scalar_prefetch = 0 : i64, scratch_operands = 0 : i64, tpu.core_type = #tpu.core_type<tc>} {
    %cst = arith.constant 0.000000e+00 : f32
    %0 = vector.broadcast %cst : f32 to vector<8x128xf32>
    %cst_0 = arith.constant 0.000000e+00 : f32
    %1 = vector.broadcast %cst_0 : f32 to vector<8x128xf32>
    %c0 = arith.constant 0 : index
    %c0_1 = arith.constant 0 : index
    %c0_2 = arith.constant 0 : index
    %2 = vector.load %arg1[%c0, %c0_1, %c0_2] : memref<8x8x512xf32, #tpu.memory_space<vmem>>, vector<1x8x512xf32>
    %3 = vector.shape_cast %2 : vector<1x8x512xf32> to vector<8x512xf32>
    %4 = arith.truncf %0 : vector<8x128xf32> to vector<8x128xbf16>
    %c0_3 = arith.constant 0 : index
    %c0_4 = arith.constant 0 : index
    %5 = vector.load %arg2[%c0_3, %c0_4] : memref<128x512xbf16, #tpu.memory_space<vmem>>, vector<128x512xbf16>
    %cst_5 = arith.constant dense<0.000000e+00> : vector<8x512xf32>
    %6 = tpu.matmul %4, %5, %cst_5 {dimension_numbers = #tpu.dot_dimension_numbers<[1], [0], [0], [1], [0, 0, 1, 1], [], []>} : vector<8x128xbf16>, vector<128x512xbf16>, vector<8x512xf32> -> vector<8x512xf32>
    %7 = arith.addf %3, %6 : vector<8x512xf32>
    %8 = vector.extract_strided_slice %7 {offsets = [0, 0], sizes = [8, 128], strides = [1, 1]} : vector<8x512xf32> to vector<8x128xf32>
    %9 = arith.negf %8 : vector<8x128xf32>
    %10 = math.exp %9 : vector<8x128xf32>
    %cst_6 = arith.constant 1.000000e+00 : f32
    %11 = vector.broadcast %cst_6 : f32 to vector<8x128xf32>
    %12 = arith.addf %11, %10 : vector<8x128xf32>
    %13 = arith.divf %11, %12 : vector<8x128xf32>
    %14 = vector.extract_strided_slice %7 {offsets = [0, 128], sizes = [8, 128], strides = [1, 1]} : vector<8x512xf32> to vector<8x128xf32>
    %15 = arith.negf %14 : vector<8x128xf32>
    %16 = math.exp %15 : vector<8x128xf32>
    %cst_7 = arith.constant 1.000000e+00 : f32
    %17 = vector.broadcast %cst_7 : f32 to vector<8x128xf32>
    %18 = arith.addf %17, %16 : vector<8x128xf32>
    %19 = arith.divf %17, %18 : vector<8x128xf32>
    %20 = vector.extract_strided_slice %7 {offsets = [0, 256], sizes = [8, 128], strides = [1, 1]} : vector<8x512xf32> to vector<8x128xf32>
    %21 = math.tanh %20 : vector<8x128xf32>
    %22 = vector.extract_strided_slice %7 {offsets = [0, 384], sizes = [8, 128], strides = [1, 1]} : vector<8x512xf32> to vector<8x128xf32>
    %23 = arith.negf %22 : vector<8x128xf32>
    %24 = math.exp %23 : vector<8x128xf32>
    %cst_8 = arith.constant 1.000000e+00 : f32
    %25 = vector.broadcast %cst_8 : f32 to vector<8x128xf32>
    %26 = arith.addf %25, %24 : vector<8x128xf32>
    %27 = arith.divf %25, %26 : vector<8x128xf32>
    %28 = arith.mulf %19, %1 : vector<8x128xf32>
    %29 = arith.mulf %13, %21 : vector<8x128xf32>
    %30 = arith.addf %28, %29 : vector<8x128xf32>
    %31 = math.tanh %30 : vector<8x128xf32>
    %32 = arith.mulf %27, %31 : vector<8x128xf32>
    %c1 = arith.constant 1 : index
    %c0_9 = arith.constant 0 : index
    %c0_10 = arith.constant 0 : index
    %33 = vector.load %arg1[%c1, %c0_9, %c0_10] : memref<8x8x512xf32, #tpu.memory_space<vmem>>, vector<1x8x512xf32>
    %34 = vector.shape_cast %33 : vector<1x8x512xf32> to vector<8x512xf32>
    %35 = arith.truncf %32 : vector<8x128xf32> to vector<8x128xbf16>
    %c0_11 = arith.constant 0 : index
    %c0_12 = arith.constant 0 : index
    %36 = vector.load %arg2[%c0_11, %c0_12] : memref<128x512xbf16, #tpu.memory_space<vmem>>, vector<128x512xbf16>
    %cst_13 = arith.constant dense<0.000000e+00> : vector<8x512xf32>
    %37 = tpu.matmul %35, %36, %cst_13 {dimension_numbers = #tpu.dot_dimension_numbers<[1], [0], [0], [1], [0, 0, 1, 1], [], []>} : vector<8x128xbf16>, vector<128x512xbf16>, vector<8x512xf32> -> vector<8x512xf32>
    %38 = arith.addf %34, %37 : vector<8x512xf32>
    %39 = vector.extract_strided_slice %38 {offsets = [0, 0], sizes = [8, 128], strides = [1, 1]} : vector<8x512xf32> to vector<8x128xf32>
    %40 = arith.negf %39 : vector<8x128xf32>
    %41 = math.exp %40 : vector<8x128xf32>
    %cst_14 = arith.constant 1.000000e+00 : f32
    %42 = vector.broadcast %cst_14 : f32 to vector<8x128xf32>
    %43 = arith.addf %42, %41 : vector<8x128xf32>
    %44 = arith.divf %42, %43 : vector<8x128xf32>
    %45 = vector.extract_strided_slice %38 {offsets = [0, 128], sizes = [8, 128], strides = [1, 1]} : vector<8x512xf32> to vector<8x128xf32>
    %46 = arith.negf %45 : vector<8x128xf32>
    %47 = math.exp %46 : vector<8x128xf32>
    %cst_15 = arith.constant 1.000000e+00 : f32
    %48 = vector.broadcast %cst_15 : f32 to vector<8x128xf32>
    %49 = arith.addf %48, %47 : vector<8x128xf32>
    %50 = arith.divf %48, %49 : vector<8x128xf32>
    %51 = vector.extract_strided_slice %38 {offsets = [0, 256], sizes = [8, 128], strides = [1, 1]} : vector<8x512xf32> to vector<8x128xf32>
    %52 = math.tanh %51 : vector<8x128xf32>
    %53 = vector.extract_strided_slice %38 {offsets = [0, 384], sizes = [8, 128], strides = [1, 1]} : vector<8x512xf32> to vector<8x128xf32>
    %54 = arith.negf %53 : vector<8x128xf32>
    %55 = math.exp %54 : vector<8x128xf32>
    %cst_16 = arith.constant 1.000000e+00 : f32
    %56 = vector.broadcast %cst_16 : f32 to vector<8x128xf32>
    %57 = arith.addf %56, %55 : vector<8x128xf32>
    %58 = arith.divf %56, %57 : vector<8x128xf32>
    %59 = arith.mulf %50, %30 : vector<8x128xf32>
    %60 = arith.mulf %44, %52 : vector<8x128xf32>
    %61 = arith.addf %59, %60 : vector<8x128xf32>
    %62 = math.tanh %61 : vector<8x128xf32>
    %63 = arith.mulf %58, %62 : vector<8x128xf32>
    %c2 = arith.constant 2 : index
    %c0_17 = arith.constant 0 : index
    %c0_18 = arith.constant 0 : index
    %64 = vector.load %arg1[%c2, %c0_17, %c0_18] : memref<8x8x512xf32, #tpu.memory_space<vmem>>, vector<1x8x512xf32>
    %65 = vector.shape_cast %64 : vector<1x8x512xf32> to vector<8x512xf32>
    %66 = arith.truncf %63 : vector<8x128xf32> to vector<8x128xbf16>
    %c0_19 = arith.constant 0 : index
    %c0_20 = arith.constant 0 : index
    %67 = vector.load %arg2[%c0_19, %c0_20] : memref<128x512xbf16, #tpu.memory_space<vmem>>, vector<128x512xbf16>
    %cst_21 = arith.constant dense<0.000000e+00> : vector<8x512xf32>
    %68 = tpu.matmul %66, %67, %cst_21 {dimension_numbers = #tpu.dot_dimension_numbers<[1], [0], [0], [1], [0, 0, 1, 1], [], []>} : vector<8x128xbf16>, vector<128x512xbf16>, vector<8x512xf32> -> vector<8x512xf32>
    %69 = arith.addf %65, %68 : vector<8x512xf32>
    %70 = vector.extract_strided_slice %69 {offsets = [0, 0], sizes = [8, 128], strides = [1, 1]} : vector<8x512xf32> to vector<8x128xf32>
    %71 = arith.negf %70 : vector<8x128xf32>
    %72 = math.exp %71 : vector<8x128xf32>
    %cst_22 = arith.constant 1.000000e+00 : f32
    %73 = vector.broadcast %cst_22 : f32 to vector<8x128xf32>
    %74 = arith.addf %73, %72 : vector<8x128xf32>
    %75 = arith.divf %73, %74 : vector<8x128xf32>
    %76 = vector.extract_strided_slice %69 {offsets = [0, 128], sizes = [8, 128], strides = [1, 1]} : vector<8x512xf32> to vector<8x128xf32>
    %77 = arith.negf %76 : vector<8x128xf32>
    %78 = math.exp %77 : vector<8x128xf32>
    %cst_23 = arith.constant 1.000000e+00 : f32
    %79 = vector.broadcast %cst_23 : f32 to vector<8x128xf32>
    %80 = arith.addf %79, %78 : vector<8x128xf32>
    %81 = arith.divf %79, %80 : vector<8x128xf32>
    %82 = vector.extract_strided_slice %69 {offsets = [0, 256], sizes = [8, 128], strides = [1, 1]} : vector<8x512xf32> to vector<8x128xf32>
    %83 = math.tanh %82 : vector<8x128xf32>
    %84 = vector.extract_strided_slice %69 {offsets = [0, 384], sizes = [8, 128], strides = [1, 1]} : vector<8x512xf32> to vector<8x128xf32>
    %85 = arith.negf %84 : vector<8x128xf32>
    %86 = math.exp %85 : vector<8x128xf32>
    %cst_24 = arith.constant 1.000000e+00 : f32
    %87 = vector.broadcast %cst_24 : f32 to vector<8x128xf32>
    %88 = arith.addf %87, %86 : vector<8x128xf32>
    %89 = arith.divf %87, %88 : vector<8x128xf32>
    %90 = arith.mulf %81, %61 : vector<8x128xf32>
    %91 = arith.mulf %75, %83 : vector<8x128xf32>
    %92 = arith.addf %90, %91 : vector<8x128xf32>
    %93 = math.tanh %92 : vector<8x128xf32>
    %94 = arith.mulf %89, %93 : vector<8x128xf32>
    %c3 = arith.constant 3 : index
    %c0_25 = arith.constant 0 : index
    %c0_26 = arith.constant 0 : index
    %95 = vector.load %arg1[%c3, %c0_25, %c0_26] : memref<8x8x512xf32, #tpu.memory_space<vmem>>, vector<1x8x512xf32>
    %96 = vector.shape_cast %95 : vector<1x8x512xf32> to vector<8x512xf32>
    %97 = arith.truncf %94 : vector<8x128xf32> to vector<8x128xbf16>
    %c0_27 = arith.constant 0 : index
    %c0_28 = arith.constant 0 : index
    %98 = vector.load %arg2[%c0_27, %c0_28] : memref<128x512xbf16, #tpu.memory_space<vmem>>, vector<128x512xbf16>
    %cst_29 = arith.constant dense<0.000000e+00> : vector<8x512xf32>
    %99 = tpu.matmul %97, %98, %cst_29 {dimension_numbers = #tpu.dot_dimension_numbers<[1], [0], [0], [1], [0, 0, 1, 1], [], []>} : vector<8x128xbf16>, vector<128x512xbf16>, vector<8x512xf32> -> vector<8x512xf32>
    %100 = arith.addf %96, %99 : vector<8x512xf32>
    %101 = vector.extract_strided_slice %100 {offsets = [0, 0], sizes = [8, 128], strides = [1, 1]} : vector<8x512xf32> to vector<8x128xf32>
    %102 = arith.negf %101 : vector<8x128xf32>
    %103 = math.exp %102 : vector<8x128xf32>
    %cst_30 = arith.constant 1.000000e+00 : f32
    %104 = vector.broadcast %cst_30 : f32 to vector<8x128xf32>
    %105 = arith.addf %104, %103 : vector<8x128xf32>
    %106 = arith.divf %104, %105 : vector<8x128xf32>
    %107 = vector.extract_strided_slice %100 {offsets = [0, 128], sizes = [8, 128], strides = [1, 1]} : vector<8x512xf32> to vector<8x128xf32>
    %108 = arith.negf %107 : vector<8x128xf32>
    %109 = math.exp %108 : vector<8x128xf32>
    %cst_31 = arith.constant 1.000000e+00 : f32
    %110 = vector.broadcast %cst_31 : f32 to vector<8x128xf32>
    %111 = arith.addf %110, %109 : vector<8x128xf32>
    %112 = arith.divf %110, %111 : vector<8x128xf32>
    %113 = vector.extract_strided_slice %100 {offsets = [0, 256], sizes = [8, 128], strides = [1, 1]} : vector<8x512xf32> to vector<8x128xf32>
    %114 = math.tanh %113 : vector<8x128xf32>
    %115 = vector.extract_strided_slice %100 {offsets = [0, 384], sizes = [8, 128], strides = [1, 1]} : vector<8x512xf32> to vector<8x128xf32>
    %116 = arith.negf %115 : vector<8x128xf32>
    %117 = math.exp %116 : vector<8x128xf32>
    %cst_32 = arith.constant 1.000000e+00 : f32
    %118 = vector.broadcast %cst_32 : f32 to vector<8x128xf32>
    %119 = arith.addf %118, %117 : vector<8x128xf32>
    %120 = arith.divf %118, %119 : vector<8x128xf32>
    %121 = arith.mulf %112, %92 : vector<8x128xf32>
    %122 = arith.mulf %106, %114 : vector<8x128xf32>
    %123 = arith.addf %121, %122 : vector<8x128xf32>
    %124 = math.tanh %123 : vector<8x128xf32>
    %125 = arith.mulf %120, %124 : vector<8x128xf32>
    %c4 = arith.constant 4 : index
    %c0_33 = arith.constant 0 : index
    %c0_34 = arith.constant 0 : index
    %126 = vector.load %arg1[%c4, %c0_33, %c0_34] : memref<8x8x512xf32, #tpu.memory_space<vmem>>, vector<1x8x512xf32>
    %127 = vector.shape_cast %126 : vector<1x8x512xf32> to vector<8x512xf32>
    %128 = arith.truncf %125 : vector<8x128xf32> to vector<8x128xbf16>
    %c0_35 = arith.constant 0 : index
    %c0_36 = arith.constant 0 : index
    %129 = vector.load %arg2[%c0_35, %c0_36] : memref<128x512xbf16, #tpu.memory_space<vmem>>, vector<128x512xbf16>
    %cst_37 = arith.constant dense<0.000000e+00> : vector<8x512xf32>
    %130 = tpu.matmul %128, %129, %cst_37 {dimension_numbers = #tpu.dot_dimension_numbers<[1], [0], [0], [1], [0, 0, 1, 1], [], []>} : vector<8x128xbf16>, vector<128x512xbf16>, vector<8x512xf32> -> vector<8x512xf32>
    %131 = arith.addf %127, %130 : vector<8x512xf32>
    %132 = vector.extract_strided_slice %131 {offsets = [0, 0], sizes = [8, 128], strides = [1, 1]} : vector<8x512xf32> to vector<8x128xf32>
    %133 = arith.negf %132 : vector<8x128xf32>
    %134 = math.exp %133 : vector<8x128xf32>
    %cst_38 = arith.constant 1.000000e+00 : f32
    %135 = vector.broadcast %cst_38 : f32 to vector<8x128xf32>
    %136 = arith.addf %135, %134 : vector<8x128xf32>
    %137 = arith.divf %135, %136 : vector<8x128xf32>
    %138 = vector.extract_strided_slice %131 {offsets = [0, 128], sizes = [8, 128], strides = [1, 1]} : vector<8x512xf32> to vector<8x128xf32>
    %139 = arith.negf %138 : vector<8x128xf32>
    %140 = math.exp %139 : vector<8x128xf32>
    %cst_39 = arith.constant 1.000000e+00 : f32
    %141 = vector.broadcast %cst_39 : f32 to vector<8x128xf32>
    %142 = arith.addf %141, %140 : vector<8x128xf32>
    %143 = arith.divf %141, %142 : vector<8x128xf32>
    %144 = vector.extract_strided_slice %131 {offsets = [0, 256], sizes = [8, 128], strides = [1, 1]} : vector<8x512xf32> to vector<8x128xf32>
    %145 = math.tanh %144 : vector<8x128xf32>
    %146 = vector.extract_strided_slice %131 {offsets = [0, 384], sizes = [8, 128], strides = [1, 1]} : vector<8x512xf32> to vector<8x128xf32>
    %147 = arith.negf %146 : vector<8x128xf32>
    %148 = math.exp %147 : vector<8x128xf32>
    %cst_40 = arith.constant 1.000000e+00 : f32
    %149 = vector.broadcast %cst_40 : f32 to vector<8x128xf32>
    %150 = arith.addf %149, %148 : vector<8x128xf32>
    %151 = arith.divf %149, %150 : vector<8x128xf32>
    %152 = arith.mulf %143, %123 : vector<8x128xf32>
    %153 = arith.mulf %137, %145 : vector<8x128xf32>
    %154 = arith.addf %152, %153 : vector<8x128xf32>
    %155 = math.tanh %154 : vector<8x128xf32>
    %156 = arith.mulf %151, %155 : vector<8x128xf32>
    %c5 = arith.constant 5 : index
    %c0_41 = arith.constant 0 : index
    %c0_42 = arith.constant 0 : index
    %157 = vector.load %arg1[%c5, %c0_41, %c0_42] : memref<8x8x512xf32, #tpu.memory_space<vmem>>, vector<1x8x512xf32>
    %158 = vector.shape_cast %157 : vector<1x8x512xf32> to vector<8x512xf32>
    %159 = arith.truncf %156 : vector<8x128xf32> to vector<8x128xbf16>
    %c0_43 = arith.constant 0 : index
    %c0_44 = arith.constant 0 : index
    %160 = vector.load %arg2[%c0_43, %c0_44] : memref<128x512xbf16, #tpu.memory_space<vmem>>, vector<128x512xbf16>
    %cst_45 = arith.constant dense<0.000000e+00> : vector<8x512xf32>
    %161 = tpu.matmul %159, %160, %cst_45 {dimension_numbers = #tpu.dot_dimension_numbers<[1], [0], [0], [1], [0, 0, 1, 1], [], []>} : vector<8x128xbf16>, vector<128x512xbf16>, vector<8x512xf32> -> vector<8x512xf32>
    %162 = arith.addf %158, %161 : vector<8x512xf32>
    %163 = vector.extract_strided_slice %162 {offsets = [0, 0], sizes = [8, 128], strides = [1, 1]} : vector<8x512xf32> to vector<8x128xf32>
    %164 = arith.negf %163 : vector<8x128xf32>
    %165 = math.exp %164 : vector<8x128xf32>
    %cst_46 = arith.constant 1.000000e+00 : f32
    %166 = vector.broadcast %cst_46 : f32 to vector<8x128xf32>
    %167 = arith.addf %166, %165 : vector<8x128xf32>
    %168 = arith.divf %166, %167 : vector<8x128xf32>
    %169 = vector.extract_strided_slice %162 {offsets = [0, 128], sizes = [8, 128], strides = [1, 1]} : vector<8x512xf32> to vector<8x128xf32>
    %170 = arith.negf %169 : vector<8x128xf32>
    %171 = math.exp %170 : vector<8x128xf32>
    %cst_47 = arith.constant 1.000000e+00 : f32
    %172 = vector.broadcast %cst_47 : f32 to vector<8x128xf32>
    %173 = arith.addf %172, %171 : vector<8x128xf32>
    %174 = arith.divf %172, %173 : vector<8x128xf32>
    %175 = vector.extract_strided_slice %162 {offsets = [0, 256], sizes = [8, 128], strides = [1, 1]} : vector<8x512xf32> to vector<8x128xf32>
    %176 = math.tanh %175 : vector<8x128xf32>
    %177 = vector.extract_strided_slice %162 {offsets = [0, 384], sizes = [8, 128], strides = [1, 1]} : vector<8x512xf32> to vector<8x128xf32>
    %178 = arith.negf %177 : vector<8x128xf32>
    %179 = math.exp %178 : vector<8x128xf32>
    %cst_48 = arith.constant 1.000000e+00 : f32
    %180 = vector.broadcast %cst_48 : f32 to vector<8x128xf32>
    %181 = arith.addf %180, %179 : vector<8x128xf32>
    %182 = arith.divf %180, %181 : vector<8x128xf32>
    %183 = arith.mulf %174, %154 : vector<8x128xf32>
    %184 = arith.mulf %168, %176 : vector<8x128xf32>
    %185 = arith.addf %183, %184 : vector<8x128xf32>
    %186 = math.tanh %185 : vector<8x128xf32>
    %187 = arith.mulf %182, %186 : vector<8x128xf32>
    %c6 = arith.constant 6 : index
    %c0_49 = arith.constant 0 : index
    %c0_50 = arith.constant 0 : index
    %188 = vector.load %arg1[%c6, %c0_49, %c0_50] : memref<8x8x512xf32, #tpu.memory_space<vmem>>, vector<1x8x512xf32>
    %189 = vector.shape_cast %188 : vector<1x8x512xf32> to vector<8x512xf32>
    %190 = arith.truncf %187 : vector<8x128xf32> to vector<8x128xbf16>
    %c0_51 = arith.constant 0 : index
    %c0_52 = arith.constant 0 : index
    %191 = vector.load %arg2[%c0_51, %c0_52] : memref<128x512xbf16, #tpu.memory_space<vmem>>, vector<128x512xbf16>
    %cst_53 = arith.constant dense<0.000000e+00> : vector<8x512xf32>
    %192 = tpu.matmul %190, %191, %cst_53 {dimension_numbers = #tpu.dot_dimension_numbers<[1], [0], [0], [1], [0, 0, 1, 1], [], []>} : vector<8x128xbf16>, vector<128x512xbf16>, vector<8x512xf32> -> vector<8x512xf32>
    %193 = arith.addf %189, %192 : vector<8x512xf32>
    %194 = vector.extract_strided_slice %193 {offsets = [0, 0], sizes = [8, 128], strides = [1, 1]} : vector<8x512xf32> to vector<8x128xf32>
    %195 = arith.negf %194 : vector<8x128xf32>
    %196 = math.exp %195 : vector<8x128xf32>
    %cst_54 = arith.constant 1.000000e+00 : f32
    %197 = vector.broadcast %cst_54 : f32 to vector<8x128xf32>
    %198 = arith.addf %197, %196 : vector<8x128xf32>
    %199 = arith.divf %197, %198 : vector<8x128xf32>
    %200 = vector.extract_strided_slice %193 {offsets = [0, 128], sizes = [8, 128], strides = [1, 1]} : vector<8x512xf32> to vector<8x128xf32>
    %201 = arith.negf %200 : vector<8x128xf32>
    %202 = math.exp %201 : vector<8x128xf32>
    %cst_55 = arith.constant 1.000000e+00 : f32
    %203 = vector.broadcast %cst_55 : f32 to vector<8x128xf32>
    %204 = arith.addf %203, %202 : vector<8x128xf32>
    %205 = arith.divf %203, %204 : vector<8x128xf32>
    %206 = vector.extract_strided_slice %193 {offsets = [0, 256], sizes = [8, 128], strides = [1, 1]} : vector<8x512xf32> to vector<8x128xf32>
    %207 = math.tanh %206 : vector<8x128xf32>
    %208 = vector.extract_strided_slice %193 {offsets = [0, 384], sizes = [8, 128], strides = [1, 1]} : vector<8x512xf32> to vector<8x128xf32>
    %209 = arith.negf %208 : vector<8x128xf32>
    %210 = math.exp %209 : vector<8x128xf32>
    %cst_56 = arith.constant 1.000000e+00 : f32
    %211 = vector.broadcast %cst_56 : f32 to vector<8x128xf32>
    %212 = arith.addf %211, %210 : vector<8x128xf32>
    %213 = arith.divf %211, %212 : vector<8x128xf32>
    %214 = arith.mulf %205, %185 : vector<8x128xf32>
    %215 = arith.mulf %199, %207 : vector<8x128xf32>
    %216 = arith.addf %214, %215 : vector<8x128xf32>
    %217 = math.tanh %216 : vector<8x128xf32>
    %218 = arith.mulf %213, %217 : vector<8x128xf32>
    %c7 = arith.constant 7 : index
    %c0_57 = arith.constant 0 : index
    %c0_58 = arith.constant 0 : index
    %219 = vector.load %arg1[%c7, %c0_57, %c0_58] : memref<8x8x512xf32, #tpu.memory_space<vmem>>, vector<1x8x512xf32>
    %220 = vector.shape_cast %219 : vector<1x8x512xf32> to vector<8x512xf32>
    %221 = arith.truncf %218 : vector<8x128xf32> to vector<8x128xbf16>
    %c0_59 = arith.constant 0 : index
    %c0_60 = arith.constant 0 : index
    %222 = vector.load %arg2[%c0_59, %c0_60] : memref<128x512xbf16, #tpu.memory_space<vmem>>, vector<128x512xbf16>
    %cst_61 = arith.constant dense<0.000000e+00> : vector<8x512xf32>
    %223 = tpu.matmul %221, %222, %cst_61 {dimension_numbers = #tpu.dot_dimension_numbers<[1], [0], [0], [1], [0, 0, 1, 1], [], []>} : vector<8x128xbf16>, vector<128x512xbf16>, vector<8x512xf32> -> vector<8x512xf32>
    %224 = arith.addf %220, %223 : vector<8x512xf32>
    %225 = vector.extract_strided_slice %224 {offsets = [0, 0], sizes = [8, 128], strides = [1, 1]} : vector<8x512xf32> to vector<8x128xf32>
    %226 = arith.negf %225 : vector<8x128xf32>
    %227 = math.exp %226 : vector<8x128xf32>
    %cst_62 = arith.constant 1.000000e+00 : f32
    %228 = vector.broadcast %cst_62 : f32 to vector<8x128xf32>
    %229 = arith.addf %228, %227 : vector<8x128xf32>
    %230 = arith.divf %228, %229 : vector<8x128xf32>
    %231 = vector.extract_strided_slice %224 {offsets = [0, 128], sizes = [8, 128], strides = [1, 1]} : vector<8x512xf32> to vector<8x128xf32>
    %232 = arith.negf %231 : vector<8x128xf32>
    %233 = math.exp %232 : vector<8x128xf32>
    %cst_63 = arith.constant 1.000000e+00 : f32
    %234 = vector.broadcast %cst_63 : f32 to vector<8x128xf32>
    %235 = arith.addf %234, %233 : vector<8x128xf32>
    %236 = arith.divf %234, %235 : vector<8x128xf32>
    %237 = vector.extract_strided_slice %224 {offsets = [0, 256], sizes = [8, 128], strides = [1, 1]} : vector<8x512xf32> to vector<8x128xf32>
    %238 = math.tanh %237 : vector<8x128xf32>
    %239 = vector.extract_strided_slice %224 {offsets = [0, 384], sizes = [8, 128], strides = [1, 1]} : vector<8x512xf32> to vector<8x128xf32>
    %240 = arith.negf %239 : vector<8x128xf32>
    %241 = math.exp %240 : vector<8x128xf32>
    %cst_64 = arith.constant 1.000000e+00 : f32
    %242 = vector.broadcast %cst_64 : f32 to vector<8x128xf32>
    %243 = arith.addf %242, %241 : vector<8x128xf32>
    %244 = arith.divf %242, %243 : vector<8x128xf32>
    %245 = arith.mulf %236, %216 : vector<8x128xf32>
    %246 = arith.mulf %230, %238 : vector<8x128xf32>
    %247 = arith.addf %245, %246 : vector<8x128xf32>
    %248 = math.tanh %247 : vector<8x128xf32>
    %249 = arith.mulf %244, %248 : vector<8x128xf32>
    %c0_65 = arith.constant 0 : index
    %c0_66 = arith.constant 0 : index
    %250 = vector.load %arg5[%c0_65, %c0_66] : memref<8x512xf32, #tpu.memory_space<vmem>>, vector<8x512xf32>
    %c0_67 = arith.constant 0 : index
    %c0_68 = arith.constant 0 : index
    %251 = vector.load %arg8[%c0_67, %c0_68] : memref<8x128xf32, #tpu.memory_space<vmem>>, vector<8x128xf32>
    %252 = tpu.iota {dimensions = array<i32: 1>} : vector<8x128xi32>
    %253 = arith.sitofp %252 : vector<8x128xi32> to vector<8x128xf32>
    %c16_i32 = arith.constant 16 : i32
    %254 = vector.broadcast %c16_i32 : i32 to vector<8x128xi32>
    %255 = arith.cmpi slt, %252, %254 : vector<8x128xi32>
    %c0_69 = arith.constant 0 : index
    %c0_70 = arith.constant 0 : index
    %c0_71 = arith.constant 0 : index
    %256 = vector.load %arg3[%c0_69, %c0_70, %c0_71] : memref<8x8x512xf32, #tpu.memory_space<vmem>>, vector<1x8x512xf32>
    %257 = vector.shape_cast %256 : vector<1x8x512xf32> to vector<8x512xf32>
    %258 = arith.addf %257, %250 : vector<8x512xf32>
    %259 = arith.truncf %249 : vector<8x128xf32> to vector<8x128xbf16>
    %c0_72 = arith.constant 0 : index
    %c0_73 = arith.constant 0 : index
    %260 = vector.load %arg4[%c0_72, %c0_73] : memref<128x512xbf16, #tpu.memory_space<vmem>>, vector<128x512xbf16>
    %cst_74 = arith.constant dense<0.000000e+00> : vector<8x512xf32>
    %261 = tpu.matmul %259, %260, %cst_74 {dimension_numbers = #tpu.dot_dimension_numbers<[1], [0], [0], [1], [0, 0, 1, 1], [], []>} : vector<8x128xbf16>, vector<128x512xbf16>, vector<8x512xf32> -> vector<8x512xf32>
    %262 = arith.addf %258, %261 : vector<8x512xf32>
    %263 = vector.extract_strided_slice %262 {offsets = [0, 0], sizes = [8, 128], strides = [1, 1]} : vector<8x512xf32> to vector<8x128xf32>
    %264 = arith.negf %263 : vector<8x128xf32>
    %265 = math.exp %264 : vector<8x128xf32>
    %cst_75 = arith.constant 1.000000e+00 : f32
    %266 = vector.broadcast %cst_75 : f32 to vector<8x128xf32>
    %267 = arith.addf %266, %265 : vector<8x128xf32>
    %268 = arith.divf %266, %267 : vector<8x128xf32>
    %269 = vector.extract_strided_slice %262 {offsets = [0, 128], sizes = [8, 128], strides = [1, 1]} : vector<8x512xf32> to vector<8x128xf32>
    %270 = arith.negf %269 : vector<8x128xf32>
    %271 = math.exp %270 : vector<8x128xf32>
    %cst_76 = arith.constant 1.000000e+00 : f32
    %272 = vector.broadcast %cst_76 : f32 to vector<8x128xf32>
    %273 = arith.addf %272, %271 : vector<8x128xf32>
    %274 = arith.divf %272, %273 : vector<8x128xf32>
    %275 = vector.extract_strided_slice %262 {offsets = [0, 256], sizes = [8, 128], strides = [1, 1]} : vector<8x512xf32> to vector<8x128xf32>
    %276 = math.tanh %275 : vector<8x128xf32>
    %277 = vector.extract_strided_slice %262 {offsets = [0, 384], sizes = [8, 128], strides = [1, 1]} : vector<8x512xf32> to vector<8x128xf32>
    %278 = arith.negf %277 : vector<8x128xf32>
    %279 = math.exp %278 : vector<8x128xf32>
    %cst_77 = arith.constant 1.000000e+00 : f32
    %280 = vector.broadcast %cst_77 : f32 to vector<8x128xf32>
    %281 = arith.addf %280, %279 : vector<8x128xf32>
    %282 = arith.divf %280, %281 : vector<8x128xf32>
    %283 = arith.mulf %274, %247 : vector<8x128xf32>
    %284 = arith.mulf %268, %276 : vector<8x128xf32>
    %285 = arith.addf %283, %284 : vector<8x128xf32>
    %286 = math.tanh %285 : vector<8x128xf32>
    %287 = arith.mulf %282, %286 : vector<8x128xf32>
    %288 = arith.truncf %287 : vector<8x128xf32> to vector<8x128xbf16>
    %c0_78 = arith.constant 0 : index
    %c0_79 = arith.constant 0 : index
    %289 = vector.load %arg7[%c0_78, %c0_79] : memref<128x128xbf16, #tpu.memory_space<vmem>>, vector<128x128xbf16>
    %cst_80 = arith.constant dense<0.000000e+00> : vector<8x128xf32>
    %290 = tpu.matmul %288, %289, %cst_80 {dimension_numbers = #tpu.dot_dimension_numbers<[1], [0], [0], [1], [0, 0, 1, 1], [], []>} : vector<8x128xbf16>, vector<128x128xbf16>, vector<8x128xf32> -> vector<8x128xf32>
    %291 = arith.addf %290, %251 : vector<8x128xf32>
    %c0_81 = arith.constant 0 : index
    %c0_82 = arith.constant 0 : index
    %c0_83 = arith.constant 0 : index
    %292 = vector.load %arg9[%c0_81, %c0_82, %c0_83] : memref<7x8x128xf32, #tpu.memory_space<vmem>>, vector<1x8x128xf32>
    %293 = vector.shape_cast %292 : vector<1x8x128xf32> to vector<8x128xf32>
    %294 = vector.shape_cast %291 : vector<8x128xf32> to vector<1x8x128xf32>
    tpu.vector_store %arg9[%c0_81, %c0_82, %c0_83], %294 {strides = array<i32>} : memref<7x8x128xf32, #tpu.memory_space<vmem>>, vector<1x8x128xf32>,
    %cst_84 = arith.constant -1.000000e+30 : f32
    %295 = vector.broadcast %cst_84 : f32 to vector<8x128xf32>
    %296 = arith.select %255, %291, %295 : vector<8x128xi1>, vector<8x128xf32>
    %cst_85 = arith.constant dense<0xFF800000> : vector<8xf32>
    %297 = vector.multi_reduction <maximumf>, %296, %cst_85 [1] : vector<8x128xf32> to vector<8xf32>
    %298 = vector.shape_cast %297 : vector<8xf32> to vector<8x1xf32>
    %299 = vector.broadcast %298 : vector<8x1xf32> to vector<8x128xf32>
    %300 = arith.cmpf oeq, %296, %299 : vector<8x128xf32>
    %cst_86 = arith.constant 1.280000e+02 : f32
    %301 = vector.broadcast %cst_86 : f32 to vector<8x128xf32>
    %302 = arith.select %300, %253, %301 : vector<8x128xi1>, vector<8x128xf32>
    %cst_87 = arith.constant dense<0x7F800000> : vector<8xf32>
    %303 = vector.multi_reduction <minimumf>, %302, %cst_87 [1] : vector<8x128xf32> to vector<8xf32>
    %304 = vector.shape_cast %303 : vector<8xf32> to vector<8x1xf32>
    %305 = vector.broadcast %304 : vector<8x1xf32> to vector<8x128xf32>
    %306 = arith.cmpf oeq, %253, %305 : vector<8x128xf32>
    %cst_88 = arith.constant 1.000000e+00 : f32
    %cst_89 = arith.constant 0.000000e+00 : f32
    %307 = vector.broadcast %cst_88 : f32 to vector<8x128xf32>
    %308 = vector.broadcast %cst_89 : f32 to vector<8x128xf32>
    %309 = arith.select %306, %307, %308 : vector<8x128xi1>, vector<8x128xf32>
    %310 = arith.truncf %309 : vector<8x128xf32> to vector<8x128xbf16>
    %c0_90 = arith.constant 0 : index
    %c0_91 = arith.constant 0 : index
    %311 = vector.load %arg6[%c0_90, %c0_91] : memref<128x512xbf16, #tpu.memory_space<vmem>>, vector<128x512xbf16>
    %cst_92 = arith.constant dense<0.000000e+00> : vector<8x512xf32>
    %312 = tpu.matmul %310, %311, %cst_92 {dimension_numbers = #tpu.dot_dimension_numbers<[1], [0], [0], [1], [0, 0, 1, 1], [], []>} : vector<8x128xbf16>, vector<128x512xbf16>, vector<8x512xf32> -> vector<8x512xf32>
    %c1_93 = arith.constant 1 : index
    %313 = memref.load %arg0[%c1_93] : memref<8xf32, #tpu.memory_space<smem>>
    %c1_94 = arith.constant 1 : index
    %c0_95 = arith.constant 0 : index
    %c0_96 = arith.constant 0 : index
    %314 = vector.load %arg3[%c1_94, %c0_95, %c0_96] : memref<8x8x512xf32, #tpu.memory_space<vmem>>, vector<1x8x512xf32>
    %315 = vector.shape_cast %314 : vector<1x8x512xf32> to vector<8x512xf32>
    %316 = vector.broadcast %313 : f32 to vector<8x512xf32>
    %317 = arith.mulf %316, %315 : vector<8x512xf32>
    %cst_97 = arith.constant 1.000000e+00 : f32
    %318 = arith.subf %cst_97, %313 : f32
    %319 = vector.broadcast %318 : f32 to vector<8x512xf32>
    %320 = arith.mulf %319, %312 : vector<8x512xf32>
    %321 = arith.addf %317, %320 : vector<8x512xf32>
    %322 = arith.addf %321, %250 : vector<8x512xf32>
    %323 = arith.truncf %287 : vector<8x128xf32> to vector<8x128xbf16>
    %c0_98 = arith.constant 0 : index
    %c0_99 = arith.constant 0 : index
    %324 = vector.load %arg4[%c0_98, %c0_99] : memref<128x512xbf16, #tpu.memory_space<vmem>>, vector<128x512xbf16>
    %cst_100 = arith.constant dense<0.000000e+00> : vector<8x512xf32>
    %325 = tpu.matmul %323, %324, %cst_100 {dimension_numbers = #tpu.dot_dimension_numbers<[1], [0], [0], [1], [0, 0, 1, 1], [], []>} : vector<8x128xbf16>, vector<128x512xbf16>, vector<8x512xf32> -> vector<8x512xf32>
    %326 = arith.addf %322, %325 : vector<8x512xf32>
    %327 = vector.extract_strided_slice %326 {offsets = [0, 0], sizes = [8, 128], strides = [1, 1]} : vector<8x512xf32> to vector<8x128xf32>
    %328 = arith.negf %327 : vector<8x128xf32>
    %329 = math.exp %328 : vector<8x128xf32>
    %cst_101 = arith.constant 1.000000e+00 : f32
    %330 = vector.broadcast %cst_101 : f32 to vector<8x128xf32>
    %331 = arith.addf %330, %329 : vector<8x128xf32>
    %332 = arith.divf %330, %331 : vector<8x128xf32>
    %333 = vector.extract_strided_slice %326 {offsets = [0, 128], sizes = [8, 128], strides = [1, 1]} : vector<8x512xf32> to vector<8x128xf32>
    %334 = arith.negf %333 : vector<8x128xf32>
    %335 = math.exp %334 : vector<8x128xf32>
    %cst_102 = arith.constant 1.000000e+00 : f32
    %336 = vector.broadcast %cst_102 : f32 to vector<8x128xf32>
    %337 = arith.addf %336, %335 : vector<8x128xf32>
    %338 = arith.divf %336, %337 : vector<8x128xf32>
    %339 = vector.extract_strided_slice %326 {offsets = [0, 256], sizes = [8, 128], strides = [1, 1]} : vector<8x512xf32> to vector<8x128xf32>
    %340 = math.tanh %339 : vector<8x128xf32>
    %341 = vector.extract_strided_slice %326 {offsets = [0, 384], sizes = [8, 128], strides = [1, 1]} : vector<8x512xf32> to vector<8x128xf32>
    %342 = arith.negf %341 : vector<8x128xf32>
    %343 = math.exp %342 : vector<8x128xf32>
    %cst_103 = arith.constant 1.000000e+00 : f32
    %344 = vector.broadcast %cst_103 : f32 to vector<8x128xf32>
    %345 = arith.addf %344, %343 : vector<8x128xf32>
    %346 = arith.divf %344, %345 : vector<8x128xf32>
    %347 = arith.mulf %338, %285 : vector<8x128xf32>
    %348 = arith.mulf %332, %340 : vector<8x128xf32>
    %349 = arith.addf %347, %348 : vector<8x128xf32>
    %350 = math.tanh %349 : vector<8x128xf32>
    %351 = arith.mulf %346, %350 : vector<8x128xf32>
    %352 = arith.truncf %351 : vector<8x128xf32> to vector<8x128xbf16>
    %c0_104 = arith.constant 0 : index
    %c0_105 = arith.constant 0 : index
    %353 = vector.load %arg7[%c0_104, %c0_105] : memref<128x128xbf16, #tpu.memory_space<vmem>>, vector<128x128xbf16>
    %cst_106 = arith.constant dense<0.000000e+00> : vector<8x128xf32>
    %354 = tpu.matmul %352, %353, %cst_106 {dimension_numbers = #tpu.dot_dimension_numbers<[1], [0], [0], [1], [0, 0, 1, 1], [], []>} : vector<8x128xbf16>, vector<128x128xbf16>, vector<8x128xf32> -> vector<8x128xf32>
    %355 = arith.addf %354, %251 : vector<8x128xf32>
    %c1_107 = arith.constant 1 : index
    %c0_108 = arith.constant 0 : index
    %c0_109 = arith.constant 0 : index
    %356 = vector.load %arg9[%c1_107, %c0_108, %c0_109] : memref<7x8x128xf32, #tpu.memory_space<vmem>>, vector<1x8x128xf32>
    %357 = vector.shape_cast %356 : vector<1x8x128xf32> to vector<8x128xf32>
    %358 = vector.shape_cast %355 : vector<8x128xf32> to vector<1x8x128xf32>
    tpu.vector_store %arg9[%c1_107, %c0_108, %c0_109], %358 {strides = array<i32>} : memref<7x8x128xf32, #tpu.memory_space<vmem>>, vector<1x8x128xf32>,
    %cst_110 = arith.constant -1.000000e+30 : f32
    %359 = vector.broadcast %cst_110 : f32 to vector<8x128xf32>
    %360 = arith.select %255, %355, %359 : vector<8x128xi1>, vector<8x128xf32>
    %cst_111 = arith.constant dense<0xFF800000> : vector<8xf32>
    %361 = vector.multi_reduction <maximumf>, %360, %cst_111 [1] : vector<8x128xf32> to vector<8xf32>
    %362 = vector.shape_cast %361 : vector<8xf32> to vector<8x1xf32>
    %363 = vector.broadcast %362 : vector<8x1xf32> to vector<8x128xf32>
    %364 = arith.cmpf oeq, %360, %363 : vector<8x128xf32>
    %cst_112 = arith.constant 1.280000e+02 : f32
    %365 = vector.broadcast %cst_112 : f32 to vector<8x128xf32>
    %366 = arith.select %364, %253, %365 : vector<8x128xi1>, vector<8x128xf32>
    %cst_113 = arith.constant dense<0x7F800000> : vector<8xf32>
    %367 = vector.multi_reduction <minimumf>, %366, %cst_113 [1] : vector<8x128xf32> to vector<8xf32>
    %368 = vector.shape_cast %367 : vector<8xf32> to vector<8x1xf32>
    %369 = vector.broadcast %368 : vector<8x1xf32> to vector<8x128xf32>
    %370 = arith.cmpf oeq, %253, %369 : vector<8x128xf32>
    %cst_114 = arith.constant 1.000000e+00 : f32
    %cst_115 = arith.constant 0.000000e+00 : f32
    %371 = vector.broadcast %cst_114 : f32 to vector<8x128xf32>
    %372 = vector.broadcast %cst_115 : f32 to vector<8x128xf32>
    %373 = arith.select %370, %371, %372 : vector<8x128xi1>, vector<8x128xf32>
    %374 = arith.truncf %373 : vector<8x128xf32> to vector<8x128xbf16>
    %c0_116 = arith.constant 0 : index
    %c0_117 = arith.constant 0 : index
    %375 = vector.load %arg6[%c0_116, %c0_117] : memref<128x512xbf16, #tpu.memory_space<vmem>>, vector<128x512xbf16>
    %cst_118 = arith.constant dense<0.000000e+00> : vector<8x512xf32>
    %376 = tpu.matmul %374, %375, %cst_118 {dimension_numbers = #tpu.dot_dimension_numbers<[1], [0], [0], [1], [0, 0, 1, 1], [], []>} : vector<8x128xbf16>, vector<128x512xbf16>, vector<8x512xf32> -> vector<8x512xf32>
    %c2_119 = arith.constant 2 : index
    %377 = memref.load %arg0[%c2_119] : memref<8xf32, #tpu.memory_space<smem>>
    %c2_120 = arith.constant 2 : index
    %c0_121 = arith.constant 0 : index
    %c0_122 = arith.constant 0 : index
    %378 = vector.load %arg3[%c2_120, %c0_121, %c0_122] : memref<8x8x512xf32, #tpu.memory_space<vmem>>, vector<1x8x512xf32>
    %379 = vector.shape_cast %378 : vector<1x8x512xf32> to vector<8x512xf32>
    %380 = vector.broadcast %377 : f32 to vector<8x512xf32>
    %381 = arith.mulf %380, %379 : vector<8x512xf32>
    %cst_123 = arith.constant 1.000000e+00 : f32
    %382 = arith.subf %cst_123, %377 : f32
    %383 = vector.broadcast %382 : f32 to vector<8x512xf32>
    %384 = arith.mulf %383, %376 : vector<8x512xf32>
    %385 = arith.addf %381, %384 : vector<8x512xf32>
    %386 = arith.addf %385, %250 : vector<8x512xf32>
    %387 = arith.truncf %351 : vector<8x128xf32> to vector<8x128xbf16>
    %c0_124 = arith.constant 0 : index
    %c0_125 = arith.constant 0 : index
    %388 = vector.load %arg4[%c0_124, %c0_125] : memref<128x512xbf16, #tpu.memory_space<vmem>>, vector<128x512xbf16>
    %cst_126 = arith.constant dense<0.000000e+00> : vector<8x512xf32>
    %389 = tpu.matmul %387, %388, %cst_126 {dimension_numbers = #tpu.dot_dimension_numbers<[1], [0], [0], [1], [0, 0, 1, 1], [], []>} : vector<8x128xbf16>, vector<128x512xbf16>, vector<8x512xf32> -> vector<8x512xf32>
    %390 = arith.addf %386, %389 : vector<8x512xf32>
    %391 = vector.extract_strided_slice %390 {offsets = [0, 0], sizes = [8, 128], strides = [1, 1]} : vector<8x512xf32> to vector<8x128xf32>
    %392 = arith.negf %391 : vector<8x128xf32>
    %393 = math.exp %392 : vector<8x128xf32>
    %cst_127 = arith.constant 1.000000e+00 : f32
    %394 = vector.broadcast %cst_127 : f32 to vector<8x128xf32>
    %395 = arith.addf %394, %393 : vector<8x128xf32>
    %396 = arith.divf %394, %395 : vector<8x128xf32>
    %397 = vector.extract_strided_slice %390 {offsets = [0, 128], sizes = [8, 128], strides = [1, 1]} : vector<8x512xf32> to vector<8x128xf32>
    %398 = arith.negf %397 : vector<8x128xf32>
    %399 = math.exp %398 : vector<8x128xf32>
    %cst_128 = arith.constant 1.000000e+00 : f32
    %400 = vector.broadcast %cst_128 : f32 to vector<8x128xf32>
    %401 = arith.addf %400, %399 : vector<8x128xf32>
    %402 = arith.divf %400, %401 : vector<8x128xf32>
    %403 = vector.extract_strided_slice %390 {offsets = [0, 256], sizes = [8, 128], strides = [1, 1]} : vector<8x512xf32> to vector<8x128xf32>
    %404 = math.tanh %403 : vector<8x128xf32>
    %405 = vector.extract_strided_slice %390 {offsets = [0, 384], sizes = [8, 128], strides = [1, 1]} : vector<8x512xf32> to vector<8x128xf32>
    %406 = arith.negf %405 : vector<8x128xf32>
    %407 = math.exp %406 : vector<8x128xf32>
    %cst_129 = arith.constant 1.000000e+00 : f32
    %408 = vector.broadcast %cst_129 : f32 to vector<8x128xf32>
    %409 = arith.addf %408, %407 : vector<8x128xf32>
    %410 = arith.divf %408, %409 : vector<8x128xf32>
    %411 = arith.mulf %402, %349 : vector<8x128xf32>
    %412 = arith.mulf %396, %404 : vector<8x128xf32>
    %413 = arith.addf %411, %412 : vector<8x128xf32>
    %414 = math.tanh %413 : vector<8x128xf32>
    %415 = arith.mulf %410, %414 : vector<8x128xf32>
    %416 = arith.truncf %415 : vector<8x128xf32> to vector<8x128xbf16>
    %c0_130 = arith.constant 0 : index
    %c0_131 = arith.constant 0 : index
    %417 = vector.load %arg7[%c0_130, %c0_131] : memref<128x128xbf16, #tpu.memory_space<vmem>>, vector<128x128xbf16>
    %cst_132 = arith.constant dense<0.000000e+00> : vector<8x128xf32>
    %418 = tpu.matmul %416, %417, %cst_132 {dimension_numbers = #tpu.dot_dimension_numbers<[1], [0], [0], [1], [0, 0, 1, 1], [], []>} : vector<8x128xbf16>, vector<128x128xbf16>, vector<8x128xf32> -> vector<8x128xf32>
    %419 = arith.addf %418, %251 : vector<8x128xf32>
    %c2_133 = arith.constant 2 : index
    %c0_134 = arith.constant 0 : index
    %c0_135 = arith.constant 0 : index
    %420 = vector.load %arg9[%c2_133, %c0_134, %c0_135] : memref<7x8x128xf32, #tpu.memory_space<vmem>>, vector<1x8x128xf32>
    %421 = vector.shape_cast %420 : vector<1x8x128xf32> to vector<8x128xf32>
    %422 = vector.shape_cast %419 : vector<8x128xf32> to vector<1x8x128xf32>
    tpu.vector_store %arg9[%c2_133, %c0_134, %c0_135], %422 {strides = array<i32>} : memref<7x8x128xf32, #tpu.memory_space<vmem>>, vector<1x8x128xf32>,
    %cst_136 = arith.constant -1.000000e+30 : f32
    %423 = vector.broadcast %cst_136 : f32 to vector<8x128xf32>
    %424 = arith.select %255, %419, %423 : vector<8x128xi1>, vector<8x128xf32>
    %cst_137 = arith.constant dense<0xFF800000> : vector<8xf32>
    %425 = vector.multi_reduction <maximumf>, %424, %cst_137 [1] : vector<8x128xf32> to vector<8xf32>
    %426 = vector.shape_cast %425 : vector<8xf32> to vector<8x1xf32>
    %427 = vector.broadcast %426 : vector<8x1xf32> to vector<8x128xf32>
    %428 = arith.cmpf oeq, %424, %427 : vector<8x128xf32>
    %cst_138 = arith.constant 1.280000e+02 : f32
    %429 = vector.broadcast %cst_138 : f32 to vector<8x128xf32>
    %430 = arith.select %428, %253, %429 : vector<8x128xi1>, vector<8x128xf32>
    %cst_139 = arith.constant dense<0x7F800000> : vector<8xf32>
    %431 = vector.multi_reduction <minimumf>, %430, %cst_139 [1] : vector<8x128xf32> to vector<8xf32>
    %432 = vector.shape_cast %431 : vector<8xf32> to vector<8x1xf32>
    %433 = vector.broadcast %432 : vector<8x1xf32> to vector<8x128xf32>
    %434 = arith.cmpf oeq, %253, %433 : vector<8x128xf32>
    %cst_140 = arith.constant 1.000000e+00 : f32
    %cst_141 = arith.constant 0.000000e+00 : f32
    %435 = vector.broadcast %cst_140 : f32 to vector<8x128xf32>
    %436 = vector.broadcast %cst_141 : f32 to vector<8x128xf32>
    %437 = arith.select %434, %435, %436 : vector<8x128xi1>, vector<8x128xf32>
    %438 = arith.truncf %437 : vector<8x128xf32> to vector<8x128xbf16>
    %c0_142 = arith.constant 0 : index
    %c0_143 = arith.constant 0 : index
    %439 = vector.load %arg6[%c0_142, %c0_143] : memref<128x512xbf16, #tpu.memory_space<vmem>>, vector<128x512xbf16>
    %cst_144 = arith.constant dense<0.000000e+00> : vector<8x512xf32>
    %440 = tpu.matmul %438, %439, %cst_144 {dimension_numbers = #tpu.dot_dimension_numbers<[1], [0], [0], [1], [0, 0, 1, 1], [], []>} : vector<8x128xbf16>, vector<128x512xbf16>, vector<8x512xf32> -> vector<8x512xf32>
    %c3_145 = arith.constant 3 : index
    %441 = memref.load %arg0[%c3_145] : memref<8xf32, #tpu.memory_space<smem>>
    %c3_146 = arith.constant 3 : index
    %c0_147 = arith.constant 0 : index
    %c0_148 = arith.constant 0 : index
    %442 = vector.load %arg3[%c3_146, %c0_147, %c0_148] : memref<8x8x512xf32, #tpu.memory_space<vmem>>, vector<1x8x512xf32>
    %443 = vector.shape_cast %442 : vector<1x8x512xf32> to vector<8x512xf32>
    %444 = vector.broadcast %441 : f32 to vector<8x512xf32>
    %445 = arith.mulf %444, %443 : vector<8x512xf32>
    %cst_149 = arith.constant 1.000000e+00 : f32
    %446 = arith.subf %cst_149, %441 : f32
    %447 = vector.broadcast %446 : f32 to vector<8x512xf32>
    %448 = arith.mulf %447, %440 : vector<8x512xf32>
    %449 = arith.addf %445, %448 : vector<8x512xf32>
    %450 = arith.addf %449, %250 : vector<8x512xf32>
    %451 = arith.truncf %415 : vector<8x128xf32> to vector<8x128xbf16>
    %c0_150 = arith.constant 0 : index
    %c0_151 = arith.constant 0 : index
    %452 = vector.load %arg4[%c0_150, %c0_151] : memref<128x512xbf16, #tpu.memory_space<vmem>>, vector<128x512xbf16>
    %cst_152 = arith.constant dense<0.000000e+00> : vector<8x512xf32>
    %453 = tpu.matmul %451, %452, %cst_152 {dimension_numbers = #tpu.dot_dimension_numbers<[1], [0], [0], [1], [0, 0, 1, 1], [], []>} : vector<8x128xbf16>, vector<128x512xbf16>, vector<8x512xf32> -> vector<8x512xf32>
    %454 = arith.addf %450, %453 : vector<8x512xf32>
    %455 = vector.extract_strided_slice %454 {offsets = [0, 0], sizes = [8, 128], strides = [1, 1]} : vector<8x512xf32> to vector<8x128xf32>
    %456 = arith.negf %455 : vector<8x128xf32>
    %457 = math.exp %456 : vector<8x128xf32>
    %cst_153 = arith.constant 1.000000e+00 : f32
    %458 = vector.broadcast %cst_153 : f32 to vector<8x128xf32>
    %459 = arith.addf %458, %457 : vector<8x128xf32>
    %460 = arith.divf %458, %459 : vector<8x128xf32>
    %461 = vector.extract_strided_slice %454 {offsets = [0, 128], sizes = [8, 128], strides = [1, 1]} : vector<8x512xf32> to vector<8x128xf32>
    %462 = arith.negf %461 : vector<8x128xf32>
    %463 = math.exp %462 : vector<8x128xf32>
    %cst_154 = arith.constant 1.000000e+00 : f32
    %464 = vector.broadcast %cst_154 : f32 to vector<8x128xf32>
    %465 = arith.addf %464, %463 : vector<8x128xf32>
    %466 = arith.divf %464, %465 : vector<8x128xf32>
    %467 = vector.extract_strided_slice %454 {offsets = [0, 256], sizes = [8, 128], strides = [1, 1]} : vector<8x512xf32> to vector<8x128xf32>
    %468 = math.tanh %467 : vector<8x128xf32>
    %469 = vector.extract_strided_slice %454 {offsets = [0, 384], sizes = [8, 128], strides = [1, 1]} : vector<8x512xf32> to vector<8x128xf32>
    %470 = arith.negf %469 : vector<8x128xf32>
    %471 = math.exp %470 : vector<8x128xf32>
    %cst_155 = arith.constant 1.000000e+00 : f32
    %472 = vector.broadcast %cst_155 : f32 to vector<8x128xf32>
    %473 = arith.addf %472, %471 : vector<8x128xf32>
    %474 = arith.divf %472, %473 : vector<8x128xf32>
    %475 = arith.mulf %466, %413 : vector<8x128xf32>
    %476 = arith.mulf %460, %468 : vector<8x128xf32>
    %477 = arith.addf %475, %476 : vector<8x128xf32>
    %478 = math.tanh %477 : vector<8x128xf32>
    %479 = arith.mulf %474, %478 : vector<8x128xf32>
    %480 = arith.truncf %479 : vector<8x128xf32> to vector<8x128xbf16>
    %c0_156 = arith.constant 0 : index
    %c0_157 = arith.constant 0 : index
    %481 = vector.load %arg7[%c0_156, %c0_157] : memref<128x128xbf16, #tpu.memory_space<vmem>>, vector<128x128xbf16>
    %cst_158 = arith.constant dense<0.000000e+00> : vector<8x128xf32>
    %482 = tpu.matmul %480, %481, %cst_158 {dimension_numbers = #tpu.dot_dimension_numbers<[1], [0], [0], [1], [0, 0, 1, 1], [], []>} : vector<8x128xbf16>, vector<128x128xbf16>, vector<8x128xf32> -> vector<8x128xf32>
    %483 = arith.addf %482, %251 : vector<8x128xf32>
    %c3_159 = arith.constant 3 : index
    %c0_160 = arith.constant 0 : index
    %c0_161 = arith.constant 0 : index
    %484 = vector.load %arg9[%c3_159, %c0_160, %c0_161] : memref<7x8x128xf32, #tpu.memory_space<vmem>>, vector<1x8x128xf32>
    %485 = vector.shape_cast %484 : vector<1x8x128xf32> to vector<8x128xf32>
    %486 = vector.shape_cast %483 : vector<8x128xf32> to vector<1x8x128xf32>
    tpu.vector_store %arg9[%c3_159, %c0_160, %c0_161], %486 {strides = array<i32>} : memref<7x8x128xf32, #tpu.memory_space<vmem>>, vector<1x8x128xf32>,
    %cst_162 = arith.constant -1.000000e+30 : f32
    %487 = vector.broadcast %cst_162 : f32 to vector<8x128xf32>
    %488 = arith.select %255, %483, %487 : vector<8x128xi1>, vector<8x128xf32>
    %cst_163 = arith.constant dense<0xFF800000> : vector<8xf32>
    %489 = vector.multi_reduction <maximumf>, %488, %cst_163 [1] : vector<8x128xf32> to vector<8xf32>
    %490 = vector.shape_cast %489 : vector<8xf32> to vector<8x1xf32>
    %491 = vector.broadcast %490 : vector<8x1xf32> to vector<8x128xf32>
    %492 = arith.cmpf oeq, %488, %491 : vector<8x128xf32>
    %cst_164 = arith.constant 1.280000e+02 : f32
    %493 = vector.broadcast %cst_164 : f32 to vector<8x128xf32>
    %494 = arith.select %492, %253, %493 : vector<8x128xi1>, vector<8x128xf32>
    %cst_165 = arith.constant dense<0x7F800000> : vector<8xf32>
    %495 = vector.multi_reduction <minimumf>, %494, %cst_165 [1] : vector<8x128xf32> to vector<8xf32>
    %496 = vector.shape_cast %495 : vector<8xf32> to vector<8x1xf32>
    %497 = vector.broadcast %496 : vector<8x1xf32> to vector<8x128xf32>
    %498 = arith.cmpf oeq, %253, %497 : vector<8x128xf32>
    %cst_166 = arith.constant 1.000000e+00 : f32
    %cst_167 = arith.constant 0.000000e+00 : f32
    %499 = vector.broadcast %cst_166 : f32 to vector<8x128xf32>
    %500 = vector.broadcast %cst_167 : f32 to vector<8x128xf32>
    %501 = arith.select %498, %499, %500 : vector<8x128xi1>, vector<8x128xf32>
    %502 = arith.truncf %501 : vector<8x128xf32> to vector<8x128xbf16>
    %c0_168 = arith.constant 0 : index
    %c0_169 = arith.constant 0 : index
    %503 = vector.load %arg6[%c0_168, %c0_169] : memref<128x512xbf16, #tpu.memory_space<vmem>>, vector<128x512xbf16>
    %cst_170 = arith.constant dense<0.000000e+00> : vector<8x512xf32>
    %504 = tpu.matmul %502, %503, %cst_170 {dimension_numbers = #tpu.dot_dimension_numbers<[1], [0], [0], [1], [0, 0, 1, 1], [], []>} : vector<8x128xbf16>, vector<128x512xbf16>, vector<8x512xf32> -> vector<8x512xf32>
    %c4_171 = arith.constant 4 : index
    %505 = memref.load %arg0[%c4_171] : memref<8xf32, #tpu.memory_space<smem>>
    %c4_172 = arith.constant 4 : index
    %c0_173 = arith.constant 0 : index
    %c0_174 = arith.constant 0 : index
    %506 = vector.load %arg3[%c4_172, %c0_173, %c0_174] : memref<8x8x512xf32, #tpu.memory_space<vmem>>, vector<1x8x512xf32>
    %507 = vector.shape_cast %506 : vector<1x8x512xf32> to vector<8x512xf32>
    %508 = vector.broadcast %505 : f32 to vector<8x512xf32>
    %509 = arith.mulf %508, %507 : vector<8x512xf32>
    %cst_175 = arith.constant 1.000000e+00 : f32
    %510 = arith.subf %cst_175, %505 : f32
    %511 = vector.broadcast %510 : f32 to vector<8x512xf32>
    %512 = arith.mulf %511, %504 : vector<8x512xf32>
    %513 = arith.addf %509, %512 : vector<8x512xf32>
    %514 = arith.addf %513, %250 : vector<8x512xf32>
    %515 = arith.truncf %479 : vector<8x128xf32> to vector<8x128xbf16>
    %c0_176 = arith.constant 0 : index
    %c0_177 = arith.constant 0 : index
    %516 = vector.load %arg4[%c0_176, %c0_177] : memref<128x512xbf16, #tpu.memory_space<vmem>>, vector<128x512xbf16>
    %cst_178 = arith.constant dense<0.000000e+00> : vector<8x512xf32>
    %517 = tpu.matmul %515, %516, %cst_178 {dimension_numbers = #tpu.dot_dimension_numbers<[1], [0], [0], [1], [0, 0, 1, 1], [], []>} : vector<8x128xbf16>, vector<128x512xbf16>, vector<8x512xf32> -> vector<8x512xf32>
    %518 = arith.addf %514, %517 : vector<8x512xf32>
    %519 = vector.extract_strided_slice %518 {offsets = [0, 0], sizes = [8, 128], strides = [1, 1]} : vector<8x512xf32> to vector<8x128xf32>
    %520 = arith.negf %519 : vector<8x128xf32>
    %521 = math.exp %520 : vector<8x128xf32>
    %cst_179 = arith.constant 1.000000e+00 : f32
    %522 = vector.broadcast %cst_179 : f32 to vector<8x128xf32>
    %523 = arith.addf %522, %521 : vector<8x128xf32>
    %524 = arith.divf %522, %523 : vector<8x128xf32>
    %525 = vector.extract_strided_slice %518 {offsets = [0, 128], sizes = [8, 128], strides = [1, 1]} : vector<8x512xf32> to vector<8x128xf32>
    %526 = arith.negf %525 : vector<8x128xf32>
    %527 = math.exp %526 : vector<8x128xf32>
    %cst_180 = arith.constant 1.000000e+00 : f32
    %528 = vector.broadcast %cst_180 : f32 to vector<8x128xf32>
    %529 = arith.addf %528, %527 : vector<8x128xf32>
    %530 = arith.divf %528, %529 : vector<8x128xf32>
    %531 = vector.extract_strided_slice %518 {offsets = [0, 256], sizes = [8, 128], strides = [1, 1]} : vector<8x512xf32> to vector<8x128xf32>
    %532 = math.tanh %531 : vector<8x128xf32>
    %533 = vector.extract_strided_slice %518 {offsets = [0, 384], sizes = [8, 128], strides = [1, 1]} : vector<8x512xf32> to vector<8x128xf32>
    %534 = arith.negf %533 : vector<8x128xf32>
    %535 = math.exp %534 : vector<8x128xf32>
    %cst_181 = arith.constant 1.000000e+00 : f32
    %536 = vector.broadcast %cst_181 : f32 to vector<8x128xf32>
    %537 = arith.addf %536, %535 : vector<8x128xf32>
    %538 = arith.divf %536, %537 : vector<8x128xf32>
    %539 = arith.mulf %530, %477 : vector<8x128xf32>
    %540 = arith.mulf %524, %532 : vector<8x128xf32>
    %541 = arith.addf %539, %540 : vector<8x128xf32>
    %542 = math.tanh %541 : vector<8x128xf32>
    %543 = arith.mulf %538, %542 : vector<8x128xf32>
    %544 = arith.truncf %543 : vector<8x128xf32> to vector<8x128xbf16>
    %c0_182 = arith.constant 0 : index
    %c0_183 = arith.constant 0 : index
    %545 = vector.load %arg7[%c0_182, %c0_183] : memref<128x128xbf16, #tpu.memory_space<vmem>>, vector<128x128xbf16>
    %cst_184 = arith.constant dense<0.000000e+00> : vector<8x128xf32>
    %546 = tpu.matmul %544, %545, %cst_184 {dimension_numbers = #tpu.dot_dimension_numbers<[1], [0], [0], [1], [0, 0, 1, 1], [], []>} : vector<8x128xbf16>, vector<128x128xbf16>, vector<8x128xf32> -> vector<8x128xf32>
    %547 = arith.addf %546, %251 : vector<8x128xf32>
    %c4_185 = arith.constant 4 : index
    %c0_186 = arith.constant 0 : index
    %c0_187 = arith.constant 0 : index
    %548 = vector.load %arg9[%c4_185, %c0_186, %c0_187] : memref<7x8x128xf32, #tpu.memory_space<vmem>>, vector<1x8x128xf32>
    %549 = vector.shape_cast %548 : vector<1x8x128xf32> to vector<8x128xf32>
    %550 = vector.shape_cast %547 : vector<8x128xf32> to vector<1x8x128xf32>
    tpu.vector_store %arg9[%c4_185, %c0_186, %c0_187], %550 {strides = array<i32>} : memref<7x8x128xf32, #tpu.memory_space<vmem>>, vector<1x8x128xf32>,
    %cst_188 = arith.constant -1.000000e+30 : f32
    %551 = vector.broadcast %cst_188 : f32 to vector<8x128xf32>
    %552 = arith.select %255, %547, %551 : vector<8x128xi1>, vector<8x128xf32>
    %cst_189 = arith.constant dense<0xFF800000> : vector<8xf32>
    %553 = vector.multi_reduction <maximumf>, %552, %cst_189 [1] : vector<8x128xf32> to vector<8xf32>
    %554 = vector.shape_cast %553 : vector<8xf32> to vector<8x1xf32>
    %555 = vector.broadcast %554 : vector<8x1xf32> to vector<8x128xf32>
    %556 = arith.cmpf oeq, %552, %555 : vector<8x128xf32>
    %cst_190 = arith.constant 1.280000e+02 : f32
    %557 = vector.broadcast %cst_190 : f32 to vector<8x128xf32>
    %558 = arith.select %556, %253, %557 : vector<8x128xi1>, vector<8x128xf32>
    %cst_191 = arith.constant dense<0x7F800000> : vector<8xf32>
    %559 = vector.multi_reduction <minimumf>, %558, %cst_191 [1] : vector<8x128xf32> to vector<8xf32>
    %560 = vector.shape_cast %559 : vector<8xf32> to vector<8x1xf32>
    %561 = vector.broadcast %560 : vector<8x1xf32> to vector<8x128xf32>
    %562 = arith.cmpf oeq, %253, %561 : vector<8x128xf32>
    %cst_192 = arith.constant 1.000000e+00 : f32
    %cst_193 = arith.constant 0.000000e+00 : f32
    %563 = vector.broadcast %cst_192 : f32 to vector<8x128xf32>
    %564 = vector.broadcast %cst_193 : f32 to vector<8x128xf32>
    %565 = arith.select %562, %563, %564 : vector<8x128xi1>, vector<8x128xf32>
    %566 = arith.truncf %565 : vector<8x128xf32> to vector<8x128xbf16>
    %c0_194 = arith.constant 0 : index
    %c0_195 = arith.constant 0 : index
    %567 = vector.load %arg6[%c0_194, %c0_195] : memref<128x512xbf16, #tpu.memory_space<vmem>>, vector<128x512xbf16>
    %cst_196 = arith.constant dense<0.000000e+00> : vector<8x512xf32>
    %568 = tpu.matmul %566, %567, %cst_196 {dimension_numbers = #tpu.dot_dimension_numbers<[1], [0], [0], [1], [0, 0, 1, 1], [], []>} : vector<8x128xbf16>, vector<128x512xbf16>, vector<8x512xf32> -> vector<8x512xf32>
    %c5_197 = arith.constant 5 : index
    %569 = memref.load %arg0[%c5_197] : memref<8xf32, #tpu.memory_space<smem>>
    %c5_198 = arith.constant 5 : index
    %c0_199 = arith.constant 0 : index
    %c0_200 = arith.constant 0 : index
    %570 = vector.load %arg3[%c5_198, %c0_199, %c0_200] : memref<8x8x512xf32, #tpu.memory_space<vmem>>, vector<1x8x512xf32>
    %571 = vector.shape_cast %570 : vector<1x8x512xf32> to vector<8x512xf32>
    %572 = vector.broadcast %569 : f32 to vector<8x512xf32>
    %573 = arith.mulf %572, %571 : vector<8x512xf32>
    %cst_201 = arith.constant 1.000000e+00 : f32
    %574 = arith.subf %cst_201, %569 : f32
    %575 = vector.broadcast %574 : f32 to vector<8x512xf32>
    %576 = arith.mulf %575, %568 : vector<8x512xf32>
    %577 = arith.addf %573, %576 : vector<8x512xf32>
    %578 = arith.addf %577, %250 : vector<8x512xf32>
    %579 = arith.truncf %543 : vector<8x128xf32> to vector<8x128xbf16>
    %c0_202 = arith.constant 0 : index
    %c0_203 = arith.constant 0 : index
    %580 = vector.load %arg4[%c0_202, %c0_203] : memref<128x512xbf16, #tpu.memory_space<vmem>>, vector<128x512xbf16>
    %cst_204 = arith.constant dense<0.000000e+00> : vector<8x512xf32>
    %581 = tpu.matmul %579, %580, %cst_204 {dimension_numbers = #tpu.dot_dimension_numbers<[1], [0], [0], [1], [0, 0, 1, 1], [], []>} : vector<8x128xbf16>, vector<128x512xbf16>, vector<8x512xf32> -> vector<8x512xf32>
    %582 = arith.addf %578, %581 : vector<8x512xf32>
    %583 = vector.extract_strided_slice %582 {offsets = [0, 0], sizes = [8, 128], strides = [1, 1]} : vector<8x512xf32> to vector<8x128xf32>
    %584 = arith.negf %583 : vector<8x128xf32>
    %585 = math.exp %584 : vector<8x128xf32>
    %cst_205 = arith.constant 1.000000e+00 : f32
    %586 = vector.broadcast %cst_205 : f32 to vector<8x128xf32>
    %587 = arith.addf %586, %585 : vector<8x128xf32>
    %588 = arith.divf %586, %587 : vector<8x128xf32>
    %589 = vector.extract_strided_slice %582 {offsets = [0, 128], sizes = [8, 128], strides = [1, 1]} : vector<8x512xf32> to vector<8x128xf32>
    %590 = arith.negf %589 : vector<8x128xf32>
    %591 = math.exp %590 : vector<8x128xf32>
    %cst_206 = arith.constant 1.000000e+00 : f32
    %592 = vector.broadcast %cst_206 : f32 to vector<8x128xf32>
    %593 = arith.addf %592, %591 : vector<8x128xf32>
    %594 = arith.divf %592, %593 : vector<8x128xf32>
    %595 = vector.extract_strided_slice %582 {offsets = [0, 256], sizes = [8, 128], strides = [1, 1]} : vector<8x512xf32> to vector<8x128xf32>
    %596 = math.tanh %595 : vector<8x128xf32>
    %597 = vector.extract_strided_slice %582 {offsets = [0, 384], sizes = [8, 128], strides = [1, 1]} : vector<8x512xf32> to vector<8x128xf32>
    %598 = arith.negf %597 : vector<8x128xf32>
    %599 = math.exp %598 : vector<8x128xf32>
    %cst_207 = arith.constant 1.000000e+00 : f32
    %600 = vector.broadcast %cst_207 : f32 to vector<8x128xf32>
    %601 = arith.addf %600, %599 : vector<8x128xf32>
    %602 = arith.divf %600, %601 : vector<8x128xf32>
    %603 = arith.mulf %594, %541 : vector<8x128xf32>
    %604 = arith.mulf %588, %596 : vector<8x128xf32>
    %605 = arith.addf %603, %604 : vector<8x128xf32>
    %606 = math.tanh %605 : vector<8x128xf32>
    %607 = arith.mulf %602, %606 : vector<8x128xf32>
    %608 = arith.truncf %607 : vector<8x128xf32> to vector<8x128xbf16>
    %c0_208 = arith.constant 0 : index
    %c0_209 = arith.constant 0 : index
    %609 = vector.load %arg7[%c0_208, %c0_209] : memref<128x128xbf16, #tpu.memory_space<vmem>>, vector<128x128xbf16>
    %cst_210 = arith.constant dense<0.000000e+00> : vector<8x128xf32>
    %610 = tpu.matmul %608, %609, %cst_210 {dimension_numbers = #tpu.dot_dimension_numbers<[1], [0], [0], [1], [0, 0, 1, 1], [], []>} : vector<8x128xbf16>, vector<128x128xbf16>, vector<8x128xf32> -> vector<8x128xf32>
    %611 = arith.addf %610, %251 : vector<8x128xf32>
    %c5_211 = arith.constant 5 : index
    %c0_212 = arith.constant 0 : index
    %c0_213 = arith.constant 0 : index
    %612 = vector.load %arg9[%c5_211, %c0_212, %c0_213] : memref<7x8x128xf32, #tpu.memory_space<vmem>>, vector<1x8x128xf32>
    %613 = vector.shape_cast %612 : vector<1x8x128xf32> to vector<8x128xf32>
    %614 = vector.shape_cast %611 : vector<8x128xf32> to vector<1x8x128xf32>
    tpu.vector_store %arg9[%c5_211, %c0_212, %c0_213], %614 {strides = array<i32>} : memref<7x8x128xf32, #tpu.memory_space<vmem>>, vector<1x8x128xf32>,
    %cst_214 = arith.constant -1.000000e+30 : f32
    %615 = vector.broadcast %cst_214 : f32 to vector<8x128xf32>
    %616 = arith.select %255, %611, %615 : vector<8x128xi1>, vector<8x128xf32>
    %cst_215 = arith.constant dense<0xFF800000> : vector<8xf32>
    %617 = vector.multi_reduction <maximumf>, %616, %cst_215 [1] : vector<8x128xf32> to vector<8xf32>
    %618 = vector.shape_cast %617 : vector<8xf32> to vector<8x1xf32>
    %619 = vector.broadcast %618 : vector<8x1xf32> to vector<8x128xf32>
    %620 = arith.cmpf oeq, %616, %619 : vector<8x128xf32>
    %cst_216 = arith.constant 1.280000e+02 : f32
    %621 = vector.broadcast %cst_216 : f32 to vector<8x128xf32>
    %622 = arith.select %620, %253, %621 : vector<8x128xi1>, vector<8x128xf32>
    %cst_217 = arith.constant dense<0x7F800000> : vector<8xf32>
    %623 = vector.multi_reduction <minimumf>, %622, %cst_217 [1] : vector<8x128xf32> to vector<8xf32>
    %624 = vector.shape_cast %623 : vector<8xf32> to vector<8x1xf32>
    %625 = vector.broadcast %624 : vector<8x1xf32> to vector<8x128xf32>
    %626 = arith.cmpf oeq, %253, %625 : vector<8x128xf32>
    %cst_218 = arith.constant 1.000000e+00 : f32
    %cst_219 = arith.constant 0.000000e+00 : f32
    %627 = vector.broadcast %cst_218 : f32 to vector<8x128xf32>
    %628 = vector.broadcast %cst_219 : f32 to vector<8x128xf32>
    %629 = arith.select %626, %627, %628 : vector<8x128xi1>, vector<8x128xf32>
    %630 = arith.truncf %629 : vector<8x128xf32> to vector<8x128xbf16>
    %c0_220 = arith.constant 0 : index
    %c0_221 = arith.constant 0 : index
    %631 = vector.load %arg6[%c0_220, %c0_221] : memref<128x512xbf16, #tpu.memory_space<vmem>>, vector<128x512xbf16>
    %cst_222 = arith.constant dense<0.000000e+00> : vector<8x512xf32>
    %632 = tpu.matmul %630, %631, %cst_222 {dimension_numbers = #tpu.dot_dimension_numbers<[1], [0], [0], [1], [0, 0, 1, 1], [], []>} : vector<8x128xbf16>, vector<128x512xbf16>, vector<8x512xf32> -> vector<8x512xf32>
    %c6_223 = arith.constant 6 : index
    %633 = memref.load %arg0[%c6_223] : memref<8xf32, #tpu.memory_space<smem>>
    %c6_224 = arith.constant 6 : index
    %c0_225 = arith.constant 0 : index
    %c0_226 = arith.constant 0 : index
    %634 = vector.load %arg3[%c6_224, %c0_225, %c0_226] : memref<8x8x512xf32, #tpu.memory_space<vmem>>, vector<1x8x512xf32>
    %635 = vector.shape_cast %634 : vector<1x8x512xf32> to vector<8x512xf32>
    %636 = vector.broadcast %633 : f32 to vector<8x512xf32>
    %637 = arith.mulf %636, %635 : vector<8x512xf32>
    %cst_227 = arith.constant 1.000000e+00 : f32
    %638 = arith.subf %cst_227, %633 : f32
    %639 = vector.broadcast %638 : f32 to vector<8x512xf32>
    %640 = arith.mulf %639, %632 : vector<8x512xf32>
    %641 = arith.addf %637, %640 : vector<8x512xf32>
    %642 = arith.addf %641, %250 : vector<8x512xf32>
    %643 = arith.truncf %607 : vector<8x128xf32> to vector<8x128xbf16>
    %c0_228 = arith.constant 0 : index
    %c0_229 = arith.constant 0 : index
    %644 = vector.load %arg4[%c0_228, %c0_229] : memref<128x512xbf16, #tpu.memory_space<vmem>>, vector<128x512xbf16>
    %cst_230 = arith.constant dense<0.000000e+00> : vector<8x512xf32>
    %645 = tpu.matmul %643, %644, %cst_230 {dimension_numbers = #tpu.dot_dimension_numbers<[1], [0], [0], [1], [0, 0, 1, 1], [], []>} : vector<8x128xbf16>, vector<128x512xbf16>, vector<8x512xf32> -> vector<8x512xf32>
    %646 = arith.addf %642, %645 : vector<8x512xf32>
    %647 = vector.extract_strided_slice %646 {offsets = [0, 0], sizes = [8, 128], strides = [1, 1]} : vector<8x512xf32> to vector<8x128xf32>
    %648 = arith.negf %647 : vector<8x128xf32>
    %649 = math.exp %648 : vector<8x128xf32>
    %cst_231 = arith.constant 1.000000e+00 : f32
    %650 = vector.broadcast %cst_231 : f32 to vector<8x128xf32>
    %651 = arith.addf %650, %649 : vector<8x128xf32>
    %652 = arith.divf %650, %651 : vector<8x128xf32>
    %653 = vector.extract_strided_slice %646 {offsets = [0, 128], sizes = [8, 128], strides = [1, 1]} : vector<8x512xf32> to vector<8x128xf32>
    %654 = arith.negf %653 : vector<8x128xf32>
    %655 = math.exp %654 : vector<8x128xf32>
    %cst_232 = arith.constant 1.000000e+00 : f32
    %656 = vector.broadcast %cst_232 : f32 to vector<8x128xf32>
    %657 = arith.addf %656, %655 : vector<8x128xf32>
    %658 = arith.divf %656, %657 : vector<8x128xf32>
    %659 = vector.extract_strided_slice %646 {offsets = [0, 256], sizes = [8, 128], strides = [1, 1]} : vector<8x512xf32> to vector<8x128xf32>
    %660 = math.tanh %659 : vector<8x128xf32>
    %661 = vector.extract_strided_slice %646 {offsets = [0, 384], sizes = [8, 128], strides = [1, 1]} : vector<8x512xf32> to vector<8x128xf32>
    %662 = arith.negf %661 : vector<8x128xf32>
    %663 = math.exp %662 : vector<8x128xf32>
    %cst_233 = arith.constant 1.000000e+00 : f32
    %664 = vector.broadcast %cst_233 : f32 to vector<8x128xf32>
    %665 = arith.addf %664, %663 : vector<8x128xf32>
    %666 = arith.divf %664, %665 : vector<8x128xf32>
    %667 = arith.mulf %658, %605 : vector<8x128xf32>
    %668 = arith.mulf %652, %660 : vector<8x128xf32>
    %669 = arith.addf %667, %668 : vector<8x128xf32>
    %670 = math.tanh %669 : vector<8x128xf32>
    %671 = arith.mulf %666, %670 : vector<8x128xf32>
    %672 = arith.truncf %671 : vector<8x128xf32> to vector<8x128xbf16>
    %c0_234 = arith.constant 0 : index
    %c0_235 = arith.constant 0 : index
    %673 = vector.load %arg7[%c0_234, %c0_235] : memref<128x128xbf16, #tpu.memory_space<vmem>>, vector<128x128xbf16>
    %cst_236 = arith.constant dense<0.000000e+00> : vector<8x128xf32>
    %674 = tpu.matmul %672, %673, %cst_236 {dimension_numbers = #tpu.dot_dimension_numbers<[1], [0], [0], [1], [0, 0, 1, 1], [], []>} : vector<8x128xbf16>, vector<128x128xbf16>, vector<8x128xf32> -> vector<8x128xf32>
    %675 = arith.addf %674, %251 : vector<8x128xf32>
    %c6_237 = arith.constant 6 : index
    %c0_238 = arith.constant 0 : index
    %c0_239 = arith.constant 0 : index
    %676 = vector.load %arg9[%c6_237, %c0_238, %c0_239] : memref<7x8x128xf32, #tpu.memory_space<vmem>>, vector<1x8x128xf32>
    %677 = vector.shape_cast %676 : vector<1x8x128xf32> to vector<8x128xf32>
    %678 = vector.shape_cast %675 : vector<8x128xf32> to vector<1x8x128xf32>
    tpu.vector_store %arg9[%c6_237, %c0_238, %c0_239], %678 {strides = array<i32>} : memref<7x8x128xf32, #tpu.memory_space<vmem>>, vector<1x8x128xf32>,
    return
  }
}

</mosaic_0001>

<bundles_post_ra>
// kernel: seq2seq_forward.1
= control target key start
LH: loop header
LB: loop body
LE: loop exit
PB: predicated region body
PF: predicated region fallthrough
CT: control target
= control target key end

     0   :  { %14 = vsyncpa [#allocation3], 0  ;;  %s8618_s12 = smov [#allocation2]   ;;  %s12353_s0 = inlined_call_operand.vmem [shape: f32[8], index: 0, kind: input, shape index: {}]   ;;  %s12354_s1 = inlined_call_operand.vmem [shape: f32[8,8,512], index: 1, kind: input, shape index: {}]   ;;  %s12355_s2 = inlined_call_operand.vmem [shape: bf16[128,512], index: 2, kind: input, shape index: {}]   ;;  %s12356_s3 = inlined_call_operand.vmem [shape: f32[8,8,512], index: 3, kind: input, shape index: {}]   ;;  %s12357_s4 = inlined_call_operand.vmem [shape: bf16[128,512], index: 4, kind: input, shape index: {}]   ;;  %s12358_s5 = inlined_call_operand.vmem [shape: f32[8,512], index: 5, kind: input, shape index: {}]   ;;  %s12359_s6 = inlined_call_operand.vmem [shape: bf16[128,512], index: 6, kind: input, shape index: {}]   ;;  %s12360_s7 = inlined_call_operand.vmem [shape: bf16[128,128], index: 7, kind: input, shape index: {}]   ;;  %s12361_s8 = inlined_call_operand.vmem [shape: f32[8,128], index: 8, kind: input, shape index: {}]   ;;  %s12362_s9 = inlined_call_operand.vmem [shape: f32[7,8,128], index: 9, kind: output, shape index: {}]  }
   0x1   :  { %s20_s11 = sshll.u32 %s12353_s0, 4  ;;  %s21_s11 = int_to_ptr.vmem [resolvable:$true] %s20_s11 }
   0x2   :  { %23 = dma.vmem_to_smem %s21_s11, 16, %s8618_s12, [#allocation3]  }
   0x3   :  { %8616 = dma.done.wait [#allocation3], 16  }
   0x4   :  { %8617 = vsyncadd [#allocation3], 4294967280 }
   0x5   :  { %44 = sfence }
   0x6   :  { %v5783_v0 = vld [vmem:[%s12355_s2 + $0xe0] sm:$0xf]  ;;  %v7872_v1 = vld [vmem:[%s12355_s2 + $0xec] sm:$0xf0]  ;;  %v7870_v2 = vld [vmem:[%s12355_s2 + $0xe4] sm:$0xf] }
   0x7   :  { %v8683_v3 = vor.u32 %v7872_v1, %v5783_v0  ;;  %v5785_v4 = vld [vmem:[%s12355_s2 + $0xf0] sm:$0xf0]  ;;  %v7871_v5 = vld [vmem:[%s12355_s2 + $0xec] sm:$0xf]  ;;  %v5793_v6 = vld [vmem:[%s12355_s2 + $0xf8] sm:$0xf0] }
   0x8   :  { %v8694_v7 = vor.u32 %v7870_v2, %v5785_v4  ;;  %v8696_v8 = vor.u32 %v7871_v5, %v5793_v6  ;;  %v5767_v9 = vld [vmem:[%s12355_s2 + $0xc0] sm:$0xf]  ;;  %v7868_v10 = vld [vmem:[%s12355_s2 + $0xcc] sm:$0xf0]  ;;  %v7866_v11 = vld [vmem:[%s12355_s2 + $0xc4] sm:$0xf] }
   0x9   :  { %242 = vmatpush.bf16.msra.mxu0 %v8683_v3  ;;  %v8708_v12 = vor.u32 %v7868_v10, %v5767_v9  ;;  %v5769_v13 = vld [vmem:[%s12355_s2 + $0xd0] sm:$0xf0]  ;;  %v7867_v14 = vld [vmem:[%s12355_s2 + $0xcc] sm:$0xf]  ;;  %v5777_v15 = vld [vmem:[%s12355_s2 + $0xd8] sm:$0xf0] }
   0xa   :  { %255 = vmatpush.bf16.msra.mxu1 %v8694_v7  ;;  %281 = vmatpush.bf16.msra.mxu3 %v8696_v8  ;;  %v8721_v16 = vor.u32 %v7866_v11, %v5769_v13  ;;  %v8723_v17 = vor.u32 %v7867_v14, %v5777_v15  ;;  %v5791_v18 = vld [vmem:[%s12355_s2 + $0xe8] sm:$0xf]  ;;  %v7873_v19 = vld [vmem:[%s12355_s2 + $0xf4] sm:$0xf0]  ;;  %v5751_v20 = vld [vmem:[%s12355_s2 + $0xa0] sm:$0xf] }
   0xb   :  { %v8734_v21 = vor.u32 %v7873_v19, %v5791_v18  ;;  %v7864_v22 = vld [vmem:[%s12355_s2 + $0xac] sm:$0xf0]  ;;  %v7862_v23 = vld [vmem:[%s12355_s2 + $0xa4] sm:$0xf]  ;;  %v5753_v24 = vld [vmem:[%s12355_s2 + $0xb0] sm:$0xf0] }
   0xc   :  { %v7863_v25 = vld [vmem:[%s12355_s2 + $0xac] sm:$0xf]  ;;  %v5761_v26 = vld [vmem:[%s12355_s2 + $0xb8] sm:$0xf0]  ;;  %v5775_v27 = vld [vmem:[%s12355_s2 + $0xc8] sm:$0xf]  ;;  %v8756_v28 = vor.u32 %v7864_v22, %v5751_v20  ;;  %v8769_v32 = vor.u32 %v7862_v23, %v5753_v24 }
   0xd   :  { %243 = vmatpush.bf16.msra.mxu0 %v8708_v12  ;;  %268 = vmatpush.bf16.msra.mxu2 %v8734_v21  ;;  %v7869_v29 = vld [vmem:[%s12355_s2 + $0xd4] sm:$0xf0]  ;;  %v5735_v30 = vld [vmem:[%s12355_s2 + $0x80] sm:$0xf]  ;;  %v7860_v31 = vld [vmem:[%s12355_s2 + $0x8c] sm:$0xf0]  ;;  %v8771_v33 = vor.u32 %v7863_v25, %v5761_v26 }
   0xe   :  { %256 = vmatpush.bf16.msra.mxu1 %v8721_v16  ;;  %282 = vmatpush.bf16.msra.mxu3 %v8723_v17  ;;  %v8773_v34 = vor.u32 %v7869_v29, %v5775_v27  ;;  %v7858_v35 = vld [vmem:[%s12355_s2 + $0x84] sm:$0xf]  ;;  %v5737_v36 = vld [vmem:[%s12355_s2 + $0x90] sm:$0xf0]  ;;  %v7859_v37 = vld [vmem:[%s12355_s2 + $0x8c] sm:$0xf]  ;;  %v8795_v41 = vor.u32 %v7860_v31, %v5735_v30 }
   0xf   :  { %v5745_v38 = vld [vmem:[%s12355_s2 + $0x98] sm:$0xf0]  ;;  %v5759_v39 = vld [vmem:[%s12355_s2 + $0xa8] sm:$0xf]  ;;  %v7865_v40 = vld [vmem:[%s12355_s2 + $0xb4] sm:$0xf0]  ;;  %v8807_v45 = vor.u32 %v7858_v35, %v5737_v36 }
  0x10   :  { %v8797_v42 = vor.u32 %v7865_v40, %v5759_v39  ;;  %v5719_v43 = vld [vmem:[%s12355_s2 + $0x60] sm:$0xf]  ;;  %v7856_v44 = vld [vmem:[%s12355_s2 + $0x6c] sm:$0xf0]  ;;  %v8809_v46 = vor.u32 %v7859_v37, %v5745_v38  ;;  %v7854_v47 = vld [vmem:[%s12355_s2 + $0x64] sm:$0xf] }
  0x11   :  { %244 = vmatpush.bf16.msra.mxu0 %v8756_v28  ;;  %269 = vmatpush.bf16.msra.mxu2 %v8773_v34  ;;  %v5743_v48 = vld [vmem:[%s12355_s2 + $0x88] sm:$0xf]  ;;  %v7861_v49 = vld [vmem:[%s12355_s2 + $0x94] sm:$0xf0]  ;;  %v5721_v50 = vld [vmem:[%s12355_s2 + $0x70] sm:$0xf0]  ;;  %v8831_v53 = vor.u32 %v7856_v44, %v5719_v43 }
  0x12   :  { %257 = vmatpush.bf16.msra.mxu1 %v8769_v32  ;;  %283 = vmatpush.bf16.msra.mxu3 %v8771_v33  ;;  %v7855_v51 = vld [vmem:[%s12355_s2 + $0x6c] sm:$0xf]  ;;  %v5729_v52 = vld [vmem:[%s12355_s2 + $0x78] sm:$0xf0]  ;;  %v8833_v54 = vor.u32 %v7861_v49, %v5743_v48  ;;  %v5703_v55 = vld [vmem:[%s12355_s2 + $0x40] sm:$0xf]  ;;  %v8843_v57 = vor.u32 %v7854_v47, %v5721_v50 }
  0x13   :  { %v7852_v56 = vld [vmem:[%s12355_s2 + $0x4c] sm:$0xf0]  ;;  %v8845_v58 = vor.u32 %v7855_v51, %v5729_v52  ;;  %v7850_v59 = vld [vmem:[%s12355_s2 + $0x44] sm:$0xf]  ;;  %v5727_v60 = vld [vmem:[%s12355_s2 + $0x68] sm:$0xf] }
  0x14   :  { %v7857_v61 = vld [vmem:[%s12355_s2 + $0x74] sm:$0xf0]  ;;  %v5705_v62 = vld [vmem:[%s12355_s2 + $0x50] sm:$0xf0]  ;;  %v7851_v63 = vld [vmem:[%s12355_s2 + $0x4c] sm:$0xf]  ;;  %v8867_v1 = vor.u32 %v7852_v56, %v5703_v55 }
  0x15   :  { %245 = vmatpush.bf16.msra.mxu0 %v8795_v41  ;;  %270 = vmatpush.bf16.msra.mxu2 %v8797_v42  ;;  %v5713_v0 = vld [vmem:[%s12355_s2 + $0x58] sm:$0xf0]  ;;  %v8869_v2 = vor.u32 %v7857_v61, %v5727_v60  ;;  %v5687_v4 = vld [vmem:[%s12355_s2 + $0x20] sm:$0xf]  ;;  %v7848_v5 = vld [vmem:[%s12355_s2 + $0x2c] sm:$0xf0]  ;;  %v8879_v6 = vor.u32 %v7850_v59, %v5705_v62 }
  0x16   :  { %258 = vmatpush.bf16.msra.mxu1 %v8807_v45  ;;  %284 = vmatpush.bf16.msra.mxu3 %v8809_v46  ;;  %v8881_v9 = vor.u32 %v7851_v63, %v5713_v0  ;;  %v7846_v10 = vld [vmem:[%s12355_s2 + $0x24] sm:$0xf]  ;;  %v5711_v11 = vld [vmem:[%s12355_s2 + $0x48] sm:$0xf]  ;;  %v7853_v13 = vld [vmem:[%s12355_s2 + $0x54] sm:$0xf0]  ;;  %v8903_v19 = vor.u32 %v7848_v5, %v5687_v4 }
  0x17   :  { %v5689_v14 = vld [vmem:[%s12355_s2 + $0x30] sm:$0xf0]  ;;  %v7847_v15 = vld [vmem:[%s12355_s2 + $0x2c] sm:$0xf]  ;;  %v5697_v18 = vld [vmem:[%s12355_s2 + $0x38] sm:$0xf0]  ;;  %v8905_v20 = vor.u32 %v7853_v13, %v5711_v11 }
  0x18   :  { %v5671_v22 = vld [vmem:[%s12355_s2] sm:$0xf]  ;;  %v7844_v23 = vld [vmem:[%s12355_s2 + $0xc] sm:$0xf0]  ;;  %v8915_v24 = vor.u32 %v7846_v10, %v5689_v14  ;;  %v8917_v25 = vor.u32 %v7847_v15, %v5697_v18  ;;  %v7842_v26 = vld [vmem:[%s12355_s2 + $0x4] sm:$0xf] }
  0x19   :  { %246 = vmatpush.bf16.msra.mxu0 %v8831_v53  ;;  %271 = vmatpush.bf16.msra.mxu2 %v8833_v54  ;;  %v5695_v27 = vld [vmem:[%s12355_s2 + $0x28] sm:$0xf]  ;;  %v7849_v29 = vld [vmem:[%s12355_s2 + $0x34] sm:$0xf0]  ;;  %v5673_v30 = vld [vmem:[%s12355_s2 + $0x10] sm:$0xf0]  ;;  %v8939_v36 = vor.u32 %v7844_v23, %v5671_v22 }
  0x1a   :  { %259 = vmatpush.bf16.msra.mxu1 %v8843_v57  ;;  %285 = vmatpush.bf16.msra.mxu3 %v8845_v58  ;;  %v7843_v31 = vld [vmem:[%s12355_s2 + $0xc] sm:$0xf]  ;;  %v5681_v35 = vld [vmem:[%s12355_s2 + $0x18] sm:$0xf0]  ;;  %v8941_v37 = vor.u32 %v7849_v29, %v5695_v27  ;;  %v8945_v38 = vor.u32 %v7842_v26, %v5673_v30  ;;  %v5679_v40 = vld [vmem:[%s12355_s2 + $0x8] sm:$0xf] }
  0x1b   :  { %v8947_v39 = vor.u32 %v7843_v31, %v5681_v35  ;;  %v7845_v43 = vld [vmem:[%s12355_s2 + $0x14] sm:$0xf0]  ;;  %v8619_v47 = vmov 0   ;;  %v46_v48 = vld [vmem:[%s12354_s1] sm:$0xff]  ;;  %v47_v49 = vld [vmem:[%s12354_s1 + $0x8] sm:$0xff]  ;;  %s6148_s0 = sld [smem:[#allocation2 + $0x1]] }
  0x1c   :  { %v8959_v44 = vor.u32 %v7845_v43, %v5679_v40  ;;  %v49_v60 = vld [vmem:[%s12354_s1 + $0x18] sm:$0xff]  ;;  %v48_v15 = vld [vmem:[%s12354_s1 + $0x10] sm:$0xff]  ;;  %s6758_s20 = sld [smem:[#allocation2 + $0x3]] }
  0x1d   :  { %247 = vmatpush.bf16.msra.mxu0 %v8867_v1  ;;  %272 = vmatpush.bf16.msra.mxu2 %v8869_v2  ;;  %s7063_s17 = sld [smem:[#allocation2 + $0x4]] }
  0x1e   :  { %260 = vmatpush.bf16.msra.mxu1 %v8879_v6  ;;  %286 = vmatpush.bf16.msra.mxu3 %v8881_v9  ;;  %s7368_s22 = sld [smem:[#allocation2 + $0x5]] }
  0x21   :  { %248 = vmatpush.bf16.msra.mxu0 %v8903_v19  ;;  %273 = vmatpush.bf16.msra.mxu2 %v8905_v20  ;;  %s1909_s19 = ssub.f32 1.0, %s6148_s0 }
  0x22   :  { %261 = vmatpush.bf16.msra.mxu1 %v8915_v24  ;;  %287 = vmatpush.bf16.msra.mxu3 %v8917_v25  ;;  %s3249_s21 = ssub.f32 1.0, %s6758_s20 }
  0x24   :  { %s4589_s23 = ssub.f32 1.0, %s7368_s22 }
  0x25   :  { %249 = vmatpush.bf16.msra.mxu0 %v8939_v36  ;;  %274 = vmatpush.bf16.msra.mxu2 %v8941_v37 }
  0x26   :  { %262 = vmatpush.bf16.msra.mxu1 %v8945_v38  ;;  %288 = vmatpush.bf16.msra.mxu3 %v8947_v39 }
  0x28   :  { %250 = vmatmul.bf16.vlgmr.msra.gmra.mxu0 %v8619_v47 }
  0x29   :  { %367 = vmatpush.bf16.msrb.mxu0 %v8683_v3  ;;  %263 = vmatmul.bf16.vlgmr.msra.gmra.mxu1 %v8619_v47 }
  0x2a   :  { %380 = vmatpush.bf16.msrb.mxu1 %v8694_v7  ;;  %406 = vmatpush.bf16.msrb.mxu3 %v8696_v8 }
  0x2b   :  { %289 = vmatmul.bf16.vlgmr.msra.gmra.mxu3 %v8619_v47  ;;  %275 = vmatpush.bf16.msra.mxu2 %v8959_v44 }
  0x2d   :  { %368 = vmatpush.bf16.msrb.mxu0 %v8708_v12 }
  0x2e   :  { %381 = vmatpush.bf16.msrb.mxu1 %v8721_v16  ;;  %407 = vmatpush.bf16.msrb.mxu3 %v8723_v17 }
  0x2f   :  { %393 = vmatpush.bf16.msrb.mxu2 %v8734_v21 }
  0x30   :  { %276 = vmatmul.bf16.vlgmr.msra.gmra.mxu2 %v8619_v47 }
  0x31   :  { %369 = vmatpush.bf16.msrb.mxu0 %v8756_v28 }
  0x32   :  { %382 = vmatpush.bf16.msrb.mxu1 %v8769_v32  ;;  %408 = vmatpush.bf16.msrb.mxu3 %v8771_v33 }
  0x33   :  { %394 = vmatpush.bf16.msrb.mxu2 %v8773_v34 }
  0x35   :  { %370 = vmatpush.bf16.msrb.mxu0 %v8795_v41 }
  0x36   :  { %383 = vmatpush.bf16.msrb.mxu1 %v8807_v45  ;;  %409 = vmatpush.bf16.msrb.mxu3 %v8809_v46 }
  0x37   :  { %395 = vmatpush.bf16.msrb.mxu2 %v8797_v42 }
  0x39   :  { %371 = vmatpush.bf16.msrb.mxu0 %v8831_v53 }
  0x3a   :  { %384 = vmatpush.bf16.msrb.mxu1 %v8843_v57  ;;  %410 = vmatpush.bf16.msrb.mxu3 %v8845_v58 }
  0x3b   :  { %396 = vmatpush.bf16.msrb.mxu2 %v8833_v54 }
  0x3d   :  { %372 = vmatpush.bf16.msrb.mxu0 %v8867_v1 }
  0x3e   :  { %385 = vmatpush.bf16.msrb.mxu1 %v8879_v6  ;;  %411 = vmatpush.bf16.msrb.mxu3 %v8881_v9 }
  0x3f   :  { %397 = vmatpush.bf16.msrb.mxu2 %v8869_v2 }
  0x41   :  { %373 = vmatpush.bf16.msrb.mxu0 %v8903_v19 }
  0x42   :  { %386 = vmatpush.bf16.msrb.mxu1 %v8915_v24  ;;  %412 = vmatpush.bf16.msrb.mxu3 %v8917_v25 }
  0x43   :  { %398 = vmatpush.bf16.msrb.mxu2 %v8905_v20 }
  0x45   :  { %374 = vmatpush.bf16.msrb.mxu0 %v8939_v36 }
  0x46   :  { %387 = vmatpush.bf16.msrb.mxu1 %v8945_v38  ;;  %413 = vmatpush.bf16.msrb.mxu3 %v8947_v39 }
  0x47   :  { %399 = vmatpush.bf16.msrb.mxu2 %v8941_v37 }
  0x49   :  { %492 = vmatpush.bf16.msra.mxu0 %v8683_v3 }
  0x4a   :  { %505 = vmatpush.bf16.msra.mxu1 %v8694_v7  ;;  %531 = vmatpush.bf16.msra.mxu3 %v8696_v8 }
  0x4b   :  { %400 = vmatpush.bf16.msrb.mxu2 %v8959_v44 }
  0x4d   :  { %493 = vmatpush.bf16.msra.mxu0 %v8708_v12 }
  0x4e   :  { %506 = vmatpush.bf16.msra.mxu1 %v8721_v16  ;;  %532 = vmatpush.bf16.msra.mxu3 %v8723_v17 }
  0x4f   :  { %518 = vmatpush.bf16.msra.mxu2 %v8734_v21 }
  0x51   :  { %494 = vmatpush.bf16.msra.mxu0 %v8756_v28 }
  0x52   :  { %507 = vmatpush.bf16.msra.mxu1 %v8769_v32  ;;  %533 = vmatpush.bf16.msra.mxu3 %v8771_v33 }
  0x53   :  { %519 = vmatpush.bf16.msra.mxu2 %v8773_v34 }
  0x55   :  { %495 = vmatpush.bf16.msra.mxu0 %v8795_v41 }
  0x56   :  { %508 = vmatpush.bf16.msra.mxu1 %v8807_v45  ;;  %534 = vmatpush.bf16.msra.mxu3 %v8809_v46 }
  0x57   :  { %520 = vmatpush.bf16.msra.mxu2 %v8797_v42 }
  0x59   :  { %496 = vmatpush.bf16.msra.mxu0 %v8831_v53 }
  0x5a   :  { %509 = vmatpush.bf16.msra.mxu1 %v8843_v57  ;;  %535 = vmatpush.bf16.msra.mxu3 %v8845_v58 }
  0x5b   :  { %521 = vmatpush.bf16.msra.mxu2 %v8833_v54 }
  0x5d   :  { %497 = vmatpush.bf16.msra.mxu0 %v8867_v1 }
  0x5e   :  { %510 = vmatpush.bf16.msra.mxu1 %v8879_v6  ;;  %536 = vmatpush.bf16.msra.mxu3 %v8881_v9 }
  0x5f   :  { %522 = vmatpush.bf16.msra.mxu2 %v8869_v2 }
  0x61   :  { %498 = vmatpush.bf16.msra.mxu0 %v8903_v19 }
  0x62   :  { %511 = vmatpush.bf16.msra.mxu1 %v8915_v24  ;;  %537 = vmatpush.bf16.msra.mxu3 %v8917_v25 }
  0x63   :  { %523 = vmatpush.bf16.msra.mxu2 %v8905_v20 }
  0x65   :  { %499 = vmatpush.bf16.msra.mxu0 %v8939_v36 }
  0x66   :  { %512 = vmatpush.bf16.msra.mxu1 %v8945_v38  ;;  %538 = vmatpush.bf16.msra.mxu3 %v8947_v39 }
  0x67   :  { %524 = vmatpush.bf16.msra.mxu2 %v8941_v37 }
  0x6b   :  { %525 = vmatpush.bf16.msra.mxu2 %v8959_v44 }
  0xa5   :  { %v251_v50 = vpop.f32.mrf.mxu0 }
  0xa6   :  { %v294_v51 = vadd.f32 %v251_v50, %v46_v48  ;;  %v264_v52 = vpop.f32.mrf.mxu1 }
  0xa7   :  { %v295_v55 = vadd.f32 %v264_v52, %v47_v49 }
  0xa8   :  { %v5797_v56 = vmul.f32 -1.442695, %v294_v51 }
  0xa9   :  { %v5798_v59 = vmul.f32 -1.442695, %v295_v55 }
  0xaa   :  { %8349 = vpow2.f32 %v5797_v56 }
  0xab   :  { %8351 = vpow2.f32 %v5798_v59 }
  0xad   :  { %v253_v63 = vpop.f32.mrf.mxu0 }
  0xae   :  { %v290_v61 = vpop.f32.mrf.mxu3  ;;  %v266_v0 = vpop.f32.mrf.mxu1 }
  0xaf   :  { %v297_v62 = vadd.f32 %v290_v61, %v49_v60 }
  0xb0   :  { %v8350_v5 = vpop.eup %8349 }
  0xb1   :  { %v5799_v4 = vmul.f32 -1.442695, %v297_v62  ;;  %v8352_v11 = vpop.eup %8351  ;;  %v301_v13 = vadd.f32 1.0, %v8350_v5 }
  0xb2   :  { %v320_v14 = vadd.f32 1.0, %v8352_v11 }
  0xb3   :  { %v277_v10 = vpop.f32.mrf.mxu2  ;;  %8353 = vpow2.f32 %v5799_v4  ;;  %v313_v47 = vand.u32 2147483648, %v301_v13  ;;  %v311_v50 = vand.u32 2147483647, %v301_v13  ;;  %vm307_vm2 = vweird.f32 %v301_v13 }
  0xb4   :  { %8355 = vrcp.f32 %v301_v13  ;;  %v296_v23 = vadd.f32 %v277_v10, %v48_v15  ;;  %v332_v48 = vand.u32 2147483648, %v320_v14  ;;  %v330_v52 = vand.u32 2147483647, %v320_v14 }
  0xb5   :  { %8357 = vrcp.f32 %v320_v14  ;;  %vm326_vm3 = vweird.f32 %v320_v14  ;;  %v314_v61 = vor.u32 1.1754944e-38, %v313_v47  ;;  %vm312_vm5 = vcmp.eq.f32.partialorder %v311_v50, 8.507059e+37  ;;  %v5801_v47 = vld [vmem:[%s12354_s1 + $0x28] sm:$0xff] }
  0xb6   :  { %v292_v18 = vpop.f32.mrf.mxu3  ;;  %v333_v63 = vor.u32 1.1754944e-38, %v332_v48  ;;  %vm331_vm7 = vcmp.eq.f32.partialorder %v330_v52, 8.507059e+37 }
  0xb9   :  { %v8354_v22 = vpop.eup %8353 }
  0xba   :  { %v340_v26 = vadd.f32 1.0, %v8354_v22  ;;  %v8356_v29 = vpop.eup %8355 }
  0xbb   :  { %v279_v27 = vpop.f32.mrf.mxu2  ;;  %v8358_v30 = vpop.eup %8357  ;;  %v303_v31 = vmul.f32 %v8356_v29, %v301_v13  ;;  %vm308_vm0 = vweird.f32 %v8356_v29 }
  0xbc   :  { %8359 = vrcp.f32 %v340_v26  ;;  %v322_v35 = vmul.f32 %v8358_v30, %v320_v14  ;;  %vm327_vm1 = vweird.f32 %v8358_v30  ;;  %vm309_vm4 = vmor %vm307_vm2, %vm308_vm0  ;;  %v352_v14 = vand.u32 2147483648, %v340_v26 }
  0xbd   :  { %8361 = vtanh.f32 %v296_v23  ;;  %v304_v40 = vsub.f32 1.0, %v303_v31  ;;  %vm328_vm6 = vmor %vm326_vm3, %vm327_vm1  ;;  %vm346_vm9 = vweird.f32 %v340_v26  ;;  %v350_v27 = vand.u32 2147483647, %v340_v26 }
  0xbe   :  { %v323_v43 = vsub.f32 1.0, %v322_v35  ;;  %v353_v31 = vor.u32 1.1754944e-38, %v352_v14 }
  0xbf   :  { %v305_v49 = vmul.f32 %v8356_v29, %v304_v40  ;;  %vm351_vm11 = vcmp.eq.f32.partialorder %v350_v27, 8.507059e+37 }
  0xc0   :  { %v324_v51 = vmul.f32 %v8358_v30, %v323_v43 }
  0xc1   :  { %v306_v56 = vadd.f32 %v8356_v29, %v305_v49 }
  0xc2   :  { %v8360_v55 = vpop.eup %8359  ;;  %v325_v62 = vadd.f32 %v8358_v30, %v324_v51 }
  0xc3   :  { %v8362_v59 = vpop.eup %8361  ;;  %v342_v60 = vmul.f32 %v8360_v55, %v340_v26  ;;  %v310_v0 = vsel %vm309_vm4, %v8356_v29, %v306_v56  ;;  %vm347_vm8 = vweird.f32 %v8360_v55  ;;  %v5800_v26 = vld [vmem:[%s12354_s1 + $0x20] sm:$0xff]  ;;  %v5803_v56 = vld [vmem:[%s12354_s1 + $0x38] sm:$0xff] }
  0xc4   :  { %v315_v5 = vsel %vm312_vm5, %v314_v61, %v310_v0  ;;  %v329_v10 = vsel %vm328_vm6, %v8358_v30, %v325_v62  ;;  %vm348_vm10 = vmor %vm346_vm9, %vm347_vm8 }
  0xc5   :  { %v343_v4 = vsub.f32 1.0, %v342_v60  ;;  %v334_v11 = vsel %vm331_vm7, %v333_v63, %v329_v10  ;;  %v357_v15 = vmul.f32 %v8362_v59, %v315_v5 }
  0xc6   :  { %v356_v18 = vmul.f32 0.0, %v334_v11 }
  0xc7   :  { %v344_v22 = vmul.f32 %v8360_v55, %v343_v4 }
  0xc8   :  { %v9038_v23 = vadd.f32 %v357_v15, %v356_v18 }
  0xc9   :  { %v345_v13 = vadd.f32 %v8360_v55, %v344_v22  ;;  %v5802_v22 = vld [vmem:[%s12354_s1 + $0x30] sm:$0xff] }
  0xca   :  { %8363 = vtanh.f32 %v9038_v23 }
  0xcb   :  { %v349_v29 = vsel %vm348_vm10, %v8360_v55, %v345_v13 }
  0xcc   :  { %v354_v30 = vsel %vm351_vm11, %v353_v31, %v349_v29 }
  0xd0   :  { %v8364_v35 = vpop.eup %8363 }
  0xd1   :  { %v360_v40 = vmul.f32 %v8364_v35, %v354_v30 }
  0xd3   :  { %v366_v43 = vpack.c.bf16 %v360_v40, %v360_v40 }
  0xd5   :  { %375 = vmatmul.bf16.vlgmr.msrb.gmra.mxu0 %v366_v43  ;;  %388 = vmatmul.bf16.vlgmr.msrb.gmra.mxu1 %v366_v43 }
  0xd6   :  { %401 = vmatmul.bf16.vlgmr.msrb.gmra.mxu2 %v366_v43  ;;  %414 = vmatmul.bf16.vlgmr.msrb.gmra.mxu3 %v366_v43 }
  0xd7   :  { %617 = vmatpush.bf16.msrb.mxu0 %v8683_v3  ;;  %630 = vmatpush.bf16.msrb.mxu1 %v8694_v7 }
  0xd8   :  { %643 = vmatpush.bf16.msrb.mxu2 %v8734_v21  ;;  %656 = vmatpush.bf16.msrb.mxu3 %v8696_v8 }
  0xdb   :  { %618 = vmatpush.bf16.msrb.mxu0 %v8708_v12  ;;  %631 = vmatpush.bf16.msrb.mxu1 %v8721_v16 }
  0xdc   :  { %644 = vmatpush.bf16.msrb.mxu2 %v8773_v34  ;;  %657 = vmatpush.bf16.msrb.mxu3 %v8723_v17 }
  0xdf   :  { %619 = vmatpush.bf16.msrb.mxu0 %v8756_v28  ;;  %632 = vmatpush.bf16.msrb.mxu1 %v8769_v32 }
  0xe0   :  { %645 = vmatpush.bf16.msrb.mxu2 %v8797_v42  ;;  %658 = vmatpush.bf16.msrb.mxu3 %v8771_v33 }
  0xe3   :  { %620 = vmatpush.bf16.msrb.mxu0 %v8795_v41  ;;  %633 = vmatpush.bf16.msrb.mxu1 %v8807_v45 }
  0xe4   :  { %646 = vmatpush.bf16.msrb.mxu2 %v8833_v54  ;;  %659 = vmatpush.bf16.msrb.mxu3 %v8809_v46 }
  0xe7   :  { %621 = vmatpush.bf16.msrb.mxu0 %v8831_v53  ;;  %634 = vmatpush.bf16.msrb.mxu1 %v8843_v57 }
  0xe8   :  { %647 = vmatpush.bf16.msrb.mxu2 %v8869_v2  ;;  %660 = vmatpush.bf16.msrb.mxu3 %v8845_v58 }
  0xeb   :  { %622 = vmatpush.bf16.msrb.mxu0 %v8867_v1  ;;  %635 = vmatpush.bf16.msrb.mxu1 %v8879_v6 }
  0xec   :  { %648 = vmatpush.bf16.msrb.mxu2 %v8905_v20  ;;  %661 = vmatpush.bf16.msrb.mxu3 %v8881_v9 }
  0xef   :  { %623 = vmatpush.bf16.msrb.mxu0 %v8903_v19  ;;  %636 = vmatpush.bf16.msrb.mxu1 %v8915_v24 }
  0xf0   :  { %649 = vmatpush.bf16.msrb.mxu2 %v8941_v37  ;;  %662 = vmatpush.bf16.msrb.mxu3 %v8917_v25 }
  0xf3   :  { %624 = vmatpush.bf16.msrb.mxu0 %v8939_v36  ;;  %637 = vmatpush.bf16.msrb.mxu1 %v8945_v38 }
  0xf4   :  { %650 = vmatpush.bf16.msrb.mxu2 %v8959_v44  ;;  %663 = vmatpush.bf16.msrb.mxu3 %v8947_v39 }
 0x152   :  { %v376_v48 = vpop.f32.mrf.mxu0  ;;  %v389_v49 = vpop.f32.mrf.mxu1 }
 0x153   :  { %v419_v50 = vadd.f32 %v5800_v26, %v376_v48  ;;  %v420_v51 = vadd.f32 %v5801_v47, %v389_v49 }
 0x155   :  { %v5804_v52 = vmul.f32 -1.442695, %v419_v50  ;;  %v5805_v55 = vmul.f32 -1.442695, %v420_v51 }
 0x157   :  { %8365 = vpow2.f32 %v5804_v52 }
 0x158   :  { %8367 = vpow2.f32 %v5805_v55 }
 0x159   :  { %v402_v59 = vpop.f32.mrf.mxu2  ;;  %v415_v60 = vpop.f32.mrf.mxu3 }
 0x15a   :  { %v422_v61 = vadd.f32 %v5803_v56, %v415_v60  ;;  %v378_v62 = vpop.f32.mrf.mxu0  ;;  %v391_v63 = vpop.f32.mrf.mxu1  ;;  %v421_v29 = vadd.f32 %v5802_v22, %v402_v59 }
 0x15c   :  { %v5806_v0 = vmul.f32 -1.442695, %v422_v61 }
 0x15d   :  { %v8366_v4 = vpop.eup %8365 }
 0x15e   :  { %v8368_v5 = vpop.eup %8367  ;;  %v426_v10 = vadd.f32 1.0, %v8366_v4  ;;  %8369 = vpow2.f32 %v5806_v0 }
 0x15f   :  { %v445_v11 = vadd.f32 1.0, %v8368_v5 }
 0x160   :  { %8371 = vrcp.f32 %v426_v10  ;;  %v438_v26 = vand.u32 2147483648, %v426_v10  ;;  %v436_v49 = vand.u32 2147483647, %v426_v10  ;;  %vm432_vm14 = vweird.f32 %v426_v10 }
 0x161   :  { %8373 = vrcp.f32 %v445_v11  ;;  %v404_v15 = vpop.f32.mrf.mxu2  ;;  %v417_v18 = vpop.f32.mrf.mxu3  ;;  %v457_v47 = vand.u32 2147483648, %v445_v11  ;;  %v455_v51 = vand.u32 2147483647, %v445_v11  ;;  %vm451_vm15 = vweird.f32 %v445_v11 }
 0x162   :  { %v439_v56 = vor.u32 1.1754944e-38, %v438_v26  ;;  %vm437_vm2 = vcmp.eq.f32.partialorder %v436_v49, 8.507059e+37 }
 0x163   :  { %v458_v61 = vor.u32 1.1754944e-38, %v457_v47  ;;  %vm456_vm3 = vcmp.eq.f32.partialorder %v455_v51, 8.507059e+37 }
 0x164   :  { %v8370_v13 = vpop.eup %8369 }
 0x165   :  { %v465_v14 = vadd.f32 1.0, %v8370_v13 }
 0x166   :  { %v8372_v27 = vpop.eup %8371 }
 0x167   :  { %v8374_v31 = vpop.eup %8373  ;;  %v428_v35 = vmul.f32 %v8372_v27, %v426_v10  ;;  %8375 = vrcp.f32 %v465_v14  ;;  %vm433_vm12 = vweird.f32 %v8372_v27  ;;  %vm471_vm5 = vweird.f32 %v465_v14 }
 0x168   :  { %v447_v30 = vmul.f32 %v8374_v31, %v445_v11  ;;  %8377 = vtanh.f32 %v421_v29  ;;  %vm452_vm13 = vweird.f32 %v8374_v31  ;;  %vm434_vm0 = vmor %vm432_vm14, %vm433_vm12  ;;  %v477_v29 = vand.u32 2147483648, %v465_v14 }
 0x169   :  { %v429_v40 = vsub.f32 1.0, %v428_v35  ;;  %vm453_vm1 = vmor %vm451_vm15, %vm452_vm13 }
 0x16a   :  { %v448_v43 = vsub.f32 1.0, %v447_v30  ;;  %v478_v30 = vor.u32 1.1754944e-38, %v477_v29 }
 0x16b   :  { %v430_v48 = vmul.f32 %v8372_v27, %v429_v40 }
 0x16c   :  { %v449_v50 = vmul.f32 %v8374_v31, %v448_v43 }
 0x16d   :  { %v8376_v52 = vpop.eup %8375  ;;  %v431_v55 = vadd.f32 %v8372_v27, %v430_v48 }
 0x16e   :  { %v450_v59 = vadd.f32 %v8374_v31, %v449_v50  ;;  %v467_v60 = vmul.f32 %v8376_v52, %v465_v14  ;;  %v8378_v63 = vpop.eup %8377  ;;  %vm472_vm4 = vweird.f32 %v8376_v52 }
 0x16f   :  { %v435_v62 = vsel %vm434_vm0, %v8372_v27, %v431_v55  ;;  %v475_v27 = vand.u32 2147483647, %v465_v14  ;;  %vm473_vm6 = vmor %vm471_vm5, %vm472_vm4  ;;  %v5808_v14 = vld [vmem:[%s12354_s1 + $0x48] sm:$0xff]  ;;  %v5810_v55 = vld [vmem:[%s12354_s1 + $0x58] sm:$0xff] }
 0x170   :  { %v440_v0 = vsel %vm437_vm2, %v439_v56, %v435_v62  ;;  %v454_v4 = vsel %vm453_vm1, %v8374_v31, %v450_v59  ;;  %v468_v5 = vsub.f32 1.0, %v467_v60 }
 0x171   :  { %v459_v15 = vsel %vm456_vm3, %v458_v61, %v454_v4  ;;  %v482_v18 = vmul.f32 %v8378_v63, %v440_v0  ;;  %vm476_vm7 = vcmp.eq.f32.partialorder %v475_v27, 8.507059e+37 }
 0x172   :  { %v481_v22 = vmul.f32 %v459_v15, %v9038_v23  ;;  %v469_v13 = vmul.f32 %v8376_v52, %v468_v5  ;;  %v5807_v23 = vld [vmem:[%s12354_s1 + $0x40] sm:$0xff] }
 0x174   :  { %v9086_v10 = vadd.f32 %v482_v18, %v481_v22  ;;  %v470_v11 = vadd.f32 %v8376_v52, %v469_v13  ;;  %v5809_v13 = vld [vmem:[%s12354_s1 + $0x50] sm:$0xff] }
 0x176   :  { %8379 = vtanh.f32 %v9086_v10  ;;  %v474_v35 = vsel %vm473_vm6, %v8376_v52, %v470_v11 }
 0x177   :  { %v479_v40 = vsel %vm476_vm7, %v478_v30, %v474_v35 }
 0x17c   :  { %v8380_v31 = vpop.eup %8379 }
 0x17d   :  { %v485_v43 = vmul.f32 %v8380_v31, %v479_v40 }
 0x17f   :  { %v491_v26 = vpack.c.bf16 %v485_v43, %v485_v43 }
 0x181   :  { %500 = vmatmul.bf16.vlgmr.msra.gmra.mxu0 %v491_v26  ;;  %513 = vmatmul.bf16.vlgmr.msra.gmra.mxu1 %v491_v26 }
 0x182   :  { %526 = vmatmul.bf16.vlgmr.msra.gmra.mxu2 %v491_v26  ;;  %539 = vmatmul.bf16.vlgmr.msra.gmra.mxu3 %v491_v26 }
 0x183   :  { %742 = vmatpush.bf16.msra.mxu0 %v8683_v3  ;;  %755 = vmatpush.bf16.msra.mxu1 %v8694_v7 }
 0x184   :  { %768 = vmatpush.bf16.msra.mxu2 %v8734_v21  ;;  %781 = vmatpush.bf16.msra.mxu3 %v8696_v8 }
 0x187   :  { %743 = vmatpush.bf16.msra.mxu0 %v8708_v12  ;;  %756 = vmatpush.bf16.msra.mxu1 %v8721_v16 }
 0x188   :  { %769 = vmatpush.bf16.msra.mxu2 %v8773_v34  ;;  %782 = vmatpush.bf16.msra.mxu3 %v8723_v17 }
 0x18b   :  { %744 = vmatpush.bf16.msra.mxu0 %v8756_v28  ;;  %757 = vmatpush.bf16.msra.mxu1 %v8769_v32 }
 0x18c   :  { %770 = vmatpush.bf16.msra.mxu2 %v8797_v42  ;;  %783 = vmatpush.bf16.msra.mxu3 %v8771_v33 }
 0x18f   :  { %745 = vmatpush.bf16.msra.mxu0 %v8795_v41  ;;  %758 = vmatpush.bf16.msra.mxu1 %v8807_v45 }
 0x190   :  { %771 = vmatpush.bf16.msra.mxu2 %v8833_v54  ;;  %784 = vmatpush.bf16.msra.mxu3 %v8809_v46 }
 0x193   :  { %746 = vmatpush.bf16.msra.mxu0 %v8831_v53  ;;  %759 = vmatpush.bf16.msra.mxu1 %v8843_v57 }
 0x194   :  { %772 = vmatpush.bf16.msra.mxu2 %v8869_v2  ;;  %785 = vmatpush.bf16.msra.mxu3 %v8845_v58 }
 0x197   :  { %747 = vmatpush.bf16.msra.mxu0 %v8867_v1  ;;  %760 = vmatpush.bf16.msra.mxu1 %v8879_v6 }
 0x198   :  { %773 = vmatpush.bf16.msra.mxu2 %v8905_v20  ;;  %786 = vmatpush.bf16.msra.mxu3 %v8881_v9 }
 0x19b   :  { %748 = vmatpush.bf16.msra.mxu0 %v8903_v19  ;;  %761 = vmatpush.bf16.msra.mxu1 %v8915_v24 }
 0x19c   :  { %774 = vmatpush.bf16.msra.mxu2 %v8941_v37  ;;  %787 = vmatpush.bf16.msra.mxu3 %v8917_v25 }
 0x19f   :  { %749 = vmatpush.bf16.msra.mxu0 %v8939_v36  ;;  %762 = vmatpush.bf16.msra.mxu1 %v8945_v38 }
 0x1a0   :  { %775 = vmatpush.bf16.msra.mxu2 %v8959_v44  ;;  %788 = vmatpush.bf16.msra.mxu3 %v8947_v39 }
 0x1fe   :  { %v501_v47 = vpop.f32.mrf.mxu0  ;;  %v514_v48 = vpop.f32.mrf.mxu1 }
 0x1ff   :  { %v544_v49 = vadd.f32 %v5807_v23, %v501_v47  ;;  %v545_v50 = vadd.f32 %v5808_v14, %v514_v48 }
 0x201   :  { %v5811_v51 = vmul.f32 -1.442695, %v544_v49  ;;  %v5812_v52 = vmul.f32 -1.442695, %v545_v50 }
 0x203   :  { %8381 = vpow2.f32 %v5811_v51 }
 0x204   :  { %8383 = vpow2.f32 %v5812_v52 }
 0x205   :  { %v527_v56 = vpop.f32.mrf.mxu2  ;;  %v540_v59 = vpop.f32.mrf.mxu3 }
 0x206   :  { %v547_v60 = vadd.f32 %v5810_v55, %v540_v59  ;;  %v503_v61 = vpop.f32.mrf.mxu0  ;;  %v516_v62 = vpop.f32.mrf.mxu1  ;;  %v546_v35 = vadd.f32 %v5809_v13, %v527_v56 }
 0x208   :  { %v5813_v63 = vmul.f32 -1.442695, %v547_v60 }
 0x209   :  { %v8382_v0 = vpop.eup %8381 }
 0x20a   :  { %v8384_v4 = vpop.eup %8383  ;;  %v551_v5 = vadd.f32 1.0, %v8382_v0  ;;  %8385 = vpow2.f32 %v5813_v63 }
 0x20b   :  { %v570_v15 = vadd.f32 1.0, %v8384_v4 }
 0x20c   :  { %8387 = vrcp.f32 %v551_v5  ;;  %v563_v23 = vand.u32 2147483648, %v551_v5  ;;  %v561_v48 = vand.u32 2147483647, %v551_v5  ;;  %vm557_vm10 = vweird.f32 %v551_v5 }
 0x20d   :  { %8389 = vrcp.f32 %v570_v15  ;;  %v529_v18 = vpop.f32.mrf.mxu2  ;;  %v542_v22 = vpop.f32.mrf.mxu3  ;;  %v582_v14 = vand.u32 2147483648, %v570_v15  ;;  %v580_v50 = vand.u32 2147483647, %v570_v15  ;;  %vm576_vm11 = vweird.f32 %v570_v15 }
 0x20e   :  { %v564_v55 = vor.u32 1.1754944e-38, %v563_v23  ;;  %vm562_vm14 = vcmp.eq.f32.partialorder %v561_v48, 8.507059e+37 }
 0x20f   :  { %v583_v60 = vor.u32 1.1754944e-38, %v582_v14  ;;  %vm581_vm15 = vcmp.eq.f32.partialorder %v580_v50, 8.507059e+37 }
 0x210   :  { %v8386_v11 = vpop.eup %8385 }
 0x211   :  { %v590_v29 = vadd.f32 1.0, %v8386_v11 }
 0x212   :  { %v8388_v27 = vpop.eup %8387 }
 0x213   :  { %v8390_v30 = vpop.eup %8389  ;;  %v553_v31 = vmul.f32 %v8388_v27, %v551_v5  ;;  %8391 = vrcp.f32 %v590_v29  ;;  %vm558_vm8 = vweird.f32 %v8388_v27  ;;  %vm596_vm1 = vweird.f32 %v590_v29 }
 0x214   :  { %v572_v40 = vmul.f32 %v8390_v30, %v570_v15  ;;  %8393 = vtanh.f32 %v546_v35  ;;  %vm577_vm9 = vweird.f32 %v8390_v30  ;;  %vm559_vm12 = vmor %vm557_vm10, %vm558_vm8  ;;  %v602_v35 = vand.u32 2147483648, %v590_v29 }
 0x215   :  { %v554_v43 = vsub.f32 1.0, %v553_v31  ;;  %vm578_vm13 = vmor %vm576_vm11, %vm577_vm9 }
 0x216   :  { %v573_v26 = vsub.f32 1.0, %v572_v40  ;;  %v603_v40 = vor.u32 1.1754944e-38, %v602_v35 }
 0x217   :  { %v555_v47 = vmul.f32 %v8388_v27, %v554_v43 }
 0x218   :  { %v574_v49 = vmul.f32 %v8390_v30, %v573_v26 }
 0x219   :  { %v8392_v51 = vpop.eup %8391  ;;  %v556_v52 = vadd.f32 %v8388_v27, %v555_v47 }
 0x21a   :  { %v575_v56 = vadd.f32 %v8390_v30, %v574_v49  ;;  %v592_v59 = vmul.f32 %v8392_v51, %v590_v29  ;;  %v8394_v62 = vpop.eup %8393  ;;  %vm597_vm0 = vweird.f32 %v8392_v51 }
 0x21b   :  { %v560_v61 = vsel %vm559_vm12, %v8388_v27, %v556_v52  ;;  %v600_v27 = vand.u32 2147483647, %v590_v29  ;;  %vm598_vm2 = vmor %vm596_vm1, %vm597_vm0  ;;  %v5815_v29 = vld [vmem:[%s12354_s1 + $0x68] sm:$0xff]  ;;  %v5817_v52 = vld [vmem:[%s12354_s1 + $0x78] sm:$0xff] }
 0x21c   :  { %v565_v63 = vsel %vm562_vm14, %v564_v55, %v560_v61  ;;  %v579_v0 = vsel %vm578_vm13, %v8390_v30, %v575_v56  ;;  %v593_v4 = vsub.f32 1.0, %v592_v59 }
 0x21d   :  { %v584_v18 = vsel %vm581_vm15, %v583_v60, %v579_v0  ;;  %v607_v22 = vmul.f32 %v8394_v62, %v565_v63  ;;  %vm601_vm3 = vcmp.eq.f32.partialorder %v600_v27, 8.507059e+37 }
 0x21e   :  { %v606_v13 = vmul.f32 %v584_v18, %v9086_v10  ;;  %v594_v11 = vmul.f32 %v8392_v51, %v593_v4  ;;  %v5814_v10 = vld [vmem:[%s12354_s1 + $0x60] sm:$0xff] }
 0x220   :  { %v9134_v5 = vadd.f32 %v607_v22, %v606_v13  ;;  %v595_v15 = vadd.f32 %v8392_v51, %v594_v11  ;;  %v5816_v11 = vld [vmem:[%s12354_s1 + $0x70] sm:$0xff] }
 0x222   :  { %8395 = vtanh.f32 %v9134_v5  ;;  %v599_v31 = vsel %vm598_vm2, %v8392_v51, %v595_v15 }
 0x223   :  { %v604_v43 = vsel %vm601_vm3, %v603_v40, %v599_v31 }
 0x228   :  { %v8396_v30 = vpop.eup %8395 }
 0x229   :  { %v610_v26 = vmul.f32 %v8396_v30, %v604_v43 }
 0x22b   :  { %v616_v23 = vpack.c.bf16 %v610_v26, %v610_v26 }
 0x22d   :  { %625 = vmatmul.bf16.vlgmr.msrb.gmra.mxu0 %v616_v23  ;;  %638 = vmatmul.bf16.vlgmr.msrb.gmra.mxu1 %v616_v23 }
 0x22e   :  { %651 = vmatmul.bf16.vlgmr.msrb.gmra.mxu2 %v616_v23  ;;  %664 = vmatmul.bf16.vlgmr.msrb.gmra.mxu3 %v616_v23 }
 0x22f   :  { %867 = vmatpush.bf16.msrb.mxu0 %v8683_v3  ;;  %880 = vmatpush.bf16.msrb.mxu1 %v8694_v7 }
 0x230   :  { %893 = vmatpush.bf16.msrb.mxu2 %v8734_v21  ;;  %906 = vmatpush.bf16.msrb.mxu3 %v8696_v8 }
 0x233   :  { %868 = vmatpush.bf16.msrb.mxu0 %v8708_v12  ;;  %881 = vmatpush.bf16.msrb.mxu1 %v8721_v16 }
 0x234   :  { %894 = vmatpush.bf16.msrb.mxu2 %v8773_v34  ;;  %907 = vmatpush.bf16.msrb.mxu3 %v8723_v17 }
 0x237   :  { %869 = vmatpush.bf16.msrb.mxu0 %v8756_v28  ;;  %882 = vmatpush.bf16.msrb.mxu1 %v8769_v32 }
 0x238   :  { %895 = vmatpush.bf16.msrb.mxu2 %v8797_v42  ;;  %908 = vmatpush.bf16.msrb.mxu3 %v8771_v33 }
 0x23b   :  { %870 = vmatpush.bf16.msrb.mxu0 %v8795_v41  ;;  %883 = vmatpush.bf16.msrb.mxu1 %v8807_v45 }
 0x23c   :  { %896 = vmatpush.bf16.msrb.mxu2 %v8833_v54  ;;  %909 = vmatpush.bf16.msrb.mxu3 %v8809_v46 }
 0x23f   :  { %871 = vmatpush.bf16.msrb.mxu0 %v8831_v53  ;;  %884 = vmatpush.bf16.msrb.mxu1 %v8843_v57 }
 0x240   :  { %897 = vmatpush.bf16.msrb.mxu2 %v8869_v2  ;;  %910 = vmatpush.bf16.msrb.mxu3 %v8845_v58 }
 0x243   :  { %872 = vmatpush.bf16.msrb.mxu0 %v8867_v1  ;;  %885 = vmatpush.bf16.msrb.mxu1 %v8879_v6 }
 0x244   :  { %898 = vmatpush.bf16.msrb.mxu2 %v8905_v20  ;;  %911 = vmatpush.bf16.msrb.mxu3 %v8881_v9 }
 0x247   :  { %873 = vmatpush.bf16.msrb.mxu0 %v8903_v19  ;;  %886 = vmatpush.bf16.msrb.mxu1 %v8915_v24 }
 0x248   :  { %899 = vmatpush.bf16.msrb.mxu2 %v8941_v37  ;;  %912 = vmatpush.bf16.msrb.mxu3 %v8917_v25 }
 0x24b   :  { %874 = vmatpush.bf16.msrb.mxu0 %v8939_v36  ;;  %887 = vmatpush.bf16.msrb.mxu1 %v8945_v38 }
 0x24c   :  { %900 = vmatpush.bf16.msrb.mxu2 %v8959_v44  ;;  %913 = vmatpush.bf16.msrb.mxu3 %v8947_v39 }
 0x2aa   :  { %v626_v14 = vpop.f32.mrf.mxu0  ;;  %v639_v47 = vpop.f32.mrf.mxu1 }
 0x2ab   :  { %v669_v48 = vadd.f32 %v5814_v10, %v626_v14  ;;  %v670_v49 = vadd.f32 %v5815_v29, %v639_v47 }
 0x2ad   :  { %v5818_v50 = vmul.f32 -1.442695, %v669_v48  ;;  %v5819_v51 = vmul.f32 -1.442695, %v670_v49 }
 0x2af   :  { %8397 = vpow2.f32 %v5818_v50 }
 0x2b0   :  { %8399 = vpow2.f32 %v5819_v51 }
 0x2b1   :  { %v652_v55 = vpop.f32.mrf.mxu2  ;;  %v665_v56 = vpop.f32.mrf.mxu3 }
 0x2b2   :  { %v672_v59 = vadd.f32 %v5817_v52, %v665_v56  ;;  %v628_v60 = vpop.f32.mrf.mxu0  ;;  %v641_v61 = vpop.f32.mrf.mxu1  ;;  %v671_v31 = vadd.f32 %v5816_v11, %v652_v55 }
 0x2b4   :  { %v5820_v62 = vmul.f32 -1.442695, %v672_v59 }
 0x2b5   :  { %v8398_v63 = vpop.eup %8397 }
 0x2b6   :  { %v8400_v0 = vpop.eup %8399  ;;  %v676_v4 = vadd.f32 1.0, %v8398_v63  ;;  %8401 = vpow2.f32 %v5820_v62 }
 0x2b7   :  { %v695_v18 = vadd.f32 1.0, %v8400_v0 }
 0x2b8   :  { %8403 = vrcp.f32 %v676_v4  ;;  %v688_v10 = vand.u32 2147483648, %v676_v4  ;;  %v686_v47 = vand.u32 2147483647, %v676_v4  ;;  %vm682_vm6 = vweird.f32 %v676_v4 }
 0x2b9   :  { %8405 = vrcp.f32 %v695_v18  ;;  %v654_v22 = vpop.f32.mrf.mxu2  ;;  %v667_v13 = vpop.f32.mrf.mxu3  ;;  %v707_v29 = vand.u32 2147483648, %v695_v18  ;;  %v705_v49 = vand.u32 2147483647, %v695_v18  ;;  %vm701_vm7 = vweird.f32 %v695_v18 }
 0x2ba   :  { %v689_v52 = vor.u32 1.1754944e-38, %v688_v10  ;;  %vm687_vm10 = vcmp.eq.f32.partialorder %v686_v47, 8.507059e+37 }
 0x2bb   :  { %v708_v59 = vor.u32 1.1754944e-38, %v707_v29  ;;  %vm706_vm11 = vcmp.eq.f32.partialorder %v705_v49, 8.507059e+37 }
 0x2bc   :  { %v8402_v15 = vpop.eup %8401 }
 0x2bd   :  { %v715_v35 = vadd.f32 1.0, %v8402_v15 }
 0x2be   :  { %v8404_v27 = vpop.eup %8403 }
 0x2bf   :  { %v8406_v40 = vpop.eup %8405  ;;  %v678_v30 = vmul.f32 %v8404_v27, %v676_v4  ;;  %8407 = vrcp.f32 %v715_v35  ;;  %vm683_vm4 = vweird.f32 %v8404_v27  ;;  %vm721_vm13 = vweird.f32 %v715_v35 }
 0x2c0   :  { %v697_v43 = vmul.f32 %v8406_v40, %v695_v18  ;;  %8409 = vtanh.f32 %v671_v31  ;;  %vm702_vm5 = vweird.f32 %v8406_v40  ;;  %vm684_vm8 = vmor %vm682_vm6, %vm683_vm4  ;;  %v727_v31 = vand.u32 2147483648, %v715_v35 }
 0x2c1   :  { %v679_v26 = vsub.f32 1.0, %v678_v30  ;;  %vm703_vm9 = vmor %vm701_vm7, %vm702_vm5 }
 0x2c2   :  { %v698_v23 = vsub.f32 1.0, %v697_v43  ;;  %v728_v43 = vor.u32 1.1754944e-38, %v727_v31 }
 0x2c3   :  { %v680_v14 = vmul.f32 %v8404_v27, %v679_v26 }
 0x2c4   :  { %v699_v48 = vmul.f32 %v8406_v40, %v698_v23 }
 0x2c5   :  { %v8408_v50 = vpop.eup %8407  ;;  %v681_v51 = vadd.f32 %v8404_v27, %v680_v14 }
 0x2c6   :  { %v700_v55 = vadd.f32 %v8406_v40, %v699_v48  ;;  %v717_v56 = vmul.f32 %v8408_v50, %v715_v35  ;;  %v8410_v61 = vpop.eup %8409  ;;  %vm722_vm12 = vweird.f32 %v8408_v50 }
 0x2c7   :  { %v685_v60 = vsel %vm684_vm8, %v8404_v27, %v681_v51  ;;  %v725_v27 = vand.u32 2147483647, %v715_v35  ;;  %vm723_vm14 = vmor %vm721_vm13, %vm722_vm12  ;;  %v5822_v35 = vld [vmem:[%s12354_s1 + $0x88] sm:$0xff]  ;;  %v5824_v51 = vld [vmem:[%s12354_s1 + $0x98] sm:$0xff] }
 0x2c8   :  { %v690_v62 = vsel %vm687_vm10, %v689_v52, %v685_v60  ;;  %v704_v63 = vsel %vm703_vm9, %v8406_v40, %v700_v55  ;;  %v718_v0 = vsub.f32 1.0, %v717_v56 }
 0x2c9   :  { %v709_v22 = vsel %vm706_vm11, %v708_v59, %v704_v63  ;;  %v732_v13 = vmul.f32 %v8410_v61, %v690_v62  ;;  %vm726_vm15 = vcmp.eq.f32.partialorder %v725_v27, 8.507059e+37 }
 0x2ca   :  { %v731_v11 = vmul.f32 %v709_v22, %v9134_v5  ;;  %v719_v15 = vmul.f32 %v8408_v50, %v718_v0  ;;  %v5821_v5 = vld [vmem:[%s12354_s1 + $0x80] sm:$0xff] }
 0x2cc   :  { %v9182_v4 = vadd.f32 %v732_v13, %v731_v11  ;;  %v720_v18 = vadd.f32 %v8408_v50, %v719_v15  ;;  %v5823_v15 = vld [vmem:[%s12354_s1 + $0x90] sm:$0xff] }
 0x2ce   :  { %8411 = vtanh.f32 %v9182_v4  ;;  %v724_v30 = vsel %vm723_vm14, %v8408_v50, %v720_v18 }
 0x2cf   :  { %v729_v26 = vsel %vm726_vm15, %v728_v43, %v724_v30 }
 0x2d4   :  { %v8412_v40 = vpop.eup %8411 }
 0x2d5   :  { %v735_v23 = vmul.f32 %v8412_v40, %v729_v26 }
 0x2d7   :  { %v741_v10 = vpack.c.bf16 %v735_v23, %v735_v23 }
 0x2d9   :  { %750 = vmatmul.bf16.vlgmr.msra.gmra.mxu0 %v741_v10  ;;  %763 = vmatmul.bf16.vlgmr.msra.gmra.mxu1 %v741_v10 }
 0x2da   :  { %776 = vmatmul.bf16.vlgmr.msra.gmra.mxu2 %v741_v10  ;;  %789 = vmatmul.bf16.vlgmr.msra.gmra.mxu3 %v741_v10 }
 0x2db   :  { %992 = vmatpush.bf16.msra.mxu0 %v8683_v3  ;;  %1005 = vmatpush.bf16.msra.mxu1 %v8694_v7 }
 0x2dc   :  { %1018 = vmatpush.bf16.msra.mxu2 %v8734_v21  ;;  %1031 = vmatpush.bf16.msra.mxu3 %v8696_v8 }
 0x2df   :  { %993 = vmatpush.bf16.msra.mxu0 %v8708_v12  ;;  %1006 = vmatpush.bf16.msra.mxu1 %v8721_v16 }
 0x2e0   :  { %1019 = vmatpush.bf16.msra.mxu2 %v8773_v34  ;;  %1032 = vmatpush.bf16.msra.mxu3 %v8723_v17 }
 0x2e3   :  { %994 = vmatpush.bf16.msra.mxu0 %v8756_v28  ;;  %1007 = vmatpush.bf16.msra.mxu1 %v8769_v32 }
 0x2e4   :  { %1020 = vmatpush.bf16.msra.mxu2 %v8797_v42  ;;  %1033 = vmatpush.bf16.msra.mxu3 %v8771_v33 }
 0x2e7   :  { %995 = vmatpush.bf16.msra.mxu0 %v8795_v41  ;;  %1008 = vmatpush.bf16.msra.mxu1 %v8807_v45 }
 0x2e8   :  { %1021 = vmatpush.bf16.msra.mxu2 %v8833_v54  ;;  %1034 = vmatpush.bf16.msra.mxu3 %v8809_v46 }
 0x2eb   :  { %996 = vmatpush.bf16.msra.mxu0 %v8831_v53  ;;  %1009 = vmatpush.bf16.msra.mxu1 %v8843_v57 }
 0x2ec   :  { %1022 = vmatpush.bf16.msra.mxu2 %v8869_v2  ;;  %1035 = vmatpush.bf16.msra.mxu3 %v8845_v58 }
 0x2ef   :  { %997 = vmatpush.bf16.msra.mxu0 %v8867_v1  ;;  %1010 = vmatpush.bf16.msra.mxu1 %v8879_v6 }
 0x2f0   :  { %1023 = vmatpush.bf16.msra.mxu2 %v8905_v20  ;;  %1036 = vmatpush.bf16.msra.mxu3 %v8881_v9 }
 0x2f3   :  { %998 = vmatpush.bf16.msra.mxu0 %v8903_v19  ;;  %1011 = vmatpush.bf16.msra.mxu1 %v8915_v24 }
 0x2f4   :  { %1024 = vmatpush.bf16.msra.mxu2 %v8941_v37  ;;  %1037 = vmatpush.bf16.msra.mxu3 %v8917_v25 }
 0x2f7   :  { %999 = vmatpush.bf16.msra.mxu0 %v8939_v36  ;;  %1012 = vmatpush.bf16.msra.mxu1 %v8945_v38 }
 0x2f8   :  { %1025 = vmatpush.bf16.msra.mxu2 %v8959_v44  ;;  %1038 = vmatpush.bf16.msra.mxu3 %v8947_v39 }
 0x356   :  { %v751_v29 = vpop.f32.mrf.mxu0  ;;  %v764_v14 = vpop.f32.mrf.mxu1 }
 0x357   :  { %v794_v47 = vadd.f32 %v5821_v5, %v751_v29  ;;  %v795_v48 = vadd.f32 %v5822_v35, %v764_v14 }
 0x359   :  { %v5825_v49 = vmul.f32 -1.442695, %v794_v47  ;;  %v5826_v50 = vmul.f32 -1.442695, %v795_v48 }
 0x35b   :  { %8413 = vpow2.f32 %v5825_v49 }
 0x35c   :  { %8415 = vpow2.f32 %v5826_v50 }
 0x35d   :  { %v777_v52 = vpop.f32.mrf.mxu2  ;;  %v790_v55 = vpop.f32.mrf.mxu3 }
 0x35e   :  { %v797_v56 = vadd.f32 %v5824_v51, %v790_v55  ;;  %v753_v59 = vpop.f32.mrf.mxu0  ;;  %v766_v60 = vpop.f32.mrf.mxu1  ;;  %v796_v30 = vadd.f32 %v5823_v15, %v777_v52 }
 0x360   :  { %v5827_v61 = vmul.f32 -1.442695, %v797_v56 }
 0x361   :  { %v8414_v62 = vpop.eup %8413 }
 0x362   :  { %v8416_v63 = vpop.eup %8415  ;;  %v801_v0 = vadd.f32 1.0, %v8414_v62  ;;  %8417 = vpow2.f32 %v5827_v61 }
 0x363   :  { %v820_v22 = vadd.f32 1.0, %v8416_v63 }
 0x364   :  { %8419 = vrcp.f32 %v801_v0  ;;  %v813_v5 = vand.u32 2147483648, %v801_v0  ;;  %v811_v14 = vand.u32 2147483647, %v801_v0  ;;  %vm807_vm2 = vweird.f32 %v801_v0 }
 0x365   :  { %8421 = vrcp.f32 %v820_v22  ;;  %v779_v13 = vpop.f32.mrf.mxu2  ;;  %v792_v11 = vpop.f32.mrf.mxu3  ;;  %v832_v35 = vand.u32 2147483648, %v820_v22  ;;  %v830_v48 = vand.u32 2147483647, %v820_v22  ;;  %vm826_vm3 = vweird.f32 %v820_v22 }
 0x366   :  { %v814_v51 = vor.u32 1.1754944e-38, %v813_v5  ;;  %vm812_vm6 = vcmp.eq.f32.partialorder %v811_v14, 8.507059e+37 }
 0x367   :  { %v833_v56 = vor.u32 1.1754944e-38, %v832_v35  ;;  %vm831_vm7 = vcmp.eq.f32.partialorder %v830_v48, 8.507059e+37 }
 0x368   :  { %v8418_v18 = vpop.eup %8417 }
 0x369   :  { %v840_v31 = vadd.f32 1.0, %v8418_v18 }
 0x36a   :  { %v8420_v27 = vpop.eup %8419 }
 0x36b   :  { %v8422_v43 = vpop.eup %8421  ;;  %v803_v40 = vmul.f32 %v8420_v27, %v801_v0  ;;  %8423 = vrcp.f32 %v840_v31  ;;  %vm808_vm0 = vweird.f32 %v8420_v27  ;;  %vm846_vm9 = vweird.f32 %v840_v31 }
 0x36c   :  { %v822_v26 = vmul.f32 %v8422_v43, %v820_v22  ;;  %8425 = vtanh.f32 %v796_v30  ;;  %vm827_vm1 = vweird.f32 %v8422_v43  ;;  %vm809_vm4 = vmor %vm807_vm2, %vm808_vm0  ;;  %v852_v30 = vand.u32 2147483648, %v840_v31 }
 0x36d   :  { %v804_v23 = vsub.f32 1.0, %v803_v40  ;;  %vm828_vm5 = vmor %vm826_vm3, %vm827_vm1 }
 0x36e   :  { %v823_v10 = vsub.f32 1.0, %v822_v26  ;;  %v853_v26 = vor.u32 1.1754944e-38, %v852_v30 }
 0x36f   :  { %v805_v29 = vmul.f32 %v8420_v27, %v804_v23 }
 0x370   :  { %v824_v47 = vmul.f32 %v8422_v43, %v823_v10 }
 0x371   :  { %v8424_v49 = vpop.eup %8423  ;;  %v806_v50 = vadd.f32 %v8420_v27, %v805_v29 }
 0x372   :  { %v825_v52 = vadd.f32 %v8422_v43, %v824_v47  ;;  %v842_v55 = vmul.f32 %v8424_v49, %v840_v31  ;;  %v8426_v60 = vpop.eup %8425  ;;  %vm847_vm8 = vweird.f32 %v8424_v49 }
 0x373   :  { %v810_v59 = vsel %vm809_vm4, %v8420_v27, %v806_v50  ;;  %v850_v27 = vand.u32 2147483647, %v840_v31  ;;  %vm848_vm10 = vmor %vm846_vm9, %vm847_vm8 }
 0x374   :  { %v815_v61 = vsel %vm812_vm6, %v814_v51, %v810_v59  ;;  %v829_v62 = vsel %vm828_vm5, %v8422_v43, %v825_v52  ;;  %v843_v63 = vsub.f32 1.0, %v842_v55 }
 0x375   :  { %v834_v13 = vsel %vm831_vm7, %v833_v56, %v829_v62  ;;  %v857_v11 = vmul.f32 %v8426_v60, %v815_v61  ;;  %vm851_vm11 = vcmp.eq.f32.partialorder %v850_v27, 8.507059e+37 }
 0x376   :  { %v856_v15 = vmul.f32 %v834_v13, %v9182_v4  ;;  %v844_v18 = vmul.f32 %v8424_v49, %v843_v63 }
 0x378   :  { %v9230_v0 = vadd.f32 %v857_v11, %v856_v15  ;;  %v845_v22 = vadd.f32 %v8424_v49, %v844_v18 }
 0x37a   :  { %8427 = vtanh.f32 %v9230_v0  ;;  %v849_v40 = vsel %vm848_vm10, %v8424_v49, %v845_v22 }
 0x37b   :  { %v854_v23 = vsel %vm851_vm11, %v853_v26, %v849_v40 }
 0x380   :  { %v8428_v43 = vpop.eup %8427 }
 0x381   :  { %v860_v10 = vmul.f32 %v8428_v43, %v854_v23 }
 0x383   :  { %v866_v5 = vpack.c.bf16 %v860_v10, %v860_v10 }
 0x385   :  { %875 = vmatmul.bf16.vlgmr.msrb.gmra.mxu0 %v866_v5  ;;  %888 = vmatmul.bf16.vlgmr.msrb.gmra.mxu1 %v866_v5 }
 0x386   :  { %901 = vmatmul.bf16.vlgmr.msrb.gmra.mxu2 %v866_v5  ;;  %914 = vmatmul.bf16.vlgmr.msrb.gmra.mxu3 %v866_v5  ;;  %v5836_v5 = vld [vmem:[%s12354_s1 + $0xc8] sm:$0xff] }
 0x387   :  { %1117 = vmatpush.bf16.msrb.mxu0 %v8683_v3  ;;  %1130 = vmatpush.bf16.msrb.mxu1 %v8694_v7  ;;  %v5828_v3 = vld [vmem:[%s12354_s1 + $0xa0] sm:$0xff]  ;;  %v5829_v7 = vld [vmem:[%s12354_s1 + $0xa8] sm:$0xff] }
 0x388   :  { %1143 = vmatpush.bf16.msrb.mxu2 %v8734_v21  ;;  %1156 = vmatpush.bf16.msrb.mxu3 %v8696_v8 }
 0x38b   :  { %1118 = vmatpush.bf16.msrb.mxu0 %v8708_v12  ;;  %1131 = vmatpush.bf16.msrb.mxu1 %v8721_v16 }
 0x38c   :  { %1144 = vmatpush.bf16.msrb.mxu2 %v8773_v34  ;;  %1157 = vmatpush.bf16.msrb.mxu3 %v8723_v17 }
 0x38f   :  { %1119 = vmatpush.bf16.msrb.mxu0 %v8756_v28  ;;  %1132 = vmatpush.bf16.msrb.mxu1 %v8769_v32  ;;  %v5831_v32 = vld [vmem:[%s12354_s1 + $0xb8] sm:$0xff] }
 0x390   :  { %1145 = vmatpush.bf16.msrb.mxu2 %v8797_v42  ;;  %1158 = vmatpush.bf16.msrb.mxu3 %v8771_v33 }
 0x393   :  { %1120 = vmatpush.bf16.msrb.mxu0 %v8795_v41  ;;  %1133 = vmatpush.bf16.msrb.mxu1 %v8807_v45 }
 0x394   :  { %1146 = vmatpush.bf16.msrb.mxu2 %v8833_v54  ;;  %1159 = vmatpush.bf16.msrb.mxu3 %v8809_v46 }
 0x397   :  { %1121 = vmatpush.bf16.msrb.mxu0 %v8831_v53  ;;  %1134 = vmatpush.bf16.msrb.mxu1 %v8843_v57 }
 0x398   :  { %1147 = vmatpush.bf16.msrb.mxu2 %v8869_v2  ;;  %1160 = vmatpush.bf16.msrb.mxu3 %v8845_v58 }
 0x39b   :  { %1122 = vmatpush.bf16.msrb.mxu0 %v8867_v1  ;;  %1135 = vmatpush.bf16.msrb.mxu1 %v8879_v6  ;;  %v5830_v6 = vld [vmem:[%s12354_s1 + $0xb0] sm:$0xff] }
 0x39c   :  { %1148 = vmatpush.bf16.msrb.mxu2 %v8905_v20  ;;  %1161 = vmatpush.bf16.msrb.mxu3 %v8881_v9 }
 0x39f   :  { %1123 = vmatpush.bf16.msrb.mxu0 %v8903_v19  ;;  %1136 = vmatpush.bf16.msrb.mxu1 %v8915_v24 }
 0x3a0   :  { %1149 = vmatpush.bf16.msrb.mxu2 %v8941_v37  ;;  %1162 = vmatpush.bf16.msrb.mxu3 %v8917_v25 }
 0x3a3   :  { %1124 = vmatpush.bf16.msrb.mxu0 %v8939_v36  ;;  %1137 = vmatpush.bf16.msrb.mxu1 %v8945_v38 }
 0x3a4   :  { %1150 = vmatpush.bf16.msrb.mxu2 %v8959_v44  ;;  %1163 = vmatpush.bf16.msrb.mxu3 %v8947_v39 }
 0x402   :  { %v876_v8 = vpop.f32.mrf.mxu0  ;;  %v889_v12 = vpop.f32.mrf.mxu1 }
 0x403   :  { %v919_v16 = vadd.f32 %v5828_v3, %v876_v8  ;;  %v920_v17 = vadd.f32 %v5829_v7, %v889_v12 }
 0x405   :  { %v5832_v21 = vmul.f32 -1.442695, %v919_v16  ;;  %v5833_v28 = vmul.f32 -1.442695, %v920_v17 }
 0x407   :  { %8429 = vpow2.f32 %v5832_v21  ;;  %v5838_v21 = vld [vmem:[%s12354_s1 + $0xd8] sm:$0xff] }
 0x408   :  { %8431 = vpow2.f32 %v5833_v28 }
 0x409   :  { %v902_v33 = vpop.f32.mrf.mxu2  ;;  %v915_v34 = vpop.f32.mrf.mxu3 }
 0x40a   :  { %v922_v41 = vadd.f32 %v5831_v32, %v915_v34  ;;  %v878_v42 = vpop.f32.mrf.mxu0  ;;  %v891_v45 = vpop.f32.mrf.mxu1  ;;  %v921_v24 = vadd.f32 %v5830_v6, %v902_v33 }
 0x40c   :  { %v5834_v46 = vmul.f32 -1.442695, %v922_v41 }
 0x40d   :  { %v8430_v53 = vpop.eup %8429 }
 0x40e   :  { %v8432_v54 = vpop.eup %8431  ;;  %v926_v57 = vadd.f32 1.0, %v8430_v53  ;;  %8433 = vpow2.f32 %v5834_v46 }
 0x40f   :  { %v945_v58 = vadd.f32 1.0, %v8432_v54 }
 0x410   :  { %8435 = vrcp.f32 %v926_v57  ;;  %v938_v44 = vand.u32 2147483648, %v926_v57  ;;  %v936_v35 = vand.u32 2147483647, %v926_v57  ;;  %vm932_vm14 = vweird.f32 %v926_v57 }
 0x411   :  { %8437 = vrcp.f32 %v945_v58  ;;  %v904_v1 = vpop.f32.mrf.mxu2  ;;  %v917_v2 = vpop.f32.mrf.mxu3  ;;  %v957_v4 = vand.u32 2147483648, %v945_v58  ;;  %v955_v14 = vand.u32 2147483647, %v945_v58  ;;  %vm951_vm15 = vweird.f32 %v945_v58 }
 0x412   :  { %v939_v49 = vor.u32 1.1754944e-38, %v938_v44  ;;  %vm937_vm2 = vcmp.eq.f32.partialorder %v936_v35, 8.507059e+37  ;;  %v5837_v1 = vld [vmem:[%s12354_s1 + $0xd0] sm:$0xff] }
 0x413   :  { %v958_v52 = vor.u32 1.1754944e-38, %v957_v4  ;;  %vm956_vm3 = vcmp.eq.f32.partialorder %v955_v14, 8.507059e+37 }
 0x414   :  { %v8434_v9 = vpop.eup %8433 }
 0x415   :  { %v965_v19 = vadd.f32 1.0, %v8434_v9 }
 0x416   :  { %v8436_v20 = vpop.eup %8435 }
 0x417   :  { %v8438_v25 = vpop.eup %8437  ;;  %v928_v36 = vmul.f32 %v8436_v20, %v926_v57  ;;  %8439 = vrcp.f32 %v965_v19  ;;  %vm933_vm12 = vweird.f32 %v8436_v20  ;;  %v977_v22 = vand.u32 2147483648, %v965_v19 }
 0x418   :  { %v947_v37 = vmul.f32 %v8438_v25, %v945_v58  ;;  %8441 = vtanh.f32 %v921_v24  ;;  %vm952_vm13 = vweird.f32 %v8438_v25  ;;  %vm934_vm0 = vmor %vm932_vm14, %vm933_vm12  ;;  %vm971_vm5 = vweird.f32 %v965_v19 }
 0x419   :  { %v929_v38 = vsub.f32 1.0, %v928_v36  ;;  %vm953_vm1 = vmor %vm951_vm15, %vm952_vm13  ;;  %v975_v30 = vand.u32 2147483647, %v965_v19  ;;  %v978_v40 = vor.u32 1.1754944e-38, %v977_v22 }
 0x41a   :  { %v948_v39 = vsub.f32 1.0, %v947_v37 }
 0x41b   :  { %v930_v31 = vmul.f32 %v8436_v20, %v929_v38  ;;  %vm976_vm7 = vcmp.eq.f32.partialorder %v975_v30, 8.507059e+37 }
 0x41c   :  { %v949_v29 = vmul.f32 %v8438_v25, %v948_v39 }
 0x41d   :  { %v8440_v47 = vpop.eup %8439  ;;  %v931_v48 = vadd.f32 %v8436_v20, %v930_v31 }
 0x41e   :  { %v950_v50 = vadd.f32 %v8438_v25, %v949_v29  ;;  %v967_v51 = vmul.f32 %v8440_v47, %v965_v19  ;;  %v8442_v56 = vpop.eup %8441  ;;  %vm972_vm4 = vweird.f32 %v8440_v47 }
 0x41f   :  { %v935_v55 = vsel %vm934_vm0, %v8436_v20, %v931_v48  ;;  %vm973_vm6 = vmor %vm971_vm5, %vm972_vm4 }
 0x420   :  { %v940_v59 = vsel %vm937_vm2, %v939_v49, %v935_v55  ;;  %v954_v60 = vsel %vm953_vm1, %v8438_v25, %v950_v50  ;;  %v968_v61 = vsub.f32 1.0, %v967_v51 }
 0x421   :  { %v959_v62 = vsel %vm956_vm3, %v958_v52, %v954_v60  ;;  %v982_v63 = vmul.f32 %v8442_v56, %v940_v59 }
 0x422   :  { %v981_v13 = vmul.f32 %v959_v62, %v9230_v0  ;;  %v969_v11 = vmul.f32 %v8440_v47, %v968_v61  ;;  %v5835_v0 = vld [vmem:[%s12354_s1 + $0xc0] sm:$0xff] }
 0x424   :  { %v9278_v15 = vadd.f32 %v982_v63, %v981_v13  ;;  %v970_v18 = vadd.f32 %v8440_v47, %v969_v11 }
 0x426   :  { %8443 = vtanh.f32 %v9278_v15  ;;  %v974_v27 = vsel %vm973_vm6, %v8440_v47, %v970_v18 }
 0x427   :  { %v979_v43 = vsel %vm976_vm7, %v978_v40, %v974_v27 }
 0x42c   :  { %v8444_v26 = vpop.eup %8443 }
 0x42d   :  { %v985_v23 = vmul.f32 %v8444_v26, %v979_v43 }
 0x42f   :  { %v991_v10 = vpack.c.bf16 %v985_v23, %v985_v23 }
 0x431   :  { %1000 = vmatmul.bf16.vlgmr.msra.gmra.mxu0 %v991_v10  ;;  %1013 = vmatmul.bf16.vlgmr.msra.gmra.mxu1 %v991_v10 }
 0x432   :  { %1026 = vmatmul.bf16.vlgmr.msra.gmra.mxu2 %v991_v10  ;;  %1039 = vmatmul.bf16.vlgmr.msra.gmra.mxu3 %v991_v10  ;;  %v7904_v10 = vld [vmem:[%s12357_s4 + $0xec] sm:$0xf0] }
 0x4ae   :  { %v1001_v3 = vpop.f32.mrf.mxu0  ;;  %v1014_v7 = vpop.f32.mrf.mxu1 }
 0x4af   :  { %v1044_v8 = vadd.f32 %v5835_v0, %v1001_v3  ;;  %v1045_v12 = vadd.f32 %v5836_v5, %v1014_v7  ;;  %v7902_v0 = vld [vmem:[%s12357_s4 + $0xe4] sm:$0xf]  ;;  %v5965_v3 = vld [vmem:[%s12357_s4 + $0xf0] sm:$0xf0]  ;;  %v5971_v7 = vld [vmem:[%s12357_s4 + $0xe8] sm:$0xf] }
 0x4b1   :  { %v5839_v16 = vmul.f32 -1.442695, %v1044_v8  ;;  %v5840_v17 = vmul.f32 -1.442695, %v1045_v12  ;;  %v7905_v8 = vld [vmem:[%s12357_s4 + $0xf4] sm:$0xf0]  ;;  %v5968_v12 = vor.u32 %v7902_v0, %v5965_v3 }
 0x4b2   :  { %v7884_v3 = vld [vmem:[%s12357_s4 + $0x4c] sm:$0xf0] }
 0x4b3   :  { %8445 = vpow2.f32 %v5839_v16  ;;  %v5972_v16 = vor.u32 %v7905_v8, %v5971_v7  ;;  %1459 = vmatpush.bf16.msra.mxu1 %v5968_v12  ;;  %v7882_v7 = vld [vmem:[%s12357_s4 + $0x44] sm:$0xf]  ;;  %v5885_v12 = vld [vmem:[%s12357_s4 + $0x50] sm:$0xf0] }
 0x4b4   :  { %8447 = vpow2.f32 %v5840_v17  ;;  %v7903_v17 = vld [vmem:[%s12357_s4 + $0xec] sm:$0xf] }
 0x4b5   :  { %v1027_v28 = vpop.f32.mrf.mxu2  ;;  %v1040_v32 = vpop.f32.mrf.mxu3  ;;  %1472 = vmatpush.bf16.msra.mxu2 %v5972_v16  ;;  %v5891_v16 = vld [vmem:[%s12357_s4 + $0x48] sm:$0xf] }
 0x4b6   :  { %v1047_v33 = vadd.f32 %v5838_v21, %v1040_v32  ;;  %v1003_v34 = vpop.f32.mrf.mxu0  ;;  %v1016_v41 = vpop.f32.mrf.mxu1  ;;  %v1046_v19 = vadd.f32 %v5837_v1, %v1027_v28  ;;  %v5973_v21 = vld [vmem:[%s12357_s4 + $0xf8] sm:$0xf0]  ;;  %v5947_v32 = vld [vmem:[%s12357_s4 + $0xc0] sm:$0xf] }
 0x4b7   :  { %v5976_v28 = vor.u32 %v7903_v17, %v5973_v21  ;;  %v7898_v34 = vld [vmem:[%s12357_s4 + $0xc4] sm:$0xf]  ;;  %v7885_v17 = vld [vmem:[%s12357_s4 + $0x54] sm:$0xf0] }
 0x4b8   :  { %v5841_v42 = vmul.f32 -1.442695, %v1047_v33  ;;  %v7900_v33 = vld [vmem:[%s12357_s4 + $0xcc] sm:$0xf0] }
 0x4b9   :  { %v8446_v45 = vpop.eup %8445  ;;  %1485 = vmatpush.bf16.msra.mxu3 %v5976_v28  ;;  %v5948_v41 = vor.u32 %v7900_v33, %v5947_v32  ;;  %v5845_v32 = vld [vmem:[%s12354_s1 + $0xf8] sm:$0xff]  ;;  %v5888_v33 = vor.u32 %v7882_v7, %v5885_v12 }
 0x4ba   :  { %v8448_v46 = vpop.eup %8447  ;;  %v1051_v53 = vadd.f32 1.0, %v8446_v45  ;;  %8449 = vpow2.f32 %v5841_v42  ;;  %v5949_v42 = vld [vmem:[%s12357_s4 + $0xd0] sm:$0xf0]  ;;  %v5955_v45 = vld [vmem:[%s12357_s4 + $0xc8] sm:$0xf] }
 0x4bb   :  { %v1070_v54 = vadd.f32 1.0, %v8448_v46  ;;  %v7901_v46 = vld [vmem:[%s12357_s4 + $0xd4] sm:$0xf0] }
 0x4bc   :  { %8451 = vrcp.f32 %v1051_v53  ;;  %v1063_v38 = vand.u32 2147483648, %v1051_v53  ;;  %v1061_v4 = vand.u32 2147483647, %v1051_v53  ;;  %vm1057_vm10 = vweird.f32 %v1051_v53 }
 0x4bd   :  { %8453 = vrcp.f32 %v1070_v54  ;;  %v1029_v57 = vpop.f32.mrf.mxu2  ;;  %v1042_v58 = vpop.f32.mrf.mxu3  ;;  %v1082_v39 = vand.u32 2147483648, %v1070_v54  ;;  %v1080_v35 = vand.u32 2147483647, %v1070_v54  ;;  %vm1076_vm11 = vweird.f32 %v1070_v54 }
 0x4be   :  { %v1064_v47 = vor.u32 1.1754944e-38, %v1063_v38  ;;  %vm1062_vm14 = vcmp.eq.f32.partialorder %v1061_v4, 8.507059e+37  ;;  %v7899_v57 = vld [vmem:[%s12357_s4 + $0xcc] sm:$0xf]  ;;  %v5957_v58 = vld [vmem:[%s12357_s4 + $0xd8] sm:$0xf0] }
 0x4bf   :  { %v1083_v50 = vor.u32 1.1754944e-38, %v1082_v39  ;;  %vm1081_vm15 = vcmp.eq.f32.partialorder %v1080_v35, 8.507059e+37  ;;  %v5960_v1 = vor.u32 %v7899_v57, %v5957_v58  ;;  %v7895_v38 = vld [vmem:[%s12357_s4 + $0xac] sm:$0xf]  ;;  %v5941_v39 = vld [vmem:[%s12357_s4 + $0xb8] sm:$0xf0] }
 0x4c0   :  { %v8450_v2 = vpop.eup %8449  ;;  %v5915_v4 = vld [vmem:[%s12357_s4 + $0x80] sm:$0xf]  ;;  %v7890_v35 = vld [vmem:[%s12357_s4 + $0x84] sm:$0xf]  ;;  %v5869_v58 = vld [vmem:[%s12357_s4 + $0x30] sm:$0xf0] }
 0x4c1   :  { %v1090_v6 = vadd.f32 1.0, %v8450_v2  ;;  %v5931_v2 = vld [vmem:[%s12357_s4 + $0xa0] sm:$0xf]  ;;  %1486 = vmatpush.bf16.msra.mxu3 %v5960_v1  ;;  %v7878_v57 = vld [vmem:[%s12357_s4 + $0x24] sm:$0xf] }
 0x4c2   :  { %v8452_v9 = vpop.eup %8451  ;;  %v5875_v1 = vld [vmem:[%s12357_s4 + $0x28] sm:$0xf] }
 0x4c3   :  { %v8454_v20 = vpop.eup %8453  ;;  %v1053_v24 = vmul.f32 %v8452_v9, %v1051_v53  ;;  %8455 = vrcp.f32 %v1090_v6  ;;  %vm1058_vm8 = vweird.f32 %v8452_v9  ;;  %v1102_v18 = vand.u32 2147483648, %v1090_v6 }
 0x4c4   :  { %v1072_v25 = vmul.f32 %v8454_v20, %v1070_v54  ;;  %8457 = vtanh.f32 %v1046_v19  ;;  %vm1077_vm9 = vweird.f32 %v8454_v20  ;;  %vm1059_vm12 = vmor %vm1057_vm10, %vm1058_vm8  ;;  %vm1096_vm1 = vweird.f32 %v1090_v6 }
 0x4c5   :  { %v1054_v36 = vsub.f32 1.0, %v1053_v24  ;;  %vm1078_vm13 = vmor %vm1076_vm11, %vm1077_vm9  ;;  %v1100_v22 = vand.u32 2147483647, %v1090_v6  ;;  %v1103_v27 = vor.u32 1.1754944e-38, %v1102_v18  ;;  %v5952_v53 = vor.u32 %v7898_v34, %v5949_v42  ;;  %v5939_v24 = vld [vmem:[%s12357_s4 + $0xa8] sm:$0xf] }
 0x4c6   :  { %v1073_v37 = vsub.f32 1.0, %v1072_v25  ;;  %v5956_v54 = vor.u32 %v7901_v46, %v5955_v45  ;;  %v7897_v25 = vld [vmem:[%s12357_s4 + $0xb4] sm:$0xf0]  ;;  %v5907_v18 = vld [vmem:[%s12357_s4 + $0x68] sm:$0xf]  ;;  %v5892_v34 = vor.u32 %v7885_v17, %v5891_v16 }
 0x4c7   :  { %v1055_v44 = vmul.f32 %v8452_v9, %v1054_v36  ;;  %vm1101_vm3 = vcmp.eq.f32.partialorder %v1100_v22, 8.507059e+37  ;;  %1460 = vmatpush.bf16.msra.mxu1 %v5952_v53  ;;  %v7889_v22 = vld [vmem:[%s12357_s4 + $0x74] sm:$0xf0]  ;;  %v5893_v42 = vld [vmem:[%s12357_s4 + $0x58] sm:$0xf0] }
 0x4c8   :  { %v1074_v31 = vmul.f32 %v8454_v20, %v1073_v37  ;;  %1473 = vmatpush.bf16.msra.mxu2 %v5956_v54  ;;  %v5940_v37 = vor.u32 %v7897_v25, %v5939_v24  ;;  %v5867_v45 = vld [vmem:[%s12357_s4 + $0x20] sm:$0xf]  ;;  %v7880_v46 = vld [vmem:[%s12357_s4 + $0x2c] sm:$0xf0] }
 0x4c9   :  { %v8456_v29 = vpop.eup %8455  ;;  %v1056_v14 = vadd.f32 %v8452_v9, %v1055_v44  ;;  %v5944_v44 = vor.u32 %v7895_v38, %v5941_v39  ;;  %v5868_v54 = vor.u32 %v7880_v46, %v5867_v45  ;;  %v7876_v38 = vld [vmem:[%s12357_s4 + $0xc] sm:$0xf0]  ;;  %v7874_v39 = vld [vmem:[%s12357_s4 + $0x4] sm:$0xf] }
 0x4ca   :  { %v1075_v48 = vadd.f32 %v8454_v20, %v1074_v31  ;;  %v1092_v49 = vmul.f32 %v8456_v29, %v1090_v6  ;;  %v8458_v52 = vpop.eup %8457  ;;  %vm1097_vm0 = vweird.f32 %v8456_v29  ;;  %v7896_v6 = vld [vmem:[%s12357_s4 + $0xac] sm:$0xf0] }
 0x4cb   :  { %v1060_v51 = vsel %vm1059_vm12, %v8452_v9, %v1056_v14  ;;  %vm1098_vm2 = vmor %vm1096_vm1, %vm1097_vm0  ;;  %v7894_v9 = vld [vmem:[%s12357_s4 + $0xa4] sm:$0xf]  ;;  %v5932_v19 = vor.u32 %v7896_v6, %v5931_v2  ;;  %v7892_v31 = vld [vmem:[%s12357_s4 + $0x8c] sm:$0xf0]  ;;  %1487 = vmatpush.bf16.msra.mxu3 %v5944_v44  ;;  %v5872_v2 = vor.u32 %v7878_v57, %v5869_v58 }
 0x4cc   :  { %v1065_v55 = vsel %vm1062_vm14, %v1064_v47, %v1060_v51  ;;  %v1079_v56 = vsel %vm1078_vm13, %v8454_v20, %v1075_v48  ;;  %v1093_v59 = vsub.f32 1.0, %v1092_v49  ;;  %v5933_v20 = vld [vmem:[%s12357_s4 + $0xb0] sm:$0xf0]  ;;  %1474 = vmatpush.bf16.msra.mxu2 %v5940_v37  ;;  %v5923_v47 = vld [vmem:[%s12357_s4 + $0x88] sm:$0xf] }
 0x4cd   :  { %v1084_v60 = vsel %vm1081_vm15, %v1083_v50, %v1079_v56  ;;  %v1107_v61 = vmul.f32 %v8458_v52, %v1065_v55  ;;  %v5936_v36 = vor.u32 %v7894_v9, %v5933_v20  ;;  %v5917_v14 = vld [vmem:[%s12357_s4 + $0x90] sm:$0xf0]  ;;  %v7893_v48 = vld [vmem:[%s12357_s4 + $0x94] sm:$0xf0]  ;;  %v7891_v51 = vld [vmem:[%s12357_s4 + $0x8c] sm:$0xf] }
 0x4ce   :  { %v1106_v62 = vmul.f32 %v1084_v60, %v9278_v15  ;;  %v1094_v63 = vmul.f32 %v8456_v29, %v1093_v59  ;;  %v5963_v15 = vld [vmem:[%s12357_s4 + $0xe0] sm:$0xf]  ;;  %v5920_v49 = vor.u32 %v7890_v35, %v5917_v14  ;;  %v5924_v50 = vor.u32 %v7893_v48, %v5923_v47  ;;  %v5925_v52 = vld [vmem:[%s12357_s4 + $0x98] sm:$0xf0]  ;;  %v5843_v56 = vld [vmem:[%s12354_s1 + $0xe8] sm:$0xff] }
 0x4cf   :  { %v5964_v5 = vor.u32 %v7904_v10, %v5963_v15  ;;  %1461 = vmatpush.bf16.msra.mxu1 %v5936_v36  ;;  %v5842_v55 = vld [vmem:[%s12354_s1 + $0xe0] sm:$0xff]  ;;  %v5928_v59 = vor.u32 %v7891_v51, %v5925_v52  ;;  %v7881_v6 = vld [vmem:[%s12357_s4 + $0x34] sm:$0xf0]  ;;  %v7879_v9 = vld [vmem:[%s12357_s4 + $0x2c] sm:$0xf] }
 0x4d0   :  { %v9294_v13 = vadd.f32 %v1107_v61, %v1106_v62  ;;  %v1095_v11 = vadd.f32 %v8456_v29, %v1094_v63  ;;  %1475 = vmatpush.bf16.msra.mxu2 %v5924_v50  ;;  %v5899_v60 = vld [vmem:[%s12357_s4 + $0x60] sm:$0xf]  ;;  %v7888_v61 = vld [vmem:[%s12357_s4 + $0x6c] sm:$0xf0]  ;;  %v7886_v62 = vld [vmem:[%s12357_s4 + $0x64] sm:$0xf]  ;;  %v5876_v25 = vor.u32 %v7881_v6, %v5875_v1 }
 0x4d1   :  { %1446 = vmatpush.bf16.msra.mxu0 %v5964_v5  ;;  %1488 = vmatpush.bf16.msra.mxu3 %v5928_v59  ;;  %v5900_v63 = vor.u32 %v7888_v61, %v5899_v60  ;;  %v5883_v5 = vld [vmem:[%s12357_s4 + $0x40] sm:$0xf]  ;;  %v5859_v14 = vld [vmem:[%s12357_s4 + $0x8] sm:$0xf]  ;;  %v7877_v47 = vld [vmem:[%s12357_s4 + $0x14] sm:$0xf0] }
 0x4d2   :  { %8459 = vtanh.f32 %v9294_v13  ;;  %v1099_v30 = vsel %vm1098_vm2, %v8456_v29, %v1095_v11  ;;  %v5916_v29 = vor.u32 %v7892_v31, %v5915_v4  ;;  %v5901_v11 = vld [vmem:[%s12357_s4 + $0x70] sm:$0xf0]  ;;  %v5884_v8 = vor.u32 %v7884_v3, %v5883_v5  ;;  %v5851_v37 = vld [vmem:[%s12357_s4] sm:$0xf]  ;;  %v7875_v50 = vld [vmem:[%s12357_s4 + $0xc] sm:$0xf] }
 0x4d3   :  { %v1104_v26 = vsel %vm1101_vm3, %v1103_v27, %v1099_v30  ;;  %1462 = vmatpush.bf16.msra.mxu1 %v5920_v49  ;;  %v5904_v30 = vor.u32 %v7886_v62, %v5901_v11  ;;  %v5908_v27 = vor.u32 %v7889_v22, %v5907_v18  ;;  %v5852_v35 = vor.u32 %v7876_v38, %v5851_v37  ;;  %v5861_v51 = vld [vmem:[%s12357_s4 + $0x18] sm:$0xf0]  ;;  %v5844_v11 = vld [vmem:[%s12354_s1 + $0xf0] sm:$0xff]  ;;  %v7911_v38 = vld [vmem:[%s12360_s7 + $0x28] sm:$0xff]  ;;  %s6453_s1 = sld [smem:[#allocation2 + $0x2]] }
 0x4d4   :  { %v5860_v49 = vor.u32 %v7877_v47, %v5859_v14  ;;  %v7912_v37 = vld [vmem:[%s12360_s7 + $0x30] sm:$0xff]  ;;  %v7909_v47 = vld [vmem:[%s12360_s7 + $0x18] sm:$0xff] }
 0x4d5   :  { %1447 = vmatpush.bf16.msra.mxu0 %v5948_v41  ;;  %1476 = vmatpush.bf16.msra.mxu2 %v5908_v27  ;;  %v7883_v41 = vld [vmem:[%s12357_s4 + $0x4c] sm:$0xf] }
 0x4d6   :  { %v5896_v53 = vor.u32 %v7883_v41, %v5893_v42 }
 0x4d7   :  { %1463 = vmatpush.bf16.msra.mxu1 %v5904_v30 }
 0x4d8   :  { %v8460_v40 = vpop.eup %8459 }
 0x4d9   :  { %v1110_v43 = vmul.f32 %v8460_v40, %v1104_v26  ;;  %1448 = vmatpush.bf16.msra.mxu0 %v5932_v19  ;;  %v7887_v40 = vld [vmem:[%s12357_s4 + $0x6c] sm:$0xf]  ;;  %v5909_v26 = vld [vmem:[%s12357_s4 + $0x78] sm:$0xf0]  ;;  %1477 = vmatpush.bf16.msra.mxu2 %v5892_v34  ;;  %s2579_s16 = ssub.f32 1.0, %s6453_s1 }
 0x4da   :  { %v5912_v15 = vor.u32 %v7887_v40, %v5909_v26  ;;  %v5877_v19 = vld [vmem:[%s12357_s4 + $0x38] sm:$0xf0] }
 0x4db   :  { %v1116_v23 = vpack.c.bf16 %v1110_v43, %v1110_v43  ;;  %1464 = vmatpush.bf16.msra.mxu1 %v5888_v33  ;;  %v5880_v36 = vor.u32 %v7879_v9, %v5877_v19 }
 0x4dc   :  { %1489 = vmatpush.bf16.msra.mxu3 %v5912_v15 }
 0x4dd   :  { %1125 = vmatmul.bf16.vlgmr.msrb.gmra.mxu0 %v1116_v23  ;;  %1138 = vmatmul.bf16.vlgmr.msrb.gmra.mxu1 %v1116_v23 }
 0x4de   :  { %1151 = vmatmul.bf16.vlgmr.msrb.gmra.mxu2 %v1116_v23  ;;  %1164 = vmatmul.bf16.vlgmr.msrb.gmra.mxu3 %v1116_v23 }
 0x4df   :  { %1449 = vmatpush.bf16.msra.mxu0 %v5916_v29  ;;  %v5853_v29 = vld [vmem:[%s12357_s4 + $0x10] sm:$0xf0]  ;;  %1465 = vmatpush.bf16.msra.mxu1 %v5872_v2 }
 0x4e0   :  { %1490 = vmatpush.bf16.msra.mxu3 %v5896_v53  ;;  %1478 = vmatpush.bf16.msra.mxu2 %v5876_v25  ;;  %v5856_v48 = vor.u32 %v7874_v39, %v5853_v29  ;;  %v9517_v39 = vld [vmem:[%s12358_s5] sm:$0xff] }
 0x4e3   :  { %1450 = vmatpush.bf16.msra.mxu0 %v5900_v63  ;;  %1466 = vmatpush.bf16.msra.mxu1 %v5856_v48 }
 0x4e4   :  { %1491 = vmatpush.bf16.msra.mxu3 %v5880_v36  ;;  %1479 = vmatpush.bf16.msra.mxu2 %v5860_v49 }
 0x4e7   :  { %1451 = vmatpush.bf16.msra.mxu0 %v5884_v8 }
 0x4eb   :  { %1452 = vmatpush.bf16.msra.mxu0 %v5868_v54 }
 0x4ef   :  { %1453 = vmatpush.bf16.msra.mxu0 %v5852_v35  ;;  %v7910_v35 = vld [vmem:[%s12360_s7 + $0x20] sm:$0xff] }
 0x55a   :  { %v1126_v43 = vpop.f32.mrf.mxu0  ;;  %v1139_v23 = vpop.f32.mrf.mxu1 }
 0x55b   :  { %v1169_v10 = vadd.f32 %v5842_v55, %v1126_v43  ;;  %v1170_v0 = vadd.f32 %v5843_v56, %v1139_v23  ;;  %v5864_v56 = vor.u32 %v7875_v50, %v5861_v51 }
 0x55d   :  { %v5846_v21 = vmul.f32 -1.442695, %v1169_v10  ;;  %v5847_v28 = vmul.f32 -1.442695, %v1170_v0  ;;  %1492 = vmatpush.bf16.msra.mxu3 %v5864_v56 }
 0x55f   :  { %8461 = vpow2.f32 %v5846_v21 }
 0x560   :  { %8463 = vpow2.f32 %v5847_v28 }
 0x561   :  { %v1152_v20 = vpop.f32.mrf.mxu2  ;;  %v1165_v24 = vpop.f32.mrf.mxu3 }
 0x562   :  { %v1172_v44 = vadd.f32 %v5845_v32, %v1165_v24  ;;  %v1128_v4 = vpop.f32.mrf.mxu0  ;;  %v1141_v31 = vpop.f32.mrf.mxu1  ;;  %v1171_v27 = vadd.f32 %v5844_v11, %v1152_v20 }
 0x563   :  { %v9525_v4 = vld [vmem:[%s12358_s5 + $0x8] sm:$0xff] }
 0x564   :  { %v5848_v52 = vmul.f32 -1.442695, %v1172_v44  ;;  %v1245_v44 = vld [vmem:[%s12356_s3] sm:$0xff]  ;;  %v1246_v31 = vld [vmem:[%s12356_s3 + $0x8] sm:$0xff] }
 0x565   :  { %v8462_v55 = vpop.eup %8461  ;;  %v1249_v29 = vadd.f32 %v1245_v44, %v9517_v39  ;;  %v1250_v14 = vadd.f32 %v1246_v31, %v9525_v4 }
 0x566   :  { %v8464_v59 = vpop.eup %8463  ;;  %v1176_v60 = vadd.f32 1.0, %v8462_v55  ;;  %8465 = vpow2.f32 %v5848_v52  ;;  %v9541_v52 = vld [vmem:[%s12358_s5 + $0x18] sm:$0xff] }
 0x567   :  { %v1195_v61 = vadd.f32 1.0, %v8464_v59  ;;  %v1248_v55 = vld [vmem:[%s12356_s3 + $0x18] sm:$0xff] }
 0x568   :  { %8467 = vrcp.f32 %v1176_v60  ;;  %v1188_v10 = vand.u32 2147483648, %v1176_v60  ;;  %v1186_v3 = vand.u32 2147483647, %v1176_v60  ;;  %vm1182_vm6 = vweird.f32 %v1176_v60 }
 0x569   :  { %8469 = vrcp.f32 %v1195_v61  ;;  %v1154_v62 = vpop.f32.mrf.mxu2  ;;  %v1167_v63 = vpop.f32.mrf.mxu3  ;;  %v1207_v0 = vand.u32 2147483648, %v1195_v61  ;;  %v1205_v8 = vand.u32 2147483647, %v1195_v61  ;;  %vm1201_vm7 = vweird.f32 %v1195_v61 }
 0x56a   :  { %v1189_v17 = vor.u32 1.1754944e-38, %v1188_v10  ;;  %vm1187_vm10 = vcmp.eq.f32.partialorder %v1186_v3, 8.507059e+37  ;;  %v7907_v62 = vld [vmem:[%s12360_s7 + $0x8] sm:$0xff]  ;;  %v9559_v10 = vld [vmem:[%s12358_s5 + $0x10] sm:$0xff] }
 0x56b   :  { %v1208_v32 = vor.u32 1.1754944e-38, %v1207_v0  ;;  %vm1206_vm11 = vcmp.eq.f32.partialorder %v1205_v8, 8.507059e+37  ;;  %v1247_v0 = vld [vmem:[%s12356_s3 + $0x10] sm:$0xff] }
 0x56c   :  { %v8466_v18 = vpop.eup %8465 }
 0x56d   :  { %v1215_v22 = vadd.f32 1.0, %v8466_v18 }
 0x56e   :  { %v8468_v30 = vpop.eup %8467 }
 0x56f   :  { %v8470_v40 = vpop.eup %8469  ;;  %v1178_v26 = vmul.f32 %v8468_v30, %v1176_v60  ;;  %8471 = vrcp.f32 %v1215_v22  ;;  %vm1183_vm4 = vweird.f32 %v8468_v30  ;;  %v1227_v2 = vand.u32 2147483648, %v1215_v22  ;;  %v7908_v60 = vld [vmem:[%s12360_s7 + $0x10] sm:$0xff] }
 0x570   :  { %v1197_v43 = vmul.f32 %v8470_v40, %v1195_v61  ;;  %8473 = vtanh.f32 %v1171_v27  ;;  %vm1202_vm5 = vweird.f32 %v8470_v40  ;;  %vm1184_vm8 = vmor %vm1182_vm6, %vm1183_vm4  ;;  %vm1221_vm13 = vweird.f32 %v1215_v22  ;;  %v7906_v27 = vld [vmem:[%s12360_s7] sm:$0xff] }
 0x571   :  { %v1179_v23 = vsub.f32 1.0, %v1178_v26  ;;  %vm1203_vm9 = vmor %vm1201_vm7, %vm1202_vm5  ;;  %v1225_v6 = vand.u32 2147483647, %v1215_v22  ;;  %v1228_v19 = vor.u32 1.1754944e-38, %v1227_v2  ;;  %v1252_v61 = vadd.f32 %v1248_v55, %v9541_v52 }
 0x572   :  { %v1198_v15 = vsub.f32 1.0, %v1197_v43 }
 0x573   :  { %v1180_v5 = vmul.f32 %v8468_v30, %v1179_v23  ;;  %vm1226_vm15 = vcmp.eq.f32.partialorder %v1225_v6, 8.507059e+37 }
 0x574   :  { %v1199_v7 = vmul.f32 %v8470_v40, %v1198_v15 }
 0x575   :  { %v8472_v12 = vpop.eup %8471  ;;  %v1181_v16 = vadd.f32 %v8468_v30, %v1180_v5 }
 0x576   :  { %v1200_v21 = vadd.f32 %v8470_v40, %v1199_v7  ;;  %v1217_v28 = vmul.f32 %v8472_v12, %v1215_v22  ;;  %v8474_v34 = vpop.eup %8473  ;;  %vm1222_vm12 = vweird.f32 %v8472_v12  ;;  %v1251_v7 = vadd.f32 %v1247_v0, %v9559_v10  ;;  %v7943_v0 = vld [vmem:[%s12359_s6 + $0xec] sm:$0xf] }
 0x577   :  { %v1185_v33 = vsel %vm1184_vm8, %v8468_v30, %v1181_v16  ;;  %vm1223_vm14 = vmor %vm1221_vm13, %vm1222_vm12 }
 0x578   :  { %v1190_v41 = vsel %vm1187_vm10, %v1189_v17, %v1185_v33  ;;  %v1204_v42 = vsel %vm1203_vm9, %v8470_v40, %v1200_v21  ;;  %v1218_v45 = vsub.f32 1.0, %v1217_v28 }
 0x579   :  { %v1209_v46 = vsel %vm1206_vm11, %v1208_v32, %v1204_v42  ;;  %v1232_v53 = vmul.f32 %v8474_v34, %v1190_v41 }
 0x57a   :  { %v1231_v54 = vmul.f32 %v1209_v46, %v9294_v13  ;;  %v1219_v57 = vmul.f32 %v8472_v12, %v1218_v45  ;;  %v7913_v13 = vld [vmem:[%s12360_s7 + $0x38] sm:$0xff] }
 0x57b   :  { %1630 = vmatpush.bf16.msrb.mxu0 %v7913_v13 }
 0x57c   :  { %v9502_v58 = vadd.f32 %v1232_v53, %v1231_v54  ;;  %v1220_v1 = vadd.f32 %v8472_v12, %v1219_v57 }
 0x57e   :  { %8475 = vtanh.f32 %v9502_v58  ;;  %v1224_v9 = vsel %vm1223_vm14, %v8472_v12, %v1220_v1 }
 0x57f   :  { %v1229_v24 = vsel %vm1226_vm15, %v1228_v19, %v1224_v9  ;;  %1631 = vmatpush.bf16.msrb.mxu0 %v7912_v37 }
 0x583   :  { %1632 = vmatpush.bf16.msrb.mxu0 %v7911_v38 }
 0x584   :  { %v8476_v20 = vpop.eup %8475 }
 0x585   :  { %v1235_v25 = vmul.f32 %v8476_v20, %v1229_v24 }
 0x587   :  { %v1253_v36 = vpack.c.bf16 %v1235_v25, %v1235_v25  ;;  %1633 = vmatpush.bf16.msrb.mxu0 %v7910_v35 }
 0x589   :  { %1454 = vmatmul.bf16.vlgmr.msra.gmra.mxu0 %v1253_v36  ;;  %1467 = vmatmul.bf16.vlgmr.msra.gmra.mxu1 %v1253_v36 }
 0x58a   :  { %1480 = vmatmul.bf16.vlgmr.msra.gmra.mxu2 %v1253_v36  ;;  %1493 = vmatmul.bf16.vlgmr.msra.gmra.mxu3 %v1253_v36 }
 0x58b   :  { %1634 = vmatpush.bf16.msrb.mxu0 %v7909_v47 }
 0x58f   :  { %1635 = vmatpush.bf16.msrb.mxu0 %v7908_v60  ;;  %v9577_v60 = vld [vmem:[%s12361_s8] sm:$0xff] }
 0x593   :  { %1636 = vmatpush.bf16.msrb.mxu0 %v7907_v62 }
 0x597   :  { %1637 = vmatpush.bf16.msrb.mxu0 %v7906_v27 }
 0x606   :  { %v1455_v48 = vpop.f32.mrf.mxu0  ;;  %v1468_v49 = vpop.f32.mrf.mxu1 }
 0x607   :  { %v1498_v50 = vadd.f32 %v1455_v48, %v1249_v29  ;;  %v1499_v51 = vadd.f32 %v1468_v49, %v1250_v14 }
 0x609   :  { %v5977_v56 = vmul.f32 -1.442695, %v1498_v50  ;;  %v5978_v59 = vmul.f32 -1.442695, %v1499_v51 }
 0x60b   :  { %8477 = vpow2.f32 %v5977_v56 }
 0x60c   :  { %8479 = vpow2.f32 %v5978_v59 }
 0x60d   :  { %v1481_v63 = vpop.f32.mrf.mxu2  ;;  %v1494_v11 = vpop.f32.mrf.mxu3 }
 0x60e   :  { %v1501_v18 = vadd.f32 %v1494_v11, %v1252_v61  ;;  %v1457_v22 = vpop.f32.mrf.mxu0  ;;  %v1470_v30 = vpop.f32.mrf.mxu1  ;;  %v1500_v17 = vadd.f32 %v1481_v63, %v1251_v7 }
 0x60f   :  { %v7944_v22 = vld [vmem:[%s12359_s6 + $0xec] sm:$0xf0]  ;;  %v7942_v30 = vld [vmem:[%s12359_s6 + $0xe4] sm:$0xf] }
 0x610   :  { %v5979_v40 = vmul.f32 -1.442695, %v1501_v18  ;;  %v6126_v18 = vld [vmem:[%s12359_s6 + $0xe0] sm:$0xf] }
 0x611   :  { %v8478_v26 = vpop.eup %8477  ;;  %v6127_v27 = vor.u32 %v7944_v22, %v6126_v18  ;;  %v6072_v18 = vld [vmem:[%s12359_s6 + $0x78] sm:$0xf0] }
 0x612   :  { %v8480_v43 = vpop.eup %8479  ;;  %v1505_v23 = vadd.f32 1.0, %v8478_v26  ;;  %8481 = vpow2.f32 %v5979_v40  ;;  %v6128_v40 = vld [vmem:[%s12359_s6 + $0xf0] sm:$0xf0]  ;;  %v6134_v26 = vld [vmem:[%s12359_s6 + $0xe8] sm:$0xf] }
 0x613   :  { %v1524_v15 = vadd.f32 1.0, %v8480_v43  ;;  %v7945_v43 = vld [vmem:[%s12359_s6 + $0xf4] sm:$0xf0]  ;;  %1846 = vmatpush.bf16.msrb.mxu1 %v6127_v27 }
 0x614   :  { %8483 = vrcp.f32 %v1505_v23  ;;  %v1517_v41 = vand.u32 2147483648, %v1505_v23  ;;  %v1515_v46 = vand.u32 2147483647, %v1505_v23  ;;  %vm1511_vm2 = vweird.f32 %v1505_v23 }
 0x615   :  { %8485 = vrcp.f32 %v1524_v15  ;;  %v1483_v5 = vpop.f32.mrf.mxu2  ;;  %v1496_v3 = vpop.f32.mrf.mxu3  ;;  %v1536_v42 = vand.u32 2147483648, %v1524_v15  ;;  %v1534_v54 = vand.u32 2147483647, %v1524_v15  ;;  %vm1530_vm3 = vweird.f32 %v1524_v15 }
 0x616   :  { %v1518_v2 = vor.u32 1.1754944e-38, %v1517_v41  ;;  %vm1516_vm6 = vcmp.eq.f32.partialorder %v1515_v46, 8.507059e+37  ;;  %v6136_v5 = vld [vmem:[%s12359_s6 + $0xf8] sm:$0xf0]  ;;  %v6110_v3 = vld [vmem:[%s12359_s6 + $0xc0] sm:$0xf] }
 0x617   :  { %v1537_v19 = vor.u32 1.1754944e-38, %v1536_v42  ;;  %vm1535_vm7 = vcmp.eq.f32.partialorder %v1534_v54, 8.507059e+37  ;;  %v6139_v7 = vor.u32 %v7943_v0, %v6136_v5  ;;  %v6120_v41 = vld [vmem:[%s12359_s6 + $0xd8] sm:$0xf0]  ;;  %v6094_v42 = vld [vmem:[%s12359_s6 + $0xa0] sm:$0xf] }
 0x618   :  { %v8482_v8 = vpop.eup %8481  ;;  %v6096_v54 = vld [vmem:[%s12359_s6 + $0xb0] sm:$0xf0]  ;;  %v6054_v0 = vld [vmem:[%s12359_s6 + $0x48] sm:$0xf]  ;;  %v7925_v5 = vld [vmem:[%s12359_s6 + $0x54] sm:$0xf0] }
 0x619   :  { %v1544_v12 = vadd.f32 1.0, %v8482_v8  ;;  %v7940_v8 = vld [vmem:[%s12359_s6 + $0xcc] sm:$0xf0]  ;;  %1885 = vmatpush.bf16.msra.mxu0 %v6139_v7  ;;  %v6056_v7 = vld [vmem:[%s12359_s6 + $0x58] sm:$0xf0] }
 0x61a   :  { %v8484_v16 = vpop.eup %8483 }
 0x61b   :  { %v8486_v21 = vpop.eup %8485  ;;  %v1507_v28 = vmul.f32 %v8484_v16, %v1505_v23  ;;  %8487 = vrcp.f32 %v1544_v12  ;;  %vm1512_vm0 = vweird.f32 %v8484_v16  ;;  %v1556_v14 = vand.u32 2147483648, %v1544_v12 }
 0x61c   :  { %v1526_v32 = vmul.f32 %v8486_v21, %v1524_v15  ;;  %8489 = vtanh.f32 %v1500_v17  ;;  %vm1531_vm1 = vweird.f32 %v8486_v21  ;;  %vm1513_vm4 = vmor %vm1511_vm2, %vm1512_vm0  ;;  %vm1550_vm9 = vweird.f32 %v1544_v12 }
 0x61d   :  { %v1508_v33 = vsub.f32 1.0, %v1507_v28  ;;  %vm1532_vm5 = vmor %vm1530_vm3, %vm1531_vm1  ;;  %v1554_v47 = vand.u32 2147483647, %v1544_v12  ;;  %v1557_v49 = vor.u32 1.1754944e-38, %v1556_v14  ;;  %v6131_v23 = vor.u32 %v7942_v30, %v6128_v40  ;;  %v6118_v28 = vld [vmem:[%s12359_s6 + $0xc8] sm:$0xf] }
 0x61e   :  { %v1527_v34 = vsub.f32 1.0, %v1526_v32  ;;  %v6135_v15 = vor.u32 %v7945_v43, %v6134_v26  ;;  %v6111_v17 = vor.u32 %v7940_v8, %v6110_v3  ;;  %v7941_v32 = vld [vmem:[%s12359_s6 + $0xd4] sm:$0xf0]  ;;  %v6046_v40 = vld [vmem:[%s12359_s6 + $0x40] sm:$0xf] }
 0x61f   :  { %v1509_v45 = vmul.f32 %v8484_v16, %v1508_v33  ;;  %vm1555_vm11 = vcmp.eq.f32.partialorder %v1554_v47, 8.507059e+37  ;;  %1859 = vmatpush.bf16.msrb.mxu2 %v6131_v23  ;;  %v7939_v33 = vld [vmem:[%s12359_s6 + $0xcc] sm:$0xf]  ;;  %v7924_v26 = vld [vmem:[%s12359_s6 + $0x4c] sm:$0xf0] }
 0x620   :  { %v1528_v53 = vmul.f32 %v8486_v21, %v1527_v34  ;;  %1872 = vmatpush.bf16.msrb.mxu3 %v6135_v15  ;;  %v6119_v34 = vor.u32 %v7941_v32, %v6118_v28  ;;  %v6123_v46 = vor.u32 %v7939_v33, %v6120_v41  ;;  %1847 = vmatpush.bf16.msrb.mxu1 %v6111_v17  ;;  %v7922_v43 = vld [vmem:[%s12359_s6 + $0x44] sm:$0xf]  ;;  %v6048_v15 = vld [vmem:[%s12359_s6 + $0x50] sm:$0xf0]  ;;  %v7923_v3 = vld [vmem:[%s12359_s6 + $0x4c] sm:$0xf] }
 0x621   :  { %v8488_v57 = vpop.eup %8487  ;;  %v1510_v1 = vadd.f32 %v8484_v16, %v1509_v45  ;;  %v7936_v45 = vld [vmem:[%s12359_s6 + $0xac] sm:$0xf0]  ;;  %v6047_v8 = vor.u32 %v7924_v26, %v6046_v40  ;;  %v6030_v17 = vld [vmem:[%s12359_s6 + $0x20] sm:$0xf]  ;;  %v7918_v28 = vld [vmem:[%s12359_s6 + $0x24] sm:$0xf]  ;;  %v6059_v32 = vor.u32 %v7923_v3, %v6056_v7 }
 0x622   :  { %v1529_v6 = vadd.f32 %v8486_v21, %v1528_v53  ;;  %v1546_v9 = vmul.f32 %v8488_v57, %v1544_v12  ;;  %v8490_v24 = vpop.eup %8489  ;;  %vm1551_vm8 = vweird.f32 %v8488_v57  ;;  %v7938_v12 = vld [vmem:[%s12359_s6 + $0xc4] sm:$0xf]  ;;  %1886 = vmatpush.bf16.msra.mxu0 %v6123_v46  ;;  %v6032_v33 = vld [vmem:[%s12359_s6 + $0x30] sm:$0xf0]  ;;  %v7921_v41 = vld [vmem:[%s12359_s6 + $0x34] sm:$0xf0] }
 0x623   :  { %v1514_v20 = vsel %vm1513_vm4, %v8484_v16, %v1510_v1  ;;  %vm1552_vm10 = vmor %vm1550_vm9, %vm1551_vm8  ;;  %v6112_v16 = vld [vmem:[%s12359_s6 + $0xd0] sm:$0xf0]  ;;  %v7934_v53 = vld [vmem:[%s12359_s6 + $0xa4] sm:$0xf]  ;;  %v6095_v1 = vor.u32 %v7936_v45, %v6094_v42 }
 0x624   :  { %v1519_v25 = vsel %vm1516_vm6, %v1518_v2, %v1514_v20  ;;  %v1533_v36 = vsel %vm1532_vm5, %v8486_v21, %v1529_v6  ;;  %v1547_v13 = vsub.f32 1.0, %v1546_v9  ;;  %v6115_v21 = vor.u32 %v7938_v12, %v6112_v16  ;;  %v7937_v2 = vld [vmem:[%s12359_s6 + $0xb4] sm:$0xf0]  ;;  %v7935_v6 = vld [vmem:[%s12359_s6 + $0xac] sm:$0xf]  ;;  %1873 = vmatpush.bf16.msrb.mxu3 %v6119_v34 }
 0x625   :  { %v1538_v37 = vsel %vm1535_vm7, %v1537_v19, %v1533_v36  ;;  %v1561_v38 = vmul.f32 %v8490_v24, %v1519_v25  ;;  %v6104_v9 = vld [vmem:[%s12359_s6 + $0xb8] sm:$0xf0]  ;;  %v6099_v19 = vor.u32 %v7934_v53, %v6096_v54  ;;  %v6078_v24 = vld [vmem:[%s12359_s6 + $0x80] sm:$0xf]  ;;  %v7932_v25 = vld [vmem:[%s12359_s6 + $0x8c] sm:$0xf0]  ;;  %1848 = vmatpush.bf16.msrb.mxu1 %v6095_v1  ;;  %v6051_v12 = vor.u32 %v7922_v43, %v6048_v15 }
 0x626   :  { %v1560_v44 = vmul.f32 %v1538_v37, %v9502_v58  ;;  %v1548_v31 = vmul.f32 %v8488_v57, %v1547_v13  ;;  %v1241_v58 = vlaneseq  ;;  %1860 = vmatpush.bf16.msrb.mxu2 %v6115_v21  ;;  %v7930_v36 = vld [vmem:[%s12359_s6 + $0x84] sm:$0xf]  ;;  %v6107_v13 = vor.u32 %v7935_v6, %v6104_v9  ;;  %v6080_v37 = vld [vmem:[%s12359_s6 + $0x90] sm:$0xf0]  ;;  %v7920_v21 = vld [vmem:[%s12359_s6 + $0x2c] sm:$0xf0] }
 0x627   :  { %v6079_v14 = vor.u32 %v7932_v25, %v6078_v24  ;;  %v6083_v47 = vor.u32 %v7930_v36, %v6080_v37  ;;  %v6055_v16 = vor.u32 %v7925_v5, %v6054_v0  ;;  %v6038_v34 = vld [vmem:[%s12359_s6 + $0x28] sm:$0xf]  ;;  %v7919_v42 = vld [vmem:[%s12359_s6 + $0x2c] sm:$0xf]  ;;  %v6040_v45 = vld [vmem:[%s12359_s6 + $0x38] sm:$0xf0]  ;;  %v6031_v46 = vor.u32 %v7920_v21, %v6030_v17 }
 0x628   :  { %v9566_v35 = vadd.f32 %v1561_v38, %v1560_v44  ;;  %v1549_v29 = vadd.f32 %v8488_v57, %v1548_v31  ;;  %v9572_v59 = vand.u32 127, %v1241_v58  ;;  %v6086_v38 = vld [vmem:[%s12359_s6 + $0x88] sm:$0xf]  ;;  %v7933_v44 = vld [vmem:[%s12359_s6 + $0x94] sm:$0xf0]  ;;  %1887 = vmatpush.bf16.msra.mxu0 %v6107_v13  ;;  %v6035_v54 = vor.u32 %v7918_v28, %v6032_v33 }
 0x629   :  { %v7931_v31 = vld [vmem:[%s12359_s6 + $0x8c] sm:$0xf]  ;;  %v6064_v58 = vld [vmem:[%s12359_s6 + $0x70] sm:$0xf0]  ;;  %1849 = vmatpush.bf16.msrb.mxu1 %v6079_v14  ;;  %v6014_v53 = vld [vmem:[%s12359_s6] sm:$0xf]  ;;  %v6043_v9 = vor.u32 %v7919_v42, %v6040_v45 }
 0x62a   :  { %8491 = vtanh.f32 %v9566_v35  ;;  %v1553_v48 = vsel %vm1552_vm10, %v8488_v57, %v1549_v29  ;;  %vm1244_vm12 = vcmp.lt.s32.totalorder %v9572_v59, 16  ;;  %v6102_v57 = vld [vmem:[%s12359_s6 + $0xa8] sm:$0xf]  ;;  %v6088_v29 = vld [vmem:[%s12359_s6 + $0x98] sm:$0xf0]  ;;  %1861 = vmatpush.bf16.msrb.mxu2 %v6099_v19  ;;  %v9788_v37 = vcvt.s32.f32 %v9572_v59 }
 0x62b   :  { %v1558_v51 = vsel %vm1555_vm11, %v1557_v49, %v1553_v48  ;;  %v6103_v20 = vor.u32 %v7937_v2, %v6102_v57  ;;  %v6087_v48 = vor.u32 %v7933_v44, %v6086_v38  ;;  %v6062_v49 = vld [vmem:[%s12359_s6 + $0x60] sm:$0xf]  ;;  %v6039_v57 = vor.u32 %v7921_v41, %v6038_v34  ;;  %v7916_v1 = vld [vmem:[%s12359_s6 + $0xc] sm:$0xf0]  ;;  %v7914_v2 = vld [vmem:[%s12359_s6 + $0x4] sm:$0xf] }
 0x62c   :  { %v6016_v6 = vld [vmem:[%s12359_s6 + $0x10] sm:$0xf0]  ;;  %v6022_v19 = vld [vmem:[%s12359_s6 + $0x8] sm:$0xf]  ;;  %v7915_v24 = vld [vmem:[%s12359_s6 + $0xc] sm:$0xf]  ;;  %v6015_v38 = vor.u32 %v7916_v1, %v6014_v53 }
 0x62d   :  { %1874 = vmatpush.bf16.msrb.mxu3 %v6103_v20  ;;  %v7917_v20 = vld [vmem:[%s12359_s6 + $0x14] sm:$0xf0]  ;;  %v6024_v25 = vld [vmem:[%s12359_s6 + $0x18] sm:$0xf0]  ;;  %v6267_v36 = vld [vmem:[%s12357_s4 + $0xe0] sm:$0xf]  ;;  %v6019_v14 = vor.u32 %v7914_v2, %v6016_v6 }
 0x62e   :  { %1862 = vmatpush.bf16.msrb.mxu2 %v6083_v47  ;;  %v7976_v13 = vld [vmem:[%s12357_s4 + $0xec] sm:$0xf0]  ;;  %v7974_v44 = vld [vmem:[%s12357_s4 + $0xe4] sm:$0xf]  ;;  %v7977_v47 = vld [vmem:[%s12357_s4 + $0xf4] sm:$0xf0] }
 0x62f   :  { %v6259_v40 = vld [vmem:[%s12357_s4 + $0xc8] sm:$0xf]  ;;  %v7973_v26 = vld [vmem:[%s12357_s4 + $0xd4] sm:$0xf0]  ;;  %v7971_v43 = vld [vmem:[%s12357_s4 + $0xcc] sm:$0xf] }
 0x630   :  { %v8492_v50 = vpop.eup %8491  ;;  %v6235_v5 = vld [vmem:[%s12357_s4 + $0xa0] sm:$0xf]  ;;  %v7968_v3 = vld [vmem:[%s12357_s4 + $0xac] sm:$0xf0]  ;;  %v6260_v7 = vor.u32 %v7973_v26, %v6259_v40  ;;  %v6243_v17 = vld [vmem:[%s12357_s4 + $0xa8] sm:$0xf] }
 0x631   :  { %v1564_v55 = vmul.f32 %v8492_v50, %v1558_v51  ;;  %v7928_v50 = vld [vmem:[%s12359_s6 + $0x6c] sm:$0xf0]  ;;  %v7926_v51 = vld [vmem:[%s12359_s6 + $0x64] sm:$0xf]  ;;  %1875 = vmatpush.bf16.msrb.mxu3 %v6087_v48  ;;  %v7975_v48 = vld [vmem:[%s12357_s4 + $0xec] sm:$0xf]  ;;  %v6236_v33 = vor.u32 %v7968_v3, %v6235_v5 }
 0x632   :  { %v6063_v22 = vor.u32 %v7928_v50, %v6062_v49  ;;  %v6067_v30 = vor.u32 %v7926_v51, %v6064_v58  ;;  %v6277_v49 = vld [vmem:[%s12357_s4 + $0xf8] sm:$0xf0]  ;;  %v6023_v51 = vor.u32 %v7917_v20, %v6022_v19  ;;  %v6268_v58 = vor.u32 %v7976_v13, %v6267_v36  ;;  %v7969_v21 = vld [vmem:[%s12357_s4 + $0xb4] sm:$0xf0]  ;;  %v7967_v28 = vld [vmem:[%s12357_s4 + $0xac] sm:$0xf] }
 0x633   :  { %v9569_v56 = vpack.c.bf16 %v1564_v55, %v1564_v55  ;;  %v6091_v55 = vor.u32 %v7931_v31, %v6088_v29  ;;  %v6269_v31 = vld [vmem:[%s12357_s4 + $0xf0] sm:$0xf0]  ;;  %v6275_v29 = vld [vmem:[%s12357_s4 + $0xe8] sm:$0xf]  ;;  %v6219_v41 = vld [vmem:[%s12357_s4 + $0x80] sm:$0xf]  ;;  %v6244_v45 = vor.u32 %v7969_v21, %v6243_v17 }
 0x634   :  { %1850 = vmatpush.bf16.msrb.mxu1 %v6063_v22  ;;  %1863 = vmatpush.bf16.msrb.mxu2 %v6067_v30  ;;  %v6276_v30 = vor.u32 %v7977_v47, %v6275_v29  ;;  %v7964_v42 = vld [vmem:[%s12357_s4 + $0x8c] sm:$0xf0]  ;;  %v7962_v53 = vld [vmem:[%s12357_s4 + $0x84] sm:$0xf]  ;;  %v7965_v1 = vld [vmem:[%s12357_s4 + $0x94] sm:$0xf0] }
 0x635   :  { %1638 = vmatmul.bf16.vlgmr.msrb.gmra.mxu0 %v9569_v56  ;;  %v7963_v2 = vld [vmem:[%s12357_s4 + $0x8c] sm:$0xf]  ;;  %v6229_v6 = vld [vmem:[%s12357_s4 + $0x98] sm:$0xf0]  ;;  %v7960_v36 = vld [vmem:[%s12357_s4 + $0x6c] sm:$0xf0] }
 0x636   :  { %1888 = vmatpush.bf16.msra.mxu0 %v6091_v55  ;;  %v6027_v55 = vor.u32 %v7915_v24, %v6024_v25  ;;  %v6232_v24 = vor.u32 %v7963_v2, %v6229_v6  ;;  %v6203_v25 = vld [vmem:[%s12357_s4 + $0x60] sm:$0xf]  ;;  %v7959_v47 = vld [vmem:[%s12357_s4 + $0x6c] sm:$0xf]  ;;  %v6179_v5 = vld [vmem:[%s12357_s4 + $0x28] sm:$0xf] }
 0x637   :  { %v6204_v13 = vor.u32 %v7960_v36, %v6203_v25  ;;  %v6171_v40 = vld [vmem:[%s12357_s4 + $0x20] sm:$0xf]  ;;  %v7953_v3 = vld [vmem:[%s12357_s4 + $0x34] sm:$0xf0]  ;;  %v7948_v17 = vld [vmem:[%s12357_s4 + $0xc] sm:$0xf0] }
 0x638   :  { %1851 = vmatpush.bf16.msrb.mxu1 %v6047_v8  ;;  %1864 = vmatpush.bf16.msrb.mxu2 %v6051_v12  ;;  %v7966_v12 = vld [vmem:[%s12357_s4 + $0xa4] sm:$0xf]  ;;  %v6180_v21 = vor.u32 %v7953_v3, %v6179_v5  ;;  %v8620_v2 = vmov 1.0|1.0   ;;  %v7985_v25 = vld [vmem:[%s12360_s7 + $0x38] sm:$0xff] }
 0x639   :  { %v6152_v36 = vld [vmem:[%s12356_s3 + $0x38] sm:$0xff]  ;;  %v7653_v59 = vld [vmem:[%s12359_s6 + $0xf0] sm:$0xf0] }
 0x63c   :  { %1852 = vmatpush.bf16.msrb.mxu1 %v6031_v46  ;;  %1865 = vmatpush.bf16.msrb.mxu2 %v6035_v54  ;;  %v6221_v54 = vld [vmem:[%s12357_s4 + $0x90] sm:$0xf0] }
 0x63d   :  { %v6224_v19 = vor.u32 %v7962_v53, %v6221_v54 }
 0x640   :  { %1853 = vmatpush.bf16.msrb.mxu1 %v6015_v38  ;;  %1866 = vmatpush.bf16.msrb.mxu2 %v6019_v14  ;;  %v7958_v38 = vld [vmem:[%s12357_s4 + $0x64] sm:$0xf]  ;;  %v7961_v14 = vld [vmem:[%s12357_s4 + $0x74] sm:$0xf0] }
 0x644   :  { %2115 = vmatpush.bf16.msra.mxu1 %v6268_v58  ;;  %v7954_v58 = vld [vmem:[%s12357_s4 + $0x44] sm:$0xf] }
 0x6b2   :  { %v1639_v61 = vpop.f32.mrf.mxu0 }
 0x6b3   :  { %v1640_v62 = vadd.f32 %v1639_v61, %v9577_v60  ;;  %v6070_v61 = vld [vmem:[%s12359_s6 + $0x68] sm:$0xf] }
 0x6b5   :  { %1643 = vst [vmem:[%s12362_s9] sm:$0xff] %v1640_v62  ;;  %v9586_v63 = vsel %vm1244_vm12, %v1640_v62, -1e+30  ;;  %v7929_v62 = vld [vmem:[%s12359_s6 + $0x74] sm:$0xf0] }
 0x6b6   :  { %1645 = vmax.xlane.f32.xlu0 %v9586_v63  ;;  %v6071_v27 = vor.u32 %v7929_v62, %v6070_v61  ;;  %v6272_v61 = vor.u32 %v7974_v44, %v6269_v31  ;;  %v6251_v62 = vld [vmem:[%s12357_s4 + $0xc0] sm:$0xf]  ;;  %v6205_v44 = vld [vmem:[%s12357_s4 + $0x70] sm:$0xf0]  ;;  %v6211_v31 = vld [vmem:[%s12357_s4 + $0x68] sm:$0xf] }
 0x6b7   :  { %v6208_v29 = vor.u32 %v7958_v38, %v6205_v44 }
 0x6b8   :  { %1876 = vmatpush.bf16.msrb.mxu3 %v6071_v27  ;;  %v6280_v27 = vor.u32 %v7975_v48, %v6277_v49  ;;  %2128 = vmatpush.bf16.msra.mxu2 %v6272_v61  ;;  %v6213_v48 = vld [vmem:[%s12357_s4 + $0x78] sm:$0xf0]  ;;  %v6212_v49 = vor.u32 %v7961_v14, %v6211_v31 }
 0x6ba   :  { %v1641_v11 = vpop.f32.mrf.mxu0 }
 0x6bb   :  { %v7927_v11 = vld [vmem:[%s12359_s6 + $0x6c] sm:$0xf] }
 0x6bc   :  { %v6075_v23 = vor.u32 %v7927_v11, %v6072_v18  ;;  %1877 = vmatpush.bf16.msrb.mxu3 %v6055_v16  ;;  %v7972_v11 = vld [vmem:[%s12357_s4 + $0xcc] sm:$0xf0]  ;;  %v7970_v18 = vld [vmem:[%s12357_s4 + $0xc4] sm:$0xf]  ;;  %v6237_v16 = vld [vmem:[%s12357_s4 + $0xb0] sm:$0xf0] }
 0x6bd   :  { %v6252_v15 = vor.u32 %v7972_v11, %v6251_v62  ;;  %v6240_v34 = vor.u32 %v7966_v12, %v6237_v16  ;;  %v6189_v62 = vld [vmem:[%s12357_s4 + $0x50] sm:$0xf0]  ;;  %v6195_v11 = vld [vmem:[%s12357_s4 + $0x48] sm:$0xf]  ;;  %v6181_v12 = vld [vmem:[%s12357_s4 + $0x38] sm:$0xf0] }
 0x6be   :  { %1889 = vmatpush.bf16.msra.mxu0 %v6075_v23  ;;  %v6261_v23 = vld [vmem:[%s12357_s4 + $0xd8] sm:$0xf0]  ;;  %v6155_v16 = vld [vmem:[%s12357_s4] sm:$0xf] }
 0x6bf   :  { %v6264_v8 = vor.u32 %v7971_v43, %v6261_v23  ;;  %2116 = vmatpush.bf16.msra.mxu1 %v6252_v15  ;;  %v7952_v43 = vld [vmem:[%s12357_s4 + $0x2c] sm:$0xf0]  ;;  %v7950_v23 = vld [vmem:[%s12357_s4 + $0x24] sm:$0xf]  ;;  %v6173_v15 = vld [vmem:[%s12357_s4 + $0x30] sm:$0xf0] }
 0x6c0   :  { %1878 = vmatpush.bf16.msrb.mxu3 %v6039_v57  ;;  %v6227_v57 = vld [vmem:[%s12357_s4 + $0x88] sm:$0xf] }
 0x6c1   :  { %v6228_v20 = vor.u32 %v7965_v1, %v6227_v57 }
 0x6c2   :  { %1890 = vmatpush.bf16.msra.mxu0 %v6059_v32  ;;  %v6245_v32 = vld [vmem:[%s12357_s4 + $0xb8] sm:$0xf0] }
 0x6c3   :  { %v6248_v46 = vor.u32 %v7967_v28, %v6245_v32  ;;  %2117 = vmatpush.bf16.msra.mxu1 %v6236_v33  ;;  %v7946_v32 = vld [vmem:[%s12357_s4 + $0x4] sm:$0xf]  ;;  %v6157_v33 = vld [vmem:[%s12357_s4 + $0x10] sm:$0xf0] }
 0x6c4   :  { %1879 = vmatpush.bf16.msrb.mxu3 %v6023_v51  ;;  %v6187_v51 = vld [vmem:[%s12357_s4 + $0x40] sm:$0xf]  ;;  %v6160_v53 = vor.u32 %v7946_v32, %v6157_v33  ;;  %v6151_v32 = vld [vmem:[%s12356_s3 + $0x30] sm:$0xff] }
 0x6c6   :  { %1891 = vmatpush.bf16.msra.mxu0 %v6043_v9  ;;  %v6220_v9 = vor.u32 %v7964_v42, %v6219_v41  ;;  %v7949_v41 = vld [vmem:[%s12357_s4 + $0x14] sm:$0xf0]  ;;  %v7947_v42 = vld [vmem:[%s12357_s4 + $0xc] sm:$0xf] }
 0x6c8   :  { %2141 = vmatpush.bf16.msra.mxu3 %v6276_v30  ;;  %2118 = vmatpush.bf16.msra.mxu1 %v6220_v9 }
 0x6ca   :  { %1892 = vmatpush.bf16.msra.mxu0 %v6027_v55  ;;  %v7956_v55 = vld [vmem:[%s12357_s4 + $0x4c] sm:$0xf0] }
 0x6cb   :  { %v6188_v61 = vor.u32 %v7956_v55, %v6187_v51  ;;  %v7983_v55 = vld [vmem:[%s12360_s7 + $0x28] sm:$0xff] }
 0x6cc   :  { %2142 = vmatpush.bf16.msra.mxu3 %v6260_v7  ;;  %2119 = vmatpush.bf16.msra.mxu1 %v6204_v13  ;;  %v7951_v7 = vld [vmem:[%s12357_s4 + $0x2c] sm:$0xf] }
 0x6cd   :  { %v6184_v28 = vor.u32 %v7951_v7, %v6181_v12 }
 0x6ce   :  { %2154 = vmatpush.bf16.msrb.mxu0 %v6280_v27  ;;  %v7955_v27 = vld [vmem:[%s12357_s4 + $0x4c] sm:$0xf] }
 0x6d0   :  { %2143 = vmatpush.bf16.msra.mxu3 %v6244_v45  ;;  %2120 = vmatpush.bf16.msra.mxu1 %v6188_v61  ;;  %v6165_v45 = vld [vmem:[%s12357_s4 + $0x18] sm:$0xf0] }
 0x6d1   :  { %v6168_v57 = vor.u32 %v7947_v42, %v6165_v45 }
 0x6d2   :  { %2155 = vmatpush.bf16.msrb.mxu0 %v6264_v8  ;;  %v6176_v8 = vor.u32 %v7950_v23, %v6173_v15 }
 0x6d4   :  { %2144 = vmatpush.bf16.msra.mxu3 %v6228_v20  ;;  %v1904_v20 = vstv %s6148_s0 }
 0x6d5   :  { %v1908_v31 = vmul.f32 %v6152_v36, %v1904_v20  ;;  %v1907_v45 = vmul.f32 %v6151_v32, %v1904_v20 }
 0x6d6   :  { %2156 = vmatpush.bf16.msrb.mxu0 %v6248_v46  ;;  %v6156_v46 = vor.u32 %v7948_v17, %v6155_v16  ;;  %v7979_v17 = vld [vmem:[%s12360_s7 + $0x8] sm:$0xff] }
 0x6d8   :  { %2145 = vmatpush.bf16.msra.mxu3 %v6212_v49  ;;  %v6150_v49 = vld [vmem:[%s12356_s3 + $0x28] sm:$0xff] }
 0x6da   :  { %2157 = vmatpush.bf16.msrb.mxu0 %v6232_v24  ;;  %v1910_v24 = vstv %s1909_s19  ;;  %s3919_s19 = ssub.f32 1.0, %s7063_s17 }
 0x729   :  { %v1646_v50 = vpop.xlane.xlu0 %1645 }
 0x72a   :  { %vm1647_vm13 = vcmp.eq.f32.partialorder %v9586_v63, %v1646_v50  ;;  %v6253_v63 = vld [vmem:[%s12357_s4 + $0xd0] sm:$0xf0]  ;;  %v6216_v50 = vor.u32 %v7959_v47, %v6213_v48 }
 0x72b   :  { %v1648_v22 = vsel %vm1647_vm13, %v9788_v37, 128.0  ;;  %v6256_v0 = vor.u32 %v7970_v18, %v6253_v63  ;;  %v7957_v18 = vld [vmem:[%s12357_s4 + $0x54] sm:$0xf0]  ;;  %v6197_v63 = vld [vmem:[%s12357_s4 + $0x58] sm:$0xf0]  ;;  %v7984_v47 = vld [vmem:[%s12360_s7 + $0x30] sm:$0xff] }
 0x72c   :  { %1649 = vmin.xlane.f32.xlu0 %v1648_v22  ;;  %2158 = vmatpush.bf16.msrb.mxu0 %v6216_v50  ;;  %v6192_v22 = vor.u32 %v7954_v58, %v6189_v62  ;;  %v6196_v30 = vor.u32 %v7957_v18, %v6195_v11  ;;  %v6200_v26 = vor.u32 %v7955_v27, %v6197_v63  ;;  %v7982_v27 = vld [vmem:[%s12360_s7 + $0x20] sm:$0xff] }
 0x72d   :  { %2129 = vmatpush.bf16.msra.mxu2 %v6256_v0  ;;  %v6172_v0 = vor.u32 %v7952_v43, %v6171_v40  ;;  %v1906_v58 = vmul.f32 %v6150_v49, %v1904_v20 }
 0x72e   :  { %2146 = vmatpush.bf16.msra.mxu3 %v6196_v30 }
 0x72f   :  { %2121 = vmatpush.bf16.msra.mxu1 %v6172_v0  ;;  %v7981_v0 = vld [vmem:[%s12360_s7 + $0x18] sm:$0xff] }
 0x730   :  { %2159 = vmatpush.bf16.msrb.mxu0 %v6200_v26 }
 0x731   :  { %2130 = vmatpush.bf16.msra.mxu2 %v6240_v34  ;;  %v6163_v34 = vld [vmem:[%s12357_s4 + $0x8] sm:$0xf] }
 0x732   :  { %2147 = vmatpush.bf16.msra.mxu3 %v6180_v21  ;;  %v6164_v54 = vor.u32 %v7949_v41, %v6163_v34  ;;  %v7978_v34 = vld [vmem:[%s12360_s7] sm:$0xff] }
 0x733   :  { %2122 = vmatpush.bf16.msra.mxu1 %v6156_v46 }
 0x734   :  { %2160 = vmatpush.bf16.msrb.mxu0 %v6184_v28 }
 0x735   :  { %2131 = vmatpush.bf16.msra.mxu2 %v6224_v19  ;;  %v6149_v19 = vld [vmem:[%s12356_s3 + $0x20] sm:$0xff] }
 0x736   :  { %2148 = vmatpush.bf16.msra.mxu3 %v6164_v54 }
 0x738   :  { %2161 = vmatpush.bf16.msrb.mxu0 %v6168_v57 }
 0x739   :  { %2132 = vmatpush.bf16.msra.mxu2 %v6208_v29 }
 0x73d   :  { %2133 = vmatpush.bf16.msra.mxu2 %v6192_v22 }
 0x741   :  { %2134 = vmatpush.bf16.msra.mxu2 %v6176_v8  ;;  %v7980_v8 = vld [vmem:[%s12360_s7 + $0x10] sm:$0xff] }
 0x745   :  { %2135 = vmatpush.bf16.msra.mxu2 %v6160_v53 }
 0x79f   :  { %v1650_v1 = vpop.xlane.xlu0 %1649 }
 0x7a0   :  { %vm1651_vm14 = vcmp.eq.f32.partialorder %v9788_v37, %v1650_v1 }
 0x7a1   :  { %vm6140_vm15 = vmpackc.low %vm1651_vm14, %vm1651_vm14 }
 0x7a2   :  { %6141 = vmatmul.msk.bf16.vlgmr.msrb.gmra.mxu1 %vm6140_vm15, %v8620_v2  ;;  %6143 = vmatmul.msk.bf16.vlgmr.msrb.gmra.mxu2 %vm6140_vm15, %v8620_v2 }
 0x7a3   :  { %6145 = vmatmul.msk.bf16.vlgmr.msrb.gmra.mxu3 %vm6140_vm15, %v8620_v2  ;;  %6147 = vmatmul.msk.bf16.vlgmr.msra.gmra.mxu0 %vm6140_vm15, %v8620_v2 }
 0x7a4   :  { %2299 = vmatpush.bf16.msrb.mxu1 %v7985_v25 }
 0x7a8   :  { %2300 = vmatpush.bf16.msrb.mxu1 %v7984_v47 }
 0x7ac   :  { %2301 = vmatpush.bf16.msrb.mxu1 %v7983_v55 }
 0x7b0   :  { %2302 = vmatpush.bf16.msrb.mxu1 %v7982_v27 }
 0x7b2   :  { %2123 = vmatmul.bf16.vlgmr.msra.gmra.mxu1 %v9569_v56  ;;  %2136 = vmatmul.bf16.vlgmr.msra.gmra.mxu2 %v9569_v56 }
 0x7b3   :  { %2149 = vmatmul.bf16.vlgmr.msra.gmra.mxu3 %v9569_v56  ;;  %2162 = vmatmul.bf16.vlgmr.msrb.gmra.mxu0 %v9569_v56  ;;  %v1905_v56 = vmul.f32 %v6149_v19, %v1904_v20 }
 0x7b4   :  { %2303 = vmatpush.bf16.msrb.mxu1 %v7981_v0 }
 0x7b8   :  { %2304 = vmatpush.bf16.msrb.mxu1 %v7980_v8  ;;  %v6431_v8 = vld [vmem:[%s12359_s6 + $0xe0] sm:$0xf] }
 0x7bc   :  { %2305 = vmatpush.bf16.msrb.mxu1 %v7979_v17  ;;  %v6433_v17 = vld [vmem:[%s12359_s6 + $0xf0] sm:$0xf0] }
 0x7c0   :  { %2306 = vmatpush.bf16.msrb.mxu1 %v7978_v34  ;;  %v6441_v34 = vld [vmem:[%s12359_s6 + $0xf8] sm:$0xf0] }
 0x81f   :  { %v1855_v6 = vpop.f32.mrf.mxu1 }
 0x820   :  { %v1894_v9 = vpop.f32.mrf.mxu0  ;;  %v1911_v38 = vmul.f32 %v1910_v24, %v1855_v6 }
 0x821   :  { %v1914_v29 = vmul.f32 %v1910_v24, %v1894_v9 }
 0x822   :  { %v1915_v50 = vadd.f32 %v1911_v38, %v1905_v56 }
 0x823   :  { %v1918_v51 = vadd.f32 %v1914_v29, %v1908_v31 }
 0x824   :  { %v1919_v18 = vadd.f32 %v1915_v50, %v9517_v39 }
 0x825   :  { %v1868_v13 = vpop.f32.mrf.mxu2  ;;  %v1922_v30 = vadd.f32 %v1918_v51, %v9541_v52 }
 0x826   :  { %v1881_v44 = vpop.f32.mrf.mxu3  ;;  %v1912_v61 = vmul.f32 %v1910_v24, %v1868_v13 }
 0x827   :  { %v1857_v14 = vpop.f32.mrf.mxu1  ;;  %v1913_v46 = vmul.f32 %v1910_v24, %v1881_v44 }
 0x828   :  { %v1896_v48 = vpop.f32.mrf.mxu0  ;;  %v1916_v63 = vadd.f32 %v1912_v61, %v1906_v58 }
 0x829   :  { %v1917_v1 = vadd.f32 %v1913_v46, %v1907_v45  ;;  %v8012_v45 = vld [vmem:[%s12359_s6 + $0xcc] sm:$0xf0]  ;;  %v8010_v46 = vld [vmem:[%s12359_s6 + $0xc4] sm:$0xf] }
 0x82a   :  { %v1920_v39 = vadd.f32 %v1916_v63, %v9525_v4 }
 0x82b   :  { %v1921_v19 = vadd.f32 %v1917_v1, %v9559_v10  ;;  %v6423_v1 = vld [vmem:[%s12359_s6 + $0xc8] sm:$0xf] }
 0x82d   :  { %v1870_v62 = vpop.f32.mrf.mxu2 }
 0x82e   :  { %v1883_v11 = vpop.f32.mrf.mxu3 }
 0x82f   :  { %v2124_v22 = vpop.f32.mrf.mxu1 }
 0x830   :  { %v2167_v40 = vadd.f32 %v2124_v22, %v1919_v18  ;;  %v2163_v26 = vpop.f32.mrf.mxu0 }
 0x831   :  { %v2170_v43 = vadd.f32 %v2163_v26, %v1922_v30 }
 0x832   :  { %v6281_v23 = vmul.f32 -1.442695, %v2167_v40 }
 0x833   :  { %v6283_v15 = vmul.f32 -1.442695, %v2170_v43 }
 0x834   :  { %8493 = vpow2.f32 %v6281_v23 }
 0x835   :  { %8495 = vpow2.f32 %v6283_v15  ;;  %v2137_v52 = vpop.f32.mrf.mxu2 }
 0x836   :  { %v2168_v5 = vadd.f32 %v2137_v52, %v1920_v39  ;;  %v2150_v3 = vpop.f32.mrf.mxu3 }
 0x837   :  { %v2126_v7 = vpop.f32.mrf.mxu1  ;;  %v2169_v56 = vadd.f32 %v2150_v3, %v1921_v19 }
 0x838   :  { %v6282_v12 = vmul.f32 -1.442695, %v2168_v5  ;;  %v2165_v16 = vpop.f32.mrf.mxu0 }
 0x83a   :  { %v8494_v21 = vpop.eup %8493  ;;  %8497 = vpow2.f32 %v6282_v12  ;;  %v8016_v12 = vld [vmem:[%s12359_s6 + $0xec] sm:$0xf0] }
 0x83b   :  { %v8496_v4 = vpop.eup %8495  ;;  %v2174_v28 = vadd.f32 1.0, %v8494_v21  ;;  %v6432_v16 = vor.u32 %v8016_v12, %v6431_v8  ;;  %v6439_v21 = vld [vmem:[%s12359_s6 + $0xe8] sm:$0xf]  ;;  %v6351_v12 = vld [vmem:[%s12359_s6 + $0x40] sm:$0xf] }
 0x83c   :  { %v2213_v41 = vadd.f32 1.0, %v8496_v4  ;;  %v8017_v4 = vld [vmem:[%s12359_s6 + $0xf4] sm:$0xf0] }
 0x83d   :  { %8499 = vrcp.f32 %v2174_v28  ;;  %v2139_v33 = vpop.f32.mrf.mxu2  ;;  %v2186_v24 = vand.u32 2147483648, %v2174_v28  ;;  %vm2180_vm1 = vweird.f32 %v2174_v28  ;;  %v2184_v29 = vand.u32 2147483647, %v2174_v28  ;;  %2516 = vmatpush.bf16.msrb.mxu2 %v6432_v16  ;;  %v7994_v16 = vld [vmem:[%s12359_s6 + $0x44] sm:$0xf] }
 0x83e   :  { %v2152_v42 = vpop.f32.mrf.mxu3  ;;  %8501 = vrcp.f32 %v2213_v41  ;;  %v2225_v40 = vand.u32 2147483648, %v2213_v41  ;;  %vm2219_vm9 = vweird.f32 %v2213_v41  ;;  %v2223_v26 = vand.u32 2147483647, %v2213_v41  ;;  %v8015_v33 = vld [vmem:[%s12359_s6 + $0xec] sm:$0xf] }
 0x83f   :  { %v2187_v50 = vor.u32 1.1754944e-38, %v2186_v24  ;;  %vm2185_vm5 = vcmp.eq.f32.partialorder %v2184_v29, 8.507059e+37  ;;  %v6440_v32 = vor.u32 %v8017_v4, %v6439_v21  ;;  %v6444_v42 = vor.u32 %v8015_v33, %v6441_v34  ;;  %v8007_v29 = vld [vmem:[%s12359_s6 + $0xac] sm:$0xf]  ;;  %v6353_v21 = vld [vmem:[%s12359_s6 + $0x50] sm:$0xf0] }
 0x840   :  { %v8498_v53 = vpop.eup %8497  ;;  %v2226_v23 = vor.u32 1.1754944e-38, %v2225_v40  ;;  %vm2224_vm11 = vcmp.eq.f32.partialorder %v2223_v26, 8.507059e+37  ;;  %v8000_v40 = vld [vmem:[%s12359_s6 + $0x6c] sm:$0xf0]  ;;  %v7998_v26 = vld [vmem:[%s12359_s6 + $0x64] sm:$0xf] }
 0x841   :  { %v2193_v54 = vadd.f32 1.0, %v8498_v53  ;;  %v6417_v53 = vld [vmem:[%s12359_s6 + $0xd0] sm:$0xf0]  ;;  %2542 = vmatpush.bf16.msra.mxu0 %v6440_v32  ;;  %2555 = vmatpush.bf16.msra.mxu1 %v6444_v42  ;;  %v6359_v4 = vld [vmem:[%s12359_s6 + $0x48] sm:$0xf] }
 0x842   :  { %v7995_v32 = vld [vmem:[%s12359_s6 + $0x4c] sm:$0xf]  ;;  %v6361_v33 = vld [vmem:[%s12359_s6 + $0x58] sm:$0xf0] }
 0x843   :  { %v8500_v57 = vpop.eup %8499  ;;  %8503 = vrcp.f32 %v2193_v54  ;;  %v2205_v14 = vand.u32 2147483648, %v2193_v54  ;;  %v2203_v49 = vand.u32 2147483647, %v2193_v54  ;;  %vm2199_vm4 = vweird.f32 %v2193_v54 }
 0x844   :  { %v2176_v6 = vmul.f32 %v8500_v57, %v2174_v28  ;;  %v8502_v25 = vpop.eup %8501  ;;  %vm2181_vm0 = vweird.f32 %v8500_v57  ;;  %8505 = vtanh.f32 %v2169_v56 }
 0x845   :  { %v2215_v20 = vmul.f32 %v8502_v25, %v2213_v41  ;;  %vm2182_vm2 = vmor %vm2180_vm1, %vm2181_vm0  ;;  %v2206_v55 = vor.u32 1.1754944e-38, %v2205_v14  ;;  %vm2204_vm7 = vcmp.eq.f32.partialorder %v2203_v49, 8.507059e+37  ;;  %vm2220_vm8 = vweird.f32 %v8502_v25  ;;  %v6415_v41 = vld [vmem:[%s12359_s6 + $0xc0] sm:$0xf]  ;;  %v6409_v14 = vld [vmem:[%s12359_s6 + $0xb8] sm:$0xf0] }
 0x846   :  { %v2177_v9 = vsub.f32 1.0, %v2176_v6  ;;  %vm2221_vm10 = vmor %vm2219_vm9, %vm2220_vm8  ;;  %v8013_v6 = vld [vmem:[%s12359_s6 + $0xd4] sm:$0xf0]  ;;  %v6383_v49 = vld [vmem:[%s12359_s6 + $0x80] sm:$0xf] }
 0x847   :  { %v2216_v10 = vsub.f32 1.0, %v2215_v20  ;;  %v6424_v19 = vor.u32 %v8013_v6, %v6423_v1  ;;  %v6407_v20 = vld [vmem:[%s12359_s6 + $0xa8] sm:$0xf]  ;;  %v7993_v6 = vld [vmem:[%s12359_s6 + $0x34] sm:$0xf0] }
 0x848   :  { %v2178_v36 = vmul.f32 %v8500_v57, %v2177_v9  ;;  %v8011_v9 = vld [vmem:[%s12359_s6 + $0xcc] sm:$0xf]  ;;  %v6343_v1 = vld [vmem:[%s12359_s6 + $0x28] sm:$0xf] }
 0x849   :  { %v8504_v13 = vpop.eup %8503  ;;  %v2217_v11 = vmul.f32 %v8502_v25, %v2216_v10  ;;  %2543 = vmatpush.bf16.msra.mxu0 %v6424_v19  ;;  %v8004_v10 = vld [vmem:[%s12359_s6 + $0x8c] sm:$0xf0]  ;;  %v6345_v19 = vld [vmem:[%s12359_s6 + $0x38] sm:$0xf0] }
 0x84a   :  { %v2195_v38 = vmul.f32 %v8504_v13, %v2193_v54  ;;  %v2179_v31 = vadd.f32 %v8500_v57, %v2178_v36  ;;  %vm2200_vm3 = vweird.f32 %v8504_v13  ;;  %v8506_v62 = vpop.eup %8505  ;;  %v6416_v54 = vor.u32 %v8012_v45, %v6415_v41  ;;  %v6399_v36 = vld [vmem:[%s12359_s6 + $0xa0] sm:$0xf] }
 0x84b   :  { %vm2201_vm6 = vmor %vm2199_vm4, %vm2200_vm3  ;;  %v2218_v63 = vadd.f32 %v8502_v25, %v2217_v11  ;;  %v6393_v11 = vld [vmem:[%s12359_s6 + $0x98] sm:$0xf0]  ;;  %v6356_v41 = vor.u32 %v7994_v16, %v6353_v21  ;;  %v6335_v45 = vld [vmem:[%s12359_s6 + $0x20] sm:$0xf] }
 0x84c   :  { %v2196_v44 = vsub.f32 1.0, %v2195_v38  ;;  %v2183_v48 = vsel %vm2182_vm2, %v8500_v57, %v2179_v31  ;;  %v6420_v57 = vor.u32 %v8010_v46, %v6417_v53  ;;  %v8006_v38 = vld [vmem:[%s12359_s6 + $0xa4] sm:$0xf]  ;;  %v6401_v31 = vld [vmem:[%s12359_s6 + $0xb0] sm:$0xf0]  ;;  %2517 = vmatpush.bf16.msrb.mxu2 %v6416_v54  ;;  %v6364_v54 = vor.u32 %v7995_v32, %v6361_v33 }
 0x84d   :  { %v2188_v58 = vsel %vm2185_vm5, %v2187_v50, %v2183_v48  ;;  %v2222_v43 = vsel %vm2221_vm10, %v8502_v25, %v2218_v63  ;;  %v6425_v25 = vld [vmem:[%s12359_s6 + $0xd8] sm:$0xf0]  ;;  %v8002_v50 = vld [vmem:[%s12359_s6 + $0x84] sm:$0xf]  ;;  %v6367_v63 = vld [vmem:[%s12359_s6 + $0x60] sm:$0xf] }
 0x84e   :  { %v2197_v47 = vmul.f32 %v8504_v13, %v2196_v44  ;;  %v2230_v30 = vmul.f32 %v8506_v62, %v2188_v58  ;;  %v2227_v0 = vsel %vm2224_vm11, %v2226_v23, %v2222_v43  ;;  %v6428_v56 = vor.u32 %v8011_v9, %v6425_v25  ;;  %v8009_v44 = vld [vmem:[%s12359_s6 + $0xb4] sm:$0xf0]  ;;  %v6391_v58 = vld [vmem:[%s12359_s6 + $0x88] sm:$0xf]  ;;  %v8003_v62 = vld [vmem:[%s12359_s6 + $0x8c] sm:$0xf] }
 0x84f   :  { %v6408_v48 = vor.u32 %v8009_v44, %v6407_v20  ;;  %v6396_v43 = vor.u32 %v8003_v62, %v6393_v11  ;;  %v6369_v23 = vld [vmem:[%s12359_s6 + $0x70] sm:$0xf0]  ;;  %v7992_v46 = vld [vmem:[%s12359_s6 + $0x2c] sm:$0xf0]  ;;  %v7990_v53 = vld [vmem:[%s12359_s6 + $0x24] sm:$0xf] }
 0x850   :  { %v2198_v51 = vadd.f32 %v8504_v13, %v2197_v47  ;;  %v6404_v47 = vor.u32 %v8006_v38, %v6401_v31  ;;  %2556 = vmatpush.bf16.msra.mxu1 %v6428_v56  ;;  %v7991_v9 = vld [vmem:[%s12359_s6 + $0x2c] sm:$0xf]  ;;  %v6336_v25 = vor.u32 %v7992_v46, %v6335_v45  ;;  %v6344_v56 = vor.u32 %v7993_v6, %v6343_v1  ;;  %v7988_v38 = vld [vmem:[%s12359_s6 + $0xc] sm:$0xf0]  ;;  %v7986_v31 = vld [vmem:[%s12359_s6 + $0x4] sm:$0xf] }
 0x851   :  { %2544 = vmatpush.bf16.msra.mxu0 %v6408_v48  ;;  %v6321_v20 = vld [vmem:[%s12359_s6 + $0x10] sm:$0xf0]  ;;  %v6327_v44 = vld [vmem:[%s12359_s6 + $0x8] sm:$0xf]  ;;  %v6572_v48 = vld [vmem:[%s12357_s4 + $0xe0] sm:$0xf] }
 0x852   :  { %v2202_v61 = vsel %vm2201_vm6, %v8504_v13, %v2198_v51  ;;  %v8008_v13 = vld [vmem:[%s12359_s6 + $0xac] sm:$0xf0]  ;;  %v6412_v51 = vor.u32 %v8007_v29, %v6409_v14  ;;  %v7989_v29 = vld [vmem:[%s12359_s6 + $0x14] sm:$0xf0]  ;;  %v7987_v14 = vld [vmem:[%s12359_s6 + $0xc] sm:$0xf] }
 0x853   :  { %v2207_v18 = vsel %vm2204_vm7, %v2206_v55, %v2202_v61  ;;  %v6400_v24 = vor.u32 %v8008_v13, %v6399_v36  ;;  %v6385_v55 = vld [vmem:[%s12359_s6 + $0x90] sm:$0xf0]  ;;  %v8005_v61 = vld [vmem:[%s12359_s6 + $0x94] sm:$0xf0]  ;;  %v6319_v36 = vld [vmem:[%s12359_s6] sm:$0xf] }
 0x854   :  { %v2229_v22 = vmul.f32 %v2207_v18, %v9566_v35  ;;  %v6384_v18 = vor.u32 %v8004_v10, %v6383_v49  ;;  %2557 = vmatpush.bf16.msra.mxu1 %v6412_v51  ;;  %v8048_v49 = vld [vmem:[%s12357_s4 + $0xec] sm:$0xf0]  ;;  %v6320_v10 = vor.u32 %v7988_v38, %v6319_v36  ;;  %v6574_v51 = vld [vmem:[%s12357_s4 + $0xf0] sm:$0xf0]  ;;  %v8047_v62 = vld [vmem:[%s12357_s4 + $0xec] sm:$0xf] }
 0x855   :  { %2518 = vmatpush.bf16.msrb.mxu2 %v6400_v24  ;;  %v6348_v24 = vor.u32 %v7991_v9, %v6345_v19  ;;  %v6582_v11 = vld [vmem:[%s12357_s4 + $0xf8] sm:$0xf0]  ;;  %v6540_v16 = vld [vmem:[%s12357_s4 + $0xa0] sm:$0xf]  ;;  %v6542_v32 = vld [vmem:[%s12357_s4 + $0xb0] sm:$0xf0] }
 0x856   :  { %v10028_v27 = vadd.f32 %v2230_v30, %v2229_v22  ;;  %v6388_v22 = vor.u32 %v8002_v50, %v6385_v55  ;;  %v6392_v30 = vor.u32 %v8005_v61, %v6391_v58  ;;  %v8046_v50 = vld [vmem:[%s12357_s4 + $0xe4] sm:$0xf]  ;;  %v6580_v55 = vld [vmem:[%s12357_s4 + $0xe8] sm:$0xf]  ;;  %v6324_v58 = vor.u32 %v7986_v31, %v6321_v20  ;;  %v8049_v61 = vld [vmem:[%s12357_s4 + $0xf4] sm:$0xf0] }
 0x857   :  { %v6548_v33 = vld [vmem:[%s12357_s4 + $0xa8] sm:$0xf]  ;;  %v8034_v6 = vld [vmem:[%s12357_s4 + $0x84] sm:$0xf]  ;;  %v6526_v9 = vld [vmem:[%s12357_s4 + $0x90] sm:$0xf0] }
 0x858   :  { %8507 = vtanh.f32 %v10028_v27  ;;  %2545 = vmatpush.bf16.msra.mxu0 %v6392_v30  ;;  %2558 = vmatpush.bf16.msra.mxu1 %v6396_v43  ;;  %v8044_v43 = vld [vmem:[%s12357_s4 + $0xcc] sm:$0xf0]  ;;  %v6532_v19 = vld [vmem:[%s12357_s4 + $0x88] sm:$0xf]  ;;  %v8035_v36 = vld [vmem:[%s12357_s4 + $0x8c] sm:$0xf]  ;;  %v6529_v38 = vor.u32 %v8034_v6, %v6526_v9 }
 0x859   :  { %2519 = vmatpush.bf16.msrb.mxu2 %v6384_v18 }
 0x85e   :  { %v8508_v15 = vpop.eup %8507 }
 0x85f   :  { %v2233_v39 = vmul.f32 %v8508_v15, %v2227_v0  ;;  %v6375_v15 = vld [vmem:[%s12359_s6 + $0x68] sm:$0xf]  ;;  %v8001_v0 = vld [vmem:[%s12359_s6 + $0x74] sm:$0xf0] }
 0x860   :  { %v6376_v8 = vor.u32 %v8001_v0, %v6375_v15  ;;  %v6581_v0 = vor.u32 %v8049_v61, %v6580_v55  ;;  %v6518_v55 = vld [vmem:[%s12357_s4 + $0x78] sm:$0xf0] }
 0x861   :  { %v10031_v52 = vpack.c.bf16 %v2233_v39, %v2233_v39  ;;  %v7999_v39 = vld [vmem:[%s12359_s6 + $0x6c] sm:$0xf] }
 0x862   :  { %2546 = vmatpush.bf16.msra.mxu0 %v6376_v8  ;;  %v6566_v8 = vld [vmem:[%s12357_s4 + $0xd8] sm:$0xf0] }
 0x863   :  { %2307 = vmatmul.bf16.vlgmr.msrb.gmra.mxu1 %v10031_v52 }
 0x8e0   :  { %v2308_v35 = vpop.f32.mrf.mxu1 }
 0x8e1   :  { %v2309_v5 = vadd.f32 %v2308_v35, %v9577_v60  ;;  %v8014_v60 = vld [vmem:[%s12359_s6 + $0xe4] sm:$0xf]  ;;  %v6377_v35 = vld [vmem:[%s12359_s6 + $0x78] sm:$0xf0] }
 0x8e2   :  { %v6436_v28 = vor.u32 %v8014_v60, %v6433_v17  ;;  %v7996_v60 = vld [vmem:[%s12359_s6 + $0x4c] sm:$0xf0]  ;;  %v6380_v17 = vor.u32 %v7999_v39, %v6377_v35  ;;  %v6585_v39 = vor.u32 %v8047_v62, %v6582_v11  ;;  %v6564_v35 = vld [vmem:[%s12357_s4 + $0xc8] sm:$0xf]  ;;  %v8026_v11 = vld [vmem:[%s12357_s4 + $0x44] sm:$0xf] }
 0x8e3   :  { %6316 = vst [vmem:[%s12362_s9 + $0x8] sm:$0xff] %v2309_v5  ;;  %v10040_v3 = vsel %vm1244_vm12, %v2309_v5, -1e+30  ;;  %v6368_v5 = vor.u32 %v8000_v40, %v6367_v63  ;;  %v6352_v34 = vor.u32 %v7996_v60, %v6351_v12  ;;  %v6573_v63 = vor.u32 %v8048_v49, %v6572_v48  ;;  %v6516_v48 = vld [vmem:[%s12357_s4 + $0x68] sm:$0xf] }
 0x8e4   :  { %2315 = vmax.xlane.f32.xlu1 %v10040_v3  ;;  %2529 = vmatpush.bf16.msrb.mxu3 %v6436_v28  ;;  %v7997_v28 = vld [vmem:[%s12359_s6 + $0x54] sm:$0xf0]  ;;  %v6577_v40 = vor.u32 %v8046_v50, %v6574_v51  ;;  %v8031_v51 = vld [vmem:[%s12357_s4 + $0x6c] sm:$0xf]  ;;  %v8028_v62 = vld [vmem:[%s12357_s4 + $0x4c] sm:$0xf0] }
 0x8e5   :  { %2520 = vmatpush.bf16.msrb.mxu2 %v6368_v5  ;;  %v6360_v42 = vor.u32 %v7997_v28, %v6359_v4  ;;  %2559 = vmatpush.bf16.msra.mxu1 %v6380_v17  ;;  %v8045_v5 = vld [vmem:[%s12357_s4 + $0xd4] sm:$0xf0]  ;;  %v8040_v17 = vld [vmem:[%s12357_s4 + $0xac] sm:$0xf0]  ;;  %v8038_v28 = vld [vmem:[%s12357_s4 + $0xa4] sm:$0xf]  ;;  %v6521_v61 = vor.u32 %v8031_v51, %v6518_v55 }
 0x8e6   :  { %v6565_v21 = vor.u32 %v8045_v5, %v6564_v35  ;;  %v6541_v45 = vor.u32 %v8040_v17, %v6540_v16  ;;  %v6545_v46 = vor.u32 %v8038_v28, %v6542_v32  ;;  %v8033_v49 = vld [vmem:[%s12357_s4 + $0x74] sm:$0xf0]  ;;  %v6478_v35 = vld [vmem:[%s12357_s4 + $0x30] sm:$0xf0]  ;;  %v6484_v5 = vld [vmem:[%s12357_s4 + $0x28] sm:$0xf] }
 0x8e7   :  { %2547 = vmatpush.bf16.msra.mxu0 %v6360_v42  ;;  %v6550_v42 = vld [vmem:[%s12357_s4 + $0xb8] sm:$0xf0]  ;;  %v6517_v50 = vor.u32 %v8033_v49, %v6516_v48  ;;  %v8018_v28 = vld [vmem:[%s12357_s4 + $0x4] sm:$0xf]  ;;  %v8055_v48 = vld [vmem:[%s12360_s7 + $0x28] sm:$0xff] }
 0x8e8   :  { %v2310_v7 = vpop.f32.mrf.mxu1  ;;  %2530 = vmatpush.bf16.msrb.mxu3 %v6420_v57  ;;  %v6337_v57 = vld [vmem:[%s12359_s6 + $0x30] sm:$0xf0] }
 0x8e9   :  { %v6372_v7 = vor.u32 %v7998_v26, %v6369_v23  ;;  %2521 = vmatpush.bf16.msrb.mxu2 %v6352_v34  ;;  %v6340_v13 = vor.u32 %v7990_v53, %v6337_v57  ;;  %2560 = vmatpush.bf16.msra.mxu1 %v6364_v54  ;;  %v6556_v26 = vld [vmem:[%s12357_s4 + $0xc0] sm:$0xf]  ;;  %v8042_v23 = vld [vmem:[%s12357_s4 + $0xc4] sm:$0xf]  ;;  %v8041_v34 = vld [vmem:[%s12357_s4 + $0xb4] sm:$0xf0] }
 0x8ea   :  { %v6557_v12 = vor.u32 %v8044_v43, %v6556_v26  ;;  %v6524_v53 = vld [vmem:[%s12357_s4 + $0x80] sm:$0xf]  ;;  %v8036_v54 = vld [vmem:[%s12357_s4 + $0x8c] sm:$0xf0]  ;;  %v6549_v57 = vor.u32 %v8041_v34, %v6548_v33  ;;  %v8027_v26 = vld [vmem:[%s12357_s4 + $0x4c] sm:$0xf] }
 0x8eb   :  { %2548 = vmatpush.bf16.msra.mxu0 %v6344_v56  ;;  %v6525_v56 = vor.u32 %v8036_v54, %v6524_v53  ;;  %v6462_v33 = vld [vmem:[%s12357_s4 + $0x10] sm:$0xf0]  ;;  %v6468_v34 = vld [vmem:[%s12357_s4 + $0x8] sm:$0xf] }
 0x8ec   :  { %2531 = vmatpush.bf16.msrb.mxu3 %v6404_v47  ;;  %v6329_v47 = vld [vmem:[%s12359_s6 + $0x18] sm:$0xf0]  ;;  %v6465_v53 = vor.u32 %v8018_v28, %v6462_v33  ;;  %v6456_v28 = vld [vmem:[%s12356_s3 + $0x50] sm:$0xff] }
 0x8ed   :  { %2522 = vmatpush.bf16.msrb.mxu2 %v6336_v25  ;;  %2561 = vmatpush.bf16.msra.mxu1 %v6348_v24  ;;  %v6332_v30 = vor.u32 %v7987_v14, %v6329_v47  ;;  %v8037_v25 = vld [vmem:[%s12357_s4 + $0x94] sm:$0xf0]  ;;  %v6508_v24 = vld [vmem:[%s12357_s4 + $0x60] sm:$0xf]  ;;  %v6510_v47 = vld [vmem:[%s12357_s4 + $0x70] sm:$0xf0] }
 0x8ee   :  { %v6533_v31 = vor.u32 %v8037_v25, %v6532_v19  ;;  %v8057_v19 = vld [vmem:[%s12360_s7 + $0x38] sm:$0xff]  ;;  %v2574_v25 = vstv %s6453_s1 }
 0x8f0   :  { %2532 = vmatpush.bf16.msrb.mxu3 %v6388_v22  ;;  %v6328_v22 = vor.u32 %v7989_v29, %v6327_v44  ;;  %v8032_v44 = vld [vmem:[%s12357_s4 + $0x6c] sm:$0xf0]  ;;  %v8030_v29 = vld [vmem:[%s12357_s4 + $0x64] sm:$0xf] }
 0x8f1   :  { %2523 = vmatpush.bf16.msrb.mxu2 %v6320_v10  ;;  %2562 = vmatpush.bf16.msra.mxu1 %v6332_v30  ;;  %v6509_v14 = vor.u32 %v8032_v44, %v6508_v24  ;;  %v6513_v10 = vor.u32 %v8030_v29, %v6510_v47  ;;  %v6454_v29 = vld [vmem:[%s12356_s3 + $0x40] sm:$0xff] }
 0x8f2   :  { %2549 = vmatpush.bf16.msra.mxu0 %v6328_v22  ;;  %v2575_v49 = vmul.f32 %v6454_v29, %v2574_v25 }
 0x8f4   :  { %2533 = vmatpush.bf16.msrb.mxu3 %v6372_v7  ;;  %v8043_v7 = vld [vmem:[%s12357_s4 + $0xcc] sm:$0xf] }
 0x8f5   :  { %2785 = vmatpush.bf16.msra.mxu2 %v6573_v63  ;;  %2824 = vmatpush.bf16.msrb.mxu1 %v6585_v39  ;;  %v6569_v4 = vor.u32 %v8043_v7, %v6566_v8  ;;  %v6500_v63 = vld [vmem:[%s12357_s4 + $0x48] sm:$0xf]  ;;  %v8025_v8 = vld [vmem:[%s12357_s4 + $0x34] sm:$0xf0] }
 0x8f6   :  { %2811 = vmatpush.bf16.msrb.mxu0 %v6581_v0  ;;  %v8024_v0 = vld [vmem:[%s12357_s4 + $0x2c] sm:$0xf0]  ;;  %v6485_v17 = vor.u32 %v8025_v8, %v6484_v5 }
 0x8f7   :  { %v8052_v5 = vld [vmem:[%s12360_s7 + $0x10] sm:$0xff] }
 0x8f8   :  { %2534 = vmatpush.bf16.msrb.mxu3 %v6356_v41  ;;  %v8039_v41 = vld [vmem:[%s12357_s4 + $0xac] sm:$0xf] }
 0x8f9   :  { %2786 = vmatpush.bf16.msra.mxu2 %v6557_v12  ;;  %2825 = vmatpush.bf16.msrb.mxu1 %v6569_v4  ;;  %v6553_v1 = vor.u32 %v8039_v41, %v6550_v42  ;;  %v8023_v12 = vld [vmem:[%s12357_s4 + $0x2c] sm:$0xf]  ;;  %v8020_v4 = vld [vmem:[%s12357_s4 + $0xc] sm:$0xf0]  ;;  %v8021_v41 = vld [vmem:[%s12357_s4 + $0x14] sm:$0xf0] }
 0x8fa   :  { %2812 = vmatpush.bf16.msrb.mxu0 %v6565_v21  ;;  %v6460_v21 = vld [vmem:[%s12357_s4] sm:$0xf]  ;;  %v8019_v42 = vld [vmem:[%s12357_s4 + $0xc] sm:$0xf]  ;;  %v6469_v54 = vor.u32 %v8021_v41, %v6468_v34 }
 0x8fb   :  { %v8050_v34 = vld [vmem:[%s12360_s7] sm:$0xff] }
 0x8fc   :  { %2535 = vmatpush.bf16.msrb.mxu3 %v6340_v13  ;;  %v6534_v13 = vld [vmem:[%s12357_s4 + $0x98] sm:$0xf0] }
 0x8fd   :  { %2787 = vmatpush.bf16.msra.mxu2 %v6541_v45  ;;  %2826 = vmatpush.bf16.msrb.mxu1 %v6553_v1  ;;  %v6537_v20 = vor.u32 %v8035_v36, %v6534_v13  ;;  %v6470_v45 = vld [vmem:[%s12357_s4 + $0x18] sm:$0xf0]  ;;  %v2580_v36 = vstv %s2579_s16 }
 0x8fe   :  { %2813 = vmatpush.bf16.msrb.mxu0 %v6549_v57  ;;  %v6473_v57 = vor.u32 %v8019_v42, %v6470_v45  ;;  %v6457_v13 = vld [vmem:[%s12356_s3 + $0x58] sm:$0xff]  ;;  %v2577_v42 = vmul.f32 %v6456_v28, %v2574_v25  ;;  %v8088_v28 = vld [vmem:[%s12359_s6 + $0xec] sm:$0xf0] }
 0x900   :  { %2536 = vmatpush.bf16.msrb.mxu3 %v6324_v58  ;;  %v6492_v58 = vld [vmem:[%s12357_s4 + $0x40] sm:$0xf] }
 0x901   :  { %2788 = vmatpush.bf16.msra.mxu2 %v6525_v56  ;;  %2827 = vmatpush.bf16.msrb.mxu1 %v6537_v20  ;;  %v6493_v22 = vor.u32 %v8028_v62, %v6492_v58  ;;  %v8056_v20 = vld [vmem:[%s12360_s7 + $0x30] sm:$0xff] }
 0x902   :  { %2814 = vmatpush.bf16.msrb.mxu0 %v6533_v31  ;;  %v2578_v31 = vmul.f32 %v6457_v13, %v2574_v25 }
 0x904   :  { %2798 = vmatpush.bf16.msra.mxu3 %v6577_v40  ;;  %v8029_v40 = vld [vmem:[%s12357_s4 + $0x54] sm:$0xf0] }
 0x905   :  { %2789 = vmatpush.bf16.msra.mxu2 %v6509_v14  ;;  %2828 = vmatpush.bf16.msrb.mxu1 %v6521_v61  ;;  %v6501_v43 = vor.u32 %v8029_v40, %v6500_v63  ;;  %v6455_v14 = vld [vmem:[%s12356_s3 + $0x48] sm:$0xff]  ;;  %v10461_v61 = vld [vmem:[%s12358_s5 + $0x18] sm:$0xff] }
 0x906   :  { %2815 = vmatpush.bf16.msrb.mxu0 %v6517_v50  ;;  %v2576_v50 = vmul.f32 %v6455_v14, %v2574_v25 }
 0x909   :  { %2790 = vmatpush.bf16.msra.mxu2 %v6493_v22 }
 0x90a   :  { %2816 = vmatpush.bf16.msrb.mxu0 %v6501_v43  ;;  %v8053_v43 = vld [vmem:[%s12360_s7 + $0x18] sm:$0xff] }
 0x90e   :  { %2817 = vmatpush.bf16.msrb.mxu0 %v6485_v17 }
 0x912   :  { %2818 = vmatpush.bf16.msrb.mxu0 %v6469_v54 }
 0x957   :  { %v2316_v18 = vpop.xlane.xlu1 %2315 }
 0x958   :  { %vm2317_vm13 = vcmp.eq.f32.partialorder %v10040_v3, %v2316_v18  ;;  %v6558_v3 = vld [vmem:[%s12357_s4 + $0xd0] sm:$0xf0] }
 0x959   :  { %v2318_v15 = vsel %vm2317_vm13, %v9788_v37, 128.0  ;;  %v6561_v60 = vor.u32 %v8042_v23, %v6558_v3  ;;  %v6494_v18 = vld [vmem:[%s12357_s4 + $0x50] sm:$0xf0]  ;;  %v6502_v23 = vld [vmem:[%s12357_s4 + $0x58] sm:$0xf0] }
 0x95a   :  { %2319 = vmin.xlane.f32.xlu1 %v2318_v15  ;;  %v6497_v30 = vor.u32 %v8026_v11, %v6494_v18  ;;  %v6476_v15 = vld [vmem:[%s12357_s4 + $0x20] sm:$0xf]  ;;  %v6505_v39 = vor.u32 %v8027_v26, %v6502_v23  ;;  %v8022_v3 = vld [vmem:[%s12357_s4 + $0x24] sm:$0xf] }
 0x95b   :  { %2799 = vmatpush.bf16.msra.mxu3 %v6561_v60  ;;  %v6477_v7 = vor.u32 %v8024_v0, %v6476_v15  ;;  %v6486_v60 = vld [vmem:[%s12357_s4 + $0x38] sm:$0xf0]  ;;  %v6481_v16 = vor.u32 %v8022_v3, %v6478_v35  ;;  %v8054_v11 = vld [vmem:[%s12360_s7 + $0x20] sm:$0xff]  ;;  %v10479_v0 = vld [vmem:[%s12358_s5 + $0x8] sm:$0xff] }
 0x95c   :  { %2829 = vmatpush.bf16.msrb.mxu1 %v6505_v39  ;;  %v6489_v32 = vor.u32 %v8023_v12, %v6486_v60  ;;  %v10473_v23 = vld [vmem:[%s12358_s5] sm:$0xff] }
 0x95d   :  { %2791 = vmatpush.bf16.msra.mxu2 %v6477_v7 }
 0x95f   :  { %2800 = vmatpush.bf16.msra.mxu3 %v6545_v46  ;;  %v6461_v46 = vor.u32 %v8020_v4, %v6460_v21  ;;  %v8051_v21 = vld [vmem:[%s12360_s7 + $0x8] sm:$0xff] }
 0x960   :  { %2830 = vmatpush.bf16.msrb.mxu1 %v6489_v32 }
 0x961   :  { %2792 = vmatpush.bf16.msra.mxu2 %v6461_v46 }
 0x963   :  { %2801 = vmatpush.bf16.msra.mxu3 %v6529_v38 }
 0x964   :  { %2831 = vmatpush.bf16.msrb.mxu1 %v6473_v57 }
 0x967   :  { %2802 = vmatpush.bf16.msra.mxu3 %v6513_v10 }
 0x96b   :  { %2803 = vmatpush.bf16.msra.mxu3 %v6497_v30 }
 0x96f   :  { %2804 = vmatpush.bf16.msra.mxu3 %v6481_v16 }
 0x973   :  { %2805 = vmatpush.bf16.msra.mxu3 %v6465_v53 }
 0x9cd   :  { %v2320_v1 = vpop.xlane.xlu1 %2319 }
 0x9ce   :  { %vm2321_vm14 = vcmp.eq.f32.partialorder %v9788_v37, %v2320_v1 }
 0x9cf   :  { %vm6445_vm15 = vmpackc.low %vm2321_vm14, %vm2321_vm14 }
 0x9d0   :  { %6446 = vmatmul.msk.bf16.vlgmr.msrb.gmra.mxu2 %vm6445_vm15, %v8620_v2  ;;  %6448 = vmatmul.msk.bf16.vlgmr.msrb.gmra.mxu3 %vm6445_vm15, %v8620_v2 }
 0x9d1   :  { %6450 = vmatmul.msk.bf16.vlgmr.msra.gmra.mxu0 %vm6445_vm15, %v8620_v2  ;;  %6452 = vmatmul.msk.bf16.vlgmr.msra.gmra.mxu1 %vm6445_vm15, %v8620_v2 }
 0x9d2   :  { %2969 = vmatpush.bf16.msrb.mxu2 %v8057_v19 }
 0x9d6   :  { %2970 = vmatpush.bf16.msrb.mxu2 %v8056_v20 }
 0x9da   :  { %2971 = vmatpush.bf16.msrb.mxu2 %v8055_v48 }
 0x9de   :  { %2972 = vmatpush.bf16.msrb.mxu2 %v8054_v11 }
 0x9e0   :  { %2793 = vmatmul.bf16.vlgmr.msra.gmra.mxu2 %v10031_v52  ;;  %2806 = vmatmul.bf16.vlgmr.msra.gmra.mxu3 %v10031_v52 }
 0x9e1   :  { %2819 = vmatmul.bf16.vlgmr.msrb.gmra.mxu0 %v10031_v52  ;;  %2832 = vmatmul.bf16.vlgmr.msrb.gmra.mxu1 %v10031_v52 }
 0x9e2   :  { %2973 = vmatpush.bf16.msrb.mxu2 %v8053_v43 }
 0x9e6   :  { %2974 = vmatpush.bf16.msrb.mxu2 %v8052_v5 }
 0x9ea   :  { %2975 = vmatpush.bf16.msrb.mxu2 %v8051_v21 }
 0x9ee   :  { %2976 = vmatpush.bf16.msrb.mxu2 %v8050_v34  ;;  %v6738_v34 = vld [vmem:[%s12359_s6 + $0xf0] sm:$0xf0] }
 0xa4e   :  { %v10438_v6 = vpop.f32.mrf.mxu0  ;;  %v2564_v9 = vpop.f32.mrf.mxu1 }
 0xa4f   :  { %v2584_v52 = vmul.f32 %v2580_v36, %v2564_v9  ;;  %v2583_v45 = vmul.f32 %v2580_v36, %v10438_v6  ;;  %v10498_v9 = vld [vmem:[%s12358_s5 + $0x10] sm:$0xff] }
 0xa51   :  { %v2588_v47 = vadd.f32 %v2584_v52, %v2578_v31  ;;  %v2587_v1 = vadd.f32 %v2583_v45, %v2577_v42  ;;  %v8089_v42 = vld [vmem:[%s12359_s6 + $0xf4] sm:$0xf0] }
 0xa53   :  { %v2525_v56 = vpop.f32.mrf.mxu2  ;;  %v2538_v38 = vpop.f32.mrf.mxu3  ;;  %v2592_v62 = vadd.f32 %v10461_v61, %v2588_v47  ;;  %v2591_v19 = vadd.f32 %v10498_v9, %v2587_v1 }
 0xa54   :  { %v2581_v10 = vmul.f32 %v2580_v36, %v2525_v56  ;;  %v2582_v51 = vmul.f32 %v2580_v36, %v2538_v38 }
 0xa56   :  { %v2553_v24 = vpop.f32.mrf.mxu0  ;;  %v2566_v44 = vpop.f32.mrf.mxu1  ;;  %v2585_v18 = vadd.f32 %v2581_v10, %v2575_v49  ;;  %v2586_v22 = vadd.f32 %v2582_v51, %v2576_v50 }
 0xa58   :  { %v2589_v15 = vadd.f32 %v10473_v23, %v2585_v18  ;;  %v2590_v39 = vadd.f32 %v10479_v0, %v2586_v22 }
 0xa5b   :  { %v2527_v55 = vpop.f32.mrf.mxu2  ;;  %v2540_v58 = vpop.f32.mrf.mxu3 }
 0xa5e   :  { %v2820_v30 = vpop.f32.mrf.mxu0  ;;  %v2833_v63 = vpop.f32.mrf.mxu1 }
 0xa5f   :  { %v2840_v40 = vadd.f32 %v2833_v63, %v2592_v62  ;;  %v2839_v56 = vadd.f32 %v2820_v30, %v2591_v19  ;;  %v8084_v19 = vld [vmem:[%s12359_s6 + $0xcc] sm:$0xf0] }
 0xa61   :  { %v6588_v26 = vmul.f32 -1.442695, %v2840_v40 }
 0xa63   :  { %8509 = vpow2.f32 %v6588_v26  ;;  %v2794_v3 = vpop.f32.mrf.mxu2  ;;  %v2807_v35 = vpop.f32.mrf.mxu3 }
 0xa64   :  { %v2837_v7 = vadd.f32 %v2794_v3, %v2589_v15  ;;  %v2838_v8 = vadd.f32 %v2807_v35, %v2590_v39 }
 0xa66   :  { %v6586_v12 = vmul.f32 -1.442695, %v2837_v7  ;;  %v6587_v60 = vmul.f32 -1.442695, %v2838_v8  ;;  %v2822_v16 = vpop.f32.mrf.mxu0  ;;  %v2835_v17 = vpop.f32.mrf.mxu1 }
 0xa68   :  { %8511 = vpow2.f32 %v6586_v12 }
 0xa69   :  { %v8510_v4 = vpop.eup %8509  ;;  %8513 = vpow2.f32 %v6587_v60  ;;  %v10511_v60 = vld [vmem:[%s12361_s8] sm:$0xff] }
 0xa6a   :  { %v2883_v41 = vadd.f32 1.0, %v8510_v4  ;;  %v6736_v4 = vld [vmem:[%s12359_s6 + $0xe0] sm:$0xf] }
 0xa6b   :  { %v2796_v32 = vpop.f32.mrf.mxu2  ;;  %v2809_v33 = vpop.f32.mrf.mxu3 }
 0xa6c   :  { %8515 = vrcp.f32 %v2883_v41  ;;  %v2895_v15 = vand.u32 2147483648, %v2883_v41  ;;  %vm2889_vm9 = vweird.f32 %v2883_v41  ;;  %v2893_v39 = vand.u32 2147483647, %v2883_v41  ;;  %v8086_v32 = vld [vmem:[%s12359_s6 + $0xe4] sm:$0xf] }
 0xa6d   :  { %v6737_v33 = vor.u32 %v8088_v28, %v6736_v4  ;;  %v6741_v45 = vor.u32 %v8086_v32, %v6738_v34  ;;  %v8073_v4 = vld [vmem:[%s12359_s6 + $0x74] sm:$0xf0]  ;;  %v8071_v28 = vld [vmem:[%s12359_s6 + $0x6c] sm:$0xf]  ;;  %v6682_v32 = vld [vmem:[%s12359_s6 + $0x78] sm:$0xf0] }
 0xa6e   :  { %v8512_v46 = vpop.eup %8511  ;;  %v2896_v35 = vor.u32 1.1754944e-38, %v2895_v15  ;;  %vm2894_vm11 = vcmp.eq.f32.partialorder %v2893_v39, 8.507059e+37  ;;  %v6698_v15 = vld [vmem:[%s12359_s6 + $0x98] sm:$0xf0] }
 0xa6f   :  { %v8514_v53 = vpop.eup %8513  ;;  %v2844_v54 = vadd.f32 1.0, %v8512_v46  ;;  %3186 = vmatpush.bf16.msrb.mxu3 %v6737_v33  ;;  %3199 = vmatpush.bf16.msra.mxu0 %v6741_v45  ;;  %v8068_v45 = vld [vmem:[%s12359_s6 + $0x4c] sm:$0xf0] }
 0xa70   :  { %v2863_v57 = vadd.f32 1.0, %v8514_v53  ;;  %v8087_v53 = vld [vmem:[%s12359_s6 + $0xec] sm:$0xf] }
 0xa71   :  { %8517 = vrcp.f32 %v2844_v54  ;;  %v2856_v20 = vand.u32 2147483648, %v2844_v54  ;;  %v2854_v29 = vand.u32 2147483647, %v2844_v54  ;;  %vm2850_vm2 = vweird.f32 %v2844_v54 }
 0xa72   :  { %8519 = vrcp.f32 %v2863_v57  ;;  %v8516_v13 = vpop.eup %8515  ;;  %v2875_v14 = vand.u32 2147483648, %v2863_v57  ;;  %v2873_v48 = vand.u32 2147483647, %v2863_v57  ;;  %vm2869_vm4 = vweird.f32 %v2863_v57 }
 0xa73   :  { %v2885_v31 = vmul.f32 %v8516_v13, %v2883_v41  ;;  %8521 = vtanh.f32 %v2839_v56  ;;  %v2857_v50 = vor.u32 1.1754944e-38, %v2856_v20  ;;  %vm2855_vm5 = vcmp.eq.f32.partialorder %v2854_v29, 8.507059e+37  ;;  %v6744_v41 = vld [vmem:[%s12359_s6 + $0xe8] sm:$0xf]  ;;  %v6730_v20 = vld [vmem:[%s12359_s6 + $0xd8] sm:$0xf0] }
 0xa74   :  { %v2876_v58 = vor.u32 1.1754944e-38, %v2875_v14  ;;  %vm2874_vm7 = vcmp.eq.f32.partialorder %v2873_v48, 8.507059e+37  ;;  %vm2890_vm8 = vweird.f32 %v8516_v13  ;;  %v6745_v46 = vor.u32 %v8089_v42, %v6744_v41  ;;  %v8078_v14 = vld [vmem:[%s12359_s6 + $0xa4] sm:$0xf]  ;;  %v6712_v48 = vld [vmem:[%s12359_s6 + $0xa8] sm:$0xf] }
 0xa75   :  { %v2886_v49 = vsub.f32 1.0, %v2885_v31  ;;  %vm2891_vm10 = vmor %vm2889_vm9, %vm2890_vm8  ;;  %v8083_v31 = vld [vmem:[%s12359_s6 + $0xcc] sm:$0xf]  ;;  %v6656_v42 = vld [vmem:[%s12359_s6 + $0x40] sm:$0xf] }
 0xa76   :  { %3212 = vmatpush.bf16.msra.mxu1 %v6745_v46  ;;  %v6733_v29 = vor.u32 %v8083_v31, %v6730_v20  ;;  %v8066_v46 = vld [vmem:[%s12359_s6 + $0x44] sm:$0xf]  ;;  %v6642_v20 = vld [vmem:[%s12359_s6 + $0x30] sm:$0xf0] }
 0xa77   :  { %v8518_v25 = vpop.eup %8517  ;;  %v2887_v22 = vmul.f32 %v8516_v13, %v2886_v49  ;;  %v8062_v31 = vld [vmem:[%s12359_s6 + $0x24] sm:$0xf] }
 0xa78   :  { %v8520_v6 = vpop.eup %8519  ;;  %v2846_v36 = vmul.f32 %v8518_v25, %v2844_v54  ;;  %vm2851_vm0 = vweird.f32 %v8518_v25  ;;  %v6746_v54 = vld [vmem:[%s12359_s6 + $0xf8] sm:$0xf0] }
 0xa79   :  { %v2865_v38 = vmul.f32 %v8520_v6, %v2863_v57  ;;  %vm2870_vm1 = vweird.f32 %v8520_v6  ;;  %vm2852_vm3 = vmor %vm2850_vm2, %vm2851_vm0  ;;  %v8522_v62 = vpop.eup %8521  ;;  %v2888_v43 = vadd.f32 %v8516_v13, %v2887_v22  ;;  %v6720_v57 = vld [vmem:[%s12359_s6 + $0xc0] sm:$0xf]  ;;  %v6749_v1 = vor.u32 %v8087_v53, %v6746_v54  ;;  %v6658_v54 = vld [vmem:[%s12359_s6 + $0x50] sm:$0xf0] }
 0xa7a   :  { %v2847_v52 = vsub.f32 1.0, %v2846_v36  ;;  %vm2871_vm6 = vmor %vm2869_vm4, %vm2870_vm1  ;;  %v6721_v56 = vor.u32 %v8084_v19, %v6720_v57  ;;  %v6728_v36 = vld [vmem:[%s12359_s6 + $0xc8] sm:$0xf]  ;;  %v6685_v53 = vor.u32 %v8071_v28, %v6682_v32  ;;  %v8067_v19 = vld [vmem:[%s12359_s6 + $0x4c] sm:$0xf] }
 0xa7b   :  { %v2866_v24 = vsub.f32 1.0, %v2865_v38  ;;  %v2892_v3 = vsel %vm2891_vm10, %v8516_v13, %v2888_v43  ;;  %v8082_v13 = vld [vmem:[%s12359_s6 + $0xc4] sm:$0xf]  ;;  %v8085_v38 = vld [vmem:[%s12359_s6 + $0xd4] sm:$0xf0]  ;;  %3225 = vmatpush.bf16.msra.mxu2 %v6749_v1 }
 0xa7c   :  { %v2848_v44 = vmul.f32 %v8518_v25, %v2847_v52  ;;  %v2897_v7 = vsel %vm2894_vm11, %v2896_v35, %v2892_v3  ;;  %v6729_v52 = vor.u32 %v8085_v38, %v6728_v36  ;;  %3187 = vmatpush.bf16.msrb.mxu3 %v6721_v56  ;;  %v8075_v43 = vld [vmem:[%s12359_s6 + $0x8c] sm:$0xf]  ;;  %v6664_v57 = vld [vmem:[%s12359_s6 + $0x48] sm:$0xf]  ;;  %v8069_v1 = vld [vmem:[%s12359_s6 + $0x54] sm:$0xf0]  ;;  %v6661_v56 = vor.u32 %v8066_v46, %v6658_v54 }
 0xa7d   :  { %v2867_v47 = vmul.f32 %v8520_v6, %v2866_v24  ;;  %v6704_v24 = vld [vmem:[%s12359_s6 + $0xa0] sm:$0xf]  ;;  %v8064_v38 = vld [vmem:[%s12359_s6 + $0x2c] sm:$0xf0]  ;;  %v8117_v46 = vld [vmem:[%s12357_s4 + $0xd4] sm:$0xf0] }
 0xa7e   :  { %v2849_v10 = vadd.f32 %v8518_v25, %v2848_v44  ;;  %v8080_v44 = vld [vmem:[%s12359_s6 + $0xac] sm:$0xf0]  ;;  %3213 = vmatpush.bf16.msra.mxu1 %v6729_v52  ;;  %v6640_v36 = vld [vmem:[%s12359_s6 + $0x20] sm:$0xf]  ;;  %v6871_v54 = vld [vmem:[%s12357_s4 + $0xd8] sm:$0xf0] }
 0xa7f   :  { %v2868_v51 = vadd.f32 %v8520_v6, %v2867_v47  ;;  %v6706_v47 = vld [vmem:[%s12359_s6 + $0xb0] sm:$0xf0]  ;;  %v6705_v49 = vor.u32 %v8080_v44, %v6704_v24  ;;  %3226 = vmatpush.bf16.msra.mxu2 %v6733_v29  ;;  %v6648_v24 = vld [vmem:[%s12359_s6 + $0x28] sm:$0xf]  ;;  %v8065_v44 = vld [vmem:[%s12359_s6 + $0x34] sm:$0xf0] }
 0xa80   :  { %v2853_v55 = vsel %vm2852_vm3, %v8518_v25, %v2849_v10  ;;  %v6722_v25 = vld [vmem:[%s12359_s6 + $0xd0] sm:$0xf0]  ;;  %v8081_v10 = vld [vmem:[%s12359_s6 + $0xb4] sm:$0xf0]  ;;  %v8063_v29 = vld [vmem:[%s12359_s6 + $0x2c] sm:$0xf] }
 0xa81   :  { %v2858_v11 = vsel %vm2855_vm5, %v2857_v50, %v2853_v55  ;;  %v2872_v18 = vsel %vm2871_vm6, %v8520_v6, %v2868_v51  ;;  %v6725_v6 = vor.u32 %v8082_v13, %v6722_v25  ;;  %v8079_v50 = vld [vmem:[%s12359_s6 + $0xac] sm:$0xf]  ;;  %v6714_v51 = vld [vmem:[%s12359_s6 + $0xb8] sm:$0xf0]  ;;  %v6709_v55 = vor.u32 %v8078_v14, %v6706_v47  ;;  %3188 = vmatpush.bf16.msrb.mxu3 %v6705_v49  ;;  %v6861_v28 = vld [vmem:[%s12357_s4 + $0xc0] sm:$0xf] }
 0xa82   :  { %v2900_v30 = vmul.f32 %v8522_v62, %v2858_v11  ;;  %v2877_v63 = vsel %vm2874_vm7, %v2876_v58, %v2872_v18  ;;  %v6713_v58 = vor.u32 %v8081_v10, %v6712_v48  ;;  %v6688_v62 = vld [vmem:[%s12359_s6 + $0x80] sm:$0xf]  ;;  %v8076_v11 = vld [vmem:[%s12359_s6 + $0x8c] sm:$0xf0]  ;;  %v8074_v18 = vld [vmem:[%s12359_s6 + $0x84] sm:$0xf]  ;;  %v6717_v22 = vor.u32 %v8079_v50, %v6714_v51 }
 0xa83   :  { %v2899_v40 = vmul.f32 %v2877_v63, %v10028_v27  ;;  %3200 = vmatpush.bf16.msra.mxu0 %v6725_v6  ;;  %v6696_v63 = vld [vmem:[%s12359_s6 + $0x88] sm:$0xf]  ;;  %v6689_v39 = vor.u32 %v8076_v11, %v6688_v62  ;;  %v6666_v13 = vld [vmem:[%s12359_s6 + $0x58] sm:$0xf0]  ;;  %v6657_v25 = vor.u32 %v8068_v45, %v6656_v42  ;;  %v6665_v6 = vor.u32 %v8069_v1, %v6664_v57  ;;  %v6624_v48 = vld [vmem:[%s12359_s6] sm:$0xf] }
 0xa84   :  { %3214 = vmatpush.bf16.msra.mxu1 %v6713_v58  ;;  %3227 = vmatpush.bf16.msra.mxu2 %v6717_v22  ;;  %v6669_v52 = vor.u32 %v8067_v19, %v6666_v13  ;;  %v6650_v14 = vld [vmem:[%s12359_s6 + $0x38] sm:$0xf0]  ;;  %v6641_v47 = vor.u32 %v8064_v38, %v6640_v36  ;;  %v6645_v49 = vor.u32 %v8062_v31, %v6642_v20  ;;  %v8060_v50 = vld [vmem:[%s12359_s6 + $0xc] sm:$0xf0]  ;;  %v8058_v51 = vld [vmem:[%s12359_s6 + $0x4] sm:$0xf] }
 0xa85   :  { %v10502_v26 = vadd.f32 %v2900_v30, %v2899_v40  ;;  %v6690_v30 = vld [vmem:[%s12359_s6 + $0x90] sm:$0xf0]  ;;  %v8077_v40 = vld [vmem:[%s12359_s6 + $0x94] sm:$0xf0]  ;;  %3189 = vmatpush.bf16.msrb.mxu3 %v6689_v39  ;;  %v6649_v10 = vor.u32 %v8065_v44, %v6648_v24  ;;  %v6653_v58 = vor.u32 %v8063_v29, %v6650_v14  ;;  %v6632_v62 = vld [vmem:[%s12359_s6 + $0x8] sm:$0xf] }
 0xa86   :  { %v6693_v3 = vor.u32 %v8074_v18, %v6690_v30  ;;  %v6697_v35 = vor.u32 %v8077_v40, %v6696_v63  ;;  %v8061_v11 = vld [vmem:[%s12359_s6 + $0x14] sm:$0xf0]  ;;  %v8059_v18 = vld [vmem:[%s12359_s6 + $0xc] sm:$0xf]  ;;  %v6634_v22 = vld [vmem:[%s12359_s6 + $0x18] sm:$0xf0]  ;;  %v6625_v40 = vor.u32 %v8060_v50, %v6624_v48 }
 0xa87   :  { %8523 = vtanh.f32 %v10502_v26  ;;  %3201 = vmatpush.bf16.msra.mxu0 %v6709_v55  ;;  %v6626_v55 = vld [vmem:[%s12359_s6 + $0x10] sm:$0xf0]  ;;  %v6877_v30 = vld [vmem:[%s12357_s4 + $0xe0] sm:$0xf]  ;;  %v8120_v63 = vld [vmem:[%s12357_s4 + $0xec] sm:$0xf0] }
 0xa88   :  { %3215 = vmatpush.bf16.msra.mxu1 %v6697_v35  ;;  %v6885_v39 = vld [vmem:[%s12357_s4 + $0xe8] sm:$0xf]  ;;  %v8121_v35 = vld [vmem:[%s12357_s4 + $0xf4] sm:$0xf0]  ;;  %v8116_v32 = vld [vmem:[%s12357_s4 + $0xcc] sm:$0xf0] }
 0xa89   :  { %v6869_v45 = vld [vmem:[%s12357_s4 + $0xc8] sm:$0xf]  ;;  %v6862_v57 = vor.u32 %v8116_v32, %v6861_v28  ;;  %v6845_v19 = vld [vmem:[%s12357_s4 + $0xa0] sm:$0xf]  ;;  %v8112_v13 = vld [vmem:[%s12357_s4 + $0xac] sm:$0xf0] }
 0xa8a   :  { %v6847_v36 = vld [vmem:[%s12357_s4 + $0xb0] sm:$0xf0]  ;;  %v6853_v38 = vld [vmem:[%s12357_s4 + $0xa8] sm:$0xf]  ;;  %v8113_v31 = vld [vmem:[%s12357_s4 + $0xb4] sm:$0xf0]  ;;  %v6846_v24 = vor.u32 %v8112_v13, %v6845_v19 }
 0xa8b   :  { %3202 = vmatpush.bf16.msra.mxu0 %v6693_v3  ;;  %v6629_v3 = vor.u32 %v8058_v51, %v6626_v55  ;;  %v6855_v20 = vld [vmem:[%s12357_s4 + $0xb8] sm:$0xf0]  ;;  %v6829_v29 = vld [vmem:[%s12357_s4 + $0x80] sm:$0xf]  ;;  %v8108_v14 = vld [vmem:[%s12357_s4 + $0x8c] sm:$0xf0] }
 0xa8c   :  { %v6837_v50 = vld [vmem:[%s12357_s4 + $0x88] sm:$0xf]  ;;  %v8109_v51 = vld [vmem:[%s12357_s4 + $0x94] sm:$0xf0]  ;;  %v8107_v55 = vld [vmem:[%s12357_s4 + $0x8c] sm:$0xf] }
 0xa8d   :  { %v8524_v5 = vpop.eup %8523  ;;  %v6799_v28 = vld [vmem:[%s12357_s4 + $0x50] sm:$0xf0]  ;;  %v6789_v19 = vld [vmem:[%s12357_s4 + $0x28] sm:$0xf] }
 0xa8e   :  { %v2903_v8 = vmul.f32 %v8524_v5, %v2897_v7  ;;  %v6672_v5 = vld [vmem:[%s12359_s6 + $0x60] sm:$0xf]  ;;  %v8072_v7 = vld [vmem:[%s12359_s6 + $0x6c] sm:$0xf0] }
 0xa8f   :  { %v6673_v33 = vor.u32 %v8072_v7, %v6672_v5  ;;  %v8119_v5 = vld [vmem:[%s12357_s4 + $0xec] sm:$0xf]  ;;  %v6887_v7 = vld [vmem:[%s12357_s4 + $0xf8] sm:$0xf0] }
 0xa90   :  { %v10505_v12 = vpack.c.bf16 %v2903_v8, %v2903_v8  ;;  %v8070_v8 = vld [vmem:[%s12359_s6 + $0x64] sm:$0xf]  ;;  %v6890_v42 = vor.u32 %v8119_v5, %v6887_v7  ;;  %v8103_v7 = vld [vmem:[%s12357_s4 + $0x6c] sm:$0xf] }
 0xa91   :  { %3190 = vmatpush.bf16.msrb.mxu3 %v6673_v33  ;;  %v8114_v33 = vld [vmem:[%s12357_s4 + $0xc4] sm:$0xf] }
 0xa92   :  { %2977 = vmatmul.bf16.vlgmr.msrb.gmra.mxu2 %v10505_v12 }
 0xa95   :  { %3191 = vmatpush.bf16.msrb.mxu3 %v6657_v25  ;;  %v6870_v25 = vor.u32 %v8117_v46, %v6869_v45  ;;  %v6807_v45 = vld [vmem:[%s12357_s4 + $0x58] sm:$0xf0]  ;;  %v6781_v46 = vld [vmem:[%s12357_s4 + $0x20] sm:$0xf] }
 0xa99   :  { %3192 = vmatpush.bf16.msrb.mxu3 %v6641_v47  ;;  %v6854_v47 = vor.u32 %v8113_v31, %v6853_v38  ;;  %v6765_v31 = vld [vmem:[%s12357_s4] sm:$0xf] }
 0xa9d   :  { %3193 = vmatpush.bf16.msrb.mxu3 %v6625_v40  ;;  %v8102_v40 = vld [vmem:[%s12357_s4 + $0x64] sm:$0xf] }
 0xb15   :  { %v2978_v27 = vpop.f32.mrf.mxu2 }
 0xb16   :  { %v2979_v16 = vadd.f32 %v10511_v60, %v2978_v27  ;;  %v6701_v27 = vor.u32 %v8075_v43, %v6698_v15  ;;  %v8118_v43 = vld [vmem:[%s12357_s4 + $0xe4] sm:$0xf]  ;;  %v6879_v15 = vld [vmem:[%s12357_s4 + $0xf0] sm:$0xf0] }
 0xb18   :  { %6621 = vst [vmem:[%s12362_s9 + $0x10] sm:$0xff] %v2979_v16  ;;  %v10519_v17 = vsel %vm1244_vm12, %v2979_v16, -1e+30  ;;  %v6674_v16 = vld [vmem:[%s12359_s6 + $0x70] sm:$0xf0]  ;;  %3228 = vmatpush.bf16.msra.mxu2 %v6701_v27  ;;  %v6633_v27 = vor.u32 %v8061_v11, %v6632_v62  ;;  %v6830_v62 = vor.u32 %v8108_v14, %v6829_v29 }
 0xb19   :  { %2985 = vmax.xlane.f32.xlu2 %v10519_v17  ;;  %v6677_v34 = vor.u32 %v8070_v8, %v6674_v16  ;;  %v6637_v16 = vor.u32 %v8059_v18, %v6634_v22  ;;  %v6838_v18 = vor.u32 %v8109_v51, %v6837_v50  ;;  %v6773_v29 = vld [vmem:[%s12357_s4 + $0x8] sm:$0xf]  ;;  %v8093_v14 = vld [vmem:[%s12357_s4 + $0x14] sm:$0xf0] }
 0xb1a   :  { %v6774_v50 = vor.u32 %v8093_v14, %v6773_v29  ;;  %v8122_v29 = vld [vmem:[%s12360_s7] sm:$0xff] }
 0xb1b   :  { %3203 = vmatpush.bf16.msra.mxu0 %v6677_v34 }
 0xb1c   :  { %3229 = vmatpush.bf16.msra.mxu2 %v6685_v53  ;;  %v8115_v53 = vld [vmem:[%s12357_s4 + $0xcc] sm:$0xf] }
 0xb1d   :  { %v2980_v21 = vpop.f32.mrf.mxu2 }
 0xb1e   :  { %v6680_v21 = vld [vmem:[%s12359_s6 + $0x68] sm:$0xf] }
 0xb1f   :  { %v6681_v41 = vor.u32 %v8073_v4, %v6680_v21  ;;  %3204 = vmatpush.bf16.msra.mxu0 %v6661_v56  ;;  %v6878_v21 = vor.u32 %v8120_v63, %v6877_v30  ;;  %v6882_v4 = vor.u32 %v8118_v43, %v6879_v15  ;;  %v6874_v56 = vor.u32 %v8115_v53, %v6871_v54  ;;  %v6813_v30 = vld [vmem:[%s12357_s4 + $0x60] sm:$0xf]  ;;  %v8104_v63 = vld [vmem:[%s12357_s4 + $0x6c] sm:$0xf0]  ;;  %v6815_v15 = vld [vmem:[%s12357_s4 + $0x70] sm:$0xf0] }
 0xb20   :  { %3230 = vmatpush.bf16.msra.mxu2 %v6669_v52  ;;  %v8111_v52 = vld [vmem:[%s12357_s4 + $0xac] sm:$0xf]  ;;  %v6814_v43 = vor.u32 %v8104_v63, %v6813_v30  ;;  %v8096_v53 = vld [vmem:[%s12357_s4 + $0x2c] sm:$0xf0]  ;;  %v8129_v30 = vld [vmem:[%s12360_s7 + $0x38] sm:$0xff] }
 0xb21   :  { %3216 = vmatpush.bf16.msra.mxu1 %v6681_v41  ;;  %v6886_v41 = vor.u32 %v8121_v35, %v6885_v39  ;;  %3455 = vmatpush.bf16.msra.mxu3 %v6878_v21  ;;  %v6858_v48 = vor.u32 %v8111_v52, %v6855_v20  ;;  %v6821_v39 = vld [vmem:[%s12357_s4 + $0x68] sm:$0xf]  ;;  %v6818_v35 = vor.u32 %v8102_v40, %v6815_v15  ;;  %v8100_v21 = vld [vmem:[%s12357_s4 + $0x4c] sm:$0xf0]  ;;  %v8090_v20 = vld [vmem:[%s12357_s4 + $0x4] sm:$0xf] }
 0xb22   :  { %v6782_v13 = vor.u32 %v8096_v53, %v6781_v46  ;;  %v8092_v52 = vld [vmem:[%s12357_s4 + $0xc] sm:$0xf0] }
 0xb23   :  { %3205 = vmatpush.bf16.msra.mxu0 %v6645_v49  ;;  %v8106_v49 = vld [vmem:[%s12357_s4 + $0x84] sm:$0xf] }
 0xb24   :  { %3231 = vmatpush.bf16.msra.mxu2 %v6653_v58  ;;  %v6839_v58 = vld [vmem:[%s12357_s4 + $0x98] sm:$0xf0] }
 0xb25   :  { %3217 = vmatpush.bf16.msra.mxu1 %v6665_v6  ;;  %v8110_v6 = vld [vmem:[%s12357_s4 + $0xa4] sm:$0xf]  ;;  %3456 = vmatpush.bf16.msra.mxu3 %v6862_v57  ;;  %v6842_v22 = vor.u32 %v8107_v55, %v6839_v58 }
 0xb26   :  { %v6850_v44 = vor.u32 %v8110_v6, %v6847_v36  ;;  %v8094_v57 = vld [vmem:[%s12357_s4 + $0x24] sm:$0xf]  ;;  %v6791_v6 = vld [vmem:[%s12357_s4 + $0x38] sm:$0xf0] }
 0xb27   :  { %3206 = vmatpush.bf16.msra.mxu0 %v6629_v3  ;;  %v8105_v3 = vld [vmem:[%s12357_s4 + $0x74] sm:$0xf0] }
 0xb28   :  { %3232 = vmatpush.bf16.msra.mxu2 %v6637_v16  ;;  %v6822_v5 = vor.u32 %v8105_v3, %v6821_v39  ;;  %v8128_v3 = vld [vmem:[%s12360_s7 + $0x30] sm:$0xff] }
 0xb29   :  { %3218 = vmatpush.bf16.msra.mxu1 %v6649_v10  ;;  %v6831_v10 = vld [vmem:[%s12357_s4 + $0x90] sm:$0xf0]  ;;  %3457 = vmatpush.bf16.msra.mxu3 %v6846_v24 }
 0xb2a   :  { %v6834_v11 = vor.u32 %v8106_v49, %v6831_v10  ;;  %v6766_v49 = vor.u32 %v8092_v52, %v6765_v31  ;;  %v8123_v52 = vld [vmem:[%s12360_s7 + $0x8] sm:$0xff] }
 0xb2b   :  { %3468 = vmatpush.bf16.msrb.mxu0 %v6882_v4  ;;  %v8098_v4 = vld [vmem:[%s12357_s4 + $0x44] sm:$0xf] }
 0xb2c   :  { %3494 = vmatpush.bf16.msrb.mxu2 %v6890_v42  ;;  %v8099_v42 = vld [vmem:[%s12357_s4 + $0x4c] sm:$0xf] }
 0xb2d   :  { %3219 = vmatpush.bf16.msra.mxu1 %v6633_v27  ;;  %3458 = vmatpush.bf16.msra.mxu3 %v6830_v62  ;;  %v6797_v27 = vld [vmem:[%s12357_s4 + $0x40] sm:$0xf]  ;;  %v6810_v54 = vor.u32 %v8099_v42, %v6807_v45 }
 0xb2e   :  { %v6798_v32 = vor.u32 %v8100_v21, %v6797_v27  ;;  %v8126_v45 = vld [vmem:[%s12360_s7 + $0x20] sm:$0xff] }
 0xb30   :  { %3495 = vmatpush.bf16.msrb.mxu2 %v6874_v56  ;;  %v8095_v56 = vld [vmem:[%s12357_s4 + $0x2c] sm:$0xf] }
 0xb31   :  { %3481 = vmatpush.bf16.msrb.mxu1 %v6886_v41  ;;  %3459 = vmatpush.bf16.msra.mxu3 %v6814_v43  ;;  %v8101_v41 = vld [vmem:[%s12357_s4 + $0x54] sm:$0xf0]  ;;  %v6794_v24 = vor.u32 %v8095_v56, %v6791_v6 }
 0xb34   :  { %3496 = vmatpush.bf16.msrb.mxu2 %v6858_v48  ;;  %v6775_v48 = vld [vmem:[%s12357_s4 + $0x18] sm:$0xf0] }
 0xb35   :  { %3482 = vmatpush.bf16.msrb.mxu1 %v6870_v25  ;;  %3460 = vmatpush.bf16.msra.mxu3 %v6798_v32  ;;  %v8097_v25 = vld [vmem:[%s12357_s4 + $0x34] sm:$0xf0] }
 0xb36   :  { %v6790_v38 = vor.u32 %v8097_v25, %v6789_v19  ;;  %v8124_v25 = vld [vmem:[%s12360_s7 + $0x10] sm:$0xff] }
 0xb38   :  { %3497 = vmatpush.bf16.msrb.mxu2 %v6842_v22  ;;  %v3250_v22 = vstv %s3249_s21 }
 0xb39   :  { %3483 = vmatpush.bf16.msrb.mxu1 %v6854_v47  ;;  %v8091_v47 = vld [vmem:[%s12357_s4 + $0xc] sm:$0xf]  ;;  %3461 = vmatpush.bf16.msra.mxu3 %v6782_v13 }
 0xb3a   :  { %v6778_v51 = vor.u32 %v8091_v47, %v6775_v48 }
 0xb3d   :  { %3484 = vmatpush.bf16.msrb.mxu1 %v6838_v18  ;;  %3462 = vmatpush.bf16.msra.mxu3 %v6766_v49  ;;  %v3244_v18 = vstv %s6758_s20 }
 0xb41   :  { %3485 = vmatpush.bf16.msrb.mxu1 %v6822_v5 }
 0xb8c   :  { %v2986_v8 = vpop.xlane.xlu2 %2985 }
 0xb8d   :  { %vm2987_vm13 = vcmp.eq.f32.partialorder %v10519_v17, %v2986_v8  ;;  %v6863_v17 = vld [vmem:[%s12357_s4 + $0xd0] sm:$0xf0]  ;;  %v6823_v8 = vld [vmem:[%s12357_s4 + $0x78] sm:$0xf0] }
 0xb8e   :  { %v2988_v34 = vsel %vm2987_vm13, %v9788_v37, 128.0  ;;  %v6866_v1 = vor.u32 %v8114_v33, %v6863_v17  ;;  %v6826_v16 = vor.u32 %v8103_v7, %v6823_v8  ;;  %v6802_v33 = vor.u32 %v8098_v4, %v6799_v28  ;;  %v6762_v7 = vld [vmem:[%s12356_s3 + $0x78] sm:$0xff] }
 0xb8f   :  { %2989 = vmin.xlane.f32.xlu2 %v2988_v34  ;;  %v6805_v34 = vld [vmem:[%s12357_s4 + $0x48] sm:$0xf]  ;;  %v3248_v21 = vmul.f32 %v6762_v7, %v3244_v18 }
 0xb90   :  { %3469 = vmatpush.bf16.msrb.mxu0 %v6866_v1  ;;  %3498 = vmatpush.bf16.msrb.mxu2 %v6826_v16  ;;  %v6806_v17 = vor.u32 %v8101_v41, %v6805_v34  ;;  %v6783_v1 = vld [vmem:[%s12357_s4 + $0x30] sm:$0xf0]  ;;  %v8127_v16 = vld [vmem:[%s12360_s7 + $0x28] sm:$0xff] }
 0xb91   :  { %v6786_v36 = vor.u32 %v8094_v57, %v6783_v1  ;;  %v8125_v57 = vld [vmem:[%s12360_s7 + $0x18] sm:$0xff] }
 0xb92   :  { %3486 = vmatpush.bf16.msrb.mxu1 %v6806_v17 }
 0xb94   :  { %3470 = vmatpush.bf16.msrb.mxu0 %v6850_v44  ;;  %3499 = vmatpush.bf16.msrb.mxu2 %v6810_v54  ;;  %v6767_v44 = vld [vmem:[%s12357_s4 + $0x10] sm:$0xf0] }
 0xb95   :  { %v6770_v10 = vor.u32 %v8090_v20, %v6767_v44  ;;  %v6761_v20 = vld [vmem:[%s12356_s3 + $0x70] sm:$0xff] }
 0xb96   :  { %3487 = vmatpush.bf16.msrb.mxu1 %v6790_v38  ;;  %v3247_v14 = vmul.f32 %v6761_v20, %v3244_v18 }
 0xb98   :  { %3471 = vmatpush.bf16.msrb.mxu0 %v6834_v11  ;;  %3500 = vmatpush.bf16.msrb.mxu2 %v6794_v24  ;;  %v6760_v11 = vld [vmem:[%s12356_s3 + $0x68] sm:$0xff] }
 0xb99   :  { %v3246_v40 = vmul.f32 %v6760_v11, %v3244_v18 }
 0xb9a   :  { %3488 = vmatpush.bf16.msrb.mxu1 %v6774_v50 }
 0xb9c   :  { %3472 = vmatpush.bf16.msrb.mxu0 %v6818_v35  ;;  %3501 = vmatpush.bf16.msrb.mxu2 %v6778_v51  ;;  %v6759_v35 = vld [vmem:[%s12356_s3 + $0x60] sm:$0xff] }
 0xb9d   :  { %v3245_v8 = vmul.f32 %v6759_v35, %v3244_v18 }
 0xba0   :  { %3473 = vmatpush.bf16.msrb.mxu0 %v6802_v33 }
 0xba4   :  { %3474 = vmatpush.bf16.msrb.mxu0 %v6786_v36 }
 0xba8   :  { %3475 = vmatpush.bf16.msrb.mxu0 %v6770_v10 }
 0xc02   :  { %v2990_v55 = vpop.xlane.xlu2 %2989 }
 0xc03   :  { %vm2991_vm14 = vcmp.eq.f32.partialorder %v9788_v37, %v2990_v55 }
 0xc04   :  { %vm6750_vm15 = vmpackc.low %vm2991_vm14, %vm2991_vm14 }
 0xc05   :  { %6751 = vmatmul.msk.bf16.vlgmr.msrb.gmra.mxu3 %vm6750_vm15, %v8620_v2  ;;  %6753 = vmatmul.msk.bf16.vlgmr.msra.gmra.mxu0 %vm6750_vm15, %v8620_v2 }
 0xc06   :  { %6755 = vmatmul.msk.bf16.vlgmr.msra.gmra.mxu1 %vm6750_vm15, %v8620_v2  ;;  %6757 = vmatmul.msk.bf16.vlgmr.msra.gmra.mxu2 %vm6750_vm15, %v8620_v2 }
 0xc07   :  { %3639 = vmatpush.bf16.msrb.mxu3 %v8129_v30 }
 0xc0b   :  { %3640 = vmatpush.bf16.msrb.mxu3 %v8128_v3 }
 0xc0f   :  { %3641 = vmatpush.bf16.msrb.mxu3 %v8127_v16 }
 0xc13   :  { %3642 = vmatpush.bf16.msrb.mxu3 %v8126_v45 }
 0xc15   :  { %3463 = vmatmul.bf16.vlgmr.msra.gmra.mxu3 %v10505_v12  ;;  %3476 = vmatmul.bf16.vlgmr.msrb.gmra.mxu0 %v10505_v12 }
 0xc16   :  { %3489 = vmatmul.bf16.vlgmr.msrb.gmra.mxu1 %v10505_v12  ;;  %3502 = vmatmul.bf16.vlgmr.msrb.gmra.mxu2 %v10505_v12 }
 0xc17   :  { %3643 = vmatpush.bf16.msrb.mxu3 %v8125_v57 }
 0xc1b   :  { %3644 = vmatpush.bf16.msrb.mxu3 %v8124_v25 }
 0xc1f   :  { %3645 = vmatpush.bf16.msrb.mxu3 %v8123_v52  ;;  %v7049_v52 = vld [vmem:[%s12359_s6 + $0xe8] sm:$0xf] }
 0xc23   :  { %3646 = vmatpush.bf16.msrb.mxu3 %v8122_v29  ;;  %v7051_v29 = vld [vmem:[%s12359_s6 + $0xf8] sm:$0xf0] }
 0xc82   :  { %v3208_v58 = vpop.f32.mrf.mxu0 }
 0xc83   :  { %v3221_v62 = vpop.f32.mrf.mxu1  ;;  %v3252_v43 = vmul.f32 %v3250_v22, %v3208_v58 }
 0xc84   :  { %v3253_v47 = vmul.f32 %v3250_v22, %v3221_v62 }
 0xc85   :  { %v3256_v5 = vadd.f32 %v3252_v43, %v3246_v40 }
 0xc86   :  { %v3257_v55 = vadd.f32 %v3253_v47, %v3247_v14  ;;  %v7025_v14 = vld [vmem:[%s12359_s6 + $0xc0] sm:$0xf] }
 0xc87   :  { %v3260_v33 = vadd.f32 %v10479_v0, %v3256_v5 }
 0xc88   :  { %v3195_v63 = vpop.f32.mrf.mxu3  ;;  %v3261_v30 = vadd.f32 %v10498_v9, %v3257_v55  ;;  %v7033_v55 = vld [vmem:[%s12359_s6 + $0xc8] sm:$0xf] }
 0xc89   :  { %v3234_v15 = vpop.f32.mrf.mxu2  ;;  %v3251_v27 = vmul.f32 %v3250_v22, %v3195_v63 }
 0xc8a   :  { %v3210_v12 = vpop.f32.mrf.mxu0  ;;  %v3254_v4 = vmul.f32 %v3250_v22, %v3234_v15 }
 0xc8b   :  { %v3223_v39 = vpop.f32.mrf.mxu1  ;;  %v3255_v41 = vadd.f32 %v3251_v27, %v3245_v8 }
 0xc8c   :  { %v3258_v46 = vadd.f32 %v3254_v4, %v3248_v21 }
 0xc8d   :  { %v3259_v54 = vadd.f32 %v10473_v23, %v3255_v41 }
 0xc8e   :  { %v3262_v1 = vadd.f32 %v10461_v61, %v3258_v46 }
 0xc90   :  { %v3197_v28 = vpop.f32.mrf.mxu3 }
 0xc91   :  { %v3236_v32 = vpop.f32.mrf.mxu2 }
 0xc92   :  { %v3477_v34 = vpop.f32.mrf.mxu0 }
 0xc93   :  { %v3508_v42 = vadd.f32 %v3477_v34, %v3260_v33  ;;  %v3490_v17 = vpop.f32.mrf.mxu1 }
 0xc94   :  { %v3509_v43 = vadd.f32 %v3490_v17, %v3261_v30 }
 0xc95   :  { %v6892_v53 = vmul.f32 -1.442695, %v3508_v42 }
 0xc97   :  { %8525 = vpow2.f32 %v6892_v53 }
 0xc98   :  { %v3464_v0 = vpop.f32.mrf.mxu3 }
 0xc99   :  { %v3507_v19 = vadd.f32 %v3464_v0, %v3259_v54  ;;  %v3503_v13 = vpop.f32.mrf.mxu2 }
 0xc9a   :  { %v3510_v56 = vadd.f32 %v3503_v13, %v3262_v1  ;;  %v3479_v6 = vpop.f32.mrf.mxu0 }
 0xc9b   :  { %v6891_v36 = vmul.f32 -1.442695, %v3507_v19  ;;  %v3492_v38 = vpop.f32.mrf.mxu1 }
 0xc9c   :  { %v6893_v31 = vmul.f32 -1.442695, %v3510_v56  ;;  %v8160_v38 = vld [vmem:[%s12359_s6 + $0xec] sm:$0xf0] }
 0xc9d   :  { %v8526_v23 = vpop.eup %8525  ;;  %8527 = vpow2.f32 %v6891_v36  ;;  %v7041_v36 = vld [vmem:[%s12359_s6 + $0xe0] sm:$0xf] }
 0xc9e   :  { %v3533_v61 = vadd.f32 1.0, %v8526_v23  ;;  %8529 = vpow2.f32 %v6893_v31  ;;  %v7042_v31 = vor.u32 %v8160_v38, %v7041_v36  ;;  %v7043_v23 = vld [vmem:[%s12359_s6 + $0xf0] sm:$0xf0]  ;;  %v6961_v38 = vld [vmem:[%s12359_s6 + $0x40] sm:$0xf] }
 0xca0   :  { %8531 = vrcp.f32 %v3533_v61  ;;  %v3466_v24 = vpop.f32.mrf.mxu3  ;;  %v3545_v18 = vand.u32 2147483648, %v3533_v61  ;;  %vm3539_vm1 = vweird.f32 %v3533_v61  ;;  %v3543_v39 = vand.u32 2147483647, %v3533_v61  ;;  %3856 = vmatpush.bf16.msra.mxu0 %v7042_v31  ;;  %v8138_v31 = vld [vmem:[%s12359_s6 + $0x44] sm:$0xf] }
 0xca1   :  { %v3505_v44 = vpop.f32.mrf.mxu2 }
 0xca2   :  { %v3546_v9 = vor.u32 1.1754944e-38, %v3545_v18  ;;  %vm3544_vm4 = vcmp.eq.f32.partialorder %v3543_v39, 8.507059e+37  ;;  %v8159_v44 = vld [vmem:[%s12359_s6 + $0xec] sm:$0xf]  ;;  %v7017_v18 = vld [vmem:[%s12359_s6 + $0xa8] sm:$0xf] }
 0xca3   :  { %v8528_v48 = vpop.eup %8527  ;;  %v7054_v47 = vor.u32 %v8159_v44, %v7051_v29  ;;  %v8153_v39 = vld [vmem:[%s12359_s6 + $0xb4] sm:$0xf0]  ;;  %v6971_v44 = vld [vmem:[%s12359_s6 + $0x58] sm:$0xf0] }
 0xca4   :  { %v8530_v49 = vpop.eup %8529  ;;  %v3514_v10 = vadd.f32 1.0, %v8528_v48  ;;  %v8156_v48 = vld [vmem:[%s12359_s6 + $0xcc] sm:$0xf0] }
 0xca5   :  { %v3553_v50 = vadd.f32 1.0, %v8530_v49  ;;  %v8154_v49 = vld [vmem:[%s12359_s6 + $0xc4] sm:$0xf]  ;;  %3895 = vmatpush.bf16.msra.mxu3 %v7054_v47 }
 0xca6   :  { %v8532_v51 = vpop.eup %8531  ;;  %8533 = vrcp.f32 %v3514_v10  ;;  %v3526_v35 = vand.u32 2147483648, %v3514_v10  ;;  %v3524_v8 = vand.u32 2147483647, %v3514_v10  ;;  %vm3520_vm5 = vweird.f32 %v3514_v10 }
 0xca7   :  { %v3535_v58 = vmul.f32 %v8532_v51, %v3533_v61  ;;  %8535 = vrcp.f32 %v3553_v50  ;;  %vm3540_vm0 = vweird.f32 %v8532_v51  ;;  %v3565_v46 = vand.u32 2147483648, %v3553_v50  ;;  %v8161_v61 = vld [vmem:[%s12359_s6 + $0xf4] sm:$0xf0] }
 0xca8   :  { %vm3541_vm2 = vmor %vm3539_vm1, %vm3540_vm0  ;;  %8537 = vtanh.f32 %v3509_v43  ;;  %v3527_v4 = vor.u32 1.1754944e-38, %v3526_v35  ;;  %vm3525_vm7 = vcmp.eq.f32.partialorder %v3524_v8, 8.507059e+37  ;;  %vm3559_vm9 = vweird.f32 %v3553_v50  ;;  %v8152_v43 = vld [vmem:[%s12359_s6 + $0xac] sm:$0xf0]  ;;  %v7019_v35 = vld [vmem:[%s12359_s6 + $0xb8] sm:$0xf0] }
 0xca9   :  { %v3536_v11 = vsub.f32 1.0, %v3535_v58  ;;  %v3563_v53 = vand.u32 2147483647, %v3553_v50  ;;  %v3566_v57 = vor.u32 1.1754944e-38, %v3565_v46  ;;  %v7050_v24 = vor.u32 %v8161_v61, %v7049_v52  ;;  %v8157_v58 = vld [vmem:[%s12359_s6 + $0xd4] sm:$0xf0] }
 0xcaa   :  { %v7034_v30 = vor.u32 %v8157_v58, %v7033_v55  ;;  %v6993_v8 = vld [vmem:[%s12359_s6 + $0x80] sm:$0xf]  ;;  %v8144_v46 = vld [vmem:[%s12359_s6 + $0x6c] sm:$0xf0]  ;;  %v6963_v52 = vld [vmem:[%s12359_s6 + $0x50] sm:$0xf0] }
 0xcab   :  { %v3537_v63 = vmul.f32 %v8532_v51, %v3536_v11  ;;  %vm3564_vm11 = vcmp.eq.f32.partialorder %v3563_v53, 8.507059e+37  ;;  %3882 = vmatpush.bf16.msra.mxu2 %v7050_v24  ;;  %v8155_v11 = vld [vmem:[%s12359_s6 + $0xcc] sm:$0xf]  ;;  %v8142_v53 = vld [vmem:[%s12359_s6 + $0x64] sm:$0xf] }
 0xcac   :  { %v8534_v40 = vpop.eup %8533  ;;  %v6969_v61 = vld [vmem:[%s12359_s6 + $0x48] sm:$0xf]  ;;  %v8139_v24 = vld [vmem:[%s12359_s6 + $0x4c] sm:$0xf]  ;;  %v8137_v58 = vld [vmem:[%s12359_s6 + $0x34] sm:$0xf0] }
 0xcad   :  { %v8536_v15 = vpop.eup %8535  ;;  %v3538_v12 = vadd.f32 %v8532_v51, %v3537_v63  ;;  %v3516_v62 = vmul.f32 %v8534_v40, %v3514_v10  ;;  %vm3521_vm3 = vweird.f32 %v8534_v40  ;;  %v7027_v10 = vld [vmem:[%s12359_s6 + $0xd0] sm:$0xf0]  ;;  %v7035_v63 = vld [vmem:[%s12359_s6 + $0xd8] sm:$0xf0]  ;;  %v6953_v55 = vld [vmem:[%s12359_s6 + $0x28] sm:$0xf] }
 0xcae   :  { %v3555_v22 = vmul.f32 %v8536_v15, %v3553_v50  ;;  %vm3522_vm6 = vmor %vm3520_vm5, %vm3521_vm3  ;;  %v8538_v32 = vpop.eup %8537  ;;  %vm3560_vm8 = vweird.f32 %v8536_v15  ;;  %v7026_v50 = vor.u32 %v8156_v48, %v7025_v14  ;;  %v6966_v14 = vor.u32 %v8138_v31, %v6963_v52  ;;  %v6945_v48 = vld [vmem:[%s12359_s6 + $0x20] sm:$0xf] }
 0xcaf   :  { %v3517_v3 = vsub.f32 1.0, %v3516_v62  ;;  %v3542_v5 = vsel %vm3541_vm2, %v8532_v51, %v3538_v12  ;;  %vm3561_vm10 = vmor %vm3559_vm9, %vm3560_vm8  ;;  %v7030_v51 = vor.u32 %v8154_v49, %v7027_v10  ;;  %v8150_v12 = vld [vmem:[%s12359_s6 + $0xa4] sm:$0xf]  ;;  %v7011_v62 = vld [vmem:[%s12359_s6 + $0xb0] sm:$0xf0]  ;;  %3883 = vmatpush.bf16.msra.mxu2 %v7034_v30 }
 0xcb0   :  { %v3556_v27 = vsub.f32 1.0, %v3555_v22  ;;  %v3547_v21 = vsel %vm3544_vm4, %v3546_v9, %v3542_v5  ;;  %3857 = vmatpush.bf16.msra.mxu0 %v7026_v50  ;;  %v7014_v5 = vor.u32 %v8150_v12, %v7011_v62  ;;  %v8148_v9 = vld [vmem:[%s12359_s6 + $0x8c] sm:$0xf0]  ;;  %v8134_v10 = vld [vmem:[%s12359_s6 + $0x24] sm:$0xf]  ;;  %v6974_v50 = vor.u32 %v8139_v24, %v6971_v44 }
 0xcb1   :  { %v3518_v7 = vmul.f32 %v8534_v40, %v3517_v3  ;;  %v3569_v41 = vmul.f32 %v3547_v21, %v10502_v26  ;;  %v8151_v3 = vld [vmem:[%s12359_s6 + $0xac] sm:$0xf]  ;;  %v6995_v21 = vld [vmem:[%s12359_s6 + $0x90] sm:$0xf0]  ;;  %v8136_v49 = vld [vmem:[%s12359_s6 + $0x2c] sm:$0xf0] }
 0xcb2   :  { %v3557_v34 = vmul.f32 %v8536_v15, %v3556_v27  ;;  %v8146_v27 = vld [vmem:[%s12359_s6 + $0x84] sm:$0xf]  ;;  %v6955_v30 = vld [vmem:[%s12359_s6 + $0x38] sm:$0xf0]  ;;  %v8132_v12 = vld [vmem:[%s12359_s6 + $0xc] sm:$0xf0] }
 0xcb3   :  { %v3519_v16 = vadd.f32 %v8534_v40, %v3518_v7  ;;  %v7018_v7 = vor.u32 %v8153_v39, %v7017_v18  ;;  %v8130_v62 = vld [vmem:[%s12359_s6 + $0x4] sm:$0xf]  ;;  %v6931_v18 = vld [vmem:[%s12359_s6 + $0x10] sm:$0xf0]  ;;  %v6937_v39 = vld [vmem:[%s12359_s6 + $0x8] sm:$0xf] }
 0xcb4   :  { %v3558_v45 = vadd.f32 %v8536_v15, %v3557_v34  ;;  %v6994_v34 = vor.u32 %v8148_v9, %v6993_v8  ;;  %v8192_v8 = vld [vmem:[%s12357_s4 + $0xec] sm:$0xf0]  ;;  %v7150_v31 = vld [vmem:[%s12357_s4 + $0xa0] sm:$0xf]  ;;  %v7152_v24 = vld [vmem:[%s12357_s4 + $0xb0] sm:$0xf0] }
 0xcb5   :  { %v3523_v28 = vsel %vm3522_vm6, %v8534_v40, %v3519_v16  ;;  %v7009_v40 = vld [vmem:[%s12359_s6 + $0xa0] sm:$0xf]  ;;  %v7022_v16 = vor.u32 %v8151_v3, %v7019_v35  ;;  %3884 = vmatpush.bf16.msra.mxu2 %v7018_v7  ;;  %v8133_v3 = vld [vmem:[%s12359_s6 + $0x14] sm:$0xf0]  ;;  %v8131_v35 = vld [vmem:[%s12359_s6 + $0xc] sm:$0xf] }
 0xcb6   :  { %v3528_v33 = vsel %vm3525_vm7, %v3527_v4, %v3523_v28  ;;  %v3562_v54 = vsel %vm3561_vm10, %v8536_v15, %v3558_v45  ;;  %v7038_v15 = vor.u32 %v8155_v11, %v7035_v63  ;;  %v7010_v22 = vor.u32 %v8152_v43, %v7009_v40  ;;  %v7001_v4 = vld [vmem:[%s12359_s6 + $0x88] sm:$0xf]  ;;  %v8149_v28 = vld [vmem:[%s12359_s6 + $0x94] sm:$0xf0]  ;;  %v6977_v45 = vld [vmem:[%s12359_s6 + $0x60] sm:$0xf] }
 0xcb7   :  { %v3570_v42 = vmul.f32 %v8538_v32, %v3528_v33  ;;  %v3567_v1 = vsel %vm3564_vm11, %v3566_v57, %v3562_v54  ;;  %v8147_v32 = vld [vmem:[%s12359_s6 + $0x8c] sm:$0xf]  ;;  %v7003_v33 = vld [vmem:[%s12359_s6 + $0x98] sm:$0xf0]  ;;  %v6979_v57 = vld [vmem:[%s12359_s6 + $0x70] sm:$0xf0]  ;;  %v6946_v63 = vor.u32 %v8136_v49, %v6945_v48 }
 0xcb8   :  { %3896 = vmatpush.bf16.msra.mxu3 %v7038_v15  ;;  %3858 = vmatpush.bf16.msra.mxu0 %v7010_v22  ;;  %v7006_v54 = vor.u32 %v8147_v32, %v7003_v33  ;;  %v8135_v11 = vld [vmem:[%s12359_s6 + $0x2c] sm:$0xf]  ;;  %v6929_v40 = vld [vmem:[%s12359_s6] sm:$0xf]  ;;  %v6954_v15 = vor.u32 %v8137_v58, %v6953_v55  ;;  %v7192_v33 = vld [vmem:[%s12357_s4 + $0xf8] sm:$0xf0] }
 0xcb9   :  { %v10958_v17 = vadd.f32 %v3570_v42, %v3569_v41  ;;  %v6998_v41 = vor.u32 %v8146_v27, %v6995_v21  ;;  %v7002_v42 = vor.u32 %v8149_v28, %v7001_v4  ;;  %v6958_v22 = vor.u32 %v8135_v11, %v6955_v30  ;;  %v7182_v7 = vld [vmem:[%s12357_s4 + $0xe0] sm:$0xf]  ;;  %v8190_v27 = vld [vmem:[%s12357_s4 + $0xe4] sm:$0xf]  ;;  %v7190_v21 = vld [vmem:[%s12357_s4 + $0xe8] sm:$0xf] }
 0xcba   :  { %v6930_v9 = vor.u32 %v8132_v12, %v6929_v40  ;;  %v6934_v4 = vor.u32 %v8130_v62, %v6931_v18  ;;  %v8193_v28 = vld [vmem:[%s12357_s4 + $0xf4] sm:$0xf0]  ;;  %v8191_v32 = vld [vmem:[%s12357_s4 + $0xec] sm:$0xf]  ;;  %v7158_v44 = vld [vmem:[%s12357_s4 + $0xa8] sm:$0xf] }
 0xcbb   :  { %8539 = vtanh.f32 %v10958_v17  ;;  %3885 = vmatpush.bf16.msra.mxu2 %v7002_v42  ;;  %v8178_v58 = vld [vmem:[%s12357_s4 + $0x84] sm:$0xf]  ;;  %v7136_v11 = vld [vmem:[%s12357_s4 + $0x90] sm:$0xf0]  ;;  %v7142_v30 = vld [vmem:[%s12357_s4 + $0x88] sm:$0xf] }
 0xcbc   :  { %3897 = vmatpush.bf16.msra.mxu3 %v7022_v16  ;;  %3859 = vmatpush.bf16.msra.mxu0 %v6994_v34  ;;  %v7184_v16 = vld [vmem:[%s12357_s4 + $0xf0] sm:$0xf0]  ;;  %v8179_v40 = vld [vmem:[%s12357_s4 + $0x8c] sm:$0xf]  ;;  %v7139_v12 = vor.u32 %v8178_v58, %v7136_v11  ;;  %v8201_v58 = vld [vmem:[%s12360_s7 + $0x38] sm:$0xff] }
 0xcc0   :  { %3898 = vmatpush.bf16.msra.mxu3 %v7006_v54  ;;  %v8188_v54 = vld [vmem:[%s12357_s4 + $0xcc] sm:$0xf0] }
 0xcc1   :  { %v8540_v0 = vpop.eup %8539 }
 0xcc2   :  { %v3573_v19 = vmul.f32 %v8540_v0, %v3567_v1  ;;  %v6985_v0 = vld [vmem:[%s12359_s6 + $0x68] sm:$0xf]  ;;  %v8145_v1 = vld [vmem:[%s12359_s6 + $0x74] sm:$0xf0] }
 0xcc3   :  { %v6986_v36 = vor.u32 %v8145_v1, %v6985_v0  ;;  %v7191_v1 = vor.u32 %v8193_v28, %v7190_v21  ;;  %v7128_v21 = vld [vmem:[%s12357_s4 + $0x78] sm:$0xf0] }
 0xcc4   :  { %v10961_v13 = vpack.c.bf16 %v3573_v19, %v3573_v19  ;;  %v8143_v19 = vld [vmem:[%s12359_s6 + $0x6c] sm:$0xf] }
 0xcc5   :  { %3886 = vmatpush.bf16.msra.mxu2 %v6986_v36  ;;  %v7176_v36 = vld [vmem:[%s12357_s4 + $0xd8] sm:$0xf0] }
 0xcc6   :  { %3647 = vmatmul.bf16.vlgmr.msrb.gmra.mxu3 %v10961_v13 }
 0xd49   :  { %v3648_v26 = vpop.f32.mrf.mxu3 }
 0xd4a   :  { %v3649_v25 = vadd.f32 %v10511_v60, %v3648_v26  ;;  %v8158_v60 = vld [vmem:[%s12359_s6 + $0xe4] sm:$0xf]  ;;  %v6987_v26 = vld [vmem:[%s12359_s6 + $0x78] sm:$0xf0] }
 0xd4b   :  { %v7046_v20 = vor.u32 %v8158_v60, %v7043_v23  ;;  %v8140_v60 = vld [vmem:[%s12359_s6 + $0x4c] sm:$0xf0]  ;;  %v6990_v23 = vor.u32 %v8143_v19, %v6987_v26  ;;  %v7195_v19 = vor.u32 %v8191_v32, %v7192_v33  ;;  %v7174_v26 = vld [vmem:[%s12357_s4 + $0xc8] sm:$0xf]  ;;  %v8170_v33 = vld [vmem:[%s12357_s4 + $0x44] sm:$0xf] }
 0xd4c   :  { %6926 = vst [vmem:[%s12362_s9 + $0x18] sm:$0xff] %v3649_v25  ;;  %v10970_v56 = vsel %vm1244_vm12, %v3649_v25, -1e+30  ;;  %v6978_v25 = vor.u32 %v8144_v46, %v6977_v45  ;;  %v6962_v29 = vor.u32 %v8140_v60, %v6961_v38  ;;  %v7183_v45 = vor.u32 %v8192_v8, %v7182_v7  ;;  %v7126_v7 = vld [vmem:[%s12357_s4 + $0x68] sm:$0xf] }
 0xd4d   :  { %3655 = vmax.xlane.f32.xlu0 %v10970_v56  ;;  %3869 = vmatpush.bf16.msra.mxu1 %v7046_v20  ;;  %v8141_v20 = vld [vmem:[%s12359_s6 + $0x54] sm:$0xf0]  ;;  %v7187_v46 = vor.u32 %v8190_v27, %v7184_v16  ;;  %v8175_v16 = vld [vmem:[%s12357_s4 + $0x6c] sm:$0xf]  ;;  %v8172_v32 = vld [vmem:[%s12357_s4 + $0x4c] sm:$0xf0] }
 0xd4e   :  { %3860 = vmatpush.bf16.msra.mxu0 %v6978_v25  ;;  %v6970_v47 = vor.u32 %v8141_v20, %v6969_v61  ;;  %3899 = vmatpush.bf16.msra.mxu3 %v6990_v23  ;;  %v8189_v25 = vld [vmem:[%s12357_s4 + $0xd4] sm:$0xf0]  ;;  %v8184_v23 = vld [vmem:[%s12357_s4 + $0xac] sm:$0xf0]  ;;  %v8182_v20 = vld [vmem:[%s12357_s4 + $0xa4] sm:$0xf]  ;;  %v7131_v28 = vor.u32 %v8175_v16, %v7128_v21 }
 0xd4f   :  { %v7175_v52 = vor.u32 %v8189_v25, %v7174_v26  ;;  %v7151_v48 = vor.u32 %v8184_v23, %v7150_v31  ;;  %v7155_v49 = vor.u32 %v8182_v20, %v7152_v24  ;;  %v8177_v8 = vld [vmem:[%s12357_s4 + $0x74] sm:$0xf0]  ;;  %v7088_v26 = vld [vmem:[%s12357_s4 + $0x30] sm:$0xf0]  ;;  %v7094_v25 = vld [vmem:[%s12357_s4 + $0x28] sm:$0xf] }
 0xd50   :  { %3887 = vmatpush.bf16.msra.mxu2 %v6970_v47  ;;  %v7160_v47 = vld [vmem:[%s12357_s4 + $0xb8] sm:$0xf0]  ;;  %v7127_v27 = vor.u32 %v8177_v8, %v7126_v7  ;;  %v8162_v20 = vld [vmem:[%s12357_s4 + $0x4] sm:$0xf] }
 0xd51   :  { %v3650_v6 = vpop.f32.mrf.mxu3  ;;  %3870 = vmatpush.bf16.msra.mxu1 %v7030_v51  ;;  %v6947_v51 = vld [vmem:[%s12359_s6 + $0x30] sm:$0xf0]  ;;  %v8198_v16 = vld [vmem:[%s12360_s7 + $0x20] sm:$0xff] }
 0xd52   :  { %v6982_v6 = vor.u32 %v8142_v53, %v6979_v57  ;;  %3861 = vmatpush.bf16.msra.mxu0 %v6962_v29  ;;  %v6950_v43 = vor.u32 %v8134_v10, %v6947_v51  ;;  %3900 = vmatpush.bf16.msra.mxu3 %v6974_v50  ;;  %v7166_v53 = vld [vmem:[%s12357_s4 + $0xc0] sm:$0xf]  ;;  %v8186_v57 = vld [vmem:[%s12357_s4 + $0xc4] sm:$0xf]  ;;  %v8185_v29 = vld [vmem:[%s12357_s4 + $0xb4] sm:$0xf0] }
 0xd53   :  { %v7167_v38 = vor.u32 %v8188_v54, %v7166_v53  ;;  %v7134_v10 = vld [vmem:[%s12357_s4 + $0x80] sm:$0xf]  ;;  %v8180_v50 = vld [vmem:[%s12357_s4 + $0x8c] sm:$0xf0]  ;;  %v7159_v51 = vor.u32 %v8185_v29, %v7158_v44  ;;  %v8171_v53 = vld [vmem:[%s12357_s4 + $0x4c] sm:$0xf] }
 0xd54   :  { %3888 = vmatpush.bf16.msra.mxu2 %v6954_v15  ;;  %v7135_v15 = vor.u32 %v8180_v50, %v7134_v10  ;;  %v7072_v44 = vld [vmem:[%s12357_s4 + $0x10] sm:$0xf0]  ;;  %v7078_v29 = vld [vmem:[%s12357_s4 + $0x8] sm:$0xf] }
 0xd55   :  { %3871 = vmatpush.bf16.msra.mxu1 %v7014_v5  ;;  %v6939_v5 = vld [vmem:[%s12359_s6 + $0x18] sm:$0xf0]  ;;  %v7075_v10 = vor.u32 %v8162_v20, %v7072_v44 }
 0xd56   :  { %3862 = vmatpush.bf16.msra.mxu0 %v6946_v63  ;;  %3901 = vmatpush.bf16.msra.mxu3 %v6958_v22  ;;  %v6942_v42 = vor.u32 %v8131_v35, %v6939_v5  ;;  %v8181_v63 = vld [vmem:[%s12357_s4 + $0x94] sm:$0xf0]  ;;  %v7118_v22 = vld [vmem:[%s12357_s4 + $0x60] sm:$0xf]  ;;  %v7120_v5 = vld [vmem:[%s12357_s4 + $0x70] sm:$0xf0] }
 0xd57   :  { %v7143_v62 = vor.u32 %v8181_v63, %v7142_v30  ;;  %v8200_v63 = vld [vmem:[%s12360_s7 + $0x30] sm:$0xff] }
 0xd59   :  { %3872 = vmatpush.bf16.msra.mxu1 %v6998_v41  ;;  %v6938_v41 = vor.u32 %v8133_v3, %v6937_v39  ;;  %v8176_v39 = vld [vmem:[%s12357_s4 + $0x6c] sm:$0xf0]  ;;  %v8174_v3 = vld [vmem:[%s12357_s4 + $0x64] sm:$0xf] }
 0xd5a   :  { %3863 = vmatpush.bf16.msra.mxu0 %v6930_v9  ;;  %3902 = vmatpush.bf16.msra.mxu3 %v6942_v42  ;;  %v7119_v35 = vor.u32 %v8176_v39, %v7118_v22  ;;  %v7123_v9 = vor.u32 %v8174_v3, %v7120_v5 }
 0xd5b   :  { %3889 = vmatpush.bf16.msra.mxu2 %v6938_v41 }
 0xd5d   :  { %3873 = vmatpush.bf16.msra.mxu1 %v6982_v6  ;;  %v8187_v6 = vld [vmem:[%s12357_s4 + $0xcc] sm:$0xf] }
 0xd5e   :  { %4125 = vmatpush.bf16.msrb.mxu0 %v7183_v45  ;;  %4164 = vmatpush.bf16.msrb.mxu3 %v7195_v19  ;;  %v7179_v61 = vor.u32 %v8187_v6, %v7176_v36  ;;  %v7110_v45 = vld [vmem:[%s12357_s4 + $0x48] sm:$0xf]  ;;  %v8169_v36 = vld [vmem:[%s12357_s4 + $0x34] sm:$0xf0] }
 0xd5f   :  { %4151 = vmatpush.bf16.msrb.mxu2 %v7191_v1  ;;  %v8168_v1 = vld [vmem:[%s12357_s4 + $0x2c] sm:$0xf0]  ;;  %v7095_v23 = vor.u32 %v8169_v36, %v7094_v25  ;;  %v11413_v25 = vld [vmem:[%s12358_s5 + $0x18] sm:$0xff] }
 0xd60   :  { %v7066_v36 = vld [vmem:[%s12356_s3 + $0x90] sm:$0xff] }
 0xd61   :  { %3874 = vmatpush.bf16.msra.mxu1 %v6966_v14  ;;  %v8183_v14 = vld [vmem:[%s12357_s4 + $0xac] sm:$0xf] }
 0xd62   :  { %4126 = vmatpush.bf16.msrb.mxu0 %v7167_v38  ;;  %4165 = vmatpush.bf16.msrb.mxu3 %v7179_v61  ;;  %v7163_v55 = vor.u32 %v8183_v14, %v7160_v47  ;;  %v8167_v38 = vld [vmem:[%s12357_s4 + $0x2c] sm:$0xf]  ;;  %v8164_v61 = vld [vmem:[%s12357_s4 + $0xc] sm:$0xf0]  ;;  %v8165_v14 = vld [vmem:[%s12357_s4 + $0x14] sm:$0xf0] }
 0xd63   :  { %4152 = vmatpush.bf16.msrb.mxu2 %v7175_v52  ;;  %v7070_v52 = vld [vmem:[%s12357_s4] sm:$0xf]  ;;  %v8163_v47 = vld [vmem:[%s12357_s4 + $0xc] sm:$0xf]  ;;  %v7079_v50 = vor.u32 %v8165_v14, %v7078_v29 }
 0xd65   :  { %3875 = vmatpush.bf16.msra.mxu1 %v6950_v43  ;;  %v7144_v43 = vld [vmem:[%s12357_s4 + $0x98] sm:$0xf0] }
 0xd66   :  { %4127 = vmatpush.bf16.msrb.mxu0 %v7151_v48  ;;  %4166 = vmatpush.bf16.msrb.mxu3 %v7163_v55  ;;  %v7147_v18 = vor.u32 %v8179_v40, %v7144_v43  ;;  %v7080_v48 = vld [vmem:[%s12357_s4 + $0x18] sm:$0xf0]  ;;  %v7064_v40 = vld [vmem:[%s12356_s3 + $0x80] sm:$0xff]  ;;  %v3914_v43 = vstv %s7063_s17 }
 0xd67   :  { %4153 = vmatpush.bf16.msrb.mxu2 %v7159_v51  ;;  %v7083_v51 = vor.u32 %v8163_v47, %v7080_v48  ;;  %v3917_v20 = vmul.f32 %v7066_v36, %v3914_v43 }
 0xd69   :  { %3876 = vmatpush.bf16.msra.mxu1 %v6934_v4  ;;  %v7102_v4 = vld [vmem:[%s12357_s4 + $0x40] sm:$0xf] }
 0xd6a   :  { %4128 = vmatpush.bf16.msrb.mxu0 %v7135_v15  ;;  %4167 = vmatpush.bf16.msrb.mxu3 %v7147_v18  ;;  %v7103_v41 = vor.u32 %v8172_v32, %v7102_v4  ;;  %v3920_v15 = vstv %s3919_s19 }
 0xd6b   :  { %4154 = vmatpush.bf16.msrb.mxu2 %v7143_v62 }
 0xd6d   :  { %4138 = vmatpush.bf16.msrb.mxu1 %v7187_v46  ;;  %v8173_v46 = vld [vmem:[%s12357_s4 + $0x54] sm:$0xf0] }
 0xd6e   :  { %4129 = vmatpush.bf16.msrb.mxu0 %v7119_v35  ;;  %4168 = vmatpush.bf16.msrb.mxu3 %v7131_v28  ;;  %v7111_v54 = vor.u32 %v8173_v46, %v7110_v45  ;;  %v8199_v35 = vld [vmem:[%s12360_s7 + $0x28] sm:$0xff]  ;;  %v8197_v45 = vld [vmem:[%s12360_s7 + $0x18] sm:$0xff] }
 0xd6f   :  { %4155 = vmatpush.bf16.msrb.mxu2 %v7127_v27  ;;  %v7067_v27 = vld [vmem:[%s12356_s3 + $0x98] sm:$0xff] }
 0xd70   :  { %v3918_v21 = vmul.f32 %v7067_v27, %v3914_v43 }
 0xd72   :  { %4130 = vmatpush.bf16.msrb.mxu0 %v7103_v41  ;;  %v11398_v41 = vld [vmem:[%s12358_s5 + $0x8] sm:$0xff] }
 0xd73   :  { %4156 = vmatpush.bf16.msrb.mxu2 %v7111_v54 }
 0xd77   :  { %4157 = vmatpush.bf16.msrb.mxu2 %v7095_v23 }
 0xd7b   :  { %4158 = vmatpush.bf16.msrb.mxu2 %v7079_v50 }
 0xdc0   :  { %v3656_v34 = vpop.xlane.xlu0 %3655 }
 0xdc1   :  { %vm3657_vm13 = vcmp.eq.f32.partialorder %v10970_v56, %v3656_v34  ;;  %v7168_v56 = vld [vmem:[%s12357_s4 + $0xd0] sm:$0xf0] }
 0xdc2   :  { %v3658_v0 = vsel %vm3657_vm13, %v9788_v37, 128.0  ;;  %v7171_v60 = vor.u32 %v8186_v57, %v7168_v56  ;;  %v7104_v34 = vld [vmem:[%s12357_s4 + $0x50] sm:$0xf0]  ;;  %v7112_v57 = vld [vmem:[%s12357_s4 + $0x58] sm:$0xf0] }
 0xdc3   :  { %3659 = vmin.xlane.f32.xlu1 %v3658_v0  ;;  %v7107_v42 = vor.u32 %v8170_v33, %v7104_v34  ;;  %v7086_v0 = vld [vmem:[%s12357_s4 + $0x20] sm:$0xf]  ;;  %v7115_v19 = vor.u32 %v8171_v53, %v7112_v57  ;;  %v8166_v56 = vld [vmem:[%s12357_s4 + $0x24] sm:$0xf] }
 0xdc4   :  { %4139 = vmatpush.bf16.msrb.mxu1 %v7171_v60  ;;  %v7087_v6 = vor.u32 %v8168_v1, %v7086_v0  ;;  %v7096_v60 = vld [vmem:[%s12357_s4 + $0x38] sm:$0xf0]  ;;  %v7091_v31 = vor.u32 %v8166_v56, %v7088_v26  ;;  %v11392_v33 = vld [vmem:[%s12358_s5] sm:$0xff]  ;;  %v8196_v56 = vld [vmem:[%s12360_s7 + $0x10] sm:$0xff] }
 0xdc5   :  { %4169 = vmatpush.bf16.msrb.mxu3 %v7115_v19  ;;  %v7099_v24 = vor.u32 %v8167_v38, %v7096_v60  ;;  %v8195_v26 = vld [vmem:[%s12360_s7 + $0x8] sm:$0xff] }
 0xdc6   :  { %4131 = vmatpush.bf16.msrb.mxu0 %v7087_v6 }
 0xdc8   :  { %4140 = vmatpush.bf16.msrb.mxu1 %v7155_v49  ;;  %v7071_v49 = vor.u32 %v8164_v61, %v7070_v52  ;;  %v8194_v61 = vld [vmem:[%s12360_s7] sm:$0xff] }
 0xdc9   :  { %4170 = vmatpush.bf16.msrb.mxu3 %v7099_v24 }
 0xdca   :  { %4132 = vmatpush.bf16.msrb.mxu0 %v7071_v49 }
 0xdcc   :  { %4141 = vmatpush.bf16.msrb.mxu1 %v7139_v12  ;;  %v3915_v12 = vmul.f32 %v7064_v40, %v3914_v43 }
 0xdcd   :  { %4171 = vmatpush.bf16.msrb.mxu3 %v7083_v51 }
 0xdd0   :  { %4142 = vmatpush.bf16.msrb.mxu1 %v7123_v9 }
 0xdd4   :  { %4143 = vmatpush.bf16.msrb.mxu1 %v7107_v42 }
 0xdd8   :  { %4144 = vmatpush.bf16.msrb.mxu1 %v7091_v31 }
 0xddc   :  { %4145 = vmatpush.bf16.msrb.mxu1 %v7075_v10 }
 0xe36   :  { %v3660_v55 = vpop.xlane.xlu1 %3659 }
 0xe37   :  { %vm3661_vm14 = vcmp.eq.f32.partialorder %v9788_v37, %v3660_v55  ;;  %v11425_v55 = vld [vmem:[%s12358_s5 + $0x10] sm:$0xff] }
 0xe38   :  { %vm7055_vm15 = vmpackc.low %vm3661_vm14, %vm3661_vm14 }
 0xe39   :  { %7056 = vmatmul.msk.bf16.vlgmr.msra.gmra.mxu0 %vm7055_vm15, %v8620_v2  ;;  %7058 = vmatmul.msk.bf16.vlgmr.msra.gmra.mxu1 %vm7055_vm15, %v8620_v2 }
 0xe3a   :  { %7060 = vmatmul.msk.bf16.vlgmr.msra.gmra.mxu2 %vm7055_vm15, %v8620_v2  ;;  %7062 = vmatmul.msk.bf16.vlgmr.msra.gmra.mxu3 %vm7055_vm15, %v8620_v2 }
 0xe3b   :  { %4309 = vmatpush.bf16.msra.mxu0 %v8201_v58 }
 0xe3f   :  { %4310 = vmatpush.bf16.msra.mxu0 %v8200_v63 }
 0xe43   :  { %4311 = vmatpush.bf16.msra.mxu0 %v8199_v35 }
 0xe47   :  { %4312 = vmatpush.bf16.msra.mxu0 %v8198_v16 }
 0xe49   :  { %4133 = vmatmul.bf16.vlgmr.msrb.gmra.mxu0 %v10961_v13  ;;  %4146 = vmatmul.bf16.vlgmr.msrb.gmra.mxu1 %v10961_v13 }
 0xe4a   :  { %4159 = vmatmul.bf16.vlgmr.msrb.gmra.mxu2 %v10961_v13  ;;  %4172 = vmatmul.bf16.vlgmr.msrb.gmra.mxu3 %v10961_v13  ;;  %v7065_v13 = vld [vmem:[%s12356_s3 + $0x88] sm:$0xff] }
 0xe4b   :  { %v3916_v18 = vmul.f32 %v7065_v13, %v3914_v43  ;;  %4313 = vmatpush.bf16.msra.mxu0 %v8197_v45 }
 0xe4f   :  { %4314 = vmatpush.bf16.msra.mxu0 %v8196_v56 }
 0xe53   :  { %4315 = vmatpush.bf16.msra.mxu0 %v8195_v26 }
 0xe57   :  { %4316 = vmatpush.bf16.msra.mxu0 %v8194_v61  ;;  %v7346_v61 = vld [vmem:[%s12359_s6 + $0xe0] sm:$0xf] }
 0xeb6   :  { %v3865_v11 = vpop.f32.mrf.mxu0  ;;  %v3878_v30 = vpop.f32.mrf.mxu1 }
 0xeb7   :  { %v3921_v62 = vmul.f32 %v3920_v15, %v3865_v11  ;;  %v3922_v22 = vmul.f32 %v3920_v15, %v3878_v30 }
 0xeb9   :  { %v3925_v8 = vadd.f32 %v3921_v62, %v3915_v12  ;;  %v3926_v9 = vadd.f32 %v3922_v22, %v3916_v18 }
 0xebb   :  { %v3929_v34 = vadd.f32 %v11392_v33, %v3925_v8  ;;  %v3930_v42 = vadd.f32 %v11398_v41, %v3926_v9 }
 0xebd   :  { %v3891_v39 = vpop.f32.mrf.mxu2  ;;  %v3904_v3 = vpop.f32.mrf.mxu3 }
 0xebe   :  { %v3867_v5 = vpop.f32.mrf.mxu0  ;;  %v3880_v7 = vpop.f32.mrf.mxu1  ;;  %v3924_v4 = vmul.f32 %v3920_v15, %v3904_v3  ;;  %v3923_v24 = vmul.f32 %v3920_v15, %v3891_v39 }
 0xec0   :  { %v3928_v0 = vadd.f32 %v3924_v4, %v3918_v21  ;;  %v3927_v49 = vadd.f32 %v3923_v24, %v3917_v20  ;;  %v8232_v20 = vld [vmem:[%s12359_s6 + $0xec] sm:$0xf0]  ;;  %v8230_v24 = vld [vmem:[%s12359_s6 + $0xe4] sm:$0xf] }
 0xec2   :  { %v3932_v6 = vadd.f32 %v11413_v25, %v3928_v0  ;;  %v3931_v58 = vadd.f32 %v11425_v55, %v3927_v49 }
 0xec5   :  { %v3893_v28 = vpop.f32.mrf.mxu2  ;;  %v3906_v32 = vpop.f32.mrf.mxu3 }
 0xec6   :  { %v4134_v46 = vpop.f32.mrf.mxu0  ;;  %v4147_v53 = vpop.f32.mrf.mxu1 }
 0xec7   :  { %v4177_v54 = vadd.f32 %v4134_v46, %v3929_v34  ;;  %v4178_v57 = vadd.f32 %v4147_v53, %v3930_v42 }
 0xec9   :  { %v7196_v1 = vmul.f32 -1.442695, %v4177_v54  ;;  %v7197_v19 = vmul.f32 -1.442695, %v4178_v57 }
 0xecb   :  { %8541 = vpow2.f32 %v7196_v1 }
 0xecc   :  { %8543 = vpow2.f32 %v7197_v19 }
 0xecd   :  { %v4160_v38 = vpop.f32.mrf.mxu2  ;;  %v4173_v60 = vpop.f32.mrf.mxu3 }
 0xece   :  { %v4180_v31 = vadd.f32 %v4173_v60, %v3932_v6  ;;  %v4136_v23 = vpop.f32.mrf.mxu0  ;;  %v4149_v52 = vpop.f32.mrf.mxu1  ;;  %v4179_v63 = vadd.f32 %v4160_v38, %v3931_v58  ;;  %v11438_v60 = vld [vmem:[%s12361_s8] sm:$0xff] }
 0xed0   :  { %v7198_v44 = vmul.f32 -1.442695, %v4180_v31 }
 0xed1   :  { %v8542_v29 = vpop.eup %8541 }
 0xed2   :  { %v8544_v14 = vpop.eup %8543  ;;  %v4184_v47 = vadd.f32 1.0, %v8542_v29  ;;  %8545 = vpow2.f32 %v7198_v44  ;;  %v7347_v44 = vor.u32 %v8232_v20, %v7346_v61  ;;  %v7348_v29 = vld [vmem:[%s12359_s6 + $0xf0] sm:$0xf0]  ;;  %v8217_v61 = vld [vmem:[%s12359_s6 + $0x74] sm:$0xf0] }
 0xed3   :  { %v4203_v48 = vadd.f32 1.0, %v8544_v14  ;;  %v7354_v14 = vld [vmem:[%s12359_s6 + $0xe8] sm:$0xf]  ;;  %v8215_v20 = vld [vmem:[%s12359_s6 + $0x6c] sm:$0xf] }
 0xed4   :  { %8547 = vrcp.f32 %v4184_v47  ;;  %v4196_v62 = vand.u32 2147483648, %v4184_v47  ;;  %v4194_v39 = vand.u32 2147483647, %v4184_v47  ;;  %vm4190_vm2 = vweird.f32 %v4184_v47  ;;  %4526 = vmatpush.bf16.msra.mxu1 %v7347_v44 }
 0xed5   :  { %8549 = vrcp.f32 %v4203_v48  ;;  %v4162_v10 = vpop.f32.mrf.mxu2  ;;  %v4175_v50 = vpop.f32.mrf.mxu3  ;;  %v4215_v18 = vand.u32 2147483648, %v4203_v48  ;;  %v4213_v35 = vand.u32 2147483647, %v4203_v48  ;;  %vm4209_vm3 = vweird.f32 %v4203_v48 }
 0xed6   :  { %v4197_v8 = vor.u32 1.1754944e-38, %v4196_v62  ;;  %vm4195_vm6 = vcmp.eq.f32.partialorder %v4194_v39, 8.507059e+37  ;;  %v8231_v10 = vld [vmem:[%s12359_s6 + $0xec] sm:$0xf]  ;;  %v7356_v50 = vld [vmem:[%s12359_s6 + $0xf8] sm:$0xf0] }
 0xed7   :  { %v4216_v16 = vor.u32 1.1754944e-38, %v4215_v18  ;;  %vm4214_vm7 = vcmp.eq.f32.partialorder %v4213_v35, 8.507059e+37  ;;  %v7359_v58 = vor.u32 %v8231_v10, %v7356_v50  ;;  %v7340_v18 = vld [vmem:[%s12359_s6 + $0xd8] sm:$0xf0]  ;;  %v8224_v39 = vld [vmem:[%s12359_s6 + $0xac] sm:$0xf0] }
 0xed8   :  { %v8546_v51 = vpop.eup %8545  ;;  %v8222_v35 = vld [vmem:[%s12359_s6 + $0xa4] sm:$0xf]  ;;  %v7268_v50 = vld [vmem:[%s12359_s6 + $0x50] sm:$0xf0] }
 0xed9   :  { %v4223_v11 = vadd.f32 1.0, %v8546_v51  ;;  %v7330_v51 = vld [vmem:[%s12359_s6 + $0xc0] sm:$0xf]  ;;  %4565 = vmatpush.bf16.msrb.mxu0 %v7359_v58  ;;  %v8213_v58 = vld [vmem:[%s12359_s6 + $0x54] sm:$0xf0] }
 0xeda   :  { %v8548_v30 = vpop.eup %8547 }
 0xedb   :  { %v8550_v40 = vpop.eup %8549  ;;  %v4186_v43 = vmul.f32 %v8548_v30, %v4184_v47  ;;  %8551 = vrcp.f32 %v4223_v11  ;;  %vm4191_vm0 = vweird.f32 %v8548_v30  ;;  %v4235_v0 = vand.u32 2147483648, %v4223_v11  ;;  %v8233_v47 = vld [vmem:[%s12359_s6 + $0xf4] sm:$0xf0] }
 0xedc   :  { %v4205_v15 = vmul.f32 %v8550_v40, %v4203_v48  ;;  %8553 = vtanh.f32 %v4179_v63  ;;  %vm4210_vm1 = vweird.f32 %v8550_v40  ;;  %vm4192_vm4 = vmor %vm4190_vm2, %vm4191_vm0  ;;  %vm4229_vm9 = vweird.f32 %v4223_v11  ;;  %v7332_v63 = vld [vmem:[%s12359_s6 + $0xd0] sm:$0xf0] }
 0xedd   :  { %v4187_v13 = vsub.f32 1.0, %v4186_v43  ;;  %vm4211_vm5 = vmor %vm4209_vm3, %vm4210_vm1  ;;  %v4233_v1 = vand.u32 2147483647, %v4223_v11  ;;  %v4236_v56 = vor.u32 1.1754944e-38, %v4235_v0  ;;  %v7351_v48 = vor.u32 %v8230_v24, %v7348_v29  ;;  %v7308_v0 = vld [vmem:[%s12359_s6 + $0x98] sm:$0xf0] }
 0xede   :  { %v4206_v12 = vsub.f32 1.0, %v4205_v15  ;;  %v7355_v49 = vor.u32 %v8233_v47, %v7354_v14  ;;  %v7338_v15 = vld [vmem:[%s12359_s6 + $0xc8] sm:$0xf]  ;;  %v7292_v24 = vld [vmem:[%s12359_s6 + $0x78] sm:$0xf0] }
 0xedf   :  { %v4188_v22 = vmul.f32 %v8548_v30, %v4187_v13  ;;  %vm4234_vm11 = vcmp.eq.f32.partialorder %v4233_v1, 8.507059e+37  ;;  %4539 = vmatpush.bf16.msra.mxu2 %v7351_v48  ;;  %v8229_v13 = vld [vmem:[%s12359_s6 + $0xd4] sm:$0xf0]  ;;  %v7266_v47 = vld [vmem:[%s12359_s6 + $0x40] sm:$0xf]  ;;  %v7295_v10 = vor.u32 %v8215_v20, %v7292_v24 }
 0xee0   :  { %v4207_v3 = vmul.f32 %v8550_v40, %v4206_v12  ;;  %4552 = vmatpush.bf16.msra.mxu3 %v7355_v49  ;;  %v8227_v12 = vld [vmem:[%s12359_s6 + $0xcc] sm:$0xf]  ;;  %v7339_v62 = vor.u32 %v8229_v13, %v7338_v15  ;;  %v8212_v48 = vld [vmem:[%s12359_s6 + $0x4c] sm:$0xf0]  ;;  %v8210_v49 = vld [vmem:[%s12359_s6 + $0x44] sm:$0xf] }
 0xee1   :  { %v8552_v5 = vpop.eup %8551  ;;  %v4189_v7 = vadd.f32 %v8548_v30, %v4188_v22  ;;  %v7314_v22 = vld [vmem:[%s12359_s6 + $0xa0] sm:$0xf]  ;;  %v8208_v13 = vld [vmem:[%s12359_s6 + $0x2c] sm:$0xf0] }
 0xee2   :  { %v4208_v9 = vadd.f32 %v8550_v40, %v4207_v3  ;;  %v4225_v27 = vmul.f32 %v8552_v5, %v4223_v11  ;;  %v8554_v4 = vpop.eup %8553  ;;  %vm4230_vm8 = vweird.f32 %v8552_v5  ;;  %v8228_v11 = vld [vmem:[%s12359_s6 + $0xcc] sm:$0xf0]  ;;  %v7343_v3 = vor.u32 %v8227_v12, %v7340_v18  ;;  %v7250_v15 = vld [vmem:[%s12359_s6 + $0x20] sm:$0xf]  ;;  %v8206_v12 = vld [vmem:[%s12359_s6 + $0x24] sm:$0xf] }
 0xee3   :  { %v4193_v21 = vsel %vm4192_vm4, %v8548_v30, %v4189_v7  ;;  %vm4231_vm10 = vmor %vm4229_vm9, %vm4230_vm8  ;;  %v8226_v30 = vld [vmem:[%s12359_s6 + $0xc4] sm:$0xf]  ;;  %v7322_v7 = vld [vmem:[%s12359_s6 + $0xa8] sm:$0xf] }
 0xee4   :  { %v4198_v28 = vsel %vm4195_vm6, %v4197_v8, %v4193_v21  ;;  %v4212_v32 = vsel %vm4211_vm5, %v8550_v40, %v4208_v9  ;;  %v4226_v34 = vsub.f32 1.0, %v4225_v27  ;;  %v7331_v40 = vor.u32 %v8228_v11, %v7330_v51  ;;  %v8225_v9 = vld [vmem:[%s12359_s6 + $0xb4] sm:$0xf0]  ;;  %v8223_v27 = vld [vmem:[%s12359_s6 + $0xac] sm:$0xf]  ;;  %4553 = vmatpush.bf16.msra.mxu3 %v7339_v62  ;;  %4566 = vmatpush.bf16.msrb.mxu0 %v7343_v3 }
 0xee5   :  { %v4217_v42 = vsel %vm4214_vm7, %v4216_v16, %v4212_v32  ;;  %v4240_v45 = vmul.f32 %v8554_v4, %v4198_v28  ;;  %v7335_v43 = vor.u32 %v8226_v30, %v7332_v63  ;;  %v7315_v8 = vor.u32 %v8224_v39, %v7314_v22  ;;  %v7324_v16 = vld [vmem:[%s12359_s6 + $0xb8] sm:$0xf0]  ;;  %v7298_v28 = vld [vmem:[%s12359_s6 + $0x80] sm:$0xf]  ;;  %v8220_v32 = vld [vmem:[%s12359_s6 + $0x8c] sm:$0xf0] }
 0xee6   :  { %v4239_v46 = vmul.f32 %v4217_v42, %v10958_v17  ;;  %v4227_v53 = vmul.f32 %v8552_v5, %v4226_v34  ;;  %4527 = vmatpush.bf16.msra.mxu1 %v7331_v40  ;;  %v7323_v4 = vor.u32 %v8225_v9, %v7322_v7  ;;  %v8218_v34 = vld [vmem:[%s12359_s6 + $0x84] sm:$0xf]  ;;  %v7327_v42 = vor.u32 %v8223_v27, %v7324_v16  ;;  %v7274_v51 = vld [vmem:[%s12359_s6 + $0x48] sm:$0xf]  ;;  %v8211_v11 = vld [vmem:[%s12359_s6 + $0x4c] sm:$0xf] }
 0xee7   :  { %4540 = vmatpush.bf16.msra.mxu2 %v7335_v43  ;;  %v7299_v1 = vor.u32 %v8220_v32, %v7298_v28  ;;  %v7276_v30 = vld [vmem:[%s12359_s6 + $0x58] sm:$0xf0]  ;;  %v7267_v63 = vor.u32 %v8212_v48, %v7266_v47  ;;  %v7271_v40 = vor.u32 %v8210_v49, %v7268_v50  ;;  %v7275_v43 = vor.u32 %v8213_v58, %v7274_v51  ;;  %v7252_v18 = vld [vmem:[%s12359_s6 + $0x30] sm:$0xf0]  ;;  %v7258_v22 = vld [vmem:[%s12359_s6 + $0x28] sm:$0xf] }
 0xee8   :  { %v11429_v54 = vadd.f32 %v4240_v45, %v4239_v46  ;;  %v4228_v57 = vadd.f32 %v8552_v5, %v4227_v53  ;;  %v7300_v45 = vld [vmem:[%s12359_s6 + $0x90] sm:$0xf0]  ;;  %v7306_v46 = vld [vmem:[%s12359_s6 + $0x88] sm:$0xf]  ;;  %v8221_v53 = vld [vmem:[%s12359_s6 + $0x94] sm:$0xf0]  ;;  %4554 = vmatpush.bf16.msra.mxu3 %v7323_v4  ;;  %4567 = vmatpush.bf16.msrb.mxu0 %v7327_v42  ;;  %v7279_v62 = vor.u32 %v8211_v11, %v7276_v30 }
 0xee9   :  { %v8209_v39 = vld [vmem:[%s12359_s6 + $0x34] sm:$0xf0]  ;;  %v8207_v3 = vld [vmem:[%s12359_s6 + $0x2c] sm:$0xf]  ;;  %v7234_v7 = vld [vmem:[%s12359_s6] sm:$0xf] }
 0xeea   :  { %8555 = vtanh.f32 %v11429_v54  ;;  %v4232_v19 = vsel %vm4231_vm10, %v8552_v5, %v4228_v57  ;;  %v7316_v5 = vld [vmem:[%s12359_s6 + $0xb0] sm:$0xf0]  ;;  %v8219_v57 = vld [vmem:[%s12359_s6 + $0x8c] sm:$0xf]  ;;  %4528 = vmatpush.bf16.msra.mxu1 %v7315_v8  ;;  %v7255_v8 = vor.u32 %v8206_v12, %v7252_v18  ;;  %v7259_v9 = vor.u32 %v8209_v39, %v7258_v22  ;;  %v8204_v27 = vld [vmem:[%s12359_s6 + $0xc] sm:$0xf0] }
 0xeeb   :  { %v4237_v6 = vsel %vm4234_vm11, %v4236_v56, %v4232_v19  ;;  %v7319_v21 = vor.u32 %v8222_v35, %v7316_v5  ;;  %v7303_v19 = vor.u32 %v8218_v34, %v7300_v45  ;;  %v7307_v56 = vor.u32 %v8221_v53, %v7306_v46  ;;  %v7260_v35 = vld [vmem:[%s12359_s6 + $0x38] sm:$0xf0]  ;;  %v8202_v16 = vld [vmem:[%s12359_s6 + $0x4] sm:$0xf]  ;;  %v7242_v28 = vld [vmem:[%s12359_s6 + $0x8] sm:$0xf] }
 0xeec   :  { %v7251_v5 = vor.u32 %v8208_v13, %v7250_v15  ;;  %v7263_v4 = vor.u32 %v8207_v3, %v7260_v35  ;;  %v8205_v32 = vld [vmem:[%s12359_s6 + $0x14] sm:$0xf0]  ;;  %v8203_v34 = vld [vmem:[%s12359_s6 + $0xc] sm:$0xf]  ;;  %v7244_v42 = vld [vmem:[%s12359_s6 + $0x18] sm:$0xf0]  ;;  %v7235_v53 = vor.u32 %v8204_v27, %v7234_v7 }
 0xeed   :  { %4541 = vmatpush.bf16.msra.mxu2 %v7319_v21  ;;  %4555 = vmatpush.bf16.msra.mxu3 %v7307_v56  ;;  %v7236_v21 = vld [vmem:[%s12359_s6 + $0x10] sm:$0xf0]  ;;  %v7487_v45 = vld [vmem:[%s12357_s4 + $0xe0] sm:$0xf]  ;;  %v8264_v46 = vld [vmem:[%s12357_s4 + $0xec] sm:$0xf0] }
 0xeee   :  { %4529 = vmatpush.bf16.msra.mxu1 %v7299_v1  ;;  %v7495_v1 = vld [vmem:[%s12357_s4 + $0xe8] sm:$0xf]  ;;  %v8265_v56 = vld [vmem:[%s12357_s4 + $0xf4] sm:$0xf0]  ;;  %v7471_v20 = vld [vmem:[%s12357_s4 + $0xc0] sm:$0xf] }
 0xeef   :  { %v8260_v24 = vld [vmem:[%s12357_s4 + $0xcc] sm:$0xf0]  ;;  %v7479_v48 = vld [vmem:[%s12357_s4 + $0xc8] sm:$0xf]  ;;  %v8261_v49 = vld [vmem:[%s12357_s4 + $0xd4] sm:$0xf0] }
 0xef0   :  { %v8556_v26 = vpop.eup %8555  ;;  %v7481_v50 = vld [vmem:[%s12357_s4 + $0xd8] sm:$0xf0]  ;;  %v7472_v51 = vor.u32 %v8260_v24, %v7471_v20  ;;  %v7455_v11 = vld [vmem:[%s12357_s4 + $0xa0] sm:$0xf]  ;;  %v8256_v30 = vld [vmem:[%s12357_s4 + $0xac] sm:$0xf0] }
 0xef1   :  { %v4243_v36 = vmul.f32 %v8556_v26, %v4237_v6  ;;  %v7282_v26 = vld [vmem:[%s12359_s6 + $0x60] sm:$0xf]  ;;  %v8216_v6 = vld [vmem:[%s12359_s6 + $0x6c] sm:$0xf0]  ;;  %4542 = vmatpush.bf16.msra.mxu2 %v7303_v19  ;;  %v7239_v19 = vor.u32 %v8202_v16, %v7236_v21  ;;  %v7457_v15 = vld [vmem:[%s12357_s4 + $0xb0] sm:$0xf0]  ;;  %v7456_v22 = vor.u32 %v8256_v30, %v7455_v11 }
 0xef2   :  { %v7283_v44 = vor.u32 %v8216_v6, %v7282_v26  ;;  %v8263_v26 = vld [vmem:[%s12357_s4 + $0xec] sm:$0xf]  ;;  %v7497_v6 = vld [vmem:[%s12357_s4 + $0xf8] sm:$0xf0]  ;;  %v7463_v13 = vld [vmem:[%s12357_s4 + $0xa8] sm:$0xf] }
 0xef3   :  { %v11432_v38 = vpack.c.bf16 %v4243_v36, %v4243_v36  ;;  %v8214_v36 = vld [vmem:[%s12359_s6 + $0x64] sm:$0xf]  ;;  %v7500_v47 = vor.u32 %v8263_v26, %v7497_v6  ;;  %v8257_v12 = vld [vmem:[%s12357_s4 + $0xb4] sm:$0xf0]  ;;  %v7465_v18 = vld [vmem:[%s12357_s4 + $0xb8] sm:$0xf0] }
 0xef4   :  { %4530 = vmatpush.bf16.msra.mxu1 %v7283_v44  ;;  %v8258_v44 = vld [vmem:[%s12357_s4 + $0xc4] sm:$0xf]  ;;  %v7439_v3 = vld [vmem:[%s12357_s4 + $0x80] sm:$0xf]  ;;  %v8252_v35 = vld [vmem:[%s12357_s4 + $0x8c] sm:$0xf0] }
 0xef5   :  { %4317 = vmatmul.bf16.vlgmr.msra.gmra.mxu0 %v11432_v38  ;;  %v7447_v27 = vld [vmem:[%s12357_s4 + $0x88] sm:$0xf]  ;;  %v8253_v16 = vld [vmem:[%s12357_s4 + $0x94] sm:$0xf0]  ;;  %v8251_v21 = vld [vmem:[%s12357_s4 + $0x8c] sm:$0xf] }
 0xef6   :  { %v8247_v6 = vld [vmem:[%s12357_s4 + $0x6c] sm:$0xf]  ;;  %v7409_v20 = vld [vmem:[%s12357_s4 + $0x50] sm:$0xf0]  ;;  %v7399_v11 = vld [vmem:[%s12357_s4 + $0x28] sm:$0xf] }
 0xef8   :  { %4531 = vmatpush.bf16.msra.mxu1 %v7267_v63  ;;  %v7480_v63 = vor.u32 %v8261_v49, %v7479_v48  ;;  %v7417_v48 = vld [vmem:[%s12357_s4 + $0x58] sm:$0xf0]  ;;  %v7391_v49 = vld [vmem:[%s12357_s4 + $0x20] sm:$0xf] }
 0xefc   :  { %4532 = vmatpush.bf16.msra.mxu1 %v7251_v5  ;;  %v7464_v5 = vor.u32 %v8257_v12, %v7463_v13  ;;  %v7375_v12 = vld [vmem:[%s12357_s4] sm:$0xf] }
 0xf00   :  { %4533 = vmatpush.bf16.msra.mxu1 %v7235_v53  ;;  %v8246_v53 = vld [vmem:[%s12357_s4 + $0x64] sm:$0xf] }
 0xf72   :  { %v4318_v17 = vpop.f32.mrf.mxu0 }
 0xf73   :  { %v4319_v31 = vadd.f32 %v11438_v60, %v4318_v17  ;;  %v7311_v17 = vor.u32 %v8219_v57, %v7308_v0  ;;  %v8262_v57 = vld [vmem:[%s12357_s4 + $0xe4] sm:$0xf]  ;;  %v7489_v0 = vld [vmem:[%s12357_s4 + $0xf0] sm:$0xf0] }
 0xf75   :  { %7231 = vst [vmem:[%s12362_s9 + $0x20] sm:$0xff] %v4319_v31  ;;  %v11446_v23 = vsel %vm1244_vm12, %v4319_v31, -1e+30  ;;  %v7284_v31 = vld [vmem:[%s12359_s6 + $0x70] sm:$0xf0]  ;;  %4568 = vmatpush.bf16.msrb.mxu0 %v7311_v17  ;;  %v7243_v17 = vor.u32 %v8205_v32, %v7242_v28  ;;  %v7440_v28 = vor.u32 %v8252_v35, %v7439_v3 }
 0xf76   :  { %4325 = vmax.xlane.f32.xlu2 %v11446_v23  ;;  %v7287_v29 = vor.u32 %v8214_v36, %v7284_v31  ;;  %v7247_v31 = vor.u32 %v8203_v34, %v7244_v42  ;;  %v7448_v34 = vor.u32 %v8253_v16, %v7447_v27  ;;  %v7383_v3 = vld [vmem:[%s12357_s4 + $0x8] sm:$0xf]  ;;  %v8237_v35 = vld [vmem:[%s12357_s4 + $0x14] sm:$0xf0] }
 0xf77   :  { %v7384_v27 = vor.u32 %v8237_v35, %v7383_v3  ;;  %v8266_v3 = vld [vmem:[%s12360_s7] sm:$0xff] }
 0xf78   :  { %4543 = vmatpush.bf16.msra.mxu2 %v7287_v29 }
 0xf79   :  { %4569 = vmatpush.bf16.msrb.mxu0 %v7295_v10  ;;  %v8259_v10 = vld [vmem:[%s12357_s4 + $0xcc] sm:$0xf] }
 0xf7a   :  { %v4320_v52 = vpop.f32.mrf.mxu0 }
 0xf7b   :  { %v7290_v52 = vld [vmem:[%s12359_s6 + $0x68] sm:$0xf] }
 0xf7c   :  { %v7291_v14 = vor.u32 %v8217_v61, %v7290_v52  ;;  %4544 = vmatpush.bf16.msra.mxu2 %v7271_v40  ;;  %v7488_v52 = vor.u32 %v8264_v46, %v7487_v45  ;;  %v7492_v61 = vor.u32 %v8262_v57, %v7489_v0  ;;  %v7484_v40 = vor.u32 %v8259_v10, %v7481_v50  ;;  %v7423_v45 = vld [vmem:[%s12357_s4 + $0x60] sm:$0xf]  ;;  %v8248_v46 = vld [vmem:[%s12357_s4 + $0x6c] sm:$0xf0]  ;;  %v7425_v0 = vld [vmem:[%s12357_s4 + $0x70] sm:$0xf0] }
 0xf7d   :  { %4570 = vmatpush.bf16.msrb.mxu0 %v7279_v62  ;;  %v8255_v62 = vld [vmem:[%s12357_s4 + $0xac] sm:$0xf]  ;;  %v7424_v57 = vor.u32 %v8248_v46, %v7423_v45  ;;  %v8240_v10 = vld [vmem:[%s12357_s4 + $0x2c] sm:$0xf0]  ;;  %v8273_v45 = vld [vmem:[%s12360_s7 + $0x38] sm:$0xff] }
 0xf7e   :  { %4556 = vmatpush.bf16.msra.mxu3 %v7291_v14  ;;  %v7496_v14 = vor.u32 %v8265_v56, %v7495_v1  ;;  %4795 = vmatpush.bf16.msrb.mxu1 %v7488_v52  ;;  %v7468_v7 = vor.u32 %v8255_v62, %v7465_v18  ;;  %v7431_v1 = vld [vmem:[%s12357_s4 + $0x68] sm:$0xf]  ;;  %v7428_v56 = vor.u32 %v8246_v53, %v7425_v0  ;;  %v8244_v52 = vld [vmem:[%s12357_s4 + $0x4c] sm:$0xf0]  ;;  %v8234_v18 = vld [vmem:[%s12357_s4 + $0x4] sm:$0xf] }
 0xf7f   :  { %v7392_v30 = vor.u32 %v8240_v10, %v7391_v49  ;;  %v8236_v62 = vld [vmem:[%s12357_s4 + $0xc] sm:$0xf0]  ;;  %v7372_v46 = vld [vmem:[%s12356_s3 + $0xb8] sm:$0xff] }
 0xf80   :  { %4545 = vmatpush.bf16.msra.mxu2 %v7255_v8  ;;  %v8250_v8 = vld [vmem:[%s12357_s4 + $0x84] sm:$0xf] }
 0xf81   :  { %4571 = vmatpush.bf16.msrb.mxu0 %v7263_v4  ;;  %v7449_v4 = vld [vmem:[%s12357_s4 + $0x98] sm:$0xf0] }
 0xf82   :  { %4557 = vmatpush.bf16.msra.mxu3 %v7275_v43  ;;  %v8254_v43 = vld [vmem:[%s12357_s4 + $0xa4] sm:$0xf]  ;;  %4796 = vmatpush.bf16.msrb.mxu1 %v7472_v51  ;;  %v7452_v42 = vor.u32 %v8251_v21, %v7449_v4 }
 0xf83   :  { %v7460_v39 = vor.u32 %v8254_v43, %v7457_v15  ;;  %v8238_v51 = vld [vmem:[%s12357_s4 + $0x24] sm:$0xf]  ;;  %v7401_v43 = vld [vmem:[%s12357_s4 + $0x38] sm:$0xf0] }
 0xf84   :  { %4546 = vmatpush.bf16.msra.mxu2 %v7239_v19  ;;  %v8249_v19 = vld [vmem:[%s12357_s4 + $0x74] sm:$0xf0] }
 0xf85   :  { %4572 = vmatpush.bf16.msrb.mxu0 %v7247_v31  ;;  %v7432_v26 = vor.u32 %v8249_v19, %v7431_v1 }
 0xf86   :  { %4558 = vmatpush.bf16.msra.mxu3 %v7259_v9  ;;  %v7441_v9 = vld [vmem:[%s12357_s4 + $0x90] sm:$0xf0]  ;;  %4797 = vmatpush.bf16.msrb.mxu1 %v7456_v22 }
 0xf87   :  { %v7444_v32 = vor.u32 %v8250_v8, %v7441_v9  ;;  %v7376_v8 = vor.u32 %v8236_v62, %v7375_v12  ;;  %v8267_v12 = vld [vmem:[%s12360_s7 + $0x8] sm:$0xff] }
 0xf88   :  { %4808 = vmatpush.bf16.msrb.mxu2 %v7492_v61  ;;  %v8242_v61 = vld [vmem:[%s12357_s4 + $0x44] sm:$0xf] }
 0xf89   :  { %4834 = vmatpush.bf16.msra.mxu0 %v7500_v47  ;;  %v8243_v47 = vld [vmem:[%s12357_s4 + $0x4c] sm:$0xf] }
 0xf8a   :  { %4559 = vmatpush.bf16.msra.mxu3 %v7243_v17  ;;  %4798 = vmatpush.bf16.msrb.mxu1 %v7440_v28  ;;  %v7407_v17 = vld [vmem:[%s12357_s4 + $0x40] sm:$0xf]  ;;  %v7420_v50 = vor.u32 %v8243_v47, %v7417_v48 }
 0xf8b   :  { %v7408_v24 = vor.u32 %v8244_v52, %v7407_v17  ;;  %v8271_v52 = vld [vmem:[%s12360_s7 + $0x28] sm:$0xff] }
 0xf8d   :  { %4835 = vmatpush.bf16.msra.mxu0 %v7484_v40  ;;  %v8239_v40 = vld [vmem:[%s12357_s4 + $0x2c] sm:$0xf] }
 0xf8e   :  { %4821 = vmatpush.bf16.msrb.mxu3 %v7496_v14  ;;  %4799 = vmatpush.bf16.msrb.mxu1 %v7424_v57  ;;  %v8245_v14 = vld [vmem:[%s12357_s4 + $0x54] sm:$0xf0]  ;;  %v7404_v22 = vor.u32 %v8239_v40, %v7401_v43  ;;  %v8268_v43 = vld [vmem:[%s12360_s7 + $0x10] sm:$0xff] }
 0xf91   :  { %4836 = vmatpush.bf16.msra.mxu0 %v7468_v7  ;;  %v7385_v7 = vld [vmem:[%s12357_s4 + $0x18] sm:$0xf0] }
 0xf92   :  { %4822 = vmatpush.bf16.msrb.mxu3 %v7480_v63  ;;  %4800 = vmatpush.bf16.msrb.mxu1 %v7408_v24  ;;  %v8241_v63 = vld [vmem:[%s12357_s4 + $0x34] sm:$0xf0] }
 0xf93   :  { %v7400_v13 = vor.u32 %v8241_v63, %v7399_v11  ;;  %v8269_v11 = vld [vmem:[%s12360_s7 + $0x18] sm:$0xff] }
 0xf95   :  { %4837 = vmatpush.bf16.msra.mxu0 %v7452_v42  ;;  %v4590_v42 = vstv %s4589_s23 }
 0xf96   :  { %4823 = vmatpush.bf16.msrb.mxu3 %v7464_v5  ;;  %v8235_v5 = vld [vmem:[%s12357_s4 + $0xc] sm:$0xf]  ;;  %4801 = vmatpush.bf16.msrb.mxu1 %v7392_v30 }
 0xf97   :  { %v7388_v16 = vor.u32 %v8235_v5, %v7385_v7 }
 0xf9a   :  { %4824 = vmatpush.bf16.msrb.mxu3 %v7448_v34  ;;  %4802 = vmatpush.bf16.msrb.mxu1 %v7376_v8  ;;  %v4584_v34 = vstv %s7368_s22 }
 0xf9b   :  { %v4588_v1 = vmul.f32 %v7372_v46, %v4584_v34 }
 0xf9e   :  { %4825 = vmatpush.bf16.msrb.mxu3 %v7432_v26  ;;  %v8272_v26 = vld [vmem:[%s12360_s7 + $0x30] sm:$0xff] }
 0xfe9   :  { %v4326_v36 = vpop.xlane.xlu2 %4325 }
 0xfea   :  { %vm4327_vm13 = vcmp.eq.f32.partialorder %v11446_v23, %v4326_v36  ;;  %v7473_v23 = vld [vmem:[%s12357_s4 + $0xd0] sm:$0xf0]  ;;  %v7433_v36 = vld [vmem:[%s12357_s4 + $0x78] sm:$0xf0] }
 0xfeb   :  { %v4328_v29 = vsel %vm4327_vm13, %v9788_v37, 128.0  ;;  %v7476_v58 = vor.u32 %v8258_v44, %v7473_v23  ;;  %v7436_v31 = vor.u32 %v8247_v6, %v7433_v36  ;;  %v7412_v44 = vor.u32 %v8242_v61, %v7409_v20  ;;  %v7370_v36 = vld [vmem:[%s12356_s3 + $0xa8] sm:$0xff] }
 0xfec   :  { %4329 = vmin.xlane.f32.xlu0 %v4328_v29  ;;  %v7415_v29 = vld [vmem:[%s12357_s4 + $0x48] sm:$0xf]  ;;  %v4586_v61 = vmul.f32 %v7370_v36, %v4584_v34 }
 0xfed   :  { %4809 = vmatpush.bf16.msrb.mxu2 %v7476_v58  ;;  %4838 = vmatpush.bf16.msra.mxu0 %v7436_v31  ;;  %v7416_v23 = vor.u32 %v8245_v14, %v7415_v29  ;;  %v7393_v58 = vld [vmem:[%s12357_s4 + $0x30] sm:$0xf0] }
 0xfee   :  { %v7396_v15 = vor.u32 %v8238_v51, %v7393_v58 }
 0xfef   :  { %4826 = vmatpush.bf16.msrb.mxu3 %v7416_v23  ;;  %v8270_v23 = vld [vmem:[%s12360_s7 + $0x20] sm:$0xff] }
 0xff1   :  { %4810 = vmatpush.bf16.msrb.mxu2 %v7460_v39  ;;  %4839 = vmatpush.bf16.msra.mxu0 %v7420_v50  ;;  %v7377_v39 = vld [vmem:[%s12357_s4 + $0x10] sm:$0xf0] }
 0xff2   :  { %v7380_v9 = vor.u32 %v8234_v18, %v7377_v39 }
 0xff3   :  { %4827 = vmatpush.bf16.msrb.mxu3 %v7400_v13 }
 0xff5   :  { %4811 = vmatpush.bf16.msrb.mxu2 %v7444_v32  ;;  %4840 = vmatpush.bf16.msra.mxu0 %v7404_v22  ;;  %v7369_v32 = vld [vmem:[%s12356_s3 + $0xa0] sm:$0xff]  ;;  %v7371_v22 = vld [vmem:[%s12356_s3 + $0xb0] sm:$0xff] }
 0xff6   :  { %v4587_v7 = vmul.f32 %v7371_v22, %v4584_v34  ;;  %v8303_v22 = vld [vmem:[%s12359_s6 + $0xec] sm:$0xf] }
 0xff7   :  { %4828 = vmatpush.bf16.msrb.mxu3 %v7384_v27 }
 0xff9   :  { %4812 = vmatpush.bf16.msrb.mxu2 %v7428_v56  ;;  %4841 = vmatpush.bf16.msra.mxu0 %v7388_v16 }
 0xffd   :  { %4813 = vmatpush.bf16.msrb.mxu2 %v7412_v44 }
0x1001   :  { %4814 = vmatpush.bf16.msrb.mxu2 %v7396_v15 }
0x1005   :  { %4815 = vmatpush.bf16.msrb.mxu2 %v7380_v9 }
0x105f   :  { %v4330_v21 = vpop.xlane.xlu0 %4329 }
0x1060   :  { %vm4331_vm14 = vcmp.eq.f32.partialorder %v9788_v37, %v4330_v21 }
0x1061   :  { %vm7360_vm15 = vmpackc.low %vm4331_vm14, %vm4331_vm14 }
0x1062   :  { %7361 = vmatmul.msk.bf16.vlgmr.msra.gmra.mxu1 %vm7360_vm15, %v8620_v2  ;;  %7363 = vmatmul.msk.bf16.vlgmr.msra.gmra.mxu2 %vm7360_vm15, %v8620_v2 }
0x1063   :  { %7365 = vmatmul.msk.bf16.vlgmr.msra.gmra.mxu3 %vm7360_vm15, %v8620_v2  ;;  %7367 = vmatmul.msk.bf16.vlgmr.msrb.gmra.mxu0 %vm7360_vm15, %v8620_v2 }
0x1064   :  { %4979 = vmatpush.bf16.msra.mxu1 %v8273_v45 }
0x1068   :  { %4980 = vmatpush.bf16.msra.mxu1 %v8272_v26 }
0x106c   :  { %4981 = vmatpush.bf16.msra.mxu1 %v8271_v52 }
0x1070   :  { %4982 = vmatpush.bf16.msra.mxu1 %v8270_v23 }
0x1072   :  { %4803 = vmatmul.bf16.vlgmr.msrb.gmra.mxu1 %v11432_v38  ;;  %4816 = vmatmul.bf16.vlgmr.msrb.gmra.mxu2 %v11432_v38 }
0x1073   :  { %4829 = vmatmul.bf16.vlgmr.msrb.gmra.mxu3 %v11432_v38  ;;  %4842 = vmatmul.bf16.vlgmr.msra.gmra.mxu0 %v11432_v38  ;;  %v4585_v38 = vmul.f32 %v7369_v32, %v4584_v34 }
0x1074   :  { %4983 = vmatpush.bf16.msra.mxu1 %v8269_v11 }
0x1078   :  { %4984 = vmatpush.bf16.msra.mxu1 %v8268_v43  ;;  %v7651_v43 = vld [vmem:[%s12359_s6 + $0xe0] sm:$0xf] }
0x107c   :  { %4985 = vmatpush.bf16.msra.mxu1 %v8267_v12  ;;  %v7659_v12 = vld [vmem:[%s12359_s6 + $0xe8] sm:$0xf] }
0x1080   :  { %4986 = vmatpush.bf16.msra.mxu1 %v8266_v3  ;;  %v7635_v3 = vld [vmem:[%s12359_s6 + $0xc0] sm:$0xf] }
0x10df   :  { %v4535_v4 = vpop.f32.mrf.mxu1 }
0x10e0   :  { %v4574_v28 = vpop.f32.mrf.mxu0  ;;  %v4591_v57 = vmul.f32 %v4590_v42, %v4535_v4 }
0x10e1   :  { %v4594_v19 = vmul.f32 %v4590_v42, %v4574_v28 }
0x10e2   :  { %v4595_v17 = vadd.f32 %v4591_v57, %v4585_v38 }
0x10e3   :  { %v4598_v31 = vadd.f32 %v4594_v19, %v4588_v1 }
0x10e4   :  { %v4599_v29 = vadd.f32 %v11392_v33, %v4595_v17 }
0x10e5   :  { %v4548_v53 = vpop.f32.mrf.mxu2  ;;  %v4602_v47 = vadd.f32 %v11413_v25, %v4598_v31 }
0x10e6   :  { %v4561_v0 = vpop.f32.mrf.mxu3  ;;  %v4592_v20 = vmul.f32 %v4590_v42, %v4548_v53 }
0x10e7   :  { %v4537_v56 = vpop.f32.mrf.mxu1  ;;  %v4593_v8 = vmul.f32 %v4590_v42, %v4561_v0 }
0x10e8   :  { %v4576_v6 = vpop.f32.mrf.mxu0  ;;  %v4596_v48 = vadd.f32 %v4592_v20, %v4586_v61 }
0x10e9   :  { %v4597_v21 = vadd.f32 %v4593_v8, %v4587_v7  ;;  %v8298_v7 = vld [vmem:[%s12359_s6 + $0xc4] sm:$0xf]  ;;  %v7637_v8 = vld [vmem:[%s12359_s6 + $0xd0] sm:$0xf0] }
0x10ea   :  { %v4600_v33 = vadd.f32 %v11398_v41, %v4596_v48 }
0x10eb   :  { %v4601_v32 = vadd.f32 %v11425_v55, %v4597_v21  ;;  %v8301_v21 = vld [vmem:[%s12359_s6 + $0xd4] sm:$0xf0] }
0x10ed   :  { %v4550_v24 = vpop.f32.mrf.mxu2 }
0x10ee   :  { %v4563_v44 = vpop.f32.mrf.mxu3 }
0x10ef   :  { %v4804_v14 = vpop.f32.mrf.mxu1 }
0x10f0   :  { %v4847_v49 = vadd.f32 %v4804_v14, %v4599_v29  ;;  %v4843_v10 = vpop.f32.mrf.mxu0 }
0x10f1   :  { %v4850_v50 = vadd.f32 %v4843_v10, %v4602_v47 }
0x10f2   :  { %v7501_v51 = vmul.f32 -1.442695, %v4847_v49 }
0x10f3   :  { %v7503_v58 = vmul.f32 -1.442695, %v4850_v50 }
0x10f4   :  { %8557 = vpow2.f32 %v7501_v51 }
0x10f5   :  { %8559 = vpow2.f32 %v7503_v58  ;;  %v4817_v25 = vpop.f32.mrf.mxu2 }
0x10f6   :  { %v4848_v30 = vadd.f32 %v4817_v25, %v4600_v33  ;;  %v4830_v63 = vpop.f32.mrf.mxu3 }
0x10f7   :  { %v4806_v40 = vpop.f32.mrf.mxu1  ;;  %v4849_v38 = vadd.f32 %v4830_v63, %v4601_v32  ;;  %v7645_v32 = vld [vmem:[%s12359_s6 + $0xd8] sm:$0xf0] }
0x10f8   :  { %v7502_v15 = vmul.f32 -1.442695, %v4848_v30  ;;  %v4845_v13 = vpop.f32.mrf.mxu0 }
0x10fa   :  { %v8558_v62 = vpop.eup %8557  ;;  %8561 = vpow2.f32 %v7502_v15  ;;  %v8304_v15 = vld [vmem:[%s12359_s6 + $0xec] sm:$0xf0] }
0x10fb   :  { %v8560_v41 = vpop.eup %8559  ;;  %v4854_v18 = vadd.f32 1.0, %v8558_v62  ;;  %v7652_v13 = vor.u32 %v8304_v15, %v7651_v43  ;;  %v8305_v62 = vld [vmem:[%s12359_s6 + $0xf4] sm:$0xf0]  ;;  %v7571_v43 = vld [vmem:[%s12359_s6 + $0x40] sm:$0xf] }
0x10fc   :  { %v4893_v35 = vadd.f32 1.0, %v8560_v41  ;;  %v8284_v15 = vld [vmem:[%s12359_s6 + $0x4c] sm:$0xf0] }
0x10fd   :  { %8563 = vrcp.f32 %v4854_v18  ;;  %v4819_v39 = vpop.f32.mrf.mxu2  ;;  %v4866_v42 = vand.u32 2147483648, %v4854_v18  ;;  %vm4860_vm1 = vweird.f32 %v4854_v18  ;;  %v4864_v19 = vand.u32 2147483647, %v4854_v18  ;;  %5196 = vmatpush.bf16.msra.mxu2 %v7652_v13 }
0x10fe   :  { %v4832_v5 = vpop.f32.mrf.mxu3  ;;  %8565 = vrcp.f32 %v4893_v35  ;;  %v4905_v49 = vand.u32 2147483648, %v4893_v35  ;;  %vm4899_vm9 = vweird.f32 %v4893_v35  ;;  %v4903_v10 = vand.u32 2147483647, %v4893_v35  ;;  %v7661_v39 = vld [vmem:[%s12359_s6 + $0xf8] sm:$0xf0] }
0x10ff   :  { %v4867_v17 = vor.u32 1.1754944e-38, %v4866_v42  ;;  %vm4865_vm5 = vcmp.eq.f32.partialorder %v4864_v19, 8.507059e+37  ;;  %v8300_v5 = vld [vmem:[%s12359_s6 + $0xcc] sm:$0xf0]  ;;  %v8297_v42 = vld [vmem:[%s12359_s6 + $0xb4] sm:$0xf0] }
0x1100   :  { %v8562_v9 = vpop.eup %8561  ;;  %v4906_v51 = vor.u32 1.1754944e-38, %v4905_v49  ;;  %vm4904_vm11 = vcmp.eq.f32.partialorder %v4903_v10, 8.507059e+37  ;;  %v7629_v19 = vld [vmem:[%s12359_s6 + $0xb8] sm:$0xf0]  ;;  %v8286_v49 = vld [vmem:[%s12359_s6 + $0x64] sm:$0xf] }
0x1101   :  { %v4873_v27 = vadd.f32 1.0, %v8562_v9  ;;  %v7636_v9 = vor.u32 %v8300_v5, %v7635_v3  ;;  %v8280_v5 = vld [vmem:[%s12359_s6 + $0x2c] sm:$0xf0] }
0x1103   :  { %v8564_v16 = vpop.eup %8563  ;;  %8567 = vrcp.f32 %v4873_v27  ;;  %v4885_v56 = vand.u32 2147483648, %v4873_v27  ;;  %v4883_v36 = vand.u32 2147483647, %v4873_v27  ;;  %vm4879_vm4 = vweird.f32 %v4873_v27  ;;  %5197 = vmatpush.bf16.msra.mxu2 %v7636_v9  ;;  %v7557_v9 = vld [vmem:[%s12359_s6 + $0x30] sm:$0xf0] }
0x1104   :  { %v4856_v4 = vmul.f32 %v8564_v16, %v4854_v18  ;;  %v8566_v45 = vpop.eup %8565  ;;  %vm4861_vm0 = vweird.f32 %v8564_v16  ;;  %8569 = vtanh.f32 %v4849_v38  ;;  %v7660_v18 = vor.u32 %v8305_v62, %v7659_v12  ;;  %v8294_v38 = vld [vmem:[%s12359_s6 + $0xa4] sm:$0xf]  ;;  %v7579_v12 = vld [vmem:[%s12359_s6 + $0x48] sm:$0xf]  ;;  %v8285_v62 = vld [vmem:[%s12359_s6 + $0x54] sm:$0xf0] }
0x1105   :  { %v4895_v34 = vmul.f32 %v8566_v45, %v4893_v35  ;;  %vm4862_vm2 = vmor %vm4860_vm1, %vm4861_vm0  ;;  %v4886_v52 = vor.u32 1.1754944e-38, %v4885_v56  ;;  %vm4884_vm7 = vcmp.eq.f32.partialorder %v4883_v36, 8.507059e+37  ;;  %vm4900_vm8 = vweird.f32 %v8566_v45  ;;  %v8292_v36 = vld [vmem:[%s12359_s6 + $0x8c] sm:$0xf0] }
0x1106   :  { %v4857_v28 = vsub.f32 1.0, %v4856_v4  ;;  %vm4901_vm10 = vmor %vm4899_vm9, %vm4900_vm8  ;;  %v7664_v35 = vor.u32 %v8303_v22, %v7661_v39  ;;  %5222 = vmatpush.bf16.msrb.mxu0 %v7660_v18  ;;  %v8299_v4 = vld [vmem:[%s12359_s6 + $0xcc] sm:$0xf]  ;;  %v7581_v18 = vld [vmem:[%s12359_s6 + $0x58] sm:$0xf0]  ;;  %v7572_v22 = vor.u32 %v8284_v15, %v7571_v43  ;;  %v7580_v3 = vor.u32 %v8285_v62, %v7579_v12 }
0x1107   :  { %v4896_v55 = vsub.f32 1.0, %v4895_v34  ;;  %v7760_v15 = vld [vmem:[%s12357_s4 + $0xa0] sm:$0xf]  ;;  %v8326_v12 = vld [vmem:[%s12357_s4 + $0xa4] sm:$0xf] }
0x1108   :  { %v4858_v46 = vmul.f32 %v8564_v16, %v4857_v28  ;;  %5235 = vmatpush.bf16.msrb.mxu1 %v7664_v35  ;;  %v7555_v35 = vld [vmem:[%s12359_s6 + $0x20] sm:$0xf]  ;;  %v7762_v62 = vld [vmem:[%s12357_s4 + $0xb0] sm:$0xf0] }
0x1109   :  { %v8568_v53 = vpop.eup %8567  ;;  %v4897_v44 = vmul.f32 %v8566_v45, %v4896_v55  ;;  %v8290_v55 = vld [vmem:[%s12359_s6 + $0x84] sm:$0xf] }
0x110a   :  { %v4875_v57 = vmul.f32 %v8568_v53, %v4873_v27  ;;  %v4859_v1 = vadd.f32 %v8564_v16, %v4858_v46  ;;  %vm4880_vm3 = vweird.f32 %v8568_v53  ;;  %v8570_v24 = vpop.eup %8569  ;;  %v7640_v27 = vor.u32 %v8298_v7, %v7637_v8  ;;  %v8296_v46 = vld [vmem:[%s12359_s6 + $0xac] sm:$0xf0]  ;;  %v8278_v7 = vld [vmem:[%s12359_s6 + $0x24] sm:$0xf] }
0x110b   :  { %vm4881_vm6 = vmor %vm4879_vm4, %vm4880_vm3  ;;  %v4898_v48 = vadd.f32 %v8566_v45, %v4897_v44 }
0x110c   :  { %v4876_v0 = vsub.f32 1.0, %v4875_v57  ;;  %v4863_v6 = vsel %vm4862_vm2, %v8564_v16, %v4859_v1  ;;  %v7643_v16 = vld [vmem:[%s12359_s6 + $0xc8] sm:$0xf]  ;;  %v7621_v57 = vld [vmem:[%s12359_s6 + $0xb0] sm:$0xf0] }
0x110d   :  { %v4868_v61 = vsel %vm4865_vm5, %v4867_v17, %v4863_v6  ;;  %v4902_v50 = vsel %vm4901_vm10, %v8566_v45, %v4898_v48  ;;  %v7644_v28 = vor.u32 %v8301_v21, %v7643_v16  ;;  %v7619_v45 = vld [vmem:[%s12359_s6 + $0xa0] sm:$0xf]  ;;  %v7627_v1 = vld [vmem:[%s12359_s6 + $0xa8] sm:$0xf]  ;;  %v7624_v56 = vor.u32 %v8294_v38, %v7621_v57  ;;  %v8288_v48 = vld [vmem:[%s12359_s6 + $0x6c] sm:$0xf0] }
0x110e   :  { %v4877_v26 = vmul.f32 %v8568_v53, %v4876_v0  ;;  %v4910_v47 = vmul.f32 %v8570_v24, %v4868_v61  ;;  %v4907_v11 = vsel %vm4904_vm11, %v4906_v51, %v4902_v50  ;;  %v7620_v34 = vor.u32 %v8296_v46, %v7619_v45  ;;  %v8295_v0 = vld [vmem:[%s12359_s6 + $0xac] sm:$0xf]  ;;  %v7603_v6 = vld [vmem:[%s12359_s6 + $0x80] sm:$0xf]  ;;  %v8293_v61 = vld [vmem:[%s12359_s6 + $0x94] sm:$0xf0] }
0x110f   :  { %5223 = vmatpush.bf16.msrb.mxu0 %v7644_v28  ;;  %v7632_v17 = vor.u32 %v8295_v0, %v7629_v19  ;;  %v7613_v24 = vld [vmem:[%s12359_s6 + $0x98] sm:$0xf0]  ;;  %v7604_v44 = vor.u32 %v8292_v36, %v7603_v6  ;;  %v7589_v50 = vld [vmem:[%s12359_s6 + $0x70] sm:$0xf0]  ;;  %v7595_v51 = vld [vmem:[%s12359_s6 + $0x68] sm:$0xf]  ;;  %v7556_v28 = vor.u32 %v8280_v5, %v7555_v35  ;;  %v7560_v45 = vor.u32 %v8278_v7, %v7557_v9 }
0x1110   :  { %v4878_v31 = vadd.f32 %v8568_v53, %v4877_v26  ;;  %v7628_v26 = vor.u32 %v8297_v42, %v7627_v1  ;;  %5198 = vmatpush.bf16.msra.mxu2 %v7620_v34  ;;  %v8281_v16 = vld [vmem:[%s12359_s6 + $0x34] sm:$0xf0]  ;;  %v8279_v21 = vld [vmem:[%s12359_s6 + $0x2c] sm:$0xf]  ;;  %v8274_v38 = vld [vmem:[%s12359_s6 + $0x4] sm:$0xf]  ;;  %v7765_v35 = vor.u32 %v8326_v12, %v7762_v62 }
0x1111   :  { %v7541_v57 = vld [vmem:[%s12359_s6 + $0x10] sm:$0xf0]  ;;  %v7547_v34 = vld [vmem:[%s12359_s6 + $0x8] sm:$0xf]  ;;  %v8277_v42 = vld [vmem:[%s12359_s6 + $0x14] sm:$0xf0] }
0x1112   :  { %v4882_v20 = vsel %vm4881_vm6, %v8568_v53, %v4878_v31  ;;  %v7648_v53 = vor.u32 %v8299_v4, %v7645_v32  ;;  %v7605_v31 = vld [vmem:[%s12359_s6 + $0x90] sm:$0xf0]  ;;  %v7565_v4 = vld [vmem:[%s12359_s6 + $0x38] sm:$0xf0]  ;;  %v7539_v32 = vld [vmem:[%s12359_s6] sm:$0xf] }
0x1113   :  { %v4887_v29 = vsel %vm4884_vm7, %v4886_v52, %v4882_v20  ;;  %v7611_v52 = vld [vmem:[%s12359_s6 + $0x88] sm:$0xf]  ;;  %v8291_v20 = vld [vmem:[%s12359_s6 + $0x8c] sm:$0xf]  ;;  %5224 = vmatpush.bf16.msrb.mxu0 %v7628_v26  ;;  %v7568_v1 = vor.u32 %v8279_v21, %v7565_v4  ;;  %v7549_v19 = vld [vmem:[%s12359_s6 + $0x18] sm:$0xf0] }
0x1114   :  { %v4909_v14 = vmul.f32 %v4887_v29, %v11429_v54  ;;  %5236 = vmatpush.bf16.msrb.mxu1 %v7648_v53  ;;  %v7608_v29 = vor.u32 %v8290_v55, %v7605_v31  ;;  %v7616_v10 = vor.u32 %v8291_v20, %v7613_v24  ;;  %5199 = vmatpush.bf16.msra.mxu2 %v7604_v44  ;;  %v8276_v53 = vld [vmem:[%s12359_s6 + $0xc] sm:$0xf0]  ;;  %v8275_v0 = vld [vmem:[%s12359_s6 + $0xc] sm:$0xf]  ;;  %v8334_v36 = vld [vmem:[%s12357_s4 + $0xe4] sm:$0xf] }
0x1115   :  { %v8336_v26 = vld [vmem:[%s12357_s4 + $0xec] sm:$0xf0]  ;;  %v7540_v6 = vor.u32 %v8276_v53, %v7539_v32  ;;  %v7794_v55 = vld [vmem:[%s12357_s4 + $0xf0] sm:$0xf0]  ;;  %v7544_v31 = vor.u32 %v8274_v38, %v7541_v57  ;;  %v7802_v20 = vld [vmem:[%s12357_s4 + $0xf8] sm:$0xf0]  ;;  %v7548_v44 = vor.u32 %v8277_v42, %v7547_v34 }
0x1116   :  { %v11885_v23 = vadd.f32 %v4910_v47, %v4909_v14  ;;  %v7612_v14 = vor.u32 %v8293_v61, %v7611_v52  ;;  %v7587_v47 = vld [vmem:[%s12359_s6 + $0x60] sm:$0xf]  ;;  %v8337_v52 = vld [vmem:[%s12357_s4 + $0xf4] sm:$0xf0]  ;;  %v8335_v61 = vld [vmem:[%s12357_s4 + $0xec] sm:$0xf] }
0x1117   :  { %v7744_v5 = vld [vmem:[%s12357_s4 + $0x80] sm:$0xf]  ;;  %v8324_v7 = vld [vmem:[%s12357_s4 + $0x8c] sm:$0xf0]  ;;  %v7752_v21 = vld [vmem:[%s12357_s4 + $0x88] sm:$0xf] }
0x1118   :  { %8571 = vtanh.f32 %v11885_v23  ;;  %5237 = vmatpush.bf16.msrb.mxu1 %v7632_v17  ;;  %5225 = vmatpush.bf16.msrb.mxu0 %v7612_v14  ;;  %v7800_v17 = vld [vmem:[%s12357_s4 + $0xe8] sm:$0xf]  ;;  %v8325_v4 = vld [vmem:[%s12357_s4 + $0x94] sm:$0xf0]  ;;  %v7754_v32 = vld [vmem:[%s12357_s4 + $0x98] sm:$0xf0] }
0x1119   :  { %v7753_v53 = vor.u32 %v8325_v4, %v7752_v21  ;;  %v7728_v57 = vld [vmem:[%s12357_s4 + $0x60] sm:$0xf]  ;;  %v8318_v34 = vld [vmem:[%s12357_s4 + $0x64] sm:$0xf]  ;;  %v7682_v62 = vld [vmem:[%s12357_s4 + $0x10] sm:$0xf0] }
0x111c   :  { %5238 = vmatpush.bf16.msrb.mxu1 %v7616_v10  ;;  %v8330_v10 = vld [vmem:[%s12357_s4 + $0xc4] sm:$0xf] }
0x111e   :  { %v8572_v58 = vpop.eup %8571 }
0x111f   :  { %v4913_v33 = vmul.f32 %v8572_v58, %v4907_v11  ;;  %v8289_v58 = vld [vmem:[%s12359_s6 + $0x74] sm:$0xf0]  ;;  %v8287_v11 = vld [vmem:[%s12359_s6 + $0x6c] sm:$0xf] }
0x1121   :  { %v11888_v25 = vpack.c.bf16 %v4913_v33, %v4913_v33  ;;  %v7597_v33 = vld [vmem:[%s12359_s6 + $0x78] sm:$0xf0] }
0x1122   :  { %v7600_v13 = vor.u32 %v8287_v11, %v7597_v33  ;;  %v7784_v11 = vld [vmem:[%s12357_s4 + $0xc8] sm:$0xf]  ;;  %v8333_v33 = vld [vmem:[%s12357_s4 + $0xd4] sm:$0xf0] }
0x1123   :  { %4987 = vmatmul.bf16.vlgmr.msra.gmra.mxu1 %v11888_v25 }
0x1124   :  { %5239 = vmatpush.bf16.msrb.mxu1 %v7600_v13  ;;  %v7785_v13 = vor.u32 %v8333_v33, %v7784_v11  ;;  %v7704_v11 = vld [vmem:[%s12357_s4 + $0x28] sm:$0xf] }
0x11a0   :  { %v4988_v54 = vpop.f32.mrf.mxu1 }
0x11a1   :  { %v4989_v30 = vadd.f32 %v11438_v60, %v4988_v54  ;;  %v8302_v60 = vld [vmem:[%s12359_s6 + $0xe4] sm:$0xf]  ;;  %v7588_v54 = vor.u32 %v8288_v48, %v7587_v47  ;;  %v7797_v47 = vor.u32 %v8334_v36, %v7794_v55  ;;  %v7776_v48 = vld [vmem:[%s12357_s4 + $0xc0] sm:$0xf]  ;;  %v8319_v36 = vld [vmem:[%s12357_s4 + $0x6c] sm:$0xf] }
0x11a2   :  { %v7656_v41 = vor.u32 %v8302_v60, %v7653_v59  ;;  %v8282_v60 = vld [vmem:[%s12359_s6 + $0x44] sm:$0xf]  ;;  %v7573_v59 = vld [vmem:[%s12359_s6 + $0x50] sm:$0xf0]  ;;  %v7738_v55 = vld [vmem:[%s12357_s4 + $0x78] sm:$0xf0] }
0x11a3   :  { %7536 = vst [vmem:[%s12362_s9 + $0x28] sm:$0xff] %v4989_v30  ;;  %v11897_v63 = vsel %vm1244_vm12, %v4989_v30, -1e+30  ;;  %v7592_v30 = vor.u32 %v8286_v49, %v7589_v50  ;;  %5200 = vmatpush.bf16.msra.mxu2 %v7588_v54  ;;  %v7576_v39 = vor.u32 %v8282_v60, %v7573_v59  ;;  %v8332_v49 = vld [vmem:[%s12357_s4 + $0xcc] sm:$0xf0] }
0x11a4   :  { %4995 = vmax.xlane.f32.xlu1 %v11897_v63  ;;  %5209 = vmatpush.bf16.msra.mxu3 %v7656_v41  ;;  %v8283_v41 = vld [vmem:[%s12359_s6 + $0x4c] sm:$0xf]  ;;  %v8328_v60 = vld [vmem:[%s12357_s4 + $0xac] sm:$0xf0] }
0x11a5   :  { %v7584_v8 = vor.u32 %v8283_v41, %v7581_v18  ;;  %v8331_v54 = vld [vmem:[%s12357_s4 + $0xcc] sm:$0xf]  ;;  %v7768_v41 = vld [vmem:[%s12357_s4 + $0xa8] sm:$0xf]  ;;  %v8329_v18 = vld [vmem:[%s12357_s4 + $0xb4] sm:$0xf0] }
0x11a7   :  { %5201 = vmatpush.bf16.msra.mxu2 %v7572_v22  ;;  %5240 = vmatpush.bf16.msrb.mxu1 %v7584_v8  ;;  %v8327_v22 = vld [vmem:[%s12357_s4 + $0xac] sm:$0xf]  ;;  %v7769_v8 = vor.u32 %v8329_v18, %v7768_v41  ;;  %v7688_v41 = vld [vmem:[%s12357_s4 + $0x8] sm:$0xf]  ;;  %v8309_v18 = vld [vmem:[%s12357_s4 + $0x14] sm:$0xf0] }
0x11a8   :  { %v4990_v40 = vpop.f32.mrf.mxu1  ;;  %5210 = vmatpush.bf16.msra.mxu3 %v7640_v27  ;;  %v7563_v27 = vld [vmem:[%s12359_s6 + $0x28] sm:$0xf] }
0x11a9   :  { %v7596_v40 = vor.u32 %v8289_v58, %v7595_v51  ;;  %v7564_v46 = vor.u32 %v8281_v16, %v7563_v27  ;;  %v7801_v51 = vor.u32 %v8337_v52, %v7800_v17  ;;  %v7805_v58 = vor.u32 %v8335_v61, %v7802_v20  ;;  %v8322_v27 = vld [vmem:[%s12357_s4 + $0x84] sm:$0xf]  ;;  %v7746_v16 = vld [vmem:[%s12357_s4 + $0x90] sm:$0xf0]  ;;  %v7712_v17 = vld [vmem:[%s12357_s4 + $0x40] sm:$0xf] }
0x11aa   :  { %v8316_v52 = vld [vmem:[%s12357_s4 + $0x4c] sm:$0xf0]  ;;  %v8314_v61 = vld [vmem:[%s12357_s4 + $0x44] sm:$0xf]  ;;  %v7714_v20 = vld [vmem:[%s12357_s4 + $0x50] sm:$0xf0] }
0x11ab   :  { %5226 = vmatpush.bf16.msrb.mxu0 %v7596_v40  ;;  %5202 = vmatpush.bf16.msra.mxu2 %v7556_v28  ;;  %v7777_v40 = vor.u32 %v8332_v49, %v7776_v48  ;;  %v8323_v28 = vld [vmem:[%s12357_s4 + $0x8c] sm:$0xf]  ;;  %v7722_v49 = vld [vmem:[%s12357_s4 + $0x58] sm:$0xf0] }
0x11ac   :  { %5211 = vmatpush.bf16.msra.mxu3 %v7624_v56  ;;  %v7792_v56 = vld [vmem:[%s12357_s4 + $0xe0] sm:$0xf]  ;;  %5241 = vmatpush.bf16.msrb.mxu1 %v7568_v1  ;;  %v7757_v38 = vor.u32 %v8323_v28, %v7754_v32  ;;  %v8320_v1 = vld [vmem:[%s12357_s4 + $0x6c] sm:$0xf0] }
0x11ad   :  { %v7793_v14 = vor.u32 %v8336_v26, %v7792_v56  ;;  %v7729_v42 = vor.u32 %v8320_v1, %v7728_v57  ;;  %v8321_v56 = vld [vmem:[%s12357_s4 + $0x74] sm:$0xf0]  ;;  %v7675_v57 = vld [vmem:[%s12356_s3 + $0xc8] sm:$0xff] }
0x11af   :  { %5227 = vmatpush.bf16.msrb.mxu0 %v7580_v3  ;;  %5203 = vmatpush.bf16.msra.mxu2 %v7540_v6  ;;  %v7761_v3 = vor.u32 %v8328_v60, %v7760_v15  ;;  %v7680_v60 = vld [vmem:[%s12357_s4] sm:$0xf] }
0x11b0   :  { %5212 = vmatpush.bf16.msra.mxu3 %v7608_v29  ;;  %v7552_v29 = vor.u32 %v8275_v0, %v7549_v19  ;;  %v7730_v0 = vld [vmem:[%s12357_s4 + $0x70] sm:$0xf0]  ;;  %v7736_v19 = vld [vmem:[%s12357_s4 + $0x68] sm:$0xf] }
0x11b1   :  { %v7733_v26 = vor.u32 %v8318_v34, %v7730_v0  ;;  %v7737_v6 = vor.u32 %v8321_v56, %v7736_v19  ;;  %v8343_v34 = vld [vmem:[%s12360_s7 + $0x28] sm:$0xff] }
0x11b2   :  { %5242 = vmatpush.bf16.msrb.mxu1 %v7552_v29  ;;  %v7720_v29 = vld [vmem:[%s12357_s4 + $0x48] sm:$0xf] }
0x11b3   :  { %5228 = vmatpush.bf16.msrb.mxu0 %v7564_v46  ;;  %5465 = vmatpush.bf16.msrb.mxu2 %v7793_v14  ;;  %v7749_v46 = vor.u32 %v8322_v27, %v7746_v16  ;;  %v8317_v14 = vld [vmem:[%s12357_s4 + $0x54] sm:$0xf0] }
0x11b4   :  { %5213 = vmatpush.bf16.msra.mxu3 %v7592_v30  ;;  %v7786_v30 = vld [vmem:[%s12357_s4 + $0xd8] sm:$0xf0]  ;;  %v7721_v48 = vor.u32 %v8317_v14, %v7720_v29  ;;  %v8600_v14 = vld [vmem:[%s12358_s5] sm:$0xff] }
0x11b5   :  { %v7789_v59 = vor.u32 %v8331_v54, %v7786_v30  ;;  %v8313_v54 = vld [vmem:[%s12357_s4 + $0x34] sm:$0xf0]  ;;  %v8311_v30 = vld [vmem:[%s12357_s4 + $0x2c] sm:$0xf] }
0x11b6   :  { %5504 = vmatpush.bf16.msra.mxu1 %v7805_v58  ;;  %v8310_v58 = vld [vmem:[%s12357_s4 + $0x24] sm:$0xf]  ;;  %v7705_v15 = vor.u32 %v8313_v54, %v7704_v11  ;;  %v8345_v27 = vld [vmem:[%s12360_s7 + $0x38] sm:$0xff] }
0x11b7   :  { %5229 = vmatpush.bf16.msrb.mxu0 %v7548_v44  ;;  %5466 = vmatpush.bf16.msrb.mxu2 %v7777_v40  ;;  %v7717_v44 = vor.u32 %v8314_v61, %v7714_v20  ;;  %v7706_v40 = vld [vmem:[%s12357_s4 + $0x38] sm:$0xf0] }
0x11b8   :  { %5214 = vmatpush.bf16.msra.mxu3 %v7576_v39  ;;  %v7770_v39 = vld [vmem:[%s12357_s4 + $0xb8] sm:$0xf0]  ;;  %v7709_v12 = vor.u32 %v8311_v30, %v7706_v40  ;;  %v8339_v40 = vld [vmem:[%s12360_s7 + $0x8] sm:$0xff] }
0x11b9   :  { %v7773_v9 = vor.u32 %v8327_v22, %v7770_v39  ;;  %v8307_v22 = vld [vmem:[%s12357_s4 + $0xc] sm:$0xf]  ;;  %v7690_v39 = vld [vmem:[%s12357_s4 + $0x18] sm:$0xf0] }
0x11ba   :  { %5505 = vmatpush.bf16.msra.mxu1 %v7789_v59  ;;  %v8306_v59 = vld [vmem:[%s12357_s4 + $0x4] sm:$0xf]  ;;  %v8341_v29 = vld [vmem:[%s12360_s7 + $0x18] sm:$0xff] }
0x11bb   :  { %5491 = vmatpush.bf16.msra.mxu0 %v7801_v51  ;;  %5467 = vmatpush.bf16.msrb.mxu2 %v7761_v3 }
0x11bc   :  { %5215 = vmatpush.bf16.msra.mxu3 %v7560_v45  ;;  %v7745_v45 = vor.u32 %v8324_v7, %v7744_v5  ;;  %v7689_v5 = vor.u32 %v8309_v18, %v7688_v41  ;;  %v7693_v7 = vor.u32 %v8307_v22, %v7690_v39 }
0x11be   :  { %5506 = vmatpush.bf16.msra.mxu1 %v7773_v9 }
0x11bf   :  { %5492 = vmatpush.bf16.msra.mxu0 %v7785_v13  ;;  %5468 = vmatpush.bf16.msrb.mxu2 %v7745_v45  ;;  %v8308_v13 = vld [vmem:[%s12357_s4 + $0xc] sm:$0xf0] }
0x11c0   :  { %5216 = vmatpush.bf16.msra.mxu3 %v7544_v31  ;;  %v7741_v31 = vor.u32 %v8319_v36, %v7738_v55  ;;  %v7681_v3 = vor.u32 %v8308_v13, %v7680_v60  ;;  %v8344_v45 = vld [vmem:[%s12360_s7 + $0x30] sm:$0xff]  ;;  %v8599_v36 = vld [vmem:[%s12358_s5 + $0x18] sm:$0xff] }
0x11c2   :  { %5507 = vmatpush.bf16.msra.mxu1 %v7757_v38  ;;  %v7674_v38 = vld [vmem:[%s12356_s3 + $0xc0] sm:$0xff] }
0x11c3   :  { %5493 = vmatpush.bf16.msra.mxu0 %v7769_v8  ;;  %5469 = vmatpush.bf16.msrb.mxu2 %v7729_v42 }
0x11c4   :  { %5478 = vmatpush.bf16.msrb.mxu3 %v7797_v47  ;;  %v8315_v47 = vld [vmem:[%s12357_s4 + $0x4c] sm:$0xf] }
0x11c5   :  { %v7725_v51 = vor.u32 %v8315_v47, %v7722_v49 }
0x11c6   :  { %5508 = vmatpush.bf16.msra.mxu1 %v7741_v31 }
0x11c7   :  { %5494 = vmatpush.bf16.msra.mxu0 %v7753_v53 }
0x11ca   :  { %5509 = vmatpush.bf16.msra.mxu1 %v7725_v51  ;;  %v8340_v51 = vld [vmem:[%s12360_s7 + $0x10] sm:$0xff] }
0x11cb   :  { %5495 = vmatpush.bf16.msra.mxu0 %v7737_v6 }
0x11ce   :  { %5510 = vmatpush.bf16.msra.mxu1 %v7709_v12 }
0x11cf   :  { %5496 = vmatpush.bf16.msra.mxu0 %v7721_v48  ;;  %v8601_v48 = vld [vmem:[%s12358_s5 + $0x8] sm:$0xff] }
0x11d2   :  { %5511 = vmatpush.bf16.msra.mxu1 %v7693_v7 }
0x11d3   :  { %5497 = vmatpush.bf16.msra.mxu0 %v7705_v15  ;;  %v7676_v15 = vld [vmem:[%s12356_s3 + $0xd0] sm:$0xff] }
0x11d7   :  { %5498 = vmatpush.bf16.msra.mxu0 %v7689_v5  ;;  %v8602_v5 = vld [vmem:[%s12358_s5 + $0x10] sm:$0xff] }
0x1217   :  { %v4996_v24 = vpop.xlane.xlu1 %4995 }
0x1218   :  { %vm4997_vm12 = vcmp.eq.f32.partialorder %v11897_v63, %v4996_v24  ;;  %v7778_v63 = vld [vmem:[%s12357_s4 + $0xd0] sm:$0xf0]  ;;  %v7713_v24 = vor.u32 %v8316_v52, %v7712_v17  ;;  %v8342_v17 = vld [vmem:[%s12360_s7 + $0x20] sm:$0xff] }
0x1219   :  { %v4998_v50 = vsel %vm4997_vm12, %v9788_v37, 128.0  ;;  %v7781_v43 = vor.u32 %v8330_v10, %v7778_v63  ;;  %v7696_v10 = vld [vmem:[%s12357_s4 + $0x20] sm:$0xf]  ;;  %v7698_v63 = vld [vmem:[%s12357_s4 + $0x30] sm:$0xf0] }
0x121a   :  { %4999 = vmin.xlane.f32.xlu2 %v4998_v50  ;;  %v8312_v50 = vld [vmem:[%s12357_s4 + $0x2c] sm:$0xf0]  ;;  %5470 = vmatpush.bf16.msrb.mxu2 %v7713_v24  ;;  %s7673_s4 = sld [smem:[#allocation2 + $0x6]] }
0x121b   :  { %5479 = vmatpush.bf16.msrb.mxu3 %v7781_v43  ;;  %v7697_v33 = vor.u32 %v8312_v50, %v7696_v10  ;;  %v7701_v43 = vor.u32 %v8310_v58, %v7698_v63 }
0x121e   :  { %5471 = vmatpush.bf16.msrb.mxu2 %v7697_v33 }
0x121f   :  { %5480 = vmatpush.bf16.msrb.mxu3 %v7765_v35  ;;  %v7685_v35 = vor.u32 %v8306_v59, %v7682_v62  ;;  %v8338_v59 = vld [vmem:[%s12360_s7] sm:$0xff] }
0x1220   :  { %s5259_s15 = ssub.f32 1.0, %s7673_s4  ;;  %v5254_v16 = vstv %s7673_s4 }
0x1221   :  { %v5255_v42 = vmul.f32 %v7674_v38, %v5254_v16  ;;  %v5256_v19 = vmul.f32 %v7675_v57, %v5254_v16  ;;  %v5257_v62 = vmul.f32 %v7676_v15, %v5254_v16 }
0x1222   :  { %5472 = vmatpush.bf16.msrb.mxu2 %v7681_v3  ;;  %v5260_v21 = vstv %s5259_s15 }
0x1223   :  { %5481 = vmatpush.bf16.msrb.mxu3 %v7749_v46 }
0x1227   :  { %5482 = vmatpush.bf16.msrb.mxu3 %v7733_v26 }
0x122b   :  { %5483 = vmatpush.bf16.msrb.mxu3 %v7717_v44 }
0x122f   :  { %5484 = vmatpush.bf16.msrb.mxu3 %v7701_v43 }
0x1233   :  { %5485 = vmatpush.bf16.msrb.mxu3 %v7685_v35 }
0x128d   :  { %v5000_v8 = vpop.xlane.xlu2 %4999 }
0x128e   :  { %vm5001_vm13 = vcmp.eq.f32.partialorder %v9788_v37, %v5000_v8 }
0x128f   :  { %vm7665_vm14 = vmpackc.low %vm5001_vm13, %vm5001_vm13 }
0x1290   :  { %7666 = vmatmul.msk.bf16.vlgmr.msra.gmra.mxu2 %vm7665_vm14, %v8620_v2  ;;  %7668 = vmatmul.msk.bf16.vlgmr.msra.gmra.mxu3 %vm7665_vm14, %v8620_v2 }
0x1291   :  { %7670 = vmatmul.msk.bf16.vlgmr.msrb.gmra.mxu0 %vm7665_vm14, %v8620_v2  ;;  %7672 = vmatmul.msk.bf16.vlgmr.msrb.gmra.mxu1 %vm7665_vm14, %v8620_v2  ;;  %v7677_v2 = vld [vmem:[%s12356_s3 + $0xd8] sm:$0xff] }
0x1292   :  { %5649 = vmatpush.bf16.msra.mxu2 %v8345_v27  ;;  %v5258_v32 = vmul.f32 %v7677_v2, %v5254_v16 }
0x1296   :  { %5650 = vmatpush.bf16.msra.mxu2 %v8344_v45 }
0x129a   :  { %5651 = vmatpush.bf16.msra.mxu2 %v8343_v34 }
0x129e   :  { %5652 = vmatpush.bf16.msra.mxu2 %v8342_v17 }
0x12a0   :  { %5473 = vmatmul.bf16.vlgmr.msrb.gmra.mxu2 %v11888_v25  ;;  %5486 = vmatmul.bf16.vlgmr.msrb.gmra.mxu3 %v11888_v25 }
0x12a1   :  { %5499 = vmatmul.bf16.vlgmr.msra.gmra.mxu0 %v11888_v25  ;;  %5512 = vmatmul.bf16.vlgmr.msra.gmra.mxu1 %v11888_v25 }
0x12a2   :  { %5653 = vmatpush.bf16.msra.mxu2 %v8341_v29 }
0x12a6   :  { %5654 = vmatpush.bf16.msra.mxu2 %v8340_v51 }
0x12aa   :  { %5655 = vmatpush.bf16.msra.mxu2 %v8339_v40 }
0x12ae   :  { %5656 = vmatpush.bf16.msra.mxu2 %v8338_v59 }
0x130e   :  { %v12295_v9 = vpop.f32.mrf.mxu0  ;;  %v5244_v37 = vpop.f32.mrf.mxu1 }
0x130f   :  { %v5264_v25 = vmul.f32 %v5260_v21, %v5244_v37  ;;  %v5263_v41 = vmul.f32 %v5260_v21, %v12295_v9 }
0x1311   :  { %v5268_v1 = vadd.f32 %v5264_v25, %v5258_v32  ;;  %v5267_v35 = vadd.f32 %v5263_v41, %v5257_v62 }
0x1313   :  { %v5205_v4 = vpop.f32.mrf.mxu2  ;;  %v5218_v28 = vpop.f32.mrf.mxu3  ;;  %v5272_v55 = vadd.f32 %v8599_v36, %v5268_v1  ;;  %v5271_v7 = vadd.f32 %v8602_v5, %v5267_v35 }
0x1314   :  { %v5261_v0 = vmul.f32 %v5260_v21, %v5205_v4  ;;  %v5262_v56 = vmul.f32 %v5260_v21, %v5218_v28 }
0x1316   :  { %v5233_v46 = vpop.f32.mrf.mxu0  ;;  %v5246_v53 = vpop.f32.mrf.mxu1  ;;  %v5265_v31 = vadd.f32 %v5261_v0, %v5255_v42  ;;  %v5266_v52 = vadd.f32 %v5262_v56, %v5256_v19 }
0x1318   :  { %v5269_v47 = vadd.f32 %v8600_v14, %v5265_v31  ;;  %v5270_v49 = vadd.f32 %v8601_v48, %v5266_v52 }
0x131b   :  { %v5207_v26 = vpop.f32.mrf.mxu2  ;;  %v5220_v6 = vpop.f32.mrf.mxu3 }
0x131e   :  { %v5500_v61 = vpop.f32.mrf.mxu0  ;;  %v5513_v20 = vpop.f32.mrf.mxu1 }
0x131f   :  { %v5520_v24 = vadd.f32 %v5513_v20, %v5272_v55  ;;  %v5519_v27 = vadd.f32 %v5500_v61, %v5271_v7 }
0x1321   :  { %v7808_v44 = vmul.f32 -1.442695, %v5520_v24 }
0x1323   :  { %8573 = vpow2.f32 %v7808_v44  ;;  %v5474_v10 = vpop.f32.mrf.mxu2  ;;  %v5487_v50 = vpop.f32.mrf.mxu3 }
0x1324   :  { %v5517_v58 = vadd.f32 %v5474_v10, %v5269_v47  ;;  %v5518_v63 = vadd.f32 %v5487_v50, %v5270_v49 }
0x1326   :  { %v7806_v11 = vmul.f32 -1.442695, %v5517_v58  ;;  %v7807_v33 = vmul.f32 -1.442695, %v5518_v63  ;;  %v5502_v54 = vpop.f32.mrf.mxu0  ;;  %v5515_v30 = vpop.f32.mrf.mxu1 }
0x1328   :  { %8575 = vpow2.f32 %v7806_v11 }
0x1329   :  { %v8574_v43 = vpop.eup %8573  ;;  %8577 = vpow2.f32 %v7807_v33 }
0x132a   :  { %v5563_v12 = vadd.f32 1.0, %v8574_v43 }
0x132b   :  { %v5476_v60 = vpop.f32.mrf.mxu2  ;;  %v5489_v13 = vpop.f32.mrf.mxu3 }
0x132c   :  { %8579 = vrcp.f32 %v5563_v12  ;;  %v5575_v20 = vand.u32 2147483648, %v5563_v12  ;;  %vm5569_vm8 = vweird.f32 %v5563_v12  ;;  %v5573_v24 = vand.u32 2147483647, %v5563_v12 }
0x132e   :  { %v8576_v18 = vpop.eup %8575  ;;  %v5576_v29 = vor.u32 1.1754944e-38, %v5575_v20  ;;  %vm5574_vm10 = vcmp.eq.f32.partialorder %v5573_v24, 8.507059e+37 }
0x132f   :  { %v8578_v22 = vpop.eup %8577  ;;  %v5524_v39 = vadd.f32 1.0, %v8576_v18 }
0x1330   :  { %v5543_v3 = vadd.f32 1.0, %v8578_v22 }
0x1331   :  { %8581 = vrcp.f32 %v5524_v39  ;;  %v5536_v28 = vand.u32 2147483648, %v5524_v39  ;;  %v5534_v45 = vand.u32 2147483647, %v5524_v39  ;;  %vm5530_vm1 = vweird.f32 %v5524_v39 }
0x1332   :  { %8583 = vrcp.f32 %v5543_v3  ;;  %v8580_v8 = vpop.eup %8579  ;;  %v5555_v46 = vand.u32 2147483648, %v5543_v3  ;;  %v5553_v38 = vand.u32 2147483647, %v5543_v3  ;;  %vm5549_vm3 = vweird.f32 %v5543_v3 }
0x1333   :  { %v5565_v21 = vmul.f32 %v8580_v8, %v5563_v12  ;;  %8585 = vtanh.f32 %v5519_v27  ;;  %v5537_v34 = vor.u32 1.1754944e-38, %v5536_v28  ;;  %vm5535_vm4 = vcmp.eq.f32.partialorder %v5534_v45, 8.507059e+37 }
0x1334   :  { %v5556_v19 = vor.u32 1.1754944e-38, %v5555_v46  ;;  %vm5554_vm6 = vcmp.eq.f32.partialorder %v5553_v38, 8.507059e+37  ;;  %vm5570_vm7 = vweird.f32 %v8580_v8 }
0x1335   :  { %v5566_v57 = vsub.f32 1.0, %v5565_v21  ;;  %vm5571_vm9 = vmor %vm5569_vm8, %vm5570_vm7 }
0x1337   :  { %v8582_v37 = vpop.eup %8581  ;;  %v5567_v36 = vmul.f32 %v8580_v8, %v5566_v57 }
0x1338   :  { %v8584_v16 = vpop.eup %8583  ;;  %v5526_v2 = vmul.f32 %v8582_v37, %v5524_v39  ;;  %vm5531_vm15 = vweird.f32 %v8582_v37 }
0x1339   :  { %v5545_v9 = vmul.f32 %v8584_v16, %v5543_v3  ;;  %vm5550_vm0 = vweird.f32 %v8584_v16  ;;  %vm5532_vm2 = vmor %vm5530_vm1, %vm5531_vm15  ;;  %v8586_v56 = vpop.eup %8585  ;;  %v5568_v61 = vadd.f32 %v8580_v8, %v5567_v36 }
0x133a   :  { %v5527_v4 = vsub.f32 1.0, %v5526_v2  ;;  %vm5551_vm5 = vmor %vm5549_vm3, %vm5550_vm0 }
0x133b   :  { %v5546_v32 = vsub.f32 1.0, %v5545_v9  ;;  %v5572_v44 = vsel %vm5571_vm9, %v8580_v8, %v5568_v61 }
0x133c   :  { %v5528_v25 = vmul.f32 %v8582_v37, %v5527_v4  ;;  %v5577_v47 = vsel %vm5574_vm10, %v5576_v29, %v5572_v44 }
0x133d   :  { %v5547_v53 = vmul.f32 %v8584_v16, %v5546_v32 }
0x133e   :  { %v5529_v1 = vadd.f32 %v8582_v37, %v5528_v25 }
0x133f   :  { %v5548_v42 = vadd.f32 %v8584_v16, %v5547_v53 }
0x1340   :  { %v5533_v0 = vsel %vm5532_vm2, %v8582_v37, %v5529_v1 }
0x1341   :  { %v5538_v26 = vsel %vm5535_vm4, %v5537_v34, %v5533_v0  ;;  %v5552_v6 = vsel %vm5551_vm5, %v8584_v16, %v5548_v42 }
0x1342   :  { %v5580_v55 = vmul.f32 %v8586_v56, %v5538_v26  ;;  %v5557_v17 = vsel %vm5554_vm6, %v5556_v19, %v5552_v6 }
0x1343   :  { %v5579_v31 = vmul.f32 %v5557_v17, %v11885_v23  ;;  %v8603_v23 = vld [vmem:[%s12361_s8] sm:$0xff] }
0x1345   :  { %v5581_v52 = vadd.f32 %v5580_v55, %v5579_v31 }
0x1347   :  { %8587 = vtanh.f32 %v5581_v52 }
0x134d   :  { %v8588_v14 = vpop.eup %8587 }
0x134e   :  { %v5583_v48 = vmul.f32 %v8588_v14, %v5577_v47 }
0x1350   :  { %v5584_v49 = vpack.c.bf16 %v5583_v48, %v5583_v48 }
0x1352   :  { %5657 = vmatmul.bf16.vlgmr.msra.gmra.mxu2 %v5584_v49 }
0x13d5   :  { %v5658_v10 = vpop.f32.mrf.mxu2 }
0x13d6   :  { %v5659_v50 = vadd.f32 %v8603_v23, %v5658_v10 }
0x13d8   :  { %7841 = vst [vmem:[%s12362_s9 + $0x30] sm:$0xff] %v5659_v50 }
0x13dd   :  { %v5660_v51 = vpop.f32.mrf.mxu2 }
0x13de   :  { %5668 = vsyncpa [#allocation3], 1 }

</bundles_post_ra>
